<compile_context>
chip_gen: v7x
topology: tpu7x:2x2x1
jax: 0.10.0
libtpu: 0.0.40
codegen_flags: <defaults>
</compile_context>

<pallas_src>
import math
from functools import partial

import jax
import jax.numpy as jnp
from jax.experimental import pallas as pl
from jax.experimental.pallas import tpu as pltpu


# ----------------------------------------------------------------------------
# Fused Pallas kernel: entire LCAModel forward for one batch element.
# ----------------------------------------------------------------------------
def _lca_kernel(x_ref, smat5_ref, wt5_ref, pwk_ref, bpw_ref,
                smat7_ref, wt7_ref, bdwd_ref,
                p1k_ref, bp1_ref, p2k_ref, bp2_ref,
                o_ref, *, H, W, C):
    WC = W * C
    x = x_ref[0].astype(jnp.float32)                       # (H, W*C), lane-dense

    def dwconv(v, smat_ref, wt_ref, K, dil):
        """Depthwise KxK conv, stride 1, dilation `dil`, 'same' zero padding."""
        p = dil * (K - 1) // 2
        zpad = jnp.zeros((H, p * C), jnp.float32)
        vp = jnp.concatenate([zpad, v, zpad], axis=1)      # (H, (W+2p)*C), in VMEM
        acc = None
        for di in range(K):
            # Row shift with zero fill: 0/1 shift matrix on the (idle) MXU
            # -> no sublane-unaligned slices.
            vr = jnp.dot(smat_ref[di], vp, preferred_element_type=jnp.float32)
            for dj in range(K):
                s = dj * dil * C                           # static lane offset
                t = vr[:, s:s + WC] * wt_ref[di * K + dj]  # per-channel tap weight
                acc = t if acc is None else acc + t        # init from first tap
        return acc

    # ---- attn branch: dw5x5 -> pw1x1 (dw-bias + BN_attn folded in) -> dw7x7 dil3
    attn = dwconv(x, smat5_ref, wt5_ref, 5, 1)
    attn = jnp.dot(attn, pwk_ref[...], preferred_element_type=jnp.float32)
    attn = attn + bpw_ref[...]
    attn = dwconv(attn, smat7_ref, wt7_ref, 7, 3) + bdwd_ref[...]

    # ---- adaptive branch: proj1 -> GELU -> (BN_adpt folded into) proj2 -> sigmoid
    ad = jnp.dot(x, p1k_ref[...], preferred_element_type=jnp.float32) + bp1_ref[...]
    ad = 0.5 * ad * (1.0 + jax.lax.erf(ad * (1.0 / math.sqrt(2.0))))   # exact GELU
    ad = jnp.dot(ad, p2k_ref[...], preferred_element_type=jnp.float32) + bp2_ref[...]
    ad = 1.0 / (1.0 + jnp.exp(-ad))                                    # sigmoid

    o_ref[0] = (ad * attn).astype(o_ref.dtype)             # lane-dense (W*C) store


# ----------------------------------------------------------------------------
# Host-side parameter packing: fold BN (eval mode) + biases, lay weights out
# for the lane-dense kernel.  One-time cost; keeps the kernel body minimal.
# ----------------------------------------------------------------------------
def _pack_params(p, H, W, eps=1e-5):
    C = p["w_pw"].shape[0]

    # BatchNorm folds (inference / running-stats semantics).
    s_attn = p["bn_attn_gamma"] / jnp.sqrt(p["bn_attn_var"] + eps)
    t_attn = p["bn_attn_beta"] - p["bn_attn_mean"] * s_attn
    s_adpt = p["bn_adpt_gamma"] / jnp.sqrt(p["bn_adpt_var"] + eps)
    t_adpt = p["bn_adpt_beta"] - p["bn_adpt_mean"] * s_adpt

    # pwconv absorbs the dwconv bias and BN_attn:  BN(Wpw·(y + b_dw) + b_pw).
    b_pw_fold = p["b_pw"] + jnp.sum(p["w_pw"] * p["b_dw"][None, :], axis=1)
    w_pw_eff = p["w_pw"] * s_attn[:, None]                       # (C, C)
    b_pw_eff = s_attn * b_pw_fold + t_attn                       # (C,)

    # proj2 absorbs BN_adpt:  Wp2·(s∘y + t) + b_p2.
    w_p2_eff = p["w_p2"] * s_adpt[None, :]                       # (C, C4)
    b_p2_eff = p["b_p2"] + jnp.sum(p["w_p2"] * t_adpt[None, :], axis=1)

    def tile_dw(w):                       # (C,1,K,K) -> (K*K, W*C) lane-tiled taps
        K = w.shape[-1]
        return jnp.stack([jnp.tile(w[:, 0, di, dj], W)
                          for di in range(K) for dj in range(K)])

    def shift_mats(K, dil):               # (K, H, H) 0/1 row-shift matrices
        pad = dil * (K - 1) // 2
        return jnp.stack([jnp.eye(H, k=dil * di - pad, dtype=jnp.float32)
                          for di in range(K)])

    eyeW = jnp.eye(W, dtype=jnp.float32)
    return dict(
        smat5=shift_mats(5, 1), wt5=tile_dw(p["w_dw"]),
        pwk=jnp.kron(eyeW, w_pw_eff.T), bpw=jnp.tile(b_pw_eff, W)[None, :],
        smat7=shift_mats(7, 3), wt7=tile_dw(p["w_dwd"]),
        bdwd=jnp.tile(p["b_dwd"], W)[None, :],
        p1k=jnp.kron(eyeW, p["w_p1"].T), bp1=jnp.tile(p["b_p1"], W)[None, :],
        p2k=jnp.kron(eyeW, w_p2_eff.T), bp2=jnp.tile(b_p2_eff, W)[None, :],
    )


# ----------------------------------------------------------------------------
# LCAModel forward wrapper (NCHW in / NCHW out).
# ----------------------------------------------------------------------------
def lca_forward(x_nchw, params, *, eps=1e-5):
    B, C, H, W = x_nchw.shape
    WC = W * C
    w = _pack_params(params, H, W, eps)

    # NCHW -> lane-dense (B, H, W*C): last dim is a multiple of 128.
    x2d = jnp.transpose(x_nchw, (0, 2, 3, 1)).reshape(B, H, WC)

    kernel = partial(_lca_kernel, H=H, W=W, C=C)
    full = lambda a: pl.BlockSpec(a.shape, lambda b, _nd=a.ndim: (0,) * _nd)

    out2d = pl.pallas_call(
        kernel,
        out_shape=jax.ShapeDtypeStruct((B, H, WC), x_nchw.dtype),
        grid=(B,),
        in_specs=[
            pl.BlockSpec((1, H, WC), lambda b: (b, 0, 0)),
            full(w["smat5"]), full(w["wt5"]), full(w["pwk"]), full(w["bpw"]),
            full(w["smat7"]), full(w["wt7"]), full(w["bdwd"]),
            full(w["p1k"]), full(w["bp1"]), full(w["p2k"]), full(w["bp2"]),
        ],
        out_specs=pl.BlockSpec((1, H, WC), lambda b: (b, 0, 0)),
        compiler_params=pltpu.CompilerParams(
            dimension_semantics=("parallel",),
            vmem_limit_bytes=32 * 1024 * 1024),
    )(x2d, w["smat5"], w["wt5"], w["pwk"], w["bpw"],
      w["smat7"], w["wt7"], w["bdwd"],
      w["p1k"], w["bp1"], w["p2k"], w["bp2"])

    return jnp.transpose(out2d.reshape(B, H, W, C), (0, 3, 1, 2))


# ----------------------------------------------------------------------------
# Deterministic parameter construction (mirrors LCAModel.__init__ shapes).
# ----------------------------------------------------------------------------
def init_lca_params(key, dim):
    C, C4 = dim, dim // 4
    ks = jax.random.split(key, 16)

    def u(k, shape, fan_in):
        b = 1.0 / math.sqrt(fan_in)
        return jax.random.uniform(k, shape, jnp.float32, -b, b)

    return {
        "w_dw":  u(ks[0], (C, 1, 5, 5), 25),  "b_dw":  u(ks[1], (C,), 25),
        "w_pw":  u(ks[2], (C, C), C),         "b_pw":  u(ks[3], (C,), C),
        "w_dwd": u(ks[4], (C, 1, 7, 7), 49),  "b_dwd": u(ks[5], (C,), 49),
        "w_p1":  u(ks[6], (C4, C), C),        "b_p1":  u(ks[7], (C4,), C),
        "w_p2":  u(ks[8], (C, C4), C4),       "b_p2":  u(ks[9], (C,), C4),
        # BatchNorm (eval mode): affine + non-trivial running stats.
        "bn_attn_gamma": 1.0 + 0.1 * jax.random.normal(ks[10], (C,), jnp.float32),
        "bn_attn_beta":  0.1 * jax.random.normal(ks[11], (C,), jnp.float32),
        "bn_attn_mean":  0.1 * jax.random.normal(ks[12], (C,), jnp.float32),
        "bn_attn_var":   1.0 + 0.1 * jax.random.uniform(ks[13], (C,), jnp.float32),
        "bn_adpt_gamma": 1.0 + 0.1 * jax.random.normal(ks[14], (C4,), jnp.float32),
        "bn_adpt_beta":  0.1 * jax.random.normal(ks[15], (C4,), jnp.float32),
        "bn_adpt_mean":  jnp.linspace(-0.1, 0.1, C4, dtype=jnp.float32),
        "bn_adpt_var":   jnp.linspace(0.9, 1.1, C4, dtype=jnp.float32),
    }


# ----------------------------------------------------------------------------
# Pure-JAX reference (validation only; eval-mode BN, exact erf GELU).
# ----------------------------------------------------------------------------
def _ref_lca(x, p, eps=1e-5):
    dn = ("NCHW", "OIHW", "NCHW")
    hp = jax.lax.Precision.HIGHEST
    C = x.shape[1]

    def conv1x1(v, w, b):
        y = jax.lax.conv_general_dilated(v, w[:, :, None, None], (1, 1),
                                         ((0, 0), (0, 0)), dimension_numbers=dn,
                                         precision=hp)
        return y + b[None, :, None, None]

    attn = jax.lax.conv_general_dilated(x, p["w_dw"], (1, 1), ((2, 2), (2, 2)),
                                        dimension_numbers=dn,
                                        feature_group_count=C, precision=hp)
    attn = attn + p["b_dw"][None, :, None, None]
    attn = conv1x1(attn, p["w_pw"], p["b_pw"])
    s = p["bn_attn_gamma"] / jnp.sqrt(p["bn_attn_var"] + eps)
    t = p["bn_attn_beta"] - p["bn_attn_mean"] * s
    attn = attn * s[None, :, None, None] + t[None, :, None, None]
    attn = jax.lax.conv_general_dilated(attn, p["w_dwd"], (1, 1), ((9, 9), (9, 9)),
                                        rhs_dilation=(3, 3), dimension_numbers=dn,
                                        feature_group_count=C, precision=hp)
    attn = attn + p["b_dwd"][None, :, None, None]

    ad = conv1x1(x, p["w_p1"], p["b_p1"])
    ad = 0.5 * ad * (1.0 + jax.lax.erf(ad / jnp.sqrt(2.0)))
    s2 = p["bn_adpt_gamma"] / jnp.sqrt(p["bn_adpt_var"] + eps)
    t2 = p["bn_adpt_beta"] - p["bn_adpt_mean"] * s2
    ad = ad * s2[None, :, None, None] + t2[None, :, None, None]
    ad = conv1x1(ad, p["w_p2"], p["b_p2"])
    ad = 1.0 / (1.0 + jnp.exp(-ad))
    return ad * attn


if __name__ == "__main__":
    B, C, H, W = 2, 32, 16, 16            # dim=32 -> dim//4 = 8

    key = jax.random.PRNGKey(0)
    kx, kp = jax.random.split(key)
    x = jax.random.normal(kx, (B, C, H, W), jnp.float32)
    params = init_lca_params(kp, C)

    fwd = jax.jit(lca_forward)
    out = jax.block_until_ready(fwd(x, params))
    assert out.shape == (B, C, H, W)

    # Correctness check vs pure-JAX reference. Tolerance allows for the
    # platform-dependent precision of in-kernel f32 MXU matmuls.
    ref = _ref_lca(x, params)
    if not jnp.allclose(out, ref, atol=2e-2, rtol=2e-2):
        err = float(jnp.max(jnp.abs(out - ref)))
        raise AssertionError(f"mismatch vs reference, max abs err {err}")

    print("KERNEL_OK")
</pallas_src>

<mosaic_0001>
module attributes {stable_mosaic.version = 11 : i64} {
  func.func @_lca_kernel(%arg0: i32, %arg1: memref<1x16x512xf32, #tpu.memory_space<vmem>>, %arg2: memref<5x16x16xf32, #tpu.memory_space<vmem>>, %arg3: memref<25x512xf32, #tpu.memory_space<vmem>>, %arg4: memref<512x512xf32, #tpu.memory_space<vmem>>, %arg5: memref<1x512xf32, #tpu.memory_space<vmem>>, %arg6: memref<7x16x16xf32, #tpu.memory_space<vmem>>, %arg7: memref<49x512xf32, #tpu.memory_space<vmem>>, %arg8: memref<1x512xf32, #tpu.memory_space<vmem>>, %arg9: memref<512x128xf32, #tpu.memory_space<vmem>>, %arg10: memref<1x128xf32, #tpu.memory_space<vmem>>, %arg11: memref<128x512xf32, #tpu.memory_space<vmem>>, %arg12: memref<1x512xf32, #tpu.memory_space<vmem>>, %arg13: memref<1x16x512xf32, #tpu.memory_space<vmem>>) attributes {dimension_semantics = [#tpu.dimension_semantics<parallel>], iteration_bounds = array<i64: 2>, scalar_prefetch = 0 : i64, scratch_operands = 0 : i64, tpu.core_type = #tpu.core_type<tc>, window_params = [{transform_indices = @transform_0, window_bounds = array<i64: 1, 16, 512>}, {pipeline_mode = #tpu.pipeline_mode<synchronous>, transform_indices = @transform_1, window_bounds = array<i64: 5, 16, 16>}, {pipeline_mode = #tpu.pipeline_mode<synchronous>, transform_indices = @transform_2, window_bounds = array<i64: 25, 512>}, {pipeline_mode = #tpu.pipeline_mode<synchronous>, transform_indices = @transform_3, window_bounds = array<i64: 512, 512>}, {pipeline_mode = #tpu.pipeline_mode<synchronous>, transform_indices = @transform_4, window_bounds = array<i64: 1, 512>}, {pipeline_mode = #tpu.pipeline_mode<synchronous>, transform_indices = @transform_5, window_bounds = array<i64: 7, 16, 16>}, {pipeline_mode = #tpu.pipeline_mode<synchronous>, transform_indices = @transform_6, window_bounds = array<i64: 49, 512>}, {pipeline_mode = #tpu.pipeline_mode<synchronous>, transform_indices = @transform_7, window_bounds = array<i64: 1, 512>}, {pipeline_mode = #tpu.pipeline_mode<synchronous>, transform_indices = @transform_8, window_bounds = array<i64: 512, 128>}, {pipeline_mode = #tpu.pipeline_mode<synchronous>, transform_indices = @transform_9, window_bounds = array<i64: 1, 128>}, {pipeline_mode = #tpu.pipeline_mode<synchronous>, transform_indices = @transform_10, window_bounds = array<i64: 128, 512>}, {pipeline_mode = #tpu.pipeline_mode<synchronous>, transform_indices = @transform_11, window_bounds = array<i64: 1, 512>}, {transform_indices = @transform_12, window_bounds = array<i64: 1, 16, 512>}]} {
    %c0 = arith.constant 0 : index
    %c0_0 = arith.constant 0 : index
    %c0_1 = arith.constant 0 : index
    %0 = vector.load %arg1[%c0, %c0_0, %c0_1] : memref<1x16x512xf32, #tpu.memory_space<vmem>>, vector<1x16x512xf32>
    %1 = vector.shape_cast %0 : vector<1x16x512xf32> to vector<16x512xf32>
    %cst = arith.constant 0.000000e+00 : f32
    %2 = vector.broadcast %cst : f32 to vector<16x64xf32>
    %3 = tpu.concatenate %2, %1, %2 in 1 : vector<16x64xf32>, vector<16x512xf32>, vector<16x64xf32> -> vector<16x640xf32>
    %c0_2 = arith.constant 0 : index
    %c0_3 = arith.constant 0 : index
    %c0_4 = arith.constant 0 : index
    %4 = vector.load %arg2[%c0_2, %c0_3, %c0_4] : memref<5x16x16xf32, #tpu.memory_space<vmem>>, vector<1x16x16xf32>
    %5 = vector.shape_cast %4 : vector<1x16x16xf32> to vector<16x16xf32>
    %cst_5 = arith.constant dense<0.000000e+00> : vector<16x640xf32>
    %6 = tpu.matmul %5, %3, %cst_5 {dimension_numbers = #tpu.dot_dimension_numbers<[1], [0], [0], [1], [0, 0, 1, 1], [], []>} : vector<16x16xf32>, vector<16x640xf32>, vector<16x640xf32> -> vector<16x640xf32>
    %7 = vector.extract_strided_slice %6 {offsets = [0, 0], sizes = [16, 512], strides = [1, 1]} : vector<16x640xf32> to vector<16x512xf32>
    %c0_6 = arith.constant 0 : index
    %c0_7 = arith.constant 0 : index
    %8 = vector.load %arg3[%c0_6, %c0_7] : memref<25x512xf32, #tpu.memory_space<vmem>>, vector<1x512xf32>
    %9 = vector.shape_cast %8 : vector<1x512xf32> to vector<512xf32>
    %10 = vector.shape_cast %9 : vector<512xf32> to vector<1x512xf32>
    %11 = vector.broadcast %10 : vector<1x512xf32> to vector<16x512xf32>
    %12 = arith.mulf %7, %11 : vector<16x512xf32>
    %13 = vector.extract_strided_slice %6 {offsets = [0, 32], sizes = [16, 512], strides = [1, 1]} : vector<16x640xf32> to vector<16x512xf32>
    %c1 = arith.constant 1 : index
    %c0_8 = arith.constant 0 : index
    %14 = vector.load %arg3[%c1, %c0_8] : memref<25x512xf32, #tpu.memory_space<vmem>>, vector<1x512xf32>
    %15 = vector.shape_cast %14 : vector<1x512xf32> to vector<512xf32>
    %16 = vector.shape_cast %15 : vector<512xf32> to vector<1x512xf32>
    %17 = vector.broadcast %16 : vector<1x512xf32> to vector<16x512xf32>
    %18 = arith.mulf %13, %17 : vector<16x512xf32>
    %19 = arith.addf %12, %18 : vector<16x512xf32>
    %20 = vector.extract_strided_slice %6 {offsets = [0, 64], sizes = [16, 512], strides = [1, 1]} : vector<16x640xf32> to vector<16x512xf32>
    %c2 = arith.constant 2 : index
    %c0_9 = arith.constant 0 : index
    %21 = vector.load %arg3[%c2, %c0_9] : memref<25x512xf32, #tpu.memory_space<vmem>>, vector<1x512xf32>
    %22 = vector.shape_cast %21 : vector<1x512xf32> to vector<512xf32>
    %23 = vector.shape_cast %22 : vector<512xf32> to vector<1x512xf32>
    %24 = vector.broadcast %23 : vector<1x512xf32> to vector<16x512xf32>
    %25 = arith.mulf %20, %24 : vector<16x512xf32>
    %26 = arith.addf %19, %25 : vector<16x512xf32>
    %27 = vector.extract_strided_slice %6 {offsets = [0, 96], sizes = [16, 512], strides = [1, 1]} : vector<16x640xf32> to vector<16x512xf32>
    %c3 = arith.constant 3 : index
    %c0_10 = arith.constant 0 : index
    %28 = vector.load %arg3[%c3, %c0_10] : memref<25x512xf32, #tpu.memory_space<vmem>>, vector<1x512xf32>
    %29 = vector.shape_cast %28 : vector<1x512xf32> to vector<512xf32>
    %30 = vector.shape_cast %29 : vector<512xf32> to vector<1x512xf32>
    %31 = vector.broadcast %30 : vector<1x512xf32> to vector<16x512xf32>
    %32 = arith.mulf %27, %31 : vector<16x512xf32>
    %33 = arith.addf %26, %32 : vector<16x512xf32>
    %34 = vector.extract_strided_slice %6 {offsets = [0, 128], sizes = [16, 512], strides = [1, 1]} : vector<16x640xf32> to vector<16x512xf32>
    %c4 = arith.constant 4 : index
    %c0_11 = arith.constant 0 : index
    %35 = vector.load %arg3[%c4, %c0_11] : memref<25x512xf32, #tpu.memory_space<vmem>>, vector<1x512xf32>
    %36 = vector.shape_cast %35 : vector<1x512xf32> to vector<512xf32>
    %37 = vector.shape_cast %36 : vector<512xf32> to vector<1x512xf32>
    %38 = vector.broadcast %37 : vector<1x512xf32> to vector<16x512xf32>
    %39 = arith.mulf %34, %38 : vector<16x512xf32>
    %40 = arith.addf %33, %39 : vector<16x512xf32>
    %c1_12 = arith.constant 1 : index
    %c0_13 = arith.constant 0 : index
    %c0_14 = arith.constant 0 : index
    %41 = vector.load %arg2[%c1_12, %c0_13, %c0_14] : memref<5x16x16xf32, #tpu.memory_space<vmem>>, vector<1x16x16xf32>
    %42 = vector.shape_cast %41 : vector<1x16x16xf32> to vector<16x16xf32>
    %cst_15 = arith.constant dense<0.000000e+00> : vector<16x640xf32>
    %43 = tpu.matmul %42, %3, %cst_15 {dimension_numbers = #tpu.dot_dimension_numbers<[1], [0], [0], [1], [0, 0, 1, 1], [], []>} : vector<16x16xf32>, vector<16x640xf32>, vector<16x640xf32> -> vector<16x640xf32>
    %44 = vector.extract_strided_slice %43 {offsets = [0, 0], sizes = [16, 512], strides = [1, 1]} : vector<16x640xf32> to vector<16x512xf32>
    %c5 = arith.constant 5 : index
    %c0_16 = arith.constant 0 : index
    %45 = vector.load %arg3[%c5, %c0_16] : memref<25x512xf32, #tpu.memory_space<vmem>>, vector<1x512xf32>
    %46 = vector.shape_cast %45 : vector<1x512xf32> to vector<512xf32>
    %47 = vector.shape_cast %46 : vector<512xf32> to vector<1x512xf32>
    %48 = vector.broadcast %47 : vector<1x512xf32> to vector<16x512xf32>
    %49 = arith.mulf %44, %48 : vector<16x512xf32>
    %50 = arith.addf %40, %49 : vector<16x512xf32>
    %51 = vector.extract_strided_slice %43 {offsets = [0, 32], sizes = [16, 512], strides = [1, 1]} : vector<16x640xf32> to vector<16x512xf32>
    %c6 = arith.constant 6 : index
    %c0_17 = arith.constant 0 : index
    %52 = vector.load %arg3[%c6, %c0_17] : memref<25x512xf32, #tpu.memory_space<vmem>>, vector<1x512xf32>
    %53 = vector.shape_cast %52 : vector<1x512xf32> to vector<512xf32>
    %54 = vector.shape_cast %53 : vector<512xf32> to vector<1x512xf32>
    %55 = vector.broadcast %54 : vector<1x512xf32> to vector<16x512xf32>
    %56 = arith.mulf %51, %55 : vector<16x512xf32>
    %57 = arith.addf %50, %56 : vector<16x512xf32>
    %58 = vector.extract_strided_slice %43 {offsets = [0, 64], sizes = [16, 512], strides = [1, 1]} : vector<16x640xf32> to vector<16x512xf32>
    %c7 = arith.constant 7 : index
    %c0_18 = arith.constant 0 : index
    %59 = vector.load %arg3[%c7, %c0_18] : memref<25x512xf32, #tpu.memory_space<vmem>>, vector<1x512xf32>
    %60 = vector.shape_cast %59 : vector<1x512xf32> to vector<512xf32>
    %61 = vector.shape_cast %60 : vector<512xf32> to vector<1x512xf32>
    %62 = vector.broadcast %61 : vector<1x512xf32> to vector<16x512xf32>
    %63 = arith.mulf %58, %62 : vector<16x512xf32>
    %64 = arith.addf %57, %63 : vector<16x512xf32>
    %65 = vector.extract_strided_slice %43 {offsets = [0, 96], sizes = [16, 512], strides = [1, 1]} : vector<16x640xf32> to vector<16x512xf32>
    %c8 = arith.constant 8 : index
    %c0_19 = arith.constant 0 : index
    %66 = vector.load %arg3[%c8, %c0_19] : memref<25x512xf32, #tpu.memory_space<vmem>>, vector<1x512xf32>
    %67 = vector.shape_cast %66 : vector<1x512xf32> to vector<512xf32>
    %68 = vector.shape_cast %67 : vector<512xf32> to vector<1x512xf32>
    %69 = vector.broadcast %68 : vector<1x512xf32> to vector<16x512xf32>
    %70 = arith.mulf %65, %69 : vector<16x512xf32>
    %71 = arith.addf %64, %70 : vector<16x512xf32>
    %72 = vector.extract_strided_slice %43 {offsets = [0, 128], sizes = [16, 512], strides = [1, 1]} : vector<16x640xf32> to vector<16x512xf32>
    %c9 = arith.constant 9 : index
    %c0_20 = arith.constant 0 : index
    %73 = vector.load %arg3[%c9, %c0_20] : memref<25x512xf32, #tpu.memory_space<vmem>>, vector<1x512xf32>
    %74 = vector.shape_cast %73 : vector<1x512xf32> to vector<512xf32>
    %75 = vector.shape_cast %74 : vector<512xf32> to vector<1x512xf32>
    %76 = vector.broadcast %75 : vector<1x512xf32> to vector<16x512xf32>
    %77 = arith.mulf %72, %76 : vector<16x512xf32>
    %78 = arith.addf %71, %77 : vector<16x512xf32>
    %c2_21 = arith.constant 2 : index
    %c0_22 = arith.constant 0 : index
    %c0_23 = arith.constant 0 : index
    %79 = vector.load %arg2[%c2_21, %c0_22, %c0_23] : memref<5x16x16xf32, #tpu.memory_space<vmem>>, vector<1x16x16xf32>
    %80 = vector.shape_cast %79 : vector<1x16x16xf32> to vector<16x16xf32>
    %cst_24 = arith.constant dense<0.000000e+00> : vector<16x640xf32>
    %81 = tpu.matmul %80, %3, %cst_24 {dimension_numbers = #tpu.dot_dimension_numbers<[1], [0], [0], [1], [0, 0, 1, 1], [], []>} : vector<16x16xf32>, vector<16x640xf32>, vector<16x640xf32> -> vector<16x640xf32>
    %82 = vector.extract_strided_slice %81 {offsets = [0, 0], sizes = [16, 512], strides = [1, 1]} : vector<16x640xf32> to vector<16x512xf32>
    %c10 = arith.constant 10 : index
    %c0_25 = arith.constant 0 : index
    %83 = vector.load %arg3[%c10, %c0_25] : memref<25x512xf32, #tpu.memory_space<vmem>>, vector<1x512xf32>
    %84 = vector.shape_cast %83 : vector<1x512xf32> to vector<512xf32>
    %85 = vector.shape_cast %84 : vector<512xf32> to vector<1x512xf32>
    %86 = vector.broadcast %85 : vector<1x512xf32> to vector<16x512xf32>
    %87 = arith.mulf %82, %86 : vector<16x512xf32>
    %88 = arith.addf %78, %87 : vector<16x512xf32>
    %89 = vector.extract_strided_slice %81 {offsets = [0, 32], sizes = [16, 512], strides = [1, 1]} : vector<16x640xf32> to vector<16x512xf32>
    %c11 = arith.constant 11 : index
    %c0_26 = arith.constant 0 : index
    %90 = vector.load %arg3[%c11, %c0_26] : memref<25x512xf32, #tpu.memory_space<vmem>>, vector<1x512xf32>
    %91 = vector.shape_cast %90 : vector<1x512xf32> to vector<512xf32>
    %92 = vector.shape_cast %91 : vector<512xf32> to vector<1x512xf32>
    %93 = vector.broadcast %92 : vector<1x512xf32> to vector<16x512xf32>
    %94 = arith.mulf %89, %93 : vector<16x512xf32>
    %95 = arith.addf %88, %94 : vector<16x512xf32>
    %96 = vector.extract_strided_slice %81 {offsets = [0, 64], sizes = [16, 512], strides = [1, 1]} : vector<16x640xf32> to vector<16x512xf32>
    %c12 = arith.constant 12 : index
    %c0_27 = arith.constant 0 : index
    %97 = vector.load %arg3[%c12, %c0_27] : memref<25x512xf32, #tpu.memory_space<vmem>>, vector<1x512xf32>
    %98 = vector.shape_cast %97 : vector<1x512xf32> to vector<512xf32>
    %99 = vector.shape_cast %98 : vector<512xf32> to vector<1x512xf32>
    %100 = vector.broadcast %99 : vector<1x512xf32> to vector<16x512xf32>
    %101 = arith.mulf %96, %100 : vector<16x512xf32>
    %102 = arith.addf %95, %101 : vector<16x512xf32>
    %103 = vector.extract_strided_slice %81 {offsets = [0, 96], sizes = [16, 512], strides = [1, 1]} : vector<16x640xf32> to vector<16x512xf32>
    %c13 = arith.constant 13 : index
    %c0_28 = arith.constant 0 : index
    %104 = vector.load %arg3[%c13, %c0_28] : memref<25x512xf32, #tpu.memory_space<vmem>>, vector<1x512xf32>
    %105 = vector.shape_cast %104 : vector<1x512xf32> to vector<512xf32>
    %106 = vector.shape_cast %105 : vector<512xf32> to vector<1x512xf32>
    %107 = vector.broadcast %106 : vector<1x512xf32> to vector<16x512xf32>
    %108 = arith.mulf %103, %107 : vector<16x512xf32>
    %109 = arith.addf %102, %108 : vector<16x512xf32>
    %110 = vector.extract_strided_slice %81 {offsets = [0, 128], sizes = [16, 512], strides = [1, 1]} : vector<16x640xf32> to vector<16x512xf32>
    %c14 = arith.constant 14 : index
    %c0_29 = arith.constant 0 : index
    %111 = vector.load %arg3[%c14, %c0_29] : memref<25x512xf32, #tpu.memory_space<vmem>>, vector<1x512xf32>
    %112 = vector.shape_cast %111 : vector<1x512xf32> to vector<512xf32>
    %113 = vector.shape_cast %112 : vector<512xf32> to vector<1x512xf32>
    %114 = vector.broadcast %113 : vector<1x512xf32> to vector<16x512xf32>
    %115 = arith.mulf %110, %114 : vector<16x512xf32>
    %116 = arith.addf %109, %115 : vector<16x512xf32>
    %c3_30 = arith.constant 3 : index
    %c0_31 = arith.constant 0 : index
    %c0_32 = arith.constant 0 : index
    %117 = vector.load %arg2[%c3_30, %c0_31, %c0_32] : memref<5x16x16xf32, #tpu.memory_space<vmem>>, vector<1x16x16xf32>
    %118 = vector.shape_cast %117 : vector<1x16x16xf32> to vector<16x16xf32>
    %cst_33 = arith.constant dense<0.000000e+00> : vector<16x640xf32>
    %119 = tpu.matmul %118, %3, %cst_33 {dimension_numbers = #tpu.dot_dimension_numbers<[1], [0], [0], [1], [0, 0, 1, 1], [], []>} : vector<16x16xf32>, vector<16x640xf32>, vector<16x640xf32> -> vector<16x640xf32>
    %120 = vector.extract_strided_slice %119 {offsets = [0, 0], sizes = [16, 512], strides = [1, 1]} : vector<16x640xf32> to vector<16x512xf32>
    %c15 = arith.constant 15 : index
    %c0_34 = arith.constant 0 : index
    %121 = vector.load %arg3[%c15, %c0_34] : memref<25x512xf32, #tpu.memory_space<vmem>>, vector<1x512xf32>
    %122 = vector.shape_cast %121 : vector<1x512xf32> to vector<512xf32>
    %123 = vector.shape_cast %122 : vector<512xf32> to vector<1x512xf32>
    %124 = vector.broadcast %123 : vector<1x512xf32> to vector<16x512xf32>
    %125 = arith.mulf %120, %124 : vector<16x512xf32>
    %126 = arith.addf %116, %125 : vector<16x512xf32>
    %127 = vector.extract_strided_slice %119 {offsets = [0, 32], sizes = [16, 512], strides = [1, 1]} : vector<16x640xf32> to vector<16x512xf32>
    %c16 = arith.constant 16 : index
    %c0_35 = arith.constant 0 : index
    %128 = vector.load %arg3[%c16, %c0_35] : memref<25x512xf32, #tpu.memory_space<vmem>>, vector<1x512xf32>
    %129 = vector.shape_cast %128 : vector<1x512xf32> to vector<512xf32>
    %130 = vector.shape_cast %129 : vector<512xf32> to vector<1x512xf32>
    %131 = vector.broadcast %130 : vector<1x512xf32> to vector<16x512xf32>
    %132 = arith.mulf %127, %131 : vector<16x512xf32>
    %133 = arith.addf %126, %132 : vector<16x512xf32>
    %134 = vector.extract_strided_slice %119 {offsets = [0, 64], sizes = [16, 512], strides = [1, 1]} : vector<16x640xf32> to vector<16x512xf32>
    %c17 = arith.constant 17 : index
    %c0_36 = arith.constant 0 : index
    %135 = vector.load %arg3[%c17, %c0_36] : memref<25x512xf32, #tpu.memory_space<vmem>>, vector<1x512xf32>
    %136 = vector.shape_cast %135 : vector<1x512xf32> to vector<512xf32>
    %137 = vector.shape_cast %136 : vector<512xf32> to vector<1x512xf32>
    %138 = vector.broadcast %137 : vector<1x512xf32> to vector<16x512xf32>
    %139 = arith.mulf %134, %138 : vector<16x512xf32>
    %140 = arith.addf %133, %139 : vector<16x512xf32>
    %141 = vector.extract_strided_slice %119 {offsets = [0, 96], sizes = [16, 512], strides = [1, 1]} : vector<16x640xf32> to vector<16x512xf32>
    %c18 = arith.constant 18 : index
    %c0_37 = arith.constant 0 : index
    %142 = vector.load %arg3[%c18, %c0_37] : memref<25x512xf32, #tpu.memory_space<vmem>>, vector<1x512xf32>
    %143 = vector.shape_cast %142 : vector<1x512xf32> to vector<512xf32>
    %144 = vector.shape_cast %143 : vector<512xf32> to vector<1x512xf32>
    %145 = vector.broadcast %144 : vector<1x512xf32> to vector<16x512xf32>
    %146 = arith.mulf %141, %145 : vector<16x512xf32>
    %147 = arith.addf %140, %146 : vector<16x512xf32>
    %148 = vector.extract_strided_slice %119 {offsets = [0, 128], sizes = [16, 512], strides = [1, 1]} : vector<16x640xf32> to vector<16x512xf32>
    %c19 = arith.constant 19 : index
    %c0_38 = arith.constant 0 : index
    %149 = vector.load %arg3[%c19, %c0_38] : memref<25x512xf32, #tpu.memory_space<vmem>>, vector<1x512xf32>
    %150 = vector.shape_cast %149 : vector<1x512xf32> to vector<512xf32>
    %151 = vector.shape_cast %150 : vector<512xf32> to vector<1x512xf32>
    %152 = vector.broadcast %151 : vector<1x512xf32> to vector<16x512xf32>
    %153 = arith.mulf %148, %152 : vector<16x512xf32>
    %154 = arith.addf %147, %153 : vector<16x512xf32>
    %c4_39 = arith.constant 4 : index
    %c0_40 = arith.constant 0 : index
    %c0_41 = arith.constant 0 : index
    %155 = vector.load %arg2[%c4_39, %c0_40, %c0_41] : memref<5x16x16xf32, #tpu.memory_space<vmem>>, vector<1x16x16xf32>
    %156 = vector.shape_cast %155 : vector<1x16x16xf32> to vector<16x16xf32>
    %cst_42 = arith.constant dense<0.000000e+00> : vector<16x640xf32>
    %157 = tpu.matmul %156, %3, %cst_42 {dimension_numbers = #tpu.dot_dimension_numbers<[1], [0], [0], [1], [0, 0, 1, 1], [], []>} : vector<16x16xf32>, vector<16x640xf32>, vector<16x640xf32> -> vector<16x640xf32>
    %158 = vector.extract_strided_slice %157 {offsets = [0, 0], sizes = [16, 512], strides = [1, 1]} : vector<16x640xf32> to vector<16x512xf32>
    %c20 = arith.constant 20 : index
    %c0_43 = arith.constant 0 : index
    %159 = vector.load %arg3[%c20, %c0_43] : memref<25x512xf32, #tpu.memory_space<vmem>>, vector<1x512xf32>
    %160 = vector.shape_cast %159 : vector<1x512xf32> to vector<512xf32>
    %161 = vector.shape_cast %160 : vector<512xf32> to vector<1x512xf32>
    %162 = vector.broadcast %161 : vector<1x512xf32> to vector<16x512xf32>
    %163 = arith.mulf %158, %162 : vector<16x512xf32>
    %164 = arith.addf %154, %163 : vector<16x512xf32>
    %165 = vector.extract_strided_slice %157 {offsets = [0, 32], sizes = [16, 512], strides = [1, 1]} : vector<16x640xf32> to vector<16x512xf32>
    %c21 = arith.constant 21 : index
    %c0_44 = arith.constant 0 : index
    %166 = vector.load %arg3[%c21, %c0_44] : memref<25x512xf32, #tpu.memory_space<vmem>>, vector<1x512xf32>
    %167 = vector.shape_cast %166 : vector<1x512xf32> to vector<512xf32>
    %168 = vector.shape_cast %167 : vector<512xf32> to vector<1x512xf32>
    %169 = vector.broadcast %168 : vector<1x512xf32> to vector<16x512xf32>
    %170 = arith.mulf %165, %169 : vector<16x512xf32>
    %171 = arith.addf %164, %170 : vector<16x512xf32>
    %172 = vector.extract_strided_slice %157 {offsets = [0, 64], sizes = [16, 512], strides = [1, 1]} : vector<16x640xf32> to vector<16x512xf32>
    %c22 = arith.constant 22 : index
    %c0_45 = arith.constant 0 : index
    %173 = vector.load %arg3[%c22, %c0_45] : memref<25x512xf32, #tpu.memory_space<vmem>>, vector<1x512xf32>
    %174 = vector.shape_cast %173 : vector<1x512xf32> to vector<512xf32>
    %175 = vector.shape_cast %174 : vector<512xf32> to vector<1x512xf32>
    %176 = vector.broadcast %175 : vector<1x512xf32> to vector<16x512xf32>
    %177 = arith.mulf %172, %176 : vector<16x512xf32>
    %178 = arith.addf %171, %177 : vector<16x512xf32>
    %179 = vector.extract_strided_slice %157 {offsets = [0, 96], sizes = [16, 512], strides = [1, 1]} : vector<16x640xf32> to vector<16x512xf32>
    %c23 = arith.constant 23 : index
    %c0_46 = arith.constant 0 : index
    %180 = vector.load %arg3[%c23, %c0_46] : memref<25x512xf32, #tpu.memory_space<vmem>>, vector<1x512xf32>
    %181 = vector.shape_cast %180 : vector<1x512xf32> to vector<512xf32>
    %182 = vector.shape_cast %181 : vector<512xf32> to vector<1x512xf32>
    %183 = vector.broadcast %182 : vector<1x512xf32> to vector<16x512xf32>
    %184 = arith.mulf %179, %183 : vector<16x512xf32>
    %185 = arith.addf %178, %184 : vector<16x512xf32>
    %186 = vector.extract_strided_slice %157 {offsets = [0, 128], sizes = [16, 512], strides = [1, 1]} : vector<16x640xf32> to vector<16x512xf32>
    %c24 = arith.constant 24 : index
    %c0_47 = arith.constant 0 : index
    %187 = vector.load %arg3[%c24, %c0_47] : memref<25x512xf32, #tpu.memory_space<vmem>>, vector<1x512xf32>
    %188 = vector.shape_cast %187 : vector<1x512xf32> to vector<512xf32>
    %189 = vector.shape_cast %188 : vector<512xf32> to vector<1x512xf32>
    %190 = vector.broadcast %189 : vector<1x512xf32> to vector<16x512xf32>
    %191 = arith.mulf %186, %190 : vector<16x512xf32>
    %192 = arith.addf %185, %191 : vector<16x512xf32>
    %c0_48 = arith.constant 0 : index
    %c0_49 = arith.constant 0 : index
    %193 = vector.load %arg4[%c0_48, %c0_49] : memref<512x512xf32, #tpu.memory_space<vmem>>, vector<512x512xf32>
    %cst_50 = arith.constant dense<0.000000e+00> : vector<16x512xf32>
    %194 = tpu.matmul %192, %193, %cst_50 {dimension_numbers = #tpu.dot_dimension_numbers<[1], [0], [0], [1], [0, 0, 1, 1], [], []>} : vector<16x512xf32>, vector<512x512xf32>, vector<16x512xf32> -> vector<16x512xf32>
    %c0_51 = arith.constant 0 : index
    %c0_52 = arith.constant 0 : index
    %195 = vector.load %arg5[%c0_51, %c0_52] : memref<1x512xf32, #tpu.memory_space<vmem>>, vector<1x512xf32>
    %196 = vector.broadcast %195 : vector<1x512xf32> to vector<16x512xf32>
    %197 = arith.addf %194, %196 : vector<16x512xf32>
    %cst_53 = arith.constant 0.000000e+00 : f32
    %198 = vector.broadcast %cst_53 : f32 to vector<16x288xf32>
    %199 = tpu.concatenate %198, %197, %198 in 1 : vector<16x288xf32>, vector<16x512xf32>, vector<16x288xf32> -> vector<16x1088xf32>
    %c0_54 = arith.constant 0 : index
    %c0_55 = arith.constant 0 : index
    %c0_56 = arith.constant 0 : index
    %200 = vector.load %arg6[%c0_54, %c0_55, %c0_56] : memref<7x16x16xf32, #tpu.memory_space<vmem>>, vector<1x16x16xf32>
    %201 = vector.shape_cast %200 : vector<1x16x16xf32> to vector<16x16xf32>
    %cst_57 = arith.constant dense<0.000000e+00> : vector<16x1088xf32>
    %202 = tpu.matmul %201, %199, %cst_57 {dimension_numbers = #tpu.dot_dimension_numbers<[1], [0], [0], [1], [0, 0, 1, 1], [], []>} : vector<16x16xf32>, vector<16x1088xf32>, vector<16x1088xf32> -> vector<16x1088xf32>
    %203 = vector.extract_strided_slice %202 {offsets = [0, 0], sizes = [16, 512], strides = [1, 1]} : vector<16x1088xf32> to vector<16x512xf32>
    %c0_58 = arith.constant 0 : index
    %c0_59 = arith.constant 0 : index
    %204 = vector.load %arg7[%c0_58, %c0_59] : memref<49x512xf32, #tpu.memory_space<vmem>>, vector<1x512xf32>
    %205 = vector.shape_cast %204 : vector<1x512xf32> to vector<512xf32>
    %206 = vector.shape_cast %205 : vector<512xf32> to vector<1x512xf32>
    %207 = vector.broadcast %206 : vector<1x512xf32> to vector<16x512xf32>
    %208 = arith.mulf %203, %207 : vector<16x512xf32>
    %209 = vector.extract_strided_slice %202 {offsets = [0, 96], sizes = [16, 512], strides = [1, 1]} : vector<16x1088xf32> to vector<16x512xf32>
    %c1_60 = arith.constant 1 : index
    %c0_61 = arith.constant 0 : index
    %210 = vector.load %arg7[%c1_60, %c0_61] : memref<49x512xf32, #tpu.memory_space<vmem>>, vector<1x512xf32>
    %211 = vector.shape_cast %210 : vector<1x512xf32> to vector<512xf32>
    %212 = vector.shape_cast %211 : vector<512xf32> to vector<1x512xf32>
    %213 = vector.broadcast %212 : vector<1x512xf32> to vector<16x512xf32>
    %214 = arith.mulf %209, %213 : vector<16x512xf32>
    %215 = arith.addf %208, %214 : vector<16x512xf32>
    %216 = vector.extract_strided_slice %202 {offsets = [0, 192], sizes = [16, 512], strides = [1, 1]} : vector<16x1088xf32> to vector<16x512xf32>
    %c2_62 = arith.constant 2 : index
    %c0_63 = arith.constant 0 : index
    %217 = vector.load %arg7[%c2_62, %c0_63] : memref<49x512xf32, #tpu.memory_space<vmem>>, vector<1x512xf32>
    %218 = vector.shape_cast %217 : vector<1x512xf32> to vector<512xf32>
    %219 = vector.shape_cast %218 : vector<512xf32> to vector<1x512xf32>
    %220 = vector.broadcast %219 : vector<1x512xf32> to vector<16x512xf32>
    %221 = arith.mulf %216, %220 : vector<16x512xf32>
    %222 = arith.addf %215, %221 : vector<16x512xf32>
    %223 = vector.extract_strided_slice %202 {offsets = [0, 288], sizes = [16, 512], strides = [1, 1]} : vector<16x1088xf32> to vector<16x512xf32>
    %c3_64 = arith.constant 3 : index
    %c0_65 = arith.constant 0 : index
    %224 = vector.load %arg7[%c3_64, %c0_65] : memref<49x512xf32, #tpu.memory_space<vmem>>, vector<1x512xf32>
    %225 = vector.shape_cast %224 : vector<1x512xf32> to vector<512xf32>
    %226 = vector.shape_cast %225 : vector<512xf32> to vector<1x512xf32>
    %227 = vector.broadcast %226 : vector<1x512xf32> to vector<16x512xf32>
    %228 = arith.mulf %223, %227 : vector<16x512xf32>
    %229 = arith.addf %222, %228 : vector<16x512xf32>
    %230 = vector.extract_strided_slice %202 {offsets = [0, 384], sizes = [16, 512], strides = [1, 1]} : vector<16x1088xf32> to vector<16x512xf32>
    %c4_66 = arith.constant 4 : index
    %c0_67 = arith.constant 0 : index
    %231 = vector.load %arg7[%c4_66, %c0_67] : memref<49x512xf32, #tpu.memory_space<vmem>>, vector<1x512xf32>
    %232 = vector.shape_cast %231 : vector<1x512xf32> to vector<512xf32>
    %233 = vector.shape_cast %232 : vector<512xf32> to vector<1x512xf32>
    %234 = vector.broadcast %233 : vector<1x512xf32> to vector<16x512xf32>
    %235 = arith.mulf %230, %234 : vector<16x512xf32>
    %236 = arith.addf %229, %235 : vector<16x512xf32>
    %237 = vector.extract_strided_slice %202 {offsets = [0, 480], sizes = [16, 512], strides = [1, 1]} : vector<16x1088xf32> to vector<16x512xf32>
    %c5_68 = arith.constant 5 : index
    %c0_69 = arith.constant 0 : index
    %238 = vector.load %arg7[%c5_68, %c0_69] : memref<49x512xf32, #tpu.memory_space<vmem>>, vector<1x512xf32>
    %239 = vector.shape_cast %238 : vector<1x512xf32> to vector<512xf32>
    %240 = vector.shape_cast %239 : vector<512xf32> to vector<1x512xf32>
    %241 = vector.broadcast %240 : vector<1x512xf32> to vector<16x512xf32>
    %242 = arith.mulf %237, %241 : vector<16x512xf32>
    %243 = arith.addf %236, %242 : vector<16x512xf32>
    %244 = vector.extract_strided_slice %202 {offsets = [0, 576], sizes = [16, 512], strides = [1, 1]} : vector<16x1088xf32> to vector<16x512xf32>
    %c6_70 = arith.constant 6 : index
    %c0_71 = arith.constant 0 : index
    %245 = vector.load %arg7[%c6_70, %c0_71] : memref<49x512xf32, #tpu.memory_space<vmem>>, vector<1x512xf32>
    %246 = vector.shape_cast %245 : vector<1x512xf32> to vector<512xf32>
    %247 = vector.shape_cast %246 : vector<512xf32> to vector<1x512xf32>
    %248 = vector.broadcast %247 : vector<1x512xf32> to vector<16x512xf32>
    %249 = arith.mulf %244, %248 : vector<16x512xf32>
    %250 = arith.addf %243, %249 : vector<16x512xf32>
    %c1_72 = arith.constant 1 : index
    %c0_73 = arith.constant 0 : index
    %c0_74 = arith.constant 0 : index
    %251 = vector.load %arg6[%c1_72, %c0_73, %c0_74] : memref<7x16x16xf32, #tpu.memory_space<vmem>>, vector<1x16x16xf32>
    %252 = vector.shape_cast %251 : vector<1x16x16xf32> to vector<16x16xf32>
    %cst_75 = arith.constant dense<0.000000e+00> : vector<16x1088xf32>
    %253 = tpu.matmul %252, %199, %cst_75 {dimension_numbers = #tpu.dot_dimension_numbers<[1], [0], [0], [1], [0, 0, 1, 1], [], []>} : vector<16x16xf32>, vector<16x1088xf32>, vector<16x1088xf32> -> vector<16x1088xf32>
    %254 = vector.extract_strided_slice %253 {offsets = [0, 0], sizes = [16, 512], strides = [1, 1]} : vector<16x1088xf32> to vector<16x512xf32>
    %c7_76 = arith.constant 7 : index
    %c0_77 = arith.constant 0 : index
    %255 = vector.load %arg7[%c7_76, %c0_77] : memref<49x512xf32, #tpu.memory_space<vmem>>, vector<1x512xf32>
    %256 = vector.shape_cast %255 : vector<1x512xf32> to vector<512xf32>
    %257 = vector.shape_cast %256 : vector<512xf32> to vector<1x512xf32>
    %258 = vector.broadcast %257 : vector<1x512xf32> to vector<16x512xf32>
    %259 = arith.mulf %254, %258 : vector<16x512xf32>
    %260 = arith.addf %250, %259 : vector<16x512xf32>
    %261 = vector.extract_strided_slice %253 {offsets = [0, 96], sizes = [16, 512], strides = [1, 1]} : vector<16x1088xf32> to vector<16x512xf32>
    %c8_78 = arith.constant 8 : index
    %c0_79 = arith.constant 0 : index
    %262 = vector.load %arg7[%c8_78, %c0_79] : memref<49x512xf32, #tpu.memory_space<vmem>>, vector<1x512xf32>
    %263 = vector.shape_cast %262 : vector<1x512xf32> to vector<512xf32>
    %264 = vector.shape_cast %263 : vector<512xf32> to vector<1x512xf32>
    %265 = vector.broadcast %264 : vector<1x512xf32> to vector<16x512xf32>
    %266 = arith.mulf %261, %265 : vector<16x512xf32>
    %267 = arith.addf %260, %266 : vector<16x512xf32>
    %268 = vector.extract_strided_slice %253 {offsets = [0, 192], sizes = [16, 512], strides = [1, 1]} : vector<16x1088xf32> to vector<16x512xf32>
    %c9_80 = arith.constant 9 : index
    %c0_81 = arith.constant 0 : index
    %269 = vector.load %arg7[%c9_80, %c0_81] : memref<49x512xf32, #tpu.memory_space<vmem>>, vector<1x512xf32>
    %270 = vector.shape_cast %269 : vector<1x512xf32> to vector<512xf32>
    %271 = vector.shape_cast %270 : vector<512xf32> to vector<1x512xf32>
    %272 = vector.broadcast %271 : vector<1x512xf32> to vector<16x512xf32>
    %273 = arith.mulf %268, %272 : vector<16x512xf32>
    %274 = arith.addf %267, %273 : vector<16x512xf32>
    %275 = vector.extract_strided_slice %253 {offsets = [0, 288], sizes = [16, 512], strides = [1, 1]} : vector<16x1088xf32> to vector<16x512xf32>
    %c10_82 = arith.constant 10 : index
    %c0_83 = arith.constant 0 : index
    %276 = vector.load %arg7[%c10_82, %c0_83] : memref<49x512xf32, #tpu.memory_space<vmem>>, vector<1x512xf32>
    %277 = vector.shape_cast %276 : vector<1x512xf32> to vector<512xf32>
    %278 = vector.shape_cast %277 : vector<512xf32> to vector<1x512xf32>
    %279 = vector.broadcast %278 : vector<1x512xf32> to vector<16x512xf32>
    %280 = arith.mulf %275, %279 : vector<16x512xf32>
    %281 = arith.addf %274, %280 : vector<16x512xf32>
    %282 = vector.extract_strided_slice %253 {offsets = [0, 384], sizes = [16, 512], strides = [1, 1]} : vector<16x1088xf32> to vector<16x512xf32>
    %c11_84 = arith.constant 11 : index
    %c0_85 = arith.constant 0 : index
    %283 = vector.load %arg7[%c11_84, %c0_85] : memref<49x512xf32, #tpu.memory_space<vmem>>, vector<1x512xf32>
    %284 = vector.shape_cast %283 : vector<1x512xf32> to vector<512xf32>
    %285 = vector.shape_cast %284 : vector<512xf32> to vector<1x512xf32>
    %286 = vector.broadcast %285 : vector<1x512xf32> to vector<16x512xf32>
    %287 = arith.mulf %282, %286 : vector<16x512xf32>
    %288 = arith.addf %281, %287 : vector<16x512xf32>
    %289 = vector.extract_strided_slice %253 {offsets = [0, 480], sizes = [16, 512], strides = [1, 1]} : vector<16x1088xf32> to vector<16x512xf32>
    %c12_86 = arith.constant 12 : index
    %c0_87 = arith.constant 0 : index
    %290 = vector.load %arg7[%c12_86, %c0_87] : memref<49x512xf32, #tpu.memory_space<vmem>>, vector<1x512xf32>
    %291 = vector.shape_cast %290 : vector<1x512xf32> to vector<512xf32>
    %292 = vector.shape_cast %291 : vector<512xf32> to vector<1x512xf32>
    %293 = vector.broadcast %292 : vector<1x512xf32> to vector<16x512xf32>
    %294 = arith.mulf %289, %293 : vector<16x512xf32>
    %295 = arith.addf %288, %294 : vector<16x512xf32>
    %296 = vector.extract_strided_slice %253 {offsets = [0, 576], sizes = [16, 512], strides = [1, 1]} : vector<16x1088xf32> to vector<16x512xf32>
    %c13_88 = arith.constant 13 : index
    %c0_89 = arith.constant 0 : index
    %297 = vector.load %arg7[%c13_88, %c0_89] : memref<49x512xf32, #tpu.memory_space<vmem>>, vector<1x512xf32>
    %298 = vector.shape_cast %297 : vector<1x512xf32> to vector<512xf32>
    %299 = vector.shape_cast %298 : vector<512xf32> to vector<1x512xf32>
    %300 = vector.broadcast %299 : vector<1x512xf32> to vector<16x512xf32>
    %301 = arith.mulf %296, %300 : vector<16x512xf32>
    %302 = arith.addf %295, %301 : vector<16x512xf32>
    %c2_90 = arith.constant 2 : index
    %c0_91 = arith.constant 0 : index
    %c0_92 = arith.constant 0 : index
    %303 = vector.load %arg6[%c2_90, %c0_91, %c0_92] : memref<7x16x16xf32, #tpu.memory_space<vmem>>, vector<1x16x16xf32>
    %304 = vector.shape_cast %303 : vector<1x16x16xf32> to vector<16x16xf32>
    %cst_93 = arith.constant dense<0.000000e+00> : vector<16x1088xf32>
    %305 = tpu.matmul %304, %199, %cst_93 {dimension_numbers = #tpu.dot_dimension_numbers<[1], [0], [0], [1], [0, 0, 1, 1], [], []>} : vector<16x16xf32>, vector<16x1088xf32>, vector<16x1088xf32> -> vector<16x1088xf32>
    %306 = vector.extract_strided_slice %305 {offsets = [0, 0], sizes = [16, 512], strides = [1, 1]} : vector<16x1088xf32> to vector<16x512xf32>
    %c14_94 = arith.constant 14 : index
    %c0_95 = arith.constant 0 : index
    %307 = vector.load %arg7[%c14_94, %c0_95] : memref<49x512xf32, #tpu.memory_space<vmem>>, vector<1x512xf32>
    %308 = vector.shape_cast %307 : vector<1x512xf32> to vector<512xf32>
    %309 = vector.shape_cast %308 : vector<512xf32> to vector<1x512xf32>
    %310 = vector.broadcast %309 : vector<1x512xf32> to vector<16x512xf32>
    %311 = arith.mulf %306, %310 : vector<16x512xf32>
    %312 = arith.addf %302, %311 : vector<16x512xf32>
    %313 = vector.extract_strided_slice %305 {offsets = [0, 96], sizes = [16, 512], strides = [1, 1]} : vector<16x1088xf32> to vector<16x512xf32>
    %c15_96 = arith.constant 15 : index
    %c0_97 = arith.constant 0 : index
    %314 = vector.load %arg7[%c15_96, %c0_97] : memref<49x512xf32, #tpu.memory_space<vmem>>, vector<1x512xf32>
    %315 = vector.shape_cast %314 : vector<1x512xf32> to vector<512xf32>
    %316 = vector.shape_cast %315 : vector<512xf32> to vector<1x512xf32>
    %317 = vector.broadcast %316 : vector<1x512xf32> to vector<16x512xf32>
    %318 = arith.mulf %313, %317 : vector<16x512xf32>
    %319 = arith.addf %312, %318 : vector<16x512xf32>
    %320 = vector.extract_strided_slice %305 {offsets = [0, 192], sizes = [16, 512], strides = [1, 1]} : vector<16x1088xf32> to vector<16x512xf32>
    %c16_98 = arith.constant 16 : index
    %c0_99 = arith.constant 0 : index
    %321 = vector.load %arg7[%c16_98, %c0_99] : memref<49x512xf32, #tpu.memory_space<vmem>>, vector<1x512xf32>
    %322 = vector.shape_cast %321 : vector<1x512xf32> to vector<512xf32>
    %323 = vector.shape_cast %322 : vector<512xf32> to vector<1x512xf32>
    %324 = vector.broadcast %323 : vector<1x512xf32> to vector<16x512xf32>
    %325 = arith.mulf %320, %324 : vector<16x512xf32>
    %326 = arith.addf %319, %325 : vector<16x512xf32>
    %327 = vector.extract_strided_slice %305 {offsets = [0, 288], sizes = [16, 512], strides = [1, 1]} : vector<16x1088xf32> to vector<16x512xf32>
    %c17_100 = arith.constant 17 : index
    %c0_101 = arith.constant 0 : index
    %328 = vector.load %arg7[%c17_100, %c0_101] : memref<49x512xf32, #tpu.memory_space<vmem>>, vector<1x512xf32>
    %329 = vector.shape_cast %328 : vector<1x512xf32> to vector<512xf32>
    %330 = vector.shape_cast %329 : vector<512xf32> to vector<1x512xf32>
    %331 = vector.broadcast %330 : vector<1x512xf32> to vector<16x512xf32>
    %332 = arith.mulf %327, %331 : vector<16x512xf32>
    %333 = arith.addf %326, %332 : vector<16x512xf32>
    %334 = vector.extract_strided_slice %305 {offsets = [0, 384], sizes = [16, 512], strides = [1, 1]} : vector<16x1088xf32> to vector<16x512xf32>
    %c18_102 = arith.constant 18 : index
    %c0_103 = arith.constant 0 : index
    %335 = vector.load %arg7[%c18_102, %c0_103] : memref<49x512xf32, #tpu.memory_space<vmem>>, vector<1x512xf32>
    %336 = vector.shape_cast %335 : vector<1x512xf32> to vector<512xf32>
    %337 = vector.shape_cast %336 : vector<512xf32> to vector<1x512xf32>
    %338 = vector.broadcast %337 : vector<1x512xf32> to vector<16x512xf32>
    %339 = arith.mulf %334, %338 : vector<16x512xf32>
    %340 = arith.addf %333, %339 : vector<16x512xf32>
    %341 = vector.extract_strided_slice %305 {offsets = [0, 480], sizes = [16, 512], strides = [1, 1]} : vector<16x1088xf32> to vector<16x512xf32>
    %c19_104 = arith.constant 19 : index
    %c0_105 = arith.constant 0 : index
    %342 = vector.load %arg7[%c19_104, %c0_105] : memref<49x512xf32, #tpu.memory_space<vmem>>, vector<1x512xf32>
    %343 = vector.shape_cast %342 : vector<1x512xf32> to vector<512xf32>
    %344 = vector.shape_cast %343 : vector<512xf32> to vector<1x512xf32>
    %345 = vector.broadcast %344 : vector<1x512xf32> to vector<16x512xf32>
    %346 = arith.mulf %341, %345 : vector<16x512xf32>
    %347 = arith.addf %340, %346 : vector<16x512xf32>
    %348 = vector.extract_strided_slice %305 {offsets = [0, 576], sizes = [16, 512], strides = [1, 1]} : vector<16x1088xf32> to vector<16x512xf32>
    %c20_106 = arith.constant 20 : index
    %c0_107 = arith.constant 0 : index
    %349 = vector.load %arg7[%c20_106, %c0_107] : memref<49x512xf32, #tpu.memory_space<vmem>>, vector<1x512xf32>
    %350 = vector.shape_cast %349 : vector<1x512xf32> to vector<512xf32>
    %351 = vector.shape_cast %350 : vector<512xf32> to vector<1x512xf32>
    %352 = vector.broadcast %351 : vector<1x512xf32> to vector<16x512xf32>
    %353 = arith.mulf %348, %352 : vector<16x512xf32>
    %354 = arith.addf %347, %353 : vector<16x512xf32>
    %c3_108 = arith.constant 3 : index
    %c0_109 = arith.constant 0 : index
    %c0_110 = arith.constant 0 : index
    %355 = vector.load %arg6[%c3_108, %c0_109, %c0_110] : memref<7x16x16xf32, #tpu.memory_space<vmem>>, vector<1x16x16xf32>
    %356 = vector.shape_cast %355 : vector<1x16x16xf32> to vector<16x16xf32>
    %cst_111 = arith.constant dense<0.000000e+00> : vector<16x1088xf32>
    %357 = tpu.matmul %356, %199, %cst_111 {dimension_numbers = #tpu.dot_dimension_numbers<[1], [0], [0], [1], [0, 0, 1, 1], [], []>} : vector<16x16xf32>, vector<16x1088xf32>, vector<16x1088xf32> -> vector<16x1088xf32>
    %358 = vector.extract_strided_slice %357 {offsets = [0, 0], sizes = [16, 512], strides = [1, 1]} : vector<16x1088xf32> to vector<16x512xf32>
    %c21_112 = arith.constant 21 : index
    %c0_113 = arith.constant 0 : index
    %359 = vector.load %arg7[%c21_112, %c0_113] : memref<49x512xf32, #tpu.memory_space<vmem>>, vector<1x512xf32>
    %360 = vector.shape_cast %359 : vector<1x512xf32> to vector<512xf32>
    %361 = vector.shape_cast %360 : vector<512xf32> to vector<1x512xf32>
    %362 = vector.broadcast %361 : vector<1x512xf32> to vector<16x512xf32>
    %363 = arith.mulf %358, %362 : vector<16x512xf32>
    %364 = arith.addf %354, %363 : vector<16x512xf32>
    %365 = vector.extract_strided_slice %357 {offsets = [0, 96], sizes = [16, 512], strides = [1, 1]} : vector<16x1088xf32> to vector<16x512xf32>
    %c22_114 = arith.constant 22 : index
    %c0_115 = arith.constant 0 : index
    %366 = vector.load %arg7[%c22_114, %c0_115] : memref<49x512xf32, #tpu.memory_space<vmem>>, vector<1x512xf32>
    %367 = vector.shape_cast %366 : vector<1x512xf32> to vector<512xf32>
    %368 = vector.shape_cast %367 : vector<512xf32> to vector<1x512xf32>
    %369 = vector.broadcast %368 : vector<1x512xf32> to vector<16x512xf32>
    %370 = arith.mulf %365, %369 : vector<16x512xf32>
    %371 = arith.addf %364, %370 : vector<16x512xf32>
    %372 = vector.extract_strided_slice %357 {offsets = [0, 192], sizes = [16, 512], strides = [1, 1]} : vector<16x1088xf32> to vector<16x512xf32>
    %c23_116 = arith.constant 23 : index
    %c0_117 = arith.constant 0 : index
    %373 = vector.load %arg7[%c23_116, %c0_117] : memref<49x512xf32, #tpu.memory_space<vmem>>, vector<1x512xf32>
    %374 = vector.shape_cast %373 : vector<1x512xf32> to vector<512xf32>
    %375 = vector.shape_cast %374 : vector<512xf32> to vector<1x512xf32>
    %376 = vector.broadcast %375 : vector<1x512xf32> to vector<16x512xf32>
    %377 = arith.mulf %372, %376 : vector<16x512xf32>
    %378 = arith.addf %371, %377 : vector<16x512xf32>
    %379 = vector.extract_strided_slice %357 {offsets = [0, 288], sizes = [16, 512], strides = [1, 1]} : vector<16x1088xf32> to vector<16x512xf32>
    %c24_118 = arith.constant 24 : index
    %c0_119 = arith.constant 0 : index
    %380 = vector.load %arg7[%c24_118, %c0_119] : memref<49x512xf32, #tpu.memory_space<vmem>>, vector<1x512xf32>
    %381 = vector.shape_cast %380 : vector<1x512xf32> to vector<512xf32>
    %382 = vector.shape_cast %381 : vector<512xf32> to vector<1x512xf32>
    %383 = vector.broadcast %382 : vector<1x512xf32> to vector<16x512xf32>
    %384 = arith.mulf %379, %383 : vector<16x512xf32>
    %385 = arith.addf %378, %384 : vector<16x512xf32>
    %386 = vector.extract_strided_slice %357 {offsets = [0, 384], sizes = [16, 512], strides = [1, 1]} : vector<16x1088xf32> to vector<16x512xf32>
    %c25 = arith.constant 25 : index
    %c0_120 = arith.constant 0 : index
    %387 = vector.load %arg7[%c25, %c0_120] : memref<49x512xf32, #tpu.memory_space<vmem>>, vector<1x512xf32>
    %388 = vector.shape_cast %387 : vector<1x512xf32> to vector<512xf32>
    %389 = vector.shape_cast %388 : vector<512xf32> to vector<1x512xf32>
    %390 = vector.broadcast %389 : vector<1x512xf32> to vector<16x512xf32>
    %391 = arith.mulf %386, %390 : vector<16x512xf32>
    %392 = arith.addf %385, %391 : vector<16x512xf32>
    %393 = vector.extract_strided_slice %357 {offsets = [0, 480], sizes = [16, 512], strides = [1, 1]} : vector<16x1088xf32> to vector<16x512xf32>
    %c26 = arith.constant 26 : index
    %c0_121 = arith.constant 0 : index
    %394 = vector.load %arg7[%c26, %c0_121] : memref<49x512xf32, #tpu.memory_space<vmem>>, vector<1x512xf32>
    %395 = vector.shape_cast %394 : vector<1x512xf32> to vector<512xf32>
    %396 = vector.shape_cast %395 : vector<512xf32> to vector<1x512xf32>
    %397 = vector.broadcast %396 : vector<1x512xf32> to vector<16x512xf32>
    %398 = arith.mulf %393, %397 : vector<16x512xf32>
    %399 = arith.addf %392, %398 : vector<16x512xf32>
    %400 = vector.extract_strided_slice %357 {offsets = [0, 576], sizes = [16, 512], strides = [1, 1]} : vector<16x1088xf32> to vector<16x512xf32>
    %c27 = arith.constant 27 : index
    %c0_122 = arith.constant 0 : index
    %401 = vector.load %arg7[%c27, %c0_122] : memref<49x512xf32, #tpu.memory_space<vmem>>, vector<1x512xf32>
    %402 = vector.shape_cast %401 : vector<1x512xf32> to vector<512xf32>
    %403 = vector.shape_cast %402 : vector<512xf32> to vector<1x512xf32>
    %404 = vector.broadcast %403 : vector<1x512xf32> to vector<16x512xf32>
    %405 = arith.mulf %400, %404 : vector<16x512xf32>
    %406 = arith.addf %399, %405 : vector<16x512xf32>
    %c4_123 = arith.constant 4 : index
    %c0_124 = arith.constant 0 : index
    %c0_125 = arith.constant 0 : index
    %407 = vector.load %arg6[%c4_123, %c0_124, %c0_125] : memref<7x16x16xf32, #tpu.memory_space<vmem>>, vector<1x16x16xf32>
    %408 = vector.shape_cast %407 : vector<1x16x16xf32> to vector<16x16xf32>
    %cst_126 = arith.constant dense<0.000000e+00> : vector<16x1088xf32>
    %409 = tpu.matmul %408, %199, %cst_126 {dimension_numbers = #tpu.dot_dimension_numbers<[1], [0], [0], [1], [0, 0, 1, 1], [], []>} : vector<16x16xf32>, vector<16x1088xf32>, vector<16x1088xf32> -> vector<16x1088xf32>
    %410 = vector.extract_strided_slice %409 {offsets = [0, 0], sizes = [16, 512], strides = [1, 1]} : vector<16x1088xf32> to vector<16x512xf32>
    %c28 = arith.constant 28 : index
    %c0_127 = arith.constant 0 : index
    %411 = vector.load %arg7[%c28, %c0_127] : memref<49x512xf32, #tpu.memory_space<vmem>>, vector<1x512xf32>
    %412 = vector.shape_cast %411 : vector<1x512xf32> to vector<512xf32>
    %413 = vector.shape_cast %412 : vector<512xf32> to vector<1x512xf32>
    %414 = vector.broadcast %413 : vector<1x512xf32> to vector<16x512xf32>
    %415 = arith.mulf %410, %414 : vector<16x512xf32>
    %416 = arith.addf %406, %415 : vector<16x512xf32>
    %417 = vector.extract_strided_slice %409 {offsets = [0, 96], sizes = [16, 512], strides = [1, 1]} : vector<16x1088xf32> to vector<16x512xf32>
    %c29 = arith.constant 29 : index
    %c0_128 = arith.constant 0 : index
    %418 = vector.load %arg7[%c29, %c0_128] : memref<49x512xf32, #tpu.memory_space<vmem>>, vector<1x512xf32>
    %419 = vector.shape_cast %418 : vector<1x512xf32> to vector<512xf32>
    %420 = vector.shape_cast %419 : vector<512xf32> to vector<1x512xf32>
    %421 = vector.broadcast %420 : vector<1x512xf32> to vector<16x512xf32>
    %422 = arith.mulf %417, %421 : vector<16x512xf32>
    %423 = arith.addf %416, %422 : vector<16x512xf32>
    %424 = vector.extract_strided_slice %409 {offsets = [0, 192], sizes = [16, 512], strides = [1, 1]} : vector<16x1088xf32> to vector<16x512xf32>
    %c30 = arith.constant 30 : index
    %c0_129 = arith.constant 0 : index
    %425 = vector.load %arg7[%c30, %c0_129] : memref<49x512xf32, #tpu.memory_space<vmem>>, vector<1x512xf32>
    %426 = vector.shape_cast %425 : vector<1x512xf32> to vector<512xf32>
    %427 = vector.shape_cast %426 : vector<512xf32> to vector<1x512xf32>
    %428 = vector.broadcast %427 : vector<1x512xf32> to vector<16x512xf32>
    %429 = arith.mulf %424, %428 : vector<16x512xf32>
    %430 = arith.addf %423, %429 : vector<16x512xf32>
    %431 = vector.extract_strided_slice %409 {offsets = [0, 288], sizes = [16, 512], strides = [1, 1]} : vector<16x1088xf32> to vector<16x512xf32>
    %c31 = arith.constant 31 : index
    %c0_130 = arith.constant 0 : index
    %432 = vector.load %arg7[%c31, %c0_130] : memref<49x512xf32, #tpu.memory_space<vmem>>, vector<1x512xf32>
    %433 = vector.shape_cast %432 : vector<1x512xf32> to vector<512xf32>
    %434 = vector.shape_cast %433 : vector<512xf32> to vector<1x512xf32>
    %435 = vector.broadcast %434 : vector<1x512xf32> to vector<16x512xf32>
    %436 = arith.mulf %431, %435 : vector<16x512xf32>
    %437 = arith.addf %430, %436 : vector<16x512xf32>
    %438 = vector.extract_strided_slice %409 {offsets = [0, 384], sizes = [16, 512], strides = [1, 1]} : vector<16x1088xf32> to vector<16x512xf32>
    %c32 = arith.constant 32 : index
    %c0_131 = arith.constant 0 : index
    %439 = vector.load %arg7[%c32, %c0_131] : memref<49x512xf32, #tpu.memory_space<vmem>>, vector<1x512xf32>
    %440 = vector.shape_cast %439 : vector<1x512xf32> to vector<512xf32>
    %441 = vector.shape_cast %440 : vector<512xf32> to vector<1x512xf32>
    %442 = vector.broadcast %441 : vector<1x512xf32> to vector<16x512xf32>
    %443 = arith.mulf %438, %442 : vector<16x512xf32>
    %444 = arith.addf %437, %443 : vector<16x512xf32>
    %445 = vector.extract_strided_slice %409 {offsets = [0, 480], sizes = [16, 512], strides = [1, 1]} : vector<16x1088xf32> to vector<16x512xf32>
    %c33 = arith.constant 33 : index
    %c0_132 = arith.constant 0 : index
    %446 = vector.load %arg7[%c33, %c0_132] : memref<49x512xf32, #tpu.memory_space<vmem>>, vector<1x512xf32>
    %447 = vector.shape_cast %446 : vector<1x512xf32> to vector<512xf32>
    %448 = vector.shape_cast %447 : vector<512xf32> to vector<1x512xf32>
    %449 = vector.broadcast %448 : vector<1x512xf32> to vector<16x512xf32>
    %450 = arith.mulf %445, %449 : vector<16x512xf32>
    %451 = arith.addf %444, %450 : vector<16x512xf32>
    %452 = vector.extract_strided_slice %409 {offsets = [0, 576], sizes = [16, 512], strides = [1, 1]} : vector<16x1088xf32> to vector<16x512xf32>
    %c34 = arith.constant 34 : index
    %c0_133 = arith.constant 0 : index
    %453 = vector.load %arg7[%c34, %c0_133] : memref<49x512xf32, #tpu.memory_space<vmem>>, vector<1x512xf32>
    %454 = vector.shape_cast %453 : vector<1x512xf32> to vector<512xf32>
    %455 = vector.shape_cast %454 : vector<512xf32> to vector<1x512xf32>
    %456 = vector.broadcast %455 : vector<1x512xf32> to vector<16x512xf32>
    %457 = arith.mulf %452, %456 : vector<16x512xf32>
    %458 = arith.addf %451, %457 : vector<16x512xf32>
    %c5_134 = arith.constant 5 : index
    %c0_135 = arith.constant 0 : index
    %c0_136 = arith.constant 0 : index
    %459 = vector.load %arg6[%c5_134, %c0_135, %c0_136] : memref<7x16x16xf32, #tpu.memory_space<vmem>>, vector<1x16x16xf32>
    %460 = vector.shape_cast %459 : vector<1x16x16xf32> to vector<16x16xf32>
    %cst_137 = arith.constant dense<0.000000e+00> : vector<16x1088xf32>
    %461 = tpu.matmul %460, %199, %cst_137 {dimension_numbers = #tpu.dot_dimension_numbers<[1], [0], [0], [1], [0, 0, 1, 1], [], []>} : vector<16x16xf32>, vector<16x1088xf32>, vector<16x1088xf32> -> vector<16x1088xf32>
    %462 = vector.extract_strided_slice %461 {offsets = [0, 0], sizes = [16, 512], strides = [1, 1]} : vector<16x1088xf32> to vector<16x512xf32>
    %c35 = arith.constant 35 : index
    %c0_138 = arith.constant 0 : index
    %463 = vector.load %arg7[%c35, %c0_138] : memref<49x512xf32, #tpu.memory_space<vmem>>, vector<1x512xf32>
    %464 = vector.shape_cast %463 : vector<1x512xf32> to vector<512xf32>
    %465 = vector.shape_cast %464 : vector<512xf32> to vector<1x512xf32>
    %466 = vector.broadcast %465 : vector<1x512xf32> to vector<16x512xf32>
    %467 = arith.mulf %462, %466 : vector<16x512xf32>
    %468 = arith.addf %458, %467 : vector<16x512xf32>
    %469 = vector.extract_strided_slice %461 {offsets = [0, 96], sizes = [16, 512], strides = [1, 1]} : vector<16x1088xf32> to vector<16x512xf32>
    %c36 = arith.constant 36 : index
    %c0_139 = arith.constant 0 : index
    %470 = vector.load %arg7[%c36, %c0_139] : memref<49x512xf32, #tpu.memory_space<vmem>>, vector<1x512xf32>
    %471 = vector.shape_cast %470 : vector<1x512xf32> to vector<512xf32>
    %472 = vector.shape_cast %471 : vector<512xf32> to vector<1x512xf32>
    %473 = vector.broadcast %472 : vector<1x512xf32> to vector<16x512xf32>
    %474 = arith.mulf %469, %473 : vector<16x512xf32>
    %475 = arith.addf %468, %474 : vector<16x512xf32>
    %476 = vector.extract_strided_slice %461 {offsets = [0, 192], sizes = [16, 512], strides = [1, 1]} : vector<16x1088xf32> to vector<16x512xf32>
    %c37 = arith.constant 37 : index
    %c0_140 = arith.constant 0 : index
    %477 = vector.load %arg7[%c37, %c0_140] : memref<49x512xf32, #tpu.memory_space<vmem>>, vector<1x512xf32>
    %478 = vector.shape_cast %477 : vector<1x512xf32> to vector<512xf32>
    %479 = vector.shape_cast %478 : vector<512xf32> to vector<1x512xf32>
    %480 = vector.broadcast %479 : vector<1x512xf32> to vector<16x512xf32>
    %481 = arith.mulf %476, %480 : vector<16x512xf32>
    %482 = arith.addf %475, %481 : vector<16x512xf32>
    %483 = vector.extract_strided_slice %461 {offsets = [0, 288], sizes = [16, 512], strides = [1, 1]} : vector<16x1088xf32> to vector<16x512xf32>
    %c38 = arith.constant 38 : index
    %c0_141 = arith.constant 0 : index
    %484 = vector.load %arg7[%c38, %c0_141] : memref<49x512xf32, #tpu.memory_space<vmem>>, vector<1x512xf32>
    %485 = vector.shape_cast %484 : vector<1x512xf32> to vector<512xf32>
    %486 = vector.shape_cast %485 : vector<512xf32> to vector<1x512xf32>
    %487 = vector.broadcast %486 : vector<1x512xf32> to vector<16x512xf32>
    %488 = arith.mulf %483, %487 : vector<16x512xf32>
    %489 = arith.addf %482, %488 : vector<16x512xf32>
    %490 = vector.extract_strided_slice %461 {offsets = [0, 384], sizes = [16, 512], strides = [1, 1]} : vector<16x1088xf32> to vector<16x512xf32>
    %c39 = arith.constant 39 : index
    %c0_142 = arith.constant 0 : index
    %491 = vector.load %arg7[%c39, %c0_142] : memref<49x512xf32, #tpu.memory_space<vmem>>, vector<1x512xf32>
    %492 = vector.shape_cast %491 : vector<1x512xf32> to vector<512xf32>
    %493 = vector.shape_cast %492 : vector<512xf32> to vector<1x512xf32>
    %494 = vector.broadcast %493 : vector<1x512xf32> to vector<16x512xf32>
    %495 = arith.mulf %490, %494 : vector<16x512xf32>
    %496 = arith.addf %489, %495 : vector<16x512xf32>
    %497 = vector.extract_strided_slice %461 {offsets = [0, 480], sizes = [16, 512], strides = [1, 1]} : vector<16x1088xf32> to vector<16x512xf32>
    %c40 = arith.constant 40 : index
    %c0_143 = arith.constant 0 : index
    %498 = vector.load %arg7[%c40, %c0_143] : memref<49x512xf32, #tpu.memory_space<vmem>>, vector<1x512xf32>
    %499 = vector.shape_cast %498 : vector<1x512xf32> to vector<512xf32>
    %500 = vector.shape_cast %499 : vector<512xf32> to vector<1x512xf32>
    %501 = vector.broadcast %500 : vector<1x512xf32> to vector<16x512xf32>
    %502 = arith.mulf %497, %501 : vector<16x512xf32>
    %503 = arith.addf %496, %502 : vector<16x512xf32>
    %504 = vector.extract_strided_slice %461 {offsets = [0, 576], sizes = [16, 512], strides = [1, 1]} : vector<16x1088xf32> to vector<16x512xf32>
    %c41 = arith.constant 41 : index
    %c0_144 = arith.constant 0 : index
    %505 = vector.load %arg7[%c41, %c0_144] : memref<49x512xf32, #tpu.memory_space<vmem>>, vector<1x512xf32>
    %506 = vector.shape_cast %505 : vector<1x512xf32> to vector<512xf32>
    %507 = vector.shape_cast %506 : vector<512xf32> to vector<1x512xf32>
    %508 = vector.broadcast %507 : vector<1x512xf32> to vector<16x512xf32>
    %509 = arith.mulf %504, %508 : vector<16x512xf32>
    %510 = arith.addf %503, %509 : vector<16x512xf32>
    %c6_145 = arith.constant 6 : index
    %c0_146 = arith.constant 0 : index
    %c0_147 = arith.constant 0 : index
    %511 = vector.load %arg6[%c6_145, %c0_146, %c0_147] : memref<7x16x16xf32, #tpu.memory_space<vmem>>, vector<1x16x16xf32>
    %512 = vector.shape_cast %511 : vector<1x16x16xf32> to vector<16x16xf32>
    %cst_148 = arith.constant dense<0.000000e+00> : vector<16x1088xf32>
    %513 = tpu.matmul %512, %199, %cst_148 {dimension_numbers = #tpu.dot_dimension_numbers<[1], [0], [0], [1], [0, 0, 1, 1], [], []>} : vector<16x16xf32>, vector<16x1088xf32>, vector<16x1088xf32> -> vector<16x1088xf32>
    %514 = vector.extract_strided_slice %513 {offsets = [0, 0], sizes = [16, 512], strides = [1, 1]} : vector<16x1088xf32> to vector<16x512xf32>
    %c42 = arith.constant 42 : index
    %c0_149 = arith.constant 0 : index
    %515 = vector.load %arg7[%c42, %c0_149] : memref<49x512xf32, #tpu.memory_space<vmem>>, vector<1x512xf32>
    %516 = vector.shape_cast %515 : vector<1x512xf32> to vector<512xf32>
    %517 = vector.shape_cast %516 : vector<512xf32> to vector<1x512xf32>
    %518 = vector.broadcast %517 : vector<1x512xf32> to vector<16x512xf32>
    %519 = arith.mulf %514, %518 : vector<16x512xf32>
    %520 = arith.addf %510, %519 : vector<16x512xf32>
    %521 = vector.extract_strided_slice %513 {offsets = [0, 96], sizes = [16, 512], strides = [1, 1]} : vector<16x1088xf32> to vector<16x512xf32>
    %c43 = arith.constant 43 : index
    %c0_150 = arith.constant 0 : index
    %522 = vector.load %arg7[%c43, %c0_150] : memref<49x512xf32, #tpu.memory_space<vmem>>, vector<1x512xf32>
    %523 = vector.shape_cast %522 : vector<1x512xf32> to vector<512xf32>
    %524 = vector.shape_cast %523 : vector<512xf32> to vector<1x512xf32>
    %525 = vector.broadcast %524 : vector<1x512xf32> to vector<16x512xf32>
    %526 = arith.mulf %521, %525 : vector<16x512xf32>
    %527 = arith.addf %520, %526 : vector<16x512xf32>
    %528 = vector.extract_strided_slice %513 {offsets = [0, 192], sizes = [16, 512], strides = [1, 1]} : vector<16x1088xf32> to vector<16x512xf32>
    %c44 = arith.constant 44 : index
    %c0_151 = arith.constant 0 : index
    %529 = vector.load %arg7[%c44, %c0_151] : memref<49x512xf32, #tpu.memory_space<vmem>>, vector<1x512xf32>
    %530 = vector.shape_cast %529 : vector<1x512xf32> to vector<512xf32>
    %531 = vector.shape_cast %530 : vector<512xf32> to vector<1x512xf32>
    %532 = vector.broadcast %531 : vector<1x512xf32> to vector<16x512xf32>
    %533 = arith.mulf %528, %532 : vector<16x512xf32>
    %534 = arith.addf %527, %533 : vector<16x512xf32>
    %535 = vector.extract_strided_slice %513 {offsets = [0, 288], sizes = [16, 512], strides = [1, 1]} : vector<16x1088xf32> to vector<16x512xf32>
    %c45 = arith.constant 45 : index
    %c0_152 = arith.constant 0 : index
    %536 = vector.load %arg7[%c45, %c0_152] : memref<49x512xf32, #tpu.memory_space<vmem>>, vector<1x512xf32>
    %537 = vector.shape_cast %536 : vector<1x512xf32> to vector<512xf32>
    %538 = vector.shape_cast %537 : vector<512xf32> to vector<1x512xf32>
    %539 = vector.broadcast %538 : vector<1x512xf32> to vector<16x512xf32>
    %540 = arith.mulf %535, %539 : vector<16x512xf32>
    %541 = arith.addf %534, %540 : vector<16x512xf32>
    %542 = vector.extract_strided_slice %513 {offsets = [0, 384], sizes = [16, 512], strides = [1, 1]} : vector<16x1088xf32> to vector<16x512xf32>
    %c46 = arith.constant 46 : index
    %c0_153 = arith.constant 0 : index
    %543 = vector.load %arg7[%c46, %c0_153] : memref<49x512xf32, #tpu.memory_space<vmem>>, vector<1x512xf32>
    %544 = vector.shape_cast %543 : vector<1x512xf32> to vector<512xf32>
    %545 = vector.shape_cast %544 : vector<512xf32> to vector<1x512xf32>
    %546 = vector.broadcast %545 : vector<1x512xf32> to vector<16x512xf32>
    %547 = arith.mulf %542, %546 : vector<16x512xf32>
    %548 = arith.addf %541, %547 : vector<16x512xf32>
    %549 = vector.extract_strided_slice %513 {offsets = [0, 480], sizes = [16, 512], strides = [1, 1]} : vector<16x1088xf32> to vector<16x512xf32>
    %c47 = arith.constant 47 : index
    %c0_154 = arith.constant 0 : index
    %550 = vector.load %arg7[%c47, %c0_154] : memref<49x512xf32, #tpu.memory_space<vmem>>, vector<1x512xf32>
    %551 = vector.shape_cast %550 : vector<1x512xf32> to vector<512xf32>
    %552 = vector.shape_cast %551 : vector<512xf32> to vector<1x512xf32>
    %553 = vector.broadcast %552 : vector<1x512xf32> to vector<16x512xf32>
    %554 = arith.mulf %549, %553 : vector<16x512xf32>
    %555 = arith.addf %548, %554 : vector<16x512xf32>
    %556 = vector.extract_strided_slice %513 {offsets = [0, 576], sizes = [16, 512], strides = [1, 1]} : vector<16x1088xf32> to vector<16x512xf32>
    %c48 = arith.constant 48 : index
    %c0_155 = arith.constant 0 : index
    %557 = vector.load %arg7[%c48, %c0_155] : memref<49x512xf32, #tpu.memory_space<vmem>>, vector<1x512xf32>
    %558 = vector.shape_cast %557 : vector<1x512xf32> to vector<512xf32>
    %559 = vector.shape_cast %558 : vector<512xf32> to vector<1x512xf32>
    %560 = vector.broadcast %559 : vector<1x512xf32> to vector<16x512xf32>
    %561 = arith.mulf %556, %560 : vector<16x512xf32>
    %562 = arith.addf %555, %561 : vector<16x512xf32>
    %c0_156 = arith.constant 0 : index
    %c0_157 = arith.constant 0 : index
    %563 = vector.load %arg8[%c0_156, %c0_157] : memref<1x512xf32, #tpu.memory_space<vmem>>, vector<1x512xf32>
    %564 = vector.broadcast %563 : vector<1x512xf32> to vector<16x512xf32>
    %565 = arith.addf %562, %564 : vector<16x512xf32>
    %c0_158 = arith.constant 0 : index
    %c0_159 = arith.constant 0 : index
    %566 = vector.load %arg9[%c0_158, %c0_159] : memref<512x128xf32, #tpu.memory_space<vmem>>, vector<512x128xf32>
    %cst_160 = arith.constant dense<0.000000e+00> : vector<16x128xf32>
    %567 = tpu.matmul %1, %566, %cst_160 {dimension_numbers = #tpu.dot_dimension_numbers<[1], [0], [0], [1], [0, 0, 1, 1], [], []>} : vector<16x512xf32>, vector<512x128xf32>, vector<16x128xf32> -> vector<16x128xf32>
    %c0_161 = arith.constant 0 : index
    %c0_162 = arith.constant 0 : index
    %568 = vector.load %arg10[%c0_161, %c0_162] : memref<1x128xf32, #tpu.memory_space<vmem>>, vector<1x128xf32>
    %569 = vector.broadcast %568 : vector<1x128xf32> to vector<16x128xf32>
    %570 = arith.addf %567, %569 : vector<16x128xf32>
    %cst_163 = arith.constant 5.000000e-01 : f32
    %571 = vector.broadcast %cst_163 : f32 to vector<16x128xf32>
    %572 = arith.mulf %571, %570 : vector<16x128xf32>
    %cst_164 = arith.constant 0.707106769 : f32
    %573 = vector.broadcast %cst_164 : f32 to vector<16x128xf32>
    %574 = arith.mulf %570, %573 : vector<16x128xf32>
    %575 = math.erf %574 : vector<16x128xf32>
    %cst_165 = arith.constant 1.000000e+00 : f32
    %576 = vector.broadcast %cst_165 : f32 to vector<16x128xf32>
    %577 = arith.addf %576, %575 : vector<16x128xf32>
    %578 = arith.mulf %572, %577 : vector<16x128xf32>
    %c0_166 = arith.constant 0 : index
    %c0_167 = arith.constant 0 : index
    %579 = vector.load %arg11[%c0_166, %c0_167] : memref<128x512xf32, #tpu.memory_space<vmem>>, vector<128x512xf32>
    %cst_168 = arith.constant dense<0.000000e+00> : vector<16x512xf32>
    %580 = tpu.matmul %578, %579, %cst_168 {dimension_numbers = #tpu.dot_dimension_numbers<[1], [0], [0], [1], [0, 0, 1, 1], [], []>} : vector<16x128xf32>, vector<128x512xf32>, vector<16x512xf32> -> vector<16x512xf32>
    %c0_169 = arith.constant 0 : index
    %c0_170 = arith.constant 0 : index
    %581 = vector.load %arg12[%c0_169, %c0_170] : memref<1x512xf32, #tpu.memory_space<vmem>>, vector<1x512xf32>
    %582 = vector.broadcast %581 : vector<1x512xf32> to vector<16x512xf32>
    %583 = arith.addf %580, %582 : vector<16x512xf32>
    %cst_171 = arith.constant 0.000000e+00 : f32
    %584 = vector.broadcast %cst_171 : f32 to vector<16x512xf32>
    %585 = arith.subf %584, %583 : vector<16x512xf32>
    %586 = math.exp %585 : vector<16x512xf32>
    %cst_172 = arith.constant 1.000000e+00 : f32
    %587 = vector.broadcast %cst_172 : f32 to vector<16x512xf32>
    %588 = arith.addf %587, %586 : vector<16x512xf32>
    %cst_173 = arith.constant 1.000000e+00 : f32
    %589 = vector.broadcast %cst_173 : f32 to vector<16x512xf32>
    %590 = arith.divf %589, %588 : vector<16x512xf32>
    %591 = arith.mulf %590, %565 : vector<16x512xf32>
    %c0_174 = arith.constant 0 : index
    %c0_175 = arith.constant 0 : index
    %c0_176 = arith.constant 0 : index
    %592 = vector.load %arg13[%c0_174, %c0_175, %c0_176] : memref<1x16x512xf32, #tpu.memory_space<vmem>>, vector<1x16x512xf32>
    %593 = vector.shape_cast %592 : vector<1x16x512xf32> to vector<16x512xf32>
    %594 = vector.shape_cast %591 : vector<16x512xf32> to vector<1x16x512xf32>
    tpu.vector_store %arg13[%c0_174, %c0_175, %c0_176], %594 {strides = array<i32>} : memref<1x16x512xf32, #tpu.memory_space<vmem>>, vector<1x16x512xf32>,
    return
  }
  func.func @transform_0(%arg0: i32) -> (i32, i32, i32) {
    %c0_i32 = arith.constant 0 : i32
    %c0_i32_0 = arith.constant 0 : i32
    %c0_i32_1 = arith.constant 0 : i32
    return %arg0, %c0_i32, %c0_i32_0 : i32, i32, i32
  }
  func.func @transform_1(%arg0: i32) -> (i32, i32, i32) {
    %c0_i32 = arith.constant 0 : i32
    %c0_i32_0 = arith.constant 0 : i32
    %c0_i32_1 = arith.constant 0 : i32
    %c0_i32_2 = arith.constant 0 : i32
    return %c0_i32, %c0_i32_0, %c0_i32_1 : i32, i32, i32
  }
  func.func @transform_2(%arg0: i32) -> (i32, i32) {
    %c0_i32 = arith.constant 0 : i32
    %c0_i32_0 = arith.constant 0 : i32
    %c0_i32_1 = arith.constant 0 : i32
    return %c0_i32, %c0_i32_0 : i32, i32
  }
  func.func @transform_3(%arg0: i32) -> (i32, i32) {
    %c0_i32 = arith.constant 0 : i32
    %c0_i32_0 = arith.constant 0 : i32
    %c0_i32_1 = arith.constant 0 : i32
    return %c0_i32, %c0_i32_0 : i32, i32
  }
  func.func @transform_4(%arg0: i32) -> (i32, i32) {
    %c0_i32 = arith.constant 0 : i32
    %c0_i32_0 = arith.constant 0 : i32
    %c0_i32_1 = arith.constant 0 : i32
    return %c0_i32, %c0_i32_0 : i32, i32
  }
  func.func @transform_5(%arg0: i32) -> (i32, i32, i32) {
    %c0_i32 = arith.constant 0 : i32
    %c0_i32_0 = arith.constant 0 : i32
    %c0_i32_1 = arith.constant 0 : i32
    %c0_i32_2 = arith.constant 0 : i32
    return %c0_i32, %c0_i32_0, %c0_i32_1 : i32, i32, i32
  }
  func.func @transform_6(%arg0: i32) -> (i32, i32) {
    %c0_i32 = arith.constant 0 : i32
    %c0_i32_0 = arith.constant 0 : i32
    %c0_i32_1 = arith.constant 0 : i32
    return %c0_i32, %c0_i32_0 : i32, i32
  }
  func.func @transform_7(%arg0: i32) -> (i32, i32) {
    %c0_i32 = arith.constant 0 : i32
    %c0_i32_0 = arith.constant 0 : i32
    %c0_i32_1 = arith.constant 0 : i32
    return %c0_i32, %c0_i32_0 : i32, i32
  }
  func.func @transform_8(%arg0: i32) -> (i32, i32) {
    %c0_i32 = arith.constant 0 : i32
    %c0_i32_0 = arith.constant 0 : i32
    %c0_i32_1 = arith.constant 0 : i32
    return %c0_i32, %c0_i32_0 : i32, i32
  }
  func.func @transform_9(%arg0: i32) -> (i32, i32) {
    %c0_i32 = arith.constant 0 : i32
    %c0_i32_0 = arith.constant 0 : i32
    %c0_i32_1 = arith.constant 0 : i32
    return %c0_i32, %c0_i32_0 : i32, i32
  }
  func.func @transform_10(%arg0: i32) -> (i32, i32) {
    %c0_i32 = arith.constant 0 : i32
    %c0_i32_0 = arith.constant 0 : i32
    %c0_i32_1 = arith.constant 0 : i32
    return %c0_i32, %c0_i32_0 : i32, i32
  }
  func.func @transform_11(%arg0: i32) -> (i32, i32) {
    %c0_i32 = arith.constant 0 : i32
    %c0_i32_0 = arith.constant 0 : i32
    %c0_i32_1 = arith.constant 0 : i32
    return %c0_i32, %c0_i32_0 : i32, i32
  }
  func.func @transform_12(%arg0: i32) -> (i32, i32, i32) {
    %c0_i32 = arith.constant 0 : i32
    %c0_i32_0 = arith.constant 0 : i32
    %c0_i32_1 = arith.constant 0 : i32
    return %arg0, %c0_i32, %c0_i32_0 : i32, i32, i32
  }
}

</mosaic_0001>

<bundles_post_ra>
// kernel: tile.318
= control target key start
LH: loop header
LB: loop body
LE: loop exit
PB: predicated region body
PF: predicated region fallthrough
CT: control target
= control target key end

     0   :  { %s28_s0 = inlined_call_operand.vmem [shape: f32[32], index: 0, kind: input, shape index: {}]   ;;  %s29_s1 = inlined_call_operand.vmem [shape: f32[16,32], index: 1, kind: output, shape index: {}]  }
   0x1   :  { %v4_v0 = vld [vmem:[%s28_s0] ss:$0 sm:$0xff] }
   0x2   :  { %5 = vst [vmem:[%s29_s1] sm:$0xff] %v4_v0  ;;  %8 = vst [vmem:[%s29_s1 + $0x8] sm:$0xff] %v4_v0 }

// kernel: tile.391
= control target key start
LH: loop header
LB: loop body
LE: loop exit
PB: predicated region body
PF: predicated region fallthrough
CT: control target
= control target key end

     0   :  { %s57_s8 = smov 96   ;;  %vm3_vm0 = vcmask 261120   ;;  %s59_s15 = smov 64   ;;  %vm9_vm1 = vcmask 1048320   ;;  %vm15_vm2 = vcmask 785920   ;;  %vm21_vm3 = vcmask 523520   ;;  %s94_s0 = inlined_call_operand.vmem [shape: f32[16,32], index: 0, kind: input, shape index: {}]   ;;  %s95_s1 = inlined_call_operand.vmem [shape: f32[1,512], index: 1, kind: output, shape index: {}]  }
   0x1   :  { %v48_v0 = vld [vmem:[%s94_s0 + $0x3] ss:$4 sm:$0xf]   ;;  %v49_v1 = vld [vmem:[%s94_s0 + $0x2] ss:$4 sm:$0xf]  }
   0x2   :  { %7 = vrot.lane.b32.xlu0 %v48_v0, %s57_s8  ;;  %v50_v2 = vld [vmem:[%s94_s0 + $0x1] ss:$4 sm:$0xf]   ;;  %v2_v3 = vld [vmem:[%s94_s0] ss:$4 sm:$0xf]  }
   0x3   :  { %s58_s0 = smov 32   ;;  %4 = vst.msk [vmem:[#allocation0] ss:$8 sm:$0xf] %vm3_vm0, %v2_v3  }
   0x4   :  { %19 = vrot.lane.b32.xlu1 %v50_v2, %s58_s0 }
   0x6   :  { %13 = vrot.lane.b32.xlu0 %v49_v1, %s59_s15 }
  0x74   :  { %v8_v4 = vpop.permute.xlu0 %7  }
  0x75   :  { %10 = vst.msk [vmem:[#allocation0] ss:$8 sm:$0xf] %vm9_vm1, %v8_v4  }
  0x76   :  { %v20_v5 = vpop.permute.xlu1 %19  }
  0x78   :  { %v14_v6 = vpop.permute.xlu0 %13  }
  0x79   :  { %16 = vst.msk [vmem:[#allocation0] ss:$8 sm:$0xf] %vm15_vm2, %v14_v6  }
  0x7a   :  { %22 = vst.msk [vmem:[#allocation0] ss:$8 sm:$0xf] %vm21_vm3, %v20_v5  }
  0x81   :  { %v26_v7 = vld [vmem:[#allocation0] sm:$0x1]  ;;  %v30_v8 = vld [vmem:[#allocation0 + $0x8] sm:$0x1]  ;;  %v35_v9 = vld [vmem:[#allocation0 + $0x10] sm:$0x1] }
  0x82   :  { %28 = vst [vmem:[%s95_s1] sm:$0x1] %v26_v7  ;;  %51 = vst [vmem:[%s95_s1 + $0x1] sm:$0x1] %v30_v8  ;;  %v41_v10 = vld [vmem:[#allocation0 + $0x18] sm:$0x1] }
  0x83   :  { %52 = vst [vmem:[%s95_s1 + $0x2] sm:$0x1] %v35_v9  ;;  %53 = vst [vmem:[%s95_s1 + $0x3] sm:$0x1] %v41_v10 }

// kernel: tile.625
= control target key start
LH: loop header
LB: loop body
LE: loop exit
PB: predicated region body
PF: predicated region fallthrough
CT: control target
= control target key end

     0   :  { %s28_s0 = inlined_call_operand.vmem [shape: f32[8], index: 0, kind: input, shape index: {}]   ;;  %s29_s1 = inlined_call_operand.vmem [shape: f32[16,8], index: 1, kind: output, shape index: {}]  }
   0x1   :  { %v4_v0 = vld [vmem:[%s28_s0] ss:$0 sm:$0xff] }
   0x2   :  { %5 = vst [vmem:[%s29_s1] sm:$0xff] %v4_v0  ;;  %8 = vst [vmem:[%s29_s1 + $0x8] sm:$0xff] %v4_v0 }

// kernel: tile.626
= control target key start
LH: loop header
LB: loop body
LE: loop exit
PB: predicated region body
PF: predicated region fallthrough
CT: control target
= control target key end

     0   :  { %s131_s10 = smov 120   ;;  %s132_s11 = smov 104   ;;  %vm3_vm0 = vcmask 64512   ;;  %vm9_vm1 = vcmask 1048512   ;;  %vm15_vm2 = vcmask 982912   ;;  %vm21_vm3 = vcmask 917312   ;;  %s207_s0 = inlined_call_operand.vmem [shape: f32[16,8], index: 0, kind: input, shape index: {}]   ;;  %s208_s1 = inlined_call_operand.vmem [shape: f32[1,128], index: 1, kind: output, shape index: {}]  }
   0x1   :  { %v101_v0 = vld [vmem:[%s207_s0 + $0xf] sm:$0x1]   ;;  %v103_v1 = vld [vmem:[%s207_s0 + $0xd] sm:$0x1]   ;;  %v102_v2 = vld [vmem:[%s207_s0 + $0xe] sm:$0x1]  }
   0x2   :  { %7 = vrot.lane.b32.xlu0 %v101_v0, %s131_s10  ;;  %19 = vrot.lane.b32.xlu1 %v103_v1, %s132_s11  ;;  %v104_v3 = vld [vmem:[%s207_s0 + $0xc] sm:$0x1]   ;;  %s133_s16 = smov 112   ;;  %s134_s17 = smov 96   ;;  %v105_v4 = vld [vmem:[%s207_s0 + $0xb] sm:$0x1]  }
   0x3   :  { %v106_v5 = vld [vmem:[%s207_s0 + $0xa] sm:$0x1]   ;;  %v2_v6 = vld [vmem:[%s207_s0] sm:$0x1]   ;;  %s135_s24 = smov 88   ;;  %s136_s25 = smov 80  }
   0x4   :  { %4 = vst.msk [vmem:[#allocation0] sm:$0x1] %vm3_vm0, %v2_v6   ;;  %v107_v7 = vld [vmem:[%s207_s0 + $0x9] sm:$0x1]   ;;  %v108_v8 = vld [vmem:[%s207_s0 + $0x8] sm:$0x1]  }
   0x5   :  { %s137_s30 = smov 72   ;;  %s138_s2 = smov 64   ;;  %v109_v9 = vld [vmem:[%s207_s0 + $0x7] sm:$0x1]   ;;  %v110_v10 = vld [vmem:[%s207_s0 + $0x6] sm:$0x1]  }
   0x6   :  { %13 = vrot.lane.b32.xlu0 %v102_v2, %s133_s16  ;;  %25 = vrot.lane.b32.xlu1 %v104_v3, %s134_s17  ;;  %s139_s7 = smov 56   ;;  %s140_s8 = smov 48   ;;  %v111_v11 = vld [vmem:[%s207_s0 + $0x5] sm:$0x1]   ;;  %v112_v12 = vld [vmem:[%s207_s0 + $0x4] sm:$0x1]  }
   0x7   :  { %s141_s13 = smov 40   ;;  %s142_s14 = smov 32   ;;  %v113_v13 = vld [vmem:[%s207_s0 + $0x3] sm:$0x1]   ;;  %v114_v14 = vld [vmem:[%s207_s0 + $0x2] sm:$0x1]  }
   0x8   :  { %s143_s19 = smov 24   ;;  %s144_s20 = smov 16   ;;  %v115_v15 = vld [vmem:[%s207_s0 + $0x1] sm:$0x1]   ;;  %vm27_vm4 = vcmask 851712   ;;  %vm33_vm5 = vcmask 786112  }
   0x9   :  { %s145_s0 = smov 8   ;;  %vm39_vm6 = vcmask 720512   ;;  %vm45_vm7 = vcmask 654912   ;;  %vm51_vm8 = vcmask 589312   ;;  %vm57_vm9 = vcmask 523712  }
   0xa   :  { %31 = vrot.lane.b32.xlu0 %v105_v4, %s135_s24  ;;  %37 = vrot.lane.b32.xlu1 %v106_v5, %s136_s25  ;;  %vm63_vm10 = vcmask 458112   ;;  %vm69_vm11 = vcmask 392512   ;;  %vm75_vm12 = vcmask 326912   ;;  %vm81_vm13 = vcmask 261312  }
   0xb   :  { %vm87_vm14 = vcmask 195712   ;;  %vm93_vm15 = vcmask 130112  }
   0xe   :  { %43 = vrot.lane.b32.xlu0 %v107_v7, %s137_s30  ;;  %49 = vrot.lane.b32.xlu1 %v108_v8, %s138_s2 }
  0x12   :  { %55 = vrot.lane.b32.xlu0 %v109_v9, %s139_s7  ;;  %61 = vrot.lane.b32.xlu1 %v110_v10, %s140_s8 }
  0x16   :  { %67 = vrot.lane.b32.xlu0 %v111_v11, %s141_s13  ;;  %73 = vrot.lane.b32.xlu1 %v112_v12, %s142_s14 }
  0x1a   :  { %79 = vrot.lane.b32.xlu0 %v113_v13, %s143_s19  ;;  %85 = vrot.lane.b32.xlu1 %v114_v14, %s144_s20 }
  0x1e   :  { %91 = vrot.lane.b32.xlu0 %v115_v15, %s145_s0 }
  0x74   :  { %v8_v16 = vpop.permute.xlu0 %7   ;;  %v20_v17 = vpop.permute.xlu1 %19  }
  0x75   :  { %10 = vst.msk [vmem:[#allocation0] sm:$0x1] %vm9_vm1, %v8_v16  }
  0x78   :  { %v14_v18 = vpop.permute.xlu0 %13   ;;  %v26_v19 = vpop.permute.xlu1 %25  }
  0x79   :  { %16 = vst.msk [vmem:[#allocation0] sm:$0x1] %vm15_vm2, %v14_v18  }
  0x7a   :  { %22 = vst.msk [vmem:[#allocation0] sm:$0x1] %vm21_vm3, %v20_v17  }
  0x7b   :  { %28 = vst.msk [vmem:[#allocation0] sm:$0x1] %vm27_vm4, %v26_v19  }
  0x7c   :  { %v32_v20 = vpop.permute.xlu0 %31   ;;  %v38_v21 = vpop.permute.xlu1 %37  }
  0x7d   :  { %34 = vst.msk [vmem:[#allocation0] sm:$0x1] %vm33_vm5, %v32_v20  }
  0x7e   :  { %40 = vst.msk [vmem:[#allocation0] sm:$0x1] %vm39_vm6, %v38_v21  }
  0x80   :  { %v44_v22 = vpop.permute.xlu0 %43   ;;  %v50_v23 = vpop.permute.xlu1 %49  }
  0x81   :  { %46 = vst.msk [vmem:[#allocation0] sm:$0x1] %vm45_vm7, %v44_v22  }
  0x82   :  { %52 = vst.msk [vmem:[#allocation0] sm:$0x1] %vm51_vm8, %v50_v23  }
  0x84   :  { %v56_v24 = vpop.permute.xlu0 %55   ;;  %v62_v25 = vpop.permute.xlu1 %61  }
  0x85   :  { %58 = vst.msk [vmem:[#allocation0] sm:$0x1] %vm57_vm9, %v56_v24  }
  0x86   :  { %64 = vst.msk [vmem:[#allocation0] sm:$0x1] %vm63_vm10, %v62_v25  }
  0x88   :  { %v68_v26 = vpop.permute.xlu0 %67   ;;  %v74_v27 = vpop.permute.xlu1 %73  }
  0x89   :  { %70 = vst.msk [vmem:[#allocation0] sm:$0x1] %vm69_vm11, %v68_v26  }
  0x8a   :  { %76 = vst.msk [vmem:[#allocation0] sm:$0x1] %vm75_vm12, %v74_v27  }
  0x8c   :  { %v80_v28 = vpop.permute.xlu0 %79   ;;  %v86_v29 = vpop.permute.xlu1 %85  }
  0x8d   :  { %82 = vst.msk [vmem:[#allocation0] sm:$0x1] %vm81_vm13, %v80_v28  }
  0x8e   :  { %88 = vst.msk [vmem:[#allocation0] sm:$0x1] %vm87_vm14, %v86_v29  }
  0x90   :  { %v92_v30 = vpop.permute.xlu0 %91  }
  0x91   :  { %94 = vst.msk [vmem:[#allocation0] sm:$0x1] %vm93_vm15, %v92_v30  }
  0x98   :  { %v98_v31 = vld [vmem:[#allocation0] sm:$0x1] }
  0x99   :  { %100 = vst [vmem:[%s208_s1] sm:$0x1] %v98_v31 }

// kernel: lca_forward.1
= control target key start
LH: loop header
LB: loop body
LE: loop exit
PB: predicated region body
PF: predicated region fallthrough
CT: control target
= control target key end

     0   :  { %s12285_s21 = smov 0   ;;  %s19314_s0 = inlined_call_operand.vmem [shape: f32[2,16,512], index: 0, kind: input, shape index: {}]   ;;  %s19315_s1 = inlined_call_operand.vmem [shape: f32[5,16,16], index: 1, kind: input, shape index: {}]   ;;  %s19316_s2 = inlined_call_operand.vmem [shape: f32[25,512], index: 2, kind: input, shape index: {}]   ;;  %s19317_s3 = inlined_call_operand.vmem [shape: f32[512,512], index: 3, kind: input, shape index: {}]   ;;  %s19318_s4 = inlined_call_operand.vmem [shape: f32[1,512], index: 4, kind: input, shape index: {}]   ;;  %s19319_s5 = inlined_call_operand.vmem [shape: f32[7,16,16], index: 5, kind: input, shape index: {}]   ;;  %s19320_s6 = inlined_call_operand.vmem [shape: f32[49,512], index: 6, kind: input, shape index: {}]   ;;  %s19321_s7 = inlined_call_operand.vmem [shape: f32[1,512], index: 7, kind: input, shape index: {}]   ;;  %s19322_s8 = inlined_call_operand.vmem [shape: f32[512,128], index: 8, kind: input, shape index: {}]   ;;  %s19323_s9 = inlined_call_operand.vmem [shape: f32[1,128], index: 9, kind: input, shape index: {}]   ;;  %s19324_s10 = inlined_call_operand.vmem [shape: f32[128,512], index: 10, kind: input, shape index: {}]   ;;  %s19325_s11 = inlined_call_operand.vmem [shape: f32[1,512], index: 11, kind: input, shape index: {}]   ;;  %s19326_s12 = inlined_call_operand.vmem [shape: f32[2,16,512], index: 12, kind: output, shape index: {}]  }
   0x1 LB: > { %s10995_s22 = sadd.s32 4294967295, %s12214_s21   ;;  %p10999_p0 = scmp.ge.s32.totalorder %s12214_s21, 1  ;;  %s12214_s21 = sphi %s12285_s21, %s22_s21  }
   0x2   : > { %p362_p1 = scmp.lt.s32.totalorder %s12214_s21, 3 }
   0x4   : > { %p363_p2 = pnand %p10999_p0, %p362_p1 }
   0x6   : > { %366 = sbr.rel (%p363_p2) target bundleno = 5067 (0x13cb), region = 68 }
   0xd   : > { %p404_p3 = scmp.lt.s32.totalorder %s10995_s22, 1  ;;  %v19327_v0 = vmov 0.0   ;;  %s12217_s27 = smov 64   ;;  %v707_v13 = vlaneseq  ;;  %v11016_v15 = vld [vmem:[%s19316_s2 + $0x1] ss:$8 sm:$0xf] }
   0xe   : > { %540 = vmatprep.mubr.f32.mxu0 %v19327_v0  ;;  %617 = vmatprep.mubr.f32.mxu1 %v19327_v0  ;;  %s12218_s30 = smov 32   ;;  %v11017_v24 = vld [vmem:[%s19316_s2 + $0x2] ss:$8 sm:$0xf]  ;;  %s12219_s17 = smov 96   ;;  %vm446_vm0 = vcmask 523264  }
   0xf   : > { %s20310_s22 = smov (!%p404_p3, %s10995_s22), 1  ;;  %v708_v14 = vshrl.u32 %v707_v13, 7  ;;  %v11018_v29 = vld [vmem:[%s19316_s2 + $0x3] ss:$8 sm:$0xf]  ;;  %vm11004_vm1 = vmneg %vm446_vm0  ;;  %vm469_vm4 = vcmask 130048  }
  0x10   : > { %s19424_s23 = sshll.u32 %s20310_s22, 6  ;;  %v11035_v34 = vld [vmem:[%s19316_s2 + $0x6] ss:$8 sm:$0xf]  ;;  %vm12437_vm2 = vmpackc.low %vm11004_vm1, %vm11004_vm1  ;;  %vm762_vm5 = vcmask 261120   ;;  %vm811_vm6 = vcmask 785408  }
  0x11   : > { %s12301_s26 = scalar_lea.vmem %s19314_s0, %s19424_s23  ;;  %v12320_v16 = vsub.s32 0, %v708_v14  ;;  %v12322_v17 = vsub.s32 1, %v708_v14  ;;  %v12324_v18 = vsub.s32 2, %v708_v14  ;;  %v12326_v19 = vsub.s32 3, %v708_v14  ;;  %vm12449_vm3 = vmpackc.low %vm446_vm0, %vm446_vm0  ;;  %s20308_s15 = sshll.u32 %s20310_s22, 6 }
  0x12   : > { %v418_v1 = vld [vmem:[%s12301_s26 + $0x20] sm:$0xff]  ;;  %v419_v2 = vld [vmem:[%s12301_s26 + $0x28] sm:$0xff]  ;;  %v420_v6 = vld [vmem:[%s12301_s26 + $0x30] sm:$0xff]  ;;  %s19274_s19 = scalar_lea.vmem %s19326_s12, %s20308_s15 }
  0x13   : > { %v414_v3 = vld [vmem:[%s12301_s26] sm:$0xff]  ;;  %v12125_v4 = vpack.i.bf16 %v419_v2, %v418_v1  ;;  %v415_v5 = vld [vmem:[%s12301_s26 + $0x8] sm:$0xff]  ;;  %v421_v7 = vld [vmem:[%s12301_s26 + $0x38] sm:$0xff]  ;;  %19638 = vst [vmem:[#allocation2_spill] sm:$0xff] %v12320_v16  ;;  %v741_v20 = vrot.slane %v11016_v15, %v12320_v16  ;;  %v745_v21 = vrot.slane %v11016_v15, %v12322_v17  ;;  %v749_v22 = vrot.slane %v11016_v15, %v12324_v18 }
  0x14   : > { %v12115_v8 = vpack.i.bf16 %v415_v5, %v414_v3  ;;  %v416_v9 = vld [vmem:[%s12301_s26 + $0x10] sm:$0xff]  ;;  %v417_v10 = vld [vmem:[%s12301_s26 + $0x18] sm:$0xff]  ;;  %v12130_v11 = vpack.i.bf16 %v421_v7, %v420_v6  ;;  %19639 = vst [vmem:[#allocation3_spill] sm:$0xff] %v12322_v17  ;;  %19640 = vst [vmem:[#allocation4_spill] sm:$0xff] %v12324_v18  ;;  %v753_v23 = vrot.slane %v11016_v15, %v12326_v19 }
  0x15   : > { %12126 = vrot.lane.b32.xlu1 %v12125_v4, %s12217_s27  ;;  %v12120_v12 = vpack.i.bf16 %v417_v10, %v416_v9  ;;  %19641 = vst [vmem:[#allocation5_spill] sm:$0xff] %v12326_v19  ;;  %v842_v25 = vrot.slane %v11017_v24, %v12320_v16  ;;  %v846_v26 = vrot.slane %v11017_v24, %v12322_v17  ;;  %v11036_v39 = vld [vmem:[%s19316_s2 + $0x7] ss:$8 sm:$0xf]  ;;  %vm11098_vm7 = vmneg %vm762_vm5 }
  0x16   : > { %12116 = vrot.lane.b32.xlu0 %v12115_v8, %s12217_s27  ;;  %v850_v27 = vrot.slane %v11017_v24, %v12324_v18  ;;  %v854_v28 = vrot.slane %v11017_v24, %v12326_v19  ;;  %v941_v30 = vrot.slane %v11018_v29, %v12320_v16  ;;  %v945_v31 = vrot.slane %v11018_v29, %v12322_v17  ;;  %v11037_v44 = vld [vmem:[%s19316_s2 + $0x20] ss:$8 sm:$0xf]  ;;  %v11054_v49 = vld [vmem:[%s19316_s2 + $0x23] ss:$8 sm:$0xf]  ;;  %vm15829_vm8 = vmpackc.low %vm11098_vm7, %vm11098_vm7 }
  0x17   : > { %v949_v32 = vrot.slane %v11018_v29, %v12324_v18  ;;  %v953_v33 = vrot.slane %v11018_v29, %v12326_v19  ;;  %v1356_v35 = vrot.slane %v11035_v34, %v12320_v16  ;;  %v1360_v36 = vrot.slane %v11035_v34, %v12322_v17  ;;  %v11055_v54 = vld [vmem:[%s19316_s2 + $0x24] ss:$8 sm:$0xf]  ;;  %v11056_v59 = vld [vmem:[%s19316_s2 + $0x25] ss:$8 sm:$0xf]  ;;  %vm15837_vm9 = vmpackc.low %vm762_vm5, %vm762_vm5 }
  0x18   : > { %v1364_v37 = vrot.slane %v11035_v34, %v12324_v18  ;;  %v1368_v38 = vrot.slane %v11035_v34, %v12326_v19  ;;  %v1455_v40 = vrot.slane %v11036_v39, %v12320_v16  ;;  %v1459_v41 = vrot.slane %v11036_v39, %v12322_v17  ;;  %v11073_v1 = vld [vmem:[%s19316_s2 + $0x40] ss:$8 sm:$0xf] }
  0x19   : > { %12131 = vrot.lane.b32.xlu1 %v12130_v11, %s12217_s27  ;;  %v1463_v42 = vrot.slane %v11036_v39, %v12324_v18  ;;  %v1467_v43 = vrot.slane %v11036_v39, %v12326_v19  ;;  %v1554_v45 = vrot.slane %v11037_v44, %v12320_v16  ;;  %v1558_v46 = vrot.slane %v11037_v44, %v12322_v17  ;;  %v467_v34 = vld [vmem:[%s19315_s1] sm:$0xff] }
  0x1a   : > { %12121 = vrot.lane.b32.xlu0 %v12120_v12, %s12217_s27  ;;  %v1562_v47 = vrot.slane %v11037_v44, %v12324_v18  ;;  %v1566_v48 = vrot.slane %v11037_v44, %v12326_v19  ;;  %v1969_v50 = vrot.slane %v11054_v49, %v12320_v16  ;;  %v1973_v51 = vrot.slane %v11054_v49, %v12322_v17  ;;  %v11020_v44 = vld [vmem:[%s19315_s1 + $0x10] sm:$0xff] }
  0x1b   : > { %v1977_v52 = vrot.slane %v11054_v49, %v12324_v18  ;;  %v1981_v53 = vrot.slane %v11054_v49, %v12326_v19  ;;  %v2068_v55 = vrot.slane %v11055_v54, %v12320_v16  ;;  %v2072_v56 = vrot.slane %v11055_v54, %v12322_v17  ;;  %v11092_v49 = vld [vmem:[%s19316_s2 + $0x45] ss:$8 sm:$0xf] }
  0x1c   : > { %v2076_v57 = vrot.slane %v11055_v54, %v12324_v18  ;;  %v2080_v58 = vrot.slane %v11055_v54, %v12326_v19  ;;  %v2167_v60 = vrot.slane %v11056_v59, %v12320_v16  ;;  %v2171_v61 = vrot.slane %v11056_v59, %v12322_v17 }
  0x1d   : > { %756 = vrot.lane.b32.xlu1 %v745_v21, %s12218_s30  ;;  %v2175_v62 = vrot.slane %v11056_v59, %v12324_v18  ;;  %v2179_v63 = vrot.slane %v11056_v59, %v12326_v19  ;;  %v2582_v3 = vrot.slane %v11073_v1, %v12320_v16  ;;  %v2586_v4 = vrot.slane %v11073_v1, %v12322_v17 }
  0x1e   : > { %754 = vrot.lane.b32.xlu0 %v741_v20, %s12218_s30  ;;  %v2590_v13 = vrot.slane %v11073_v1, %v12324_v18  ;;  %v3199_v54 = vrot.slane %v11092_v49, %v12322_v17  ;;  %v3207_v59 = vrot.slane %v11092_v49, %v12326_v19 }
  0x21   : > { %760 = vrot.lane.b32.xlu1 %v753_v23, %s12218_s30  ;;  %v2594_v23 = vrot.slane %v11073_v1, %v12326_v19  ;;  %v11078_v1 = vld [vmem:[%s19315_s1 + $0x48] sm:$0xff] }
  0x22   : > { %758 = vrot.lane.b32.xlu0 %v749_v22, %s12218_s30 }
  0x25   : > { %857 = vrot.lane.b32.xlu1 %v846_v26, %s12217_s27 }
  0x26   : > { %855 = vrot.lane.b32.xlu0 %v842_v25, %s12217_s27 }
  0x29   : > { %861 = vrot.lane.b32.xlu1 %v854_v28, %s12217_s27 }
  0x2a   : > { %859 = vrot.lane.b32.xlu0 %v850_v27, %s12217_s27 }
  0x2d   : > { %956 = vrot.lane.b32.xlu1 %v945_v31, %s12219_s17 }
  0x2e   : > { %954 = vrot.lane.b32.xlu0 %v941_v30, %s12219_s17  ;;  %v11074_v30 = vld [vmem:[%s19316_s2 + $0x41] ss:$8 sm:$0xf] }
  0x2f   : > { %v2689_v39 = vrot.slane %v11074_v30, %v12324_v18 }
  0x31   : > { %960 = vrot.lane.b32.xlu1 %v953_v33, %s12219_s17 }
  0x32   : > { %958 = vrot.lane.b32.xlu0 %v949_v32, %s12219_s17 }
  0x35   : > { %1371 = vrot.lane.b32.xlu1 %v1360_v36, %s12218_s30 }
  0x36   : > { %1369 = vrot.lane.b32.xlu0 %v1356_v35, %s12218_s30 }
  0x39   : > { %1375 = vrot.lane.b32.xlu1 %v1368_v38, %s12218_s30  ;;  %v468_v38 = vld [vmem:[%s19315_s1 + $0x8] sm:$0xff] }
  0x3a   : > { %1373 = vrot.lane.b32.xlu0 %v1364_v37, %s12218_s30  ;;  %v2681_v37 = vrot.slane %v11074_v30, %v12320_v16 }
  0x3d   : > { %1470 = vrot.lane.b32.xlu1 %v1459_v41, %s12217_s27  ;;  %v11075_v41 = vld [vmem:[%s19316_s2 + $0x42] ss:$8 sm:$0xf] }
  0x3e   : > { %1468 = vrot.lane.b32.xlu0 %v1455_v40, %s12217_s27  ;;  %v2685_v40 = vrot.slane %v11074_v30, %v12322_v17 }
  0x41   : > { %1474 = vrot.lane.b32.xlu1 %v1467_v43, %s12217_s27  ;;  %v2693_v43 = vrot.slane %v11074_v30, %v12326_v19 }
  0x42   : > { %1472 = vrot.lane.b32.xlu0 %v1463_v42, %s12217_s27  ;;  %v2780_v42 = vrot.slane %v11075_v41, %v12320_v16 }
  0x45   : > { %1569 = vrot.lane.b32.xlu1 %v1558_v46, %s12219_s17  ;;  %v2788_v46 = vrot.slane %v11075_v41, %v12324_v18 }
  0x46   : > { %1567 = vrot.lane.b32.xlu0 %v1554_v45, %s12219_s17  ;;  %v11021_v45 = vld [vmem:[%s19315_s1 + $0x18] sm:$0xff] }
  0x49   : > { %1573 = vrot.lane.b32.xlu1 %v1566_v48, %s12219_s17  ;;  %v11039_v48 = vld [vmem:[%s19315_s1 + $0x20] sm:$0xff] }
  0x4a   : > { %1571 = vrot.lane.b32.xlu0 %v1562_v47, %s12219_s17  ;;  %v2784_v47 = vrot.slane %v11075_v41, %v12322_v17 }
  0x4d   : > { %1984 = vrot.lane.b32.xlu1 %v1973_v51, %s12218_s30  ;;  %v3195_v51 = vrot.slane %v11092_v49, %v12320_v16 }
  0x4e   : > { %1982 = vrot.lane.b32.xlu0 %v1969_v50, %s12218_s30  ;;  %v11040_v50 = vld [vmem:[%s19315_s1 + $0x28] sm:$0xff] }
  0x51   : > { %1988 = vrot.lane.b32.xlu1 %v1981_v53, %s12218_s30  ;;  %v3203_v53 = vrot.slane %v11092_v49, %v12324_v18 }
  0x52   : > { %1986 = vrot.lane.b32.xlu0 %v1977_v52, %s12218_s30  ;;  %v2792_v52 = vrot.slane %v11075_v41, %v12326_v19 }
  0x55   : > { %2083 = vrot.lane.b32.xlu1 %v2072_v56, %s12217_s27  ;;  %v11093_v56 = vld [vmem:[%s19316_s2 + $0x46] ss:$8 sm:$0xf] }
  0x56   : > { %2081 = vrot.lane.b32.xlu0 %v2068_v55, %s12217_s27  ;;  %v11058_v55 = vld [vmem:[%s19315_s1 + $0x30] sm:$0xff] }
  0x59   : > { %2087 = vrot.lane.b32.xlu1 %v2080_v58, %s12217_s27  ;;  %v3294_v58 = vrot.slane %v11093_v56, %v12320_v16 }
  0x5a   : > { %2085 = vrot.lane.b32.xlu0 %v2076_v57, %s12217_s27  ;;  %v11059_v57 = vld [vmem:[%s19315_s1 + $0x38] sm:$0xff] }
  0x5d   : > { %2182 = vrot.lane.b32.xlu1 %v2171_v61, %s12219_s17  ;;  %v3302_v61 = vrot.slane %v11093_v56, %v12324_v18 }
  0x5e   : > { %2180 = vrot.lane.b32.xlu0 %v2167_v60, %s12219_s17  ;;  %v11077_v60 = vld [vmem:[%s19315_s1 + $0x40] sm:$0xff] }
  0x61   : > { %2186 = vrot.lane.b32.xlu1 %v2179_v63, %s12219_s17  ;;  %v11094_v63 = vld [vmem:[%s19316_s2 + $0x47] ss:$8 sm:$0xf] }
  0x62   : > { %2184 = vrot.lane.b32.xlu0 %v2175_v62, %s12219_s17  ;;  %v3298_v62 = vrot.slane %v11093_v56, %v12322_v17 }
  0x65   : > { %2597 = vrot.lane.b32.xlu1 %v2586_v4, %s12218_s30  ;;  %v3306_v4 = vrot.slane %v11093_v56, %v12326_v19 }
  0x66   : > { %2595 = vrot.lane.b32.xlu0 %v2582_v3, %s12218_s30  ;;  %v3393_v3 = vrot.slane %v11094_v63, %v12320_v16 }
  0x69   : > { %2601 = vrot.lane.b32.xlu1 %v2594_v23, %s12218_s30 }
  0x6a   : > { %2599 = vrot.lane.b32.xlu0 %v2590_v13, %s12218_s30 }
  0x6d   : > { %2696 = vrot.lane.b32.xlu1 %v2685_v40, %s12217_s27 }
  0x6e   : > { %2694 = vrot.lane.b32.xlu0 %v2681_v37, %s12217_s27 }
  0x71   : > { %2700 = vrot.lane.b32.xlu1 %v2693_v43, %s12217_s27 }
  0x72   : > { %2698 = vrot.lane.b32.xlu0 %v2689_v39, %s12217_s27 }
  0x75   : > { %2795 = vrot.lane.b32.xlu1 %v2784_v47, %s12219_s17 }
  0x76   : > { %2793 = vrot.lane.b32.xlu0 %v2780_v42, %s12219_s17 }
  0x79   : > { %2799 = vrot.lane.b32.xlu1 %v2792_v52, %s12219_s17 }
  0x7a   : > { %2797 = vrot.lane.b32.xlu0 %v2788_v46, %s12219_s17 }
  0x7d   : > { %3210 = vrot.lane.b32.xlu1 %v3199_v54, %s12218_s30 }
  0x7e   : > { %3208 = vrot.lane.b32.xlu0 %v3195_v51, %s12218_s30 }
  0x81   : > { %3214 = vrot.lane.b32.xlu1 %v3207_v59, %s12218_s30 }
  0x82   : > { %3212 = vrot.lane.b32.xlu0 %v3203_v53, %s12218_s30 }
  0x85   : > { %3309 = vrot.lane.b32.xlu1 %v3298_v62, %s12217_s27  ;;  %v705_v62 = vld [vmem:[%s19316_s2] ss:$8 sm:$0xf] }
  0x86   : > { %3307 = vrot.lane.b32.xlu0 %v3294_v58, %s12217_s27 }
  0x87   : > { %v12127_v2 = vpop.permute.xlu1 %12126 }
  0x88   : > { %v12129_v5 = vunpack.i.h.bf16 %v12127_v2  ;;  %v12128_v6 = vunpack.i.l.bf16 %v12127_v2  ;;  %v12117_v7 = vpop.permute.xlu0 %12116  ;;  %v3397_v2 = vrot.slane %v11094_v63, %v12322_v17 }
  0x89   : > { %v12119_v8 = vunpack.i.h.bf16 %v12117_v7  ;;  %v12118_v9 = vunpack.i.l.bf16 %v12117_v7  ;;  %3406 = vrot.lane.b32.xlu1 %v3393_v3, %s12219_s17 }
  0x8a   : > { %v450_v10 = vsel %vm446_vm0, %v12128_v6, %v12129_v5  ;;  %3311 = vrot.lane.b32.xlu0 %v3302_v61, %s12217_s27 }
  0x8b   : > { %v447_v11 = vsel %vm446_vm0, %v12118_v9, %v12119_v8  ;;  %v12132_v12 = vpop.permute.xlu1 %12131  ;;  %v12442_v24 = vpack.c.bf16 %v12128_v6, %v12118_v9 }
  0x8c   : > { %v12435_v14 = vpack.c.bf16 %v450_v10, %v447_v11  ;;  %v12134_v15 = vunpack.i.h.bf16 %v12132_v12  ;;  %v12133_v20 = vunpack.i.l.bf16 %v12132_v12  ;;  %v12122_v21 = vpop.permute.xlu0 %12121 }
  0x8d   : > { %v12124_v25 = vunpack.i.h.bf16 %v12122_v21  ;;  %v12123_v26 = vunpack.i.l.bf16 %v12122_v21 }
  0x8e   : > { %v451_v27 = vsel %vm446_vm0, %v12129_v5, %v12133_v20  ;;  %v452_v28 = vsel %vm446_vm0, %v12133_v20, %v12134_v15  ;;  %11524 = vmatprep.subr.bf16.mxu0 %v12435_v14  ;;  %3408 = vrot.lane.b32.xlu0 %v3397_v2, %s12219_s17  ;;  %v3401_v5 = vrot.slane %v11094_v63, %v12324_v18 }
  0x8f   : > { %v12456_v31 = vpack.c.bf16 %v12134_v15, %v12124_v25  ;;  %v448_v32 = vsel %vm446_vm0, %v12119_v8, %v12123_v26  ;;  %v449_v33 = vsel %vm446_vm0, %v12123_v26, %v12124_v25  ;;  %11527 = vmatpush1.bf16.msk.msra.mxu0 %vm12437_vm2, %v12442_v24  ;;  %v757_v7 = vpop.permute.xlu1 %756 }
  0x90   : > { %v12467_v35 = vpack.c.bf16 %v452_v28, %v449_v33  ;;  %v12469_v36 = vpack.c.bf16 %v451_v27, %v448_v32  ;;  %3410 = vrot.lane.b32.xlu1 %v3401_v5, %s12219_s17  ;;  %v12653_v6 = vpop.permute.xlu0 %754 }
  0x91   : > { %11534 = vmatprep.subr.msk.bf16.mxu0 %vm12449_vm3, %v12456_v31  ;;  %v12743_v56 = vsel %vm762_vm5, %v12653_v6, %v757_v7 }
  0x92   : > { %11008 = vmatmul.mubr.msk.f32.vlgmr.msra.gmra.mrb[0].mxu0 %vm469_vm4, %v467_v34  ;;  %11529 = vmatprep.subr.bf16.mxu1 %v12467_v35 }
  0x93   : > { %11531 = vmatpush1.bf16.msra.mxu1 %v12469_v36  ;;  %11537 = vmatpush3.bf16.msk.msra.mxu0 %vm12449_vm3, %v12456_v31  ;;  %v12655_v9 = vpop.permute.xlu1 %760 }
  0x94   : > { %11539 = vmatprep.subr.bf16.mxu1 %v12435_v14  ;;  %11544 = vmatprep.subr.bf16.mxu0 %v12467_v35  ;;  %v759_v8 = vpop.permute.xlu0 %758 }
  0x95   : > { %546 = vmatprep.mubr.f32.mxu0 %v19327_v0  ;;  %3313 = vrot.lane.b32.xlu0 %v3306_v4, %s12217_s27  ;;  %v12761_v63 = vsel %vm762_vm5, %v759_v8, %v12655_v9  ;;  %v12769_v3 = vsel %vm762_vm5, %v757_v7, %v759_v8  ;;  %v12786_v8 = vrot.slane %v705_v62, %v12320_v16 }
  0x96   : > { %11009 = vmatmul.mubr.msk.f32.gmra.mrb[2].mxu0 %vm469_vm4, %v468_v38  ;;  %11010 = vmatmul.mubr.msk.f32.vlgmr.msra.gmra.mrb[0].mxu1 %vm469_vm4, %v467_v34 }
  0x97   : > { %11542 = vmatpush1.bf16.msk.msra.mxu1 %vm12437_vm2, %v12442_v24  ;;  %623 = vmatprep.mubr.f32.mxu1 %v19327_v0  ;;  %v12659_v11 = vpop.permute.xlu1 %857  ;;  %19669 = vst [vmem:[#allocation29_spill] sm:$0xff] %v12786_v8 }
  0x98   : > { %11549 = vmatprep.subr.msk.bf16.mxu1 %vm12449_vm3, %v12456_v31  ;;  %11408 = vmatprep.mubr.msk.f32.mxu0 %vm469_vm4, %v467_v34  ;;  %v12657_v10 = vpop.permute.xlu0 %855 }
  0x9a   : > { %11011 = vmatmul.mubr.msk.f32.gmra.mrb[2].mxu1 %vm469_vm4, %v468_v38  ;;  %11409 = vmatmul.mubr.msk.f32.vlgmr.msra.gmra.mrb[4].mxu0 %vm469_vm4, %v468_v38 }
  0x9b   : > { %11546 = vmatpush1.bf16.msra.mxu0 %v12469_v36  ;;  %1146 = vmatprep.mubr.f32.mxu1 %v19327_v0  ;;  %v12663_v13 = vpop.permute.xlu1 %861 }
  0x9c   : > { %11554 = vmatprep.subr.bf16.mxu0 %v12435_v14  ;;  %1223 = vmatprep.mubr.f32.mxu0 %v19327_v0  ;;  %v12661_v12 = vpop.permute.xlu0 %859 }
  0x9e   : > { %11026 = vmatmul.mubr.msk.f32.vlgmr.msra.gmra.mrb[4].mxu1 %vm469_vm4, %v11020_v44  ;;  %11028 = vmatmul.mubr.msk.f32.vlgmr.msra.gmra.mrb[6].mxu0 %vm469_vm4, %v11020_v44 }
  0x9f   : > { %11552 = vmatpush3.bf16.msk.msra.mxu1 %vm12449_vm3, %v12456_v31  ;;  %11557 = vmatpush1.bf16.msk.msra.mxu0 %vm12437_vm2, %v12442_v24  ;;  %v12667_v15 = vpop.permute.xlu1 %956 }
  0xa0   : > { %11559 = vmatprep.subr.bf16.mxu1 %v12467_v35  ;;  %11564 = vmatprep.subr.msk.bf16.mxu0 %vm12449_vm3, %v12456_v31 }
  0xa1   : > { %1152 = vmatprep.mubr.f32.mxu1 %v19327_v0  ;;  %1229 = vmatprep.mubr.f32.mxu0 %v19327_v0 }
  0xa2   : > { %11027 = vmatmul.mubr.msk.f32.gmra.mrb[6].mxu1 %vm469_vm4, %v11021_v45  ;;  %11029 = vmatmul.mubr.msk.f32.gmra.mrb[8].mxu0 %vm469_vm4, %v11021_v45 }
  0xa3   : > { %11415 = vmatprep.mubr.msk.f32.mxu1 %vm469_vm4, %v11020_v44  ;;  %1759 = vmatprep.mubr.f32.mxu0 %v19327_v0  ;;  %v12671_v21 = vpop.permute.xlu1 %960 }
  0xa6   : > { %11416 = vmatmul.mubr.msk.f32.vlgmr.msra.gmra.mrb[8].mxu1 %vm469_vm4, %v11021_v45  ;;  %11045 = vmatmul.mubr.msk.f32.vlgmr.msra.gmra.mrb[10].mxu0 %vm469_vm4, %v11039_v48 }
  0xa7   : > { %11561 = vmatpush1.bf16.msra.mxu1 %v12469_v36  ;;  %11567 = vmatpush3.bf16.msk.msra.mxu0 %vm12449_vm3, %v12456_v31  ;;  %v12675_v23 = vpop.permute.xlu1 %1371 }
  0xa8   : > { %11569 = vmatprep.subr.bf16.mxu1 %v12435_v14  ;;  %11574 = vmatprep.subr.bf16.mxu0 %v12467_v35 }
  0xa9   : > { %1765 = vmatprep.mubr.f32.mxu0 %v19327_v0  ;;  %1836 = vmatprep.mubr.f32.mxu1 %v19327_v0 }
  0xaa   : > { %11046 = vmatmul.mubr.msk.f32.gmra.mrb[12].mxu0 %vm469_vm4, %v11040_v50  ;;  %11047 = vmatmul.mubr.msk.f32.vlgmr.msra.gmra.mrb[10].mxu1 %vm469_vm4, %v11039_v48 }
  0xab   : > { %11572 = vmatpush1.bf16.msk.msra.mxu1 %vm12437_vm2, %v12442_v24  ;;  %1842 = vmatprep.mubr.f32.mxu1 %v19327_v0  ;;  %v12679_v25 = vpop.permute.xlu1 %1375 }
  0xac   : > { %11579 = vmatprep.subr.msk.bf16.mxu1 %vm12449_vm3, %v12456_v31  ;;  %11422 = vmatprep.mubr.msk.f32.mxu0 %vm469_vm4, %v11039_v48 }
  0xae   : > { %11048 = vmatmul.mubr.msk.f32.gmra.mrb[12].mxu1 %vm469_vm4, %v11040_v50  ;;  %11423 = vmatmul.mubr.msk.f32.vlgmr.msra.gmra.mrb[14].mxu0 %vm469_vm4, %v11040_v50 }
  0xaf   : > { %11576 = vmatpush1.bf16.msra.mxu0 %v12469_v36  ;;  %2372 = vmatprep.mubr.f32.mxu1 %v19327_v0  ;;  %v12683_v27 = vpop.permute.xlu1 %1470 }
  0xb0   : > { %11584 = vmatprep.subr.bf16.mxu0 %v12435_v14  ;;  %2449 = vmatprep.mubr.f32.mxu0 %v19327_v0  ;;  %v12665_v14 = vpop.permute.xlu0 %954 }
  0xb2   : > { %11064 = vmatmul.mubr.msk.f32.vlgmr.msra.gmra.mrb[14].mxu1 %vm469_vm4, %v11058_v55  ;;  %11066 = vmatmul.mubr.msk.f32.vlgmr.msra.gmra.mrb[16].mxu0 %vm469_vm4, %v11058_v55 }
  0xb3   : > { %11582 = vmatpush3.bf16.msk.msra.mxu1 %vm12449_vm3, %v12456_v31  ;;  %11587 = vmatpush1.bf16.msk.msra.mxu0 %vm12437_vm2, %v12442_v24  ;;  %v12687_v29 = vpop.permute.xlu1 %1474 }
  0xb4   : > { %11589 = vmatprep.subr.bf16.mxu1 %v12467_v35  ;;  %11594 = vmatprep.subr.msk.bf16.mxu0 %vm12449_vm3, %v12456_v31  ;;  %v12669_v20 = vpop.permute.xlu0 %958 }
  0xb5   : > { %2378 = vmatprep.mubr.f32.mxu1 %v19327_v0  ;;  %2455 = vmatprep.mubr.f32.mxu0 %v19327_v0 }
  0xb6   : > { %11065 = vmatmul.mubr.msk.f32.gmra.mrb[16].mxu1 %vm469_vm4, %v11059_v57  ;;  %11067 = vmatmul.mubr.msk.f32.gmra.mrb[18].mxu0 %vm469_vm4, %v11059_v57 }
  0xb7   : > { %11429 = vmatprep.mubr.msk.f32.mxu1 %vm469_vm4, %v11058_v55  ;;  %2985 = vmatprep.mubr.f32.mxu0 %v19327_v0 }
  0xb8   : > { %v12673_v22 = vpop.permute.xlu0 %1369 }
  0xba   : > { %11430 = vmatmul.mubr.msk.f32.vlgmr.msra.gmra.mrb[18].mxu1 %vm469_vm4, %v11059_v57  ;;  %11083 = vmatmul.mubr.msk.f32.vlgmr.msra.gmra.mrb[20].mxu0 %vm469_vm4, %v11077_v60 }
  0xbb   : > { %11591 = vmatpush1.bf16.msra.mxu1 %v12469_v36  ;;  %11597 = vmatpush3.bf16.msk.msra.mxu0 %vm12449_vm3, %v12456_v31  ;;  %v12691_v31 = vpop.permute.xlu1 %1569 }
  0xbc   : > { %3062 = vmatprep.mubr.f32.mxu1 %v19327_v0  ;;  %2991 = vmatprep.mubr.f32.mxu0 %v19327_v0  ;;  %v12677_v24 = vpop.permute.xlu0 %1373 }
  0xbe   : > { %11085 = vmatmul.mubr.msk.f32.vlgmr.msra.gmra.mrb[20].mxu1 %vm469_vm4, %v11077_v60  ;;  %11084 = vmatmul.mubr.msk.f32.gmra.mrb[22].mxu0 %vm469_vm4, %v11078_v1 }
  0xbf   : > { %3068 = vmatprep.mubr.f32.mxu1 %v19327_v0  ;;  %11436 = vmatprep.mubr.msk.f32.mxu0 %vm469_vm4, %v11077_v60  ;;  %v12695_v33 = vpop.permute.xlu1 %1573 }
  0xc0   : > { %v12681_v26 = vpop.permute.xlu0 %1468 }
  0xc2   : > { %11086 = vmatmul.mubr.msk.f32.gmra.mrb[22].mxu1 %vm469_vm4, %v11078_v1  ;;  %11437 = vmatmul.mubr.msk.f32.vlgmr.msra.gmra.mrb[24].mxu0 %vm469_vm4, %v11078_v1  ;;  %v11019_v1 = vld [vmem:[%s19316_s2 + $0x4] ss:$8 sm:$0xf] }
  0xc3   : > { %v12699_v35 = vpop.permute.xlu1 %1984  ;;  %v1048_v0 = vrot.slane %v11019_v1, %v12324_v18  ;;  %v1052_v7 = vrot.slane %v11019_v1, %v12326_v19 }
  0xc4   : > { %v12685_v28 = vpop.permute.xlu0 %1472 }
  0xc7   : > { %v12703_v37 = vpop.permute.xlu1 %1988 }
  0xc8   : > { %v12689_v30 = vpop.permute.xlu0 %1567 }
  0xcb   : > { %v12707_v39 = vpop.permute.xlu1 %2083 }
  0xcc   : > { %v12693_v32 = vpop.permute.xlu0 %1571  ;;  %19647 = vst [vmem:[#allocation7_spill] sm:$0xff] %v12707_v39 }
  0xcf   : > { %v12711_v41 = vpop.permute.xlu1 %2087 }
  0xd0   : > { %v12697_v34 = vpop.permute.xlu0 %1982  ;;  %19649 = vst [vmem:[#allocation9_spill] sm:$0xff] %v12711_v41 }
  0xd3   : > { %v12715_v43 = vpop.permute.xlu1 %2182 }
  0xd4   : > { %v12701_v36 = vpop.permute.xlu0 %1986  ;;  %19651 = vst [vmem:[#allocation11_spill] sm:$0xff] %v12715_v43 }
  0xd7   : > { %v12719_v45 = vpop.permute.xlu1 %2186 }
  0xd8   : > { %v12705_v38 = vpop.permute.xlu0 %2081  ;;  %19653 = vst [vmem:[#allocation13_spill] sm:$0xff] %v12719_v45 }
  0xd9   : > { %19646 = vst [vmem:[#allocation6_spill] sm:$0xff] %v12705_v38 }
  0xdb   : > { %v12723_v47 = vpop.permute.xlu1 %2597 }
  0xdc   : > { %v12709_v40 = vpop.permute.xlu0 %2085  ;;  %19655 = vst [vmem:[#allocation15_spill] sm:$0xff] %v12723_v47 }
  0xdd   : > { %19648 = vst [vmem:[#allocation8_spill] sm:$0xff] %v12709_v40 }
  0xdf   : > { %v12727_v49 = vpop.permute.xlu1 %2601 }
  0xe0   : > { %v12713_v42 = vpop.permute.xlu0 %2180  ;;  %19657 = vst [vmem:[#allocation17_spill] sm:$0xff] %v12727_v49 }
  0xe1   : > { %19650 = vst [vmem:[#allocation10_spill] sm:$0xff] %v12713_v42  ;;  %v12869_v42 = vrot.slane %v11019_v1, %v12320_v16 }
  0xe3   : > { %v12731_v51 = vpop.permute.xlu1 %2696  ;;  %19680 = vst [vmem:[#allocation40_spill] sm:$0xff] %v12869_v42 }
  0xe4   : > { %v12717_v44 = vpop.permute.xlu0 %2184  ;;  %19659 = vst [vmem:[#allocation19_spill] sm:$0xff] %v12731_v51 }
  0xe5   : > { %19652 = vst [vmem:[#allocation12_spill] sm:$0xff] %v12717_v44 }
  0xe7   : > { %v12735_v53 = vpop.permute.xlu1 %2700 }
  0xe8   : > { %v12721_v46 = vpop.permute.xlu0 %2595  ;;  %19661 = vst [vmem:[#allocation21_spill] sm:$0xff] %v12735_v53 }
  0xe9   : > { %19654 = vst [vmem:[#allocation14_spill] sm:$0xff] %v12721_v46  ;;  %v12825_v46 = vsel %vm446_vm0, %v12659_v11, %v12661_v12 }
  0xeb   : > { %v12739_v55 = vpop.permute.xlu1 %2795 }
  0xec   : > { %v12725_v48 = vpop.permute.xlu0 %2599  ;;  %19663 = vst [vmem:[#allocation23_spill] sm:$0xff] %v12739_v55 }
  0xed   : > { %19656 = vst [vmem:[#allocation16_spill] sm:$0xff] %v12725_v48 }
  0xef   : > { %v12766_v2 = vpop.permute.xlu1 %2799 }
  0xf0   : > { %v12729_v50 = vpop.permute.xlu0 %2694  ;;  %19667 = vst [vmem:[#allocation27_spill] sm:$0xff] %v12766_v2 }
  0xf1   : > { %19658 = vst [vmem:[#allocation18_spill] sm:$0xff] %v12729_v50 }
  0xf4   : > { %v12733_v52 = vpop.permute.xlu0 %2698 }
  0xf5   : > { %19660 = vst [vmem:[#allocation20_spill] sm:$0xff] %v12733_v52 }
  0xf8   : > { %v12737_v54 = vpop.permute.xlu0 %2793 }
  0xf9   : > { %19662 = vst [vmem:[#allocation22_spill] sm:$0xff] %v12737_v54 }
  0xfc   : > { %v12751_v60 = vpop.permute.xlu0 %2797 }
  0xfd   : > { %19666 = vst [vmem:[#allocation26_spill] sm:$0xff] %v12751_v60  ;;  %v12793_v60 = vsel %vm446_vm0, %v12657_v10, %v12659_v11 }
 0x100   : > { %v12796_v52 = vpop.permute.xlu0 %3208 }
 0x101   : > { %19670 = vst [vmem:[#allocation30_spill] sm:$0xff] %v12796_v52 }
 0x104   : > { %v12884_v43 = vpop.permute.xlu0 %3212 }
 0x105   : > { %19683 = vst [vmem:[#allocation43_spill] sm:$0xff] %v12884_v43 }
 0x165   : > { %v12745_v57 = vpop.f32.mrb[0].mxu0 }
 0x166   : > { %19664 = vst [vmem:[#allocation24_spill] sm:$0xff] %v12745_v57  ;;  %v12747_v58 = vpop.f32.mrb[1].mxu0  ;;  %v771_v59 = vmul.f32 %v12653_v6, %v12745_v57 }
 0x167   : > { %19665 = vst [vmem:[#allocation25_spill] sm:$0xff] %v12747_v58  ;;  %v772_v61 = vmul.f32 %v12743_v56, %v12747_v58 }
 0x168   : > { %791 = vrot.lane.b32.xlu0 %v771_v59, %s12219_s17  ;;  %v718_v59 = vrot.slane %v705_v62, %v12324_v18  ;;  %v12839_v18 = vsel %vm446_vm0, %v12661_v12, %v12663_v13 }
 0x169   : > { %v12771_v4 = vpop.f32.mrb[0].mxu1  ;;  %793 = vrot.lane.b32.xlu1 %v772_v61, %s12219_s17  ;;  %v12774_v5 = vpop.f32.mrb[2].mxu0 }
 0x16a   : > { %19668 = vst [vmem:[#allocation28_spill] sm:$0xff] %v12771_v4  ;;  %v12778_v53 = vpop.f32.mrb[3].mxu0  ;;  %v12780_v49 = vpop.f32.mrb[1].mxu1  ;;  %v773_v2 = vmul.f32 %v12769_v3, %v12771_v4  ;;  %v12804_v51 = vmul.f32 %v718_v59, %v12771_v4  ;;  %v12811_v54 = vmul.f32 %v12786_v8, %v12774_v5  ;;  %v722_v8 = vrot.slane %v705_v62, %v12326_v19 }
 0x16b   : > { %v774_v61 = vmul.f32 %v12761_v63, %v12780_v49  ;;  %v12807_v47 = vmul.f32 %v1048_v0, %v12780_v49  ;;  %v874_v44 = vmul.f32 %v12839_v18, %v12780_v49 }
 0x16c   : > { %795 = vrot.lane.b32.xlu0 %v773_v2, %s12219_s17  ;;  %19671 = vst [vmem:[#allocation31_spill] sm:$0xff] %v12804_v51  ;;  %19673 = vst [vmem:[#allocation33_spill] sm:$0xff] %v12811_v54  ;;  %v872_v54 = vmul.f32 %v12793_v60, %v12747_v58  ;;  %v12841_v51 = vpop.permute.xlu1 %3210 }
 0x16d   : > { %v12798_v48 = vpop.f32.mrb[2].mxu1  ;;  %797 = vrot.lane.b32.xlu1 %v774_v61, %s12219_s17  ;;  %v12801_v55 = vpop.f32.mrb[4].mxu0  ;;  %19672 = vst [vmem:[#allocation32_spill] sm:$0xff] %v12807_v47  ;;  %v871_v61 = vmul.f32 %v12657_v10, %v12745_v57  ;;  %19677 = vst [vmem:[#allocation37_spill] sm:$0xff] %v12841_v51  ;;  %v873_v51 = vmul.f32 %v12825_v46, %v12771_v4 }
 0x16e   : > { %v12814_v2 = vmul.f32 %v12801_v55, %v1052_v7  ;;  %v12816_v52 = vpop.f32.mrb[3].mxu1  ;;  %v12818_v50 = vpop.f32.mrb[5].mxu0 }
 0x16f   : > { %v12828_v47 = vmul.f32 %v1052_v7, %v12818_v50  ;;  %v12849_v7 = vld [vmem:[%s19316_s2 + $0x5] ss:$8 sm:$0xf] }
 0x170   : > { %19674 = vst [vmem:[#allocation34_spill] sm:$0xff] %v12814_v2  ;;  %v12833_v2 = vrot.slane %v705_v62, %v12322_v17  ;;  %891 = vrot.lane.b32.xlu0 %v871_v61, %s12217_s27  ;;  %v12854_v61 = vmul.f32 %v718_v59, %v12798_v48  ;;  %v12872_v59 = vrot.slane %v11019_v1, %v12322_v17  ;;  %v12926_v19 = vpop.permute.xlu1 %3214 }
 0x171   : > { %19675 = vst [vmem:[#allocation35_spill] sm:$0xff] %v12828_v47  ;;  %893 = vrot.lane.b32.xlu1 %v872_v54, %s12217_s27  ;;  %v12844_v11 = vpop.f32.mrb[4].mxu1  ;;  %v12851_v47 = vpop.f32.mrb[6].mxu0  ;;  %v12893_v1 = vmul.f32 %v12869_v42, %v12778_v53  ;;  %v12924_v62 = vsel %vm811_vm6, %v12669_v20, %v12671_v21  ;;  %19688 = vst [vmem:[#allocation48_spill] sm:$0xff] %v12926_v19 }
 0x172   : > { %19676 = vst [vmem:[#allocation36_spill] sm:$0xff] %v12833_v2  ;;  %19678 = vst [vmem:[#allocation38_spill] sm:$0xff] %v12854_v61  ;;  %v12858_v12 = vmul.f32 %v12833_v2, %v12778_v53  ;;  %v12862_v54 = vpop.f32.mrb[5].mxu1  ;;  %v12864_v45 = vpop.f32.mrb[7].mxu0  ;;  %v12877_v61 = vsel %vm811_vm6, %v12665_v14, %v12667_v15  ;;  %v12897_v40 = vmul.f32 %v12872_v59, %v12798_v48 }
 0x173   : > { %19681 = vst [vmem:[#allocation41_spill] sm:$0xff] %v12872_v59  ;;  %19684 = vst [vmem:[#allocation44_spill] sm:$0xff] %v12893_v1  ;;  %v12942_v1 = vmul.f32 %v722_v8, %v12780_v49  ;;  %v973_v59 = vmul.f32 %v12924_v62, %v12780_v49  ;;  %v777_v49 = vmul.f32 %v12743_v56, %v12778_v53 }
 0x174   : > { %19679 = vst [vmem:[#allocation39_spill] sm:$0xff] %v12858_v12  ;;  %895 = vrot.lane.b32.xlu0 %v873_v51, %s12217_s27  ;;  %v12882_v12 = vrot.slane %v12849_v7, %v12320_v16  ;;  %19685 = vst [vmem:[#allocation45_spill] sm:$0xff] %v12897_v40  ;;  %v12900_v51 = vmul.f32 %v1048_v0, %v12816_v52  ;;  %v12916_v40 = vsel %vm811_vm6, %v12667_v15, %v12669_v20  ;;  %v12936_v15 = vld [vmem:[%s19316_s2 + $0x22] ss:$8 sm:$0xf]  ;;  %v12986_v39 = vpop.permute.xlu1 %3309 }
 0x175   : > { %897 = vrot.lane.b32.xlu1 %v874_v44, %s12217_s27  ;;  %v12887_v2 = vpop.f32.mrb[6].mxu1  ;;  %v12889_v41 = vpop.f32.mrb[8].mxu0  ;;  %v970_v44 = vmul.f32 %v12665_v14, %v12745_v57  ;;  %v971_v0 = vmul.f32 %v12877_v61, %v12747_v58  ;;  %19691 = vst [vmem:[#allocation51_spill] sm:$0xff] %v12942_v1  ;;  %v972_v20 = vmul.f32 %v12916_v40, %v12771_v4  ;;  %19700 = vst [vmem:[#allocation60_spill] sm:$0xff] %v12986_v39 }
 0x176   : > { %19682 = vst [vmem:[#allocation42_spill] sm:$0xff] %v12882_v12  ;;  %19686 = vst [vmem:[#allocation46_spill] sm:$0xff] %v12900_v51  ;;  %v12907_v43 = vmul.f32 %v12882_v12, %v12887_v2  ;;  %v12909_v38 = vpop.f32.mrb[7].mxu1  ;;  %v12911_v42 = vpop.f32.mrb[9].mxu0 }
 0x177   : > { %v12956_v12 = vld [vmem:[%s19316_s2 + $0x21] ss:$8 sm:$0xf]  ;;  %v12962_v1 = vpop.permute.xlu0 %3307 }
 0x178   : > { %19687 = vst [vmem:[#allocation47_spill] sm:$0xff] %v12907_v43  ;;  %990 = vrot.lane.b32.xlu0 %v970_v44, %s12218_s30  ;;  %v12939_v44 = vmul.f32 %v722_v8, %v12816_v52  ;;  %19693 = vst [vmem:[#allocation53_spill] sm:$0xff] %v12956_v12  ;;  %v12960_v8 = vrot.slane %v12936_v15, %v12320_v16 }
 0x179   : > { %992 = vrot.lane.b32.xlu1 %v971_v0, %s12218_s30  ;;  %v12929_v51 = vpop.f32.mrb[8].mxu1  ;;  %v12931_v43 = vpop.f32.mrb[10].mxu0  ;;  %19695 = vst [vmem:[#allocation55_spill] sm:$0xff] %v12962_v1  ;;  %v776_v1 = vmul.f32 %v12653_v6, %v12774_v5  ;;  %v779_v6 = vmul.f32 %v12761_v63, %v12816_v52 }
 0x17a   : > { %19689 = vst [vmem:[#allocation49_spill] sm:$0xff] %v12929_v51  ;;  %19690 = vst [vmem:[#allocation50_spill] sm:$0xff] %v12939_v44  ;;  %v12946_v19 = vpop.f32.mrb[9].mxu1  ;;  %v12948_v0 = vpop.f32.mrb[11].mxu0 }
 0x17b   : > { %19692 = vst [vmem:[#allocation52_spill] sm:$0xff] %v12946_v19  ;;  %19694 = vst [vmem:[#allocation54_spill] sm:$0xff] %v12960_v8 }
 0x17c   : > { %994 = vrot.lane.b32.xlu0 %v972_v20, %s12218_s30 }
 0x17d   : > { %996 = vrot.lane.b32.xlu1 %v973_v59, %s12218_s30  ;;  %v12965_v44 = vpop.f32.mrb[10].mxu1  ;;  %v12967_v4 = vpop.f32.mrb[12].mxu0  ;;  %v12983_v59 = vrot.slane %v12956_v12, %v12320_v16 }
 0x17e   : > { %19696 = vst [vmem:[#allocation56_spill] sm:$0xff] %v12967_v4  ;;  %v12973_v20 = vmul.f32 %v12960_v8, %v12967_v4  ;;  %v12975_v58 = vpop.f32.mrb[11].mxu1  ;;  %v12977_v57 = vpop.f32.mrb[13].mxu0 }
 0x17f   : > { %19698 = vst [vmem:[#allocation58_spill] sm:$0xff] %v12975_v58  ;;  %19699 = vst [vmem:[#allocation59_spill] sm:$0xff] %v12983_v59  ;;  %v12995_v8 = vmul.f32 %v12983_v59, %v12909_v38  ;;  %v877_v59 = vmul.f32 %v12793_v60, %v12778_v53 }
 0x180   : > { %19697 = vst [vmem:[#allocation57_spill] sm:$0xff] %v12973_v20  ;;  %803 = vrot.lane.b32.xlu0 %v777_v49, %s12219_s17  ;;  %v778_v49 = vmul.f32 %v12769_v3, %v12798_v48 }
 0x181   : > { %801 = vrot.lane.b32.xlu1 %v776_v1, %s12219_s17  ;;  %v12989_v56 = vpop.f32.mrb[12].mxu1  ;;  %v12991_v20 = vpop.f32.mrb[14].mxu0  ;;  %19702 = vst [vmem:[#allocation62_spill] sm:$0xff] %v12995_v8  ;;  %v13014_v8 = vld [vmem:[%s19316_s2 + $0x27] ss:$8 sm:$0xf] }
 0x182   : > { %19701 = vst [vmem:[#allocation61_spill] sm:$0xff] %v12991_v20  ;;  %v12999_v4 = vpop.f32.mrb[15].mxu0  ;;  %v13001_v58 = vpop.f32.mrb[13].mxu1 }
 0x183   : > { %19703 = vst [vmem:[#allocation63_spill] sm:$0xff] %v12999_v4  ;;  %19704 = vst [vmem:[#allocation64_spill] sm:$0xff] %v13001_v58  ;;  %v13006_v1 = vpop.permute.xlu0 %3311  ;;  %v13060_v58 = vrot.slane %v12956_v12, %v12322_v17 }
 0x184   : > { %807 = vrot.lane.b32.xlu0 %v779_v6, %s12219_s17  ;;  %19705 = vst [vmem:[#allocation65_spill] sm:$0xff] %v13006_v1  ;;  %v876_v6 = vmul.f32 %v12657_v10, %v12774_v5  ;;  %v13033_v1 = vrot.slane %v13014_v8, %v12320_v16 }
 0x185   : > { %805 = vrot.lane.b32.xlu1 %v778_v49, %s12219_s17  ;;  %v13009_v39 = vpop.f32.mrb[14].mxu1  ;;  %v13016_v63 = vpop.f32.mrb[16].mxu0  ;;  %v13028_v49 = vrot.slane %v12849_v7, %v12322_v17 }
 0x186   : > { %19706 = vst [vmem:[#allocation66_spill] sm:$0xff] %v13009_v39  ;;  %19707 = vst [vmem:[#allocation67_spill] sm:$0xff] %v13016_v63  ;;  %v13020_v4 = vpop.f32.mrb[15].mxu1  ;;  %v13022_v3 = vpop.f32.mrb[17].mxu0 }
 0x187   : > { %19708 = vst [vmem:[#allocation68_spill] sm:$0xff] %v13020_v4  ;;  %19709 = vst [vmem:[#allocation69_spill] sm:$0xff] %v13022_v3  ;;  %v13035_v63 = vpop.permute.xlu1 %3406  ;;  %v13044_v10 = vmul.f32 %v13028_v49, %v12909_v38  ;;  %v879_v4 = vmul.f32 %v12839_v18, %v12816_v52 }
 0x188   : > { %903 = vrot.lane.b32.xlu0 %v877_v59, %s12217_s27  ;;  %19710 = vst [vmem:[#allocation70_spill] sm:$0xff] %v13033_v1  ;;  %19711 = vst [vmem:[#allocation71_spill] sm:$0xff] %v13035_v63 }
 0x189   : > { %901 = vrot.lane.b32.xlu1 %v876_v6, %s12217_s27  ;;  %v13038_v60 = vpop.f32.mrb[16].mxu1  ;;  %v13040_v3 = vpop.f32.mrb[18].mxu0  ;;  %19713 = vst [vmem:[#allocation73_spill] sm:$0xff] %v13044_v10  ;;  %v878_v6 = vmul.f32 %v12825_v46, %v12798_v48  ;;  %v13075_v46 = vmul.f32 %v13060_v58, %v12889_v41 }
 0x18a   : > { %19712 = vst [vmem:[#allocation72_spill] sm:$0xff] %v13040_v3  ;;  %v13050_v59 = vmul.f32 %v13033_v1, %v13038_v60  ;;  %v13052_v20 = vpop.f32.mrb[17].mxu1  ;;  %v13054_v39 = vpop.f32.mrb[19].mxu0 }
 0x18b   : > { %19715 = vst [vmem:[#allocation75_spill] sm:$0xff] %v13054_v39  ;;  %v3409_v10 = vpop.permute.xlu0 %3408  ;;  %19718 = vst [vmem:[#allocation78_spill] sm:$0xff] %v13075_v46  ;;  %v976_v39 = vmul.f32 %v12877_v61, %v12778_v53 }
 0x18c   : > { %19714 = vst [vmem:[#allocation74_spill] sm:$0xff] %v13050_v59  ;;  %907 = vrot.lane.b32.xlu0 %v879_v4, %s12217_s27  ;;  %v13071_v59 = vld [vmem:[%s19316_s2 + $0x44] ss:$8 sm:$0xf]  ;;  %v13099_v61 = vsel %vm811_vm6, %v13035_v63, %v3409_v10  ;;  %v1385_v63 = vmul.f32 %v12673_v22, %v12844_v11 }
 0x18d   : > { %905 = vrot.lane.b32.xlu1 %v878_v6, %s12217_s27  ;;  %v13064_v18 = vpop.f32.mrb[18].mxu1  ;;  %v13066_v1 = vpop.f32.mrb[20].mxu0  ;;  %v975_v6 = vmul.f32 %v12665_v14, %v12774_v5  ;;  %19725 = vst [vmem:[#allocation85_spill] sm:$0xff] %v13099_v61  ;;  %v978_v14 = vmul.f32 %v12924_v62, %v12816_v52  ;;  %v11057_v52 = vld [vmem:[%s19316_s2 + $0x26] ss:$8 sm:$0xf] }
 0x18e   : > { %19716 = vst [vmem:[#allocation76_spill] sm:$0xff] %v13064_v18  ;;  %19717 = vst [vmem:[#allocation77_spill] sm:$0xff] %v13066_v1  ;;  %v13079_v4 = vpop.f32.mrb[19].mxu1  ;;  %v13081_v12 = vpop.f32.mrb[21].mxu0  ;;  %v13088_v1 = vrot.slane %v13071_v59, %v12320_v16 }
 0x18f   : > { %19719 = vst [vmem:[#allocation79_spill] sm:$0xff] %v13079_v4  ;;  %19720 = vst [vmem:[#allocation80_spill] sm:$0xff] %v13081_v12  ;;  %v13090_v18 = vpop.permute.xlu1 %3410 }
 0x190   : > { %1002 = vrot.lane.b32.xlu0 %v976_v39, %s12218_s30  ;;  %19721 = vst [vmem:[#allocation81_spill] sm:$0xff] %v13088_v1  ;;  %19722 = vst [vmem:[#allocation82_spill] sm:$0xff] %v13090_v18 }
 0x191   : > { %1000 = vrot.lane.b32.xlu1 %v975_v6, %s12218_s30  ;;  %v13093_v46 = vpop.f32.mrb[20].mxu1  ;;  %v13095_v53 = vpop.f32.mrb[22].mxu0  ;;  %v977_v6 = vmul.f32 %v12916_v40, %v12798_v48  ;;  %v13130_v40 = vsel %vm811_vm6, %v3409_v10, %v13090_v18  ;;  %v13147_v10 = vrot.slane %v12936_v15, %v12322_v17  ;;  %v13150_v18 = vrot.slane %v11057_v52, %v12320_v16 }
 0x192   : > { %19723 = vst [vmem:[#allocation83_spill] sm:$0xff] %v13093_v46  ;;  %19724 = vst [vmem:[#allocation84_spill] sm:$0xff] %v13095_v53  ;;  %v13105_v39 = vmul.f32 %v13088_v1, %v13095_v53  ;;  %v13107_v5 = vpop.f32.mrb[21].mxu1  ;;  %v13109_v12 = vpop.f32.mrb[23].mxu0 }
 0x193   : > { %19727 = vst [vmem:[#allocation87_spill] sm:$0xff] %v13107_v5  ;;  %v13118_v46 = vmul.f32 %v13099_v61, %v13109_v12  ;;  %19730 = vst [vmem:[#allocation90_spill] sm:$0xff] %v13130_v40  ;;  %v13153_v61 = vrot.slane %v11057_v52, %v12322_v17  ;;  %v979_v52 = vmul.f32 %v12801_v55, %v12671_v21 }
 0x194   : > { %19726 = vst [vmem:[#allocation86_spill] sm:$0xff] %v13105_v39  ;;  %1006 = vrot.lane.b32.xlu0 %v978_v14, %s12218_s30  ;;  %19734 = vst [vmem:[#allocation94_spill] sm:$0xff] %v13150_v18 }
 0x195   : > { %19728 = vst [vmem:[#allocation88_spill] sm:$0xff] %v13118_v46  ;;  %1004 = vrot.lane.b32.xlu1 %v977_v6, %s12218_s30  ;;  %v13124_v62 = vpop.f32.mrb[22].mxu1  ;;  %v13126_v39 = vpop.f32.mrb[24].mxu0  ;;  %v780_v46 = vmul.f32 %v12801_v55, %v12655_v9  ;;  %v1484_v6 = vmul.f32 %v12681_v26, %v12844_v11  ;;  %19735 = vst [vmem:[#allocation95_spill] sm:$0xff] %v13153_v61 }
 0x196   : > { %19729 = vst [vmem:[#allocation89_spill] sm:$0xff] %v13126_v39  ;;  %v13132_v48 = vpop.f32.mrb[25].mxu0  ;;  %v13134_v14 = vpop.f32.mrb[23].mxu1  ;;  %v13143_v1 = vmul.f32 %v13130_v40, %v13124_v62  ;;  %v13158_v39 = vmul.f32 %v13147_v10, %v12977_v57  ;;  %v880_v40 = vmul.f32 %v12801_v55, %v12663_v13  ;;  %v875_v55 = vmul.f32 %v12663_v13, %v12818_v50 }
 0x197   : > { %19731 = vst [vmem:[#allocation91_spill] sm:$0xff] %v13132_v48  ;;  %19732 = vst [vmem:[#allocation92_spill] sm:$0xff] %v13134_v14  ;;  %v19754_v48 = vld [vmem:[#allocation36_spill] sm:$0xff] }
 0x198   : > { %1405 = vrot.lane.b32.xlu0 %v1385_v63, %s12219_s17  ;;  %19733 = vst [vmem:[#allocation93_spill] sm:$0xff] %v13143_v1  ;;  %19736 = vst [vmem:[#allocation96_spill] sm:$0xff] %v13158_v39  ;;  %v13162_v63 = vmul.f32 %v13150_v18, %v12977_v57  ;;  %v13166_v1 = vmul.f32 %v13153_v61, %v12989_v56  ;;  %v19755_v61 = vld [vmem:[#allocation11_spill] sm:$0xff]  ;;  %v19757_v18 = vld [vmem:[#allocation12_spill] sm:$0xff] }
 0x199   : > { %809 = vrot.lane.b32.xlu1 %v780_v46, %s12219_s17  ;;  %v1583_v46 = vmul.f32 %v12689_v30, %v12844_v11  ;;  %v19760_v39 = vld [vmem:[#allocation40_spill] sm:$0xff] }
 0x19a   : > { %19737 = vst [vmem:[#allocation97_spill] sm:$0xff] %v13162_v63  ;;  %19738 = vst [vmem:[#allocation98_spill] sm:$0xff] %v13166_v1  ;;  %v1377_v63 = vsel %vm762_vm5, %v12673_v22, %v12675_v23  ;;  %v775_v1 = vmul.f32 %v12655_v9, %v12818_v50  ;;  %v974_v9 = vmul.f32 %v12671_v21, %v12818_v50  ;;  %v11076_v21 = vld [vmem:[%s19316_s2 + $0x43] ss:$8 sm:$0xf] }
 0x19b   : > { %v1489_v50 = vmul.f32 %v12681_v26, %v12887_v2 }
 0x19c   : > { %1504 = vrot.lane.b32.xlu0 %v1484_v6, %s12217_s27  ;;  %v1386_v6 = vmul.f32 %v1377_v63, %v12862_v54 }
 0x19d   : > { %909 = vrot.lane.b32.xlu1 %v880_v40, %s12217_s27  ;;  %v1476_v40 = vsel %vm446_vm0, %v12681_v26, %v12683_v27 }
 0x1a0   : > { %1603 = vrot.lane.b32.xlu0 %v1583_v46, %s12218_s30  ;;  %v1485_v46 = vmul.f32 %v1476_v40, %v12862_v54 }
 0x1a1   : > { %1008 = vrot.lane.b32.xlu1 %v979_v52, %s12218_s30  ;;  %v1575_v52 = vsel %vm811_vm6, %v12689_v30, %v12691_v31 }
 0x1a4   : > { %799 = vrot.lane.b32.xlu0 %v775_v1, %s12219_s17  ;;  %v1378_v1 = vsel %vm762_vm5, %v12675_v23, %v12677_v24 }
 0x1a5   : > { %1407 = vrot.lane.b32.xlu1 %v1386_v6, %s12219_s17  ;;  %v1584_v6 = vmul.f32 %v1575_v52, %v12862_v54  ;;  %v1387_v13 = vmul.f32 %v1378_v1, %v12851_v47 }
 0x1a8   : > { %899 = vrot.lane.b32.xlu0 %v875_v55, %s12217_s27  ;;  %v1390_v55 = vmul.f32 %v12673_v22, %v12887_v2  ;;  %v1576_v22 = vsel %vm811_vm6, %v12691_v31, %v12693_v32 }
 0x1a9   : > { %1506 = vrot.lane.b32.xlu1 %v1485_v46, %s12217_s27  ;;  %v1477_v46 = vsel %vm446_vm0, %v12683_v27, %v12685_v28  ;;  %v13227_v27 = vrot.slane %v13014_v8, %v12322_v17  ;;  %v1585_v31 = vmul.f32 %v1576_v22, %v12851_v47  ;;  %v1379_v8 = vsel %vm762_vm5, %v12677_v24, %v12679_v25 }
 0x1aa   : > { %v1486_v23 = vmul.f32 %v1477_v46, %v12851_v47 }
 0x1ab   : > { %19740 = vst [vmem:[#allocation100_spill] sm:$0xff] %v13227_v27  ;;  %v13237_v26 = vmul.f32 %v13227_v27, %v13052_v20 }
 0x1ac   : > { %998 = vrot.lane.b32.xlu0 %v974_v9, %s12218_s30  ;;  %v13223_v9 = vrot.slane %v11076_v21, %v12320_v16 }
 0x1ad   : > { %1605 = vrot.lane.b32.xlu1 %v1584_v6, %s12218_s30  ;;  %19742 = vst [vmem:[#allocation102_spill] sm:$0xff] %v13237_v26  ;;  %v19753_v26 = vld [vmem:[#allocation25_spill] sm:$0xff] }
 0x1ae   : > { %19739 = vst [vmem:[#allocation99_spill] sm:$0xff] %v13223_v9  ;;  %v13233_v6 = vmul.f32 %v13223_v9, %v13052_v20  ;;  %v728_v27 = vmul.f32 %v19754_v48, %v19753_v26  ;;  %v13378_v48 = vsel %vm811_vm6, %v19755_v61, %v19757_v18 }
 0x1b0   : > { %1409 = vrot.lane.b32.xlu0 %v1387_v13, %s12219_s17  ;;  %19741 = vst [vmem:[#allocation101_spill] sm:$0xff] %v13233_v6  ;;  %v1588_v13 = vmul.f32 %v12689_v30, %v12887_v2  ;;  %v1490_v30 = vmul.f32 %v1476_v40, %v12909_v38  ;;  %v1577_v2 = vsel %vm811_vm6, %v12693_v32, %v12695_v33 }
 0x1b1   : > { %1415 = vrot.lane.b32.xlu1 %v1390_v55, %s12219_s17  ;;  %v1391_v55 = vmul.f32 %v1377_v63, %v12909_v38  ;;  %v1589_v63 = vmul.f32 %v1575_v52, %v12909_v38  ;;  %v1389_v40 = vmul.f32 %v12679_v25, %v12946_v19  ;;  %v1393_v32 = vmul.f32 %v1379_v8, %v12911_v42 }
 0x1b2   : > { %v1394_v38 = vmul.f32 %v12929_v51, %v12679_v25  ;;  %v13274_v52 = vrot.slane %v11076_v21, %v12322_v17  ;;  %v1493_v21 = vmul.f32 %v12929_v51, %v12687_v29 }
 0x1b4   : > { %1508 = vrot.lane.b32.xlu0 %v1486_v23, %s12217_s27  ;;  %v1388_v23 = vmul.f32 %v1379_v8, %v12864_v45  ;;  %19743 = vst [vmem:[#allocation103_spill] sm:$0xff] %v13274_v52  ;;  %v13291_v8 = vpop.permute.xlu0 %3313 }
 0x1b5   : > { %1514 = vrot.lane.b32.xlu1 %v1489_v50, %s12217_s27  ;;  %v1478_v50 = vsel %vm446_vm0, %v12685_v28, %v12687_v29  ;;  %v1586_v28 = vmul.f32 %v1577_v2, %v12864_v45  ;;  %19745 = vst [vmem:[#allocation105_spill] sm:$0xff] %v13291_v8  ;;  %v19758_v8 = vld [vmem:[#allocation13_spill] sm:$0xff] }
 0x1b6   : > { %v1487_v24 = vmul.f32 %v1478_v50, %v12864_v45  ;;  %v1492_v25 = vmul.f32 %v1478_v50, %v12911_v42  ;;  %v1591_v50 = vmul.f32 %v1577_v2, %v12911_v42  ;;  %v13314_v2 = vsel %vm762_vm5, %v12699_v35, %v12701_v36 }
 0x1b8   : > { %1607 = vrot.lane.b32.xlu0 %v1585_v31, %s12218_s30  ;;  %v1392_v31 = vmul.f32 %v1378_v1, %v12889_v41  ;;  %v1488_v1 = vmul.f32 %v12687_v29, %v12946_v19  ;;  %v1592_v29 = vmul.f32 %v12929_v51, %v12695_v33  ;;  %v19762_v51 = vld [vmem:[#allocation4_spill] sm:$0xff] }
 0x1b9   : > { %1613 = vrot.lane.b32.xlu1 %v1588_v13, %s12218_s30  ;;  %v13280_v13 = vmul.f32 %v13274_v52, %v13040_v3 }
 0x1bb   : > { %19744 = vst [vmem:[#allocation104_spill] sm:$0xff] %v13280_v13  ;;  %v19751_v13 = vld [vmem:[#allocation8_spill] sm:$0xff] }
 0x1bc   : > { %1417 = vrot.lane.b32.xlu0 %v1391_v55, %s12219_s17  ;;  %v1491_v55 = vmul.f32 %v1477_v46, %v12889_v41  ;;  %v1590_v46 = vmul.f32 %v1576_v22, %v12889_v41 }
 0x1bd   : > { %1411 = vrot.lane.b32.xlu1 %v1388_v23, %s12219_s17  ;;  %v1587_v23 = vmul.f32 %v12695_v33, %v12946_v19  ;;  %v1057_v19 = vmul.f32 %v19760_v39, %v19753_v26 }
 0x1c0   : > { %1516 = vrot.lane.b32.xlu0 %v1490_v30, %s12217_s27 }
 0x1c1   : > { %1510 = vrot.lane.b32.xlu1 %v1487_v24, %s12217_s27 }
 0x1c4   : > { %1615 = vrot.lane.b32.xlu0 %v1589_v63, %s12218_s30  ;;  %v1998_v63 = vmul.f32 %v12697_v34, %v12931_v43 }
 0x1c5   : > { %1609 = vrot.lane.b32.xlu1 %v1586_v28, %s12218_s30  ;;  %v13307_v28 = vsel %vm762_vm5, %v12697_v34, %v12699_v35  ;;  %v19746_v35 = vld [vmem:[#allocation58_spill] sm:$0xff] }
 0x1c6   : > { %v1999_v33 = vmul.f32 %v13307_v28, %v12948_v0 }
 0x1c8   : > { %1413 = vrot.lane.b32.xlu0 %v1389_v40, %s12219_s17 }
 0x1c9   : > { %1419 = vrot.lane.b32.xlu1 %v1392_v31, %s12219_s17  ;;  %v13323_v31 = vsel %vm762_vm5, %v12701_v36, %v12703_v37 }
 0x1cc   : > { %1421 = vrot.lane.b32.xlu0 %v1393_v32, %s12219_s17  ;;  %v2000_v32 = vmul.f32 %v13314_v2, %v12965_v44 }
 0x1cd   : > { %1423 = vrot.lane.b32.xlu1 %v1394_v38, %s12219_s17 }
 0x1d0   : > { %1512 = vrot.lane.b32.xlu0 %v1488_v1, %s12217_s27  ;;  %v2001_v1 = vmul.f32 %v13323_v31, %v19746_v35 }
 0x1d1   : > { %1518 = vrot.lane.b32.xlu1 %v1491_v55, %s12217_s27 }
 0x1d4   : > { %1520 = vrot.lane.b32.xlu0 %v1492_v25, %s12217_s27  ;;  %v19747_v25 = vld [vmem:[#allocation7_spill] sm:$0xff] }
 0x1d5   : > { %1522 = vrot.lane.b32.xlu1 %v1493_v21, %s12217_s27  ;;  %v19748_v21 = vld [vmem:[#allocation6_spill] sm:$0xff]  ;;  %v13346_v6 = vsel %vm446_vm0, %v19747_v25, %v19751_v13 }
 0x1d6   : > { %v2097_v36 = vmul.f32 %v19748_v21, %v12931_v43 }
 0x1d8   : > { %1611 = vrot.lane.b32.xlu0 %v1587_v23, %s12218_s30  ;;  %v13334_v23 = vsel %vm446_vm0, %v19748_v21, %v19747_v25  ;;  %v2099_v25 = vmul.f32 %v13346_v6, %v12965_v44 }
 0x1d9   : > { %1617 = vrot.lane.b32.xlu1 %v1590_v46, %s12218_s30  ;;  %v2098_v52 = vmul.f32 %v13334_v23, %v12948_v0 }
 0x1da   : > { %v792_v30 = vpop.permute.xlu0 %791 }
 0x1db   : > { %v794_v24 = vpop.permute.xlu1 %793 }
 0x1dc   : > { %1619 = vrot.lane.b32.xlu0 %v1591_v50, %s12218_s30  ;;  %v812_v46 = vsel %vm811_vm6, %v792_v30, %v794_v24 }
 0x1dd   : > { %1621 = vrot.lane.b32.xlu1 %v1592_v29, %s12218_s30  ;;  %v19749_v29 = vld [vmem:[#allocation24_spill] sm:$0xff] }
 0x1de   : > { %v796_v22 = vpop.permute.xlu0 %795 }
 0x1df   : > { %v13318_v40 = vpop.permute.xlu1 %797 }
 0x1e0   : > { %2018 = vrot.lane.b32.xlu0 %v1998_v63, %s12219_s17  ;;  %v19750_v63 = vld [vmem:[#allocation29_spill] sm:$0xff]  ;;  %v814_v14 = vsel %vm811_vm6, %v796_v22, %v13318_v40 }
 0x1e1   : > { %2020 = vrot.lane.b32.xlu1 %v1999_v33, %s12219_s17  ;;  %v727_v33 = vmul.f32 %v19750_v63, %v19749_v29  ;;  %v813_v63 = vsel %vm811_vm6, %v794_v24, %v796_v22 }
 0x1e2   : > { %v892_v38 = vpop.permute.xlu0 %891  ;;  %v829_v5 = vadd.f32 %v813_v63, %v728_v27  ;;  %v19761_v27 = vld [vmem:[#allocation42_spill] sm:$0xff] }
 0x1e3   : > { %v894_v55 = vpop.permute.xlu1 %893  ;;  %v828_v29 = vadd.f32 %v812_v46, %v727_v33 }
 0x1e4   : > { %2022 = vrot.lane.b32.xlu0 %v2000_v32, %s12219_s17  ;;  %v911_v30 = vsel %vm446_vm0, %v892_v38, %v894_v55 }
 0x1e5   : > { %2024 = vrot.lane.b32.xlu1 %v2001_v1, %s12219_s17  ;;  %v19752_v1 = vld [vmem:[#allocation9_spill] sm:$0xff]  ;;  %v927_v24 = vadd.f32 %v911_v30, %v828_v29  ;;  %v13387_v30 = vsel %vm811_vm6, %v19757_v18, %v19758_v8  ;;  %v13399_v18 = vrot.slane %v12849_v7, %v19762_v51 }
 0x1e6   : > { %v896_v50 = vpop.permute.xlu0 %895  ;;  %v13355_v9 = vsel %vm446_vm0, %v19751_v13, %v19752_v1 }
 0x1e7   : > { %v13350_v32 = vpop.permute.xlu1 %897  ;;  %v2100_v38 = vmul.f32 %v13355_v9, %v19746_v35 }
 0x1e8   : > { %2117 = vrot.lane.b32.xlu0 %v2097_v36, %s12217_s27  ;;  %v19756_v36 = vld [vmem:[#allocation10_spill] sm:$0xff]  ;;  %v913_v22 = vsel %vm446_vm0, %v896_v50, %v13350_v32 }
 0x1e9   : > { %2119 = vrot.lane.b32.xlu1 %v2098_v52, %s12217_s27  ;;  %v13372_v46 = vsel %vm811_vm6, %v19756_v36, %v19755_v61  ;;  %v912_v52 = vsel %vm446_vm0, %v894_v55, %v896_v50  ;;  %v19759_v55 = vld [vmem:[#allocation31_spill] sm:$0xff]  ;;  %v1334_v50 = vmul.f32 %v19761_v27, %v12844_v11  ;;  %v2196_v63 = vmul.f32 %v19756_v36, %v12931_v43 }
 0x1ea   : > { %v991_v13 = vpop.permute.xlu0 %990  ;;  %v830_v29 = vadd.f32 %v814_v14, %v19759_v55  ;;  %v2197_v14 = vmul.f32 %v13372_v46, %v12948_v0  ;;  %v11095_v11 = vld [vmem:[%s19316_s2 + $0x60] ss:$8 sm:$0xf] }
 0x1eb   : > { %v993_v33 = vpop.permute.xlu1 %992 }
 0x1ec   : > { %v1010_v53 = vsel %vm762_vm5, %v991_v13, %v993_v33  ;;  %2121 = vrot.lane.b32.xlu0 %v2099_v25, %s12217_s27  ;;  %v928_v25 = vadd.f32 %v912_v52, %v829_v5  ;;  %v929_v55 = vadd.f32 %v913_v22, %v830_v29  ;;  %v19764_v5 = vld [vmem:[#allocation41_spill] sm:$0xff]  ;;  %v2199_v22 = vmul.f32 %v13387_v30, %v19746_v35 }
 0x1ed   : > { %v1026_v61 = vadd.f32 %v1010_v53, %v927_v24  ;;  %2123 = vrot.lane.b32.xlu1 %v2100_v38, %s12217_s27  ;;  %v19763_v38 = vld [vmem:[#allocation28_spill] sm:$0xff] }
 0x1ee   : > { %v995_v13 = vpop.permute.xlu0 %994  ;;  %v1058_v24 = vmul.f32 %v19764_v5, %v19763_v38  ;;  %v2004_v5 = vmul.f32 %v13307_v28, %v12977_v57 }
 0x1ef   : > { %v1065_v39 = vadd.f32 %v1057_v19, %v1026_v61  ;;  %v1011_v53 = vsel %vm762_vm5, %v993_v33, %v995_v13  ;;  %v13404_v26 = vpop.permute.xlu1 %996  ;;  %v2198_v33 = vmul.f32 %v13378_v48, %v12965_v44 }
 0x1f0   : > { %v1027_v52 = vadd.f32 %v1011_v53, %v928_v25  ;;  %v1012_v27 = vsel %vm762_vm5, %v995_v13, %v13404_v26  ;;  %2216 = vrot.lane.b32.xlu0 %v2196_v63, %s12218_s30  ;;  %v1335_v25 = vmul.f32 %v13028_v49, %v12862_v54  ;;  %v19765_v53 = vld [vmem:[#allocation32_spill] sm:$0xff]  ;;  %v1336_v63 = vmul.f32 %v13399_v18, %v12851_v47 }
 0x1f1   : > { %v1028_v3 = vadd.f32 %v1012_v27, %v929_v55  ;;  %2218 = vrot.lane.b32.xlu1 %v2197_v14, %s12218_s30  ;;  %v13415_v19 = vadd.f32 %v1334_v50, %v1065_v39  ;;  %v13428_v50 = vrot.slane %v13071_v59, %v12322_v17  ;;  %v13431_v14 = vrot.slane %v11095_v11, %v12320_v16 }
 0x1f2   : > { %v1066_v29 = vadd.f32 %v1058_v24, %v1027_v52  ;;  %v804_v61 = vpop.permute.xlu0 %803  ;;  %v19770_v24 = vld [vmem:[#allocation56_spill] sm:$0xff] }
 0x1f3   : > { %v1067_v13 = vadd.f32 %v19765_v53, %v1028_v3  ;;  %v802_v38 = vpop.permute.xlu1 %801  ;;  %19766 = vst [vmem:[#allocation58_spill] sm:$0xff] %v13428_v50  ;;  %19767 = vst [vmem:[#allocation7_spill] sm:$0xff] %v13431_v14  ;;  %v13441_v3 = vmul.f32 %v13428_v50, %v13109_v12  ;;  %v13445_v39 = vmul.f32 %v13431_v14, %v13109_v12  ;;  %v3540_v14 = vld [vmem:[%s19317_s3 + $0x78] sm:$0xff] }
 0x1f4   : > { %2220 = vrot.lane.b32.xlu0 %v2198_v33, %s12218_s30  ;;  %v13434_v55 = vadd.f32 %v1335_v25, %v1066_v29  ;;  %v2003_v52 = vmul.f32 %v12697_v34, %v19770_v24  ;;  %v13455_v33 = vrot.slane %v11095_v11, %v12322_v17  ;;  %v19772_v29 = vld [vmem:[#allocation64_spill] sm:$0xff]  ;;  %v2005_v34 = vmul.f32 %v13314_v2, %v12989_v56 }
 0x1f5   : > { %2222 = vrot.lane.b32.xlu1 %v2199_v22, %s12218_s30  ;;  %v13437_v49 = vadd.f32 %v1336_v63, %v1067_v13  ;;  %19768 = vst [vmem:[#allocation6_spill] sm:$0xff] %v13441_v3  ;;  %19769 = vst [vmem:[#allocation24_spill] sm:$0xff] %v13445_v39  ;;  %v2006_v25 = vmul.f32 %v13323_v31, %v19772_v29  ;;  %v2103_v11 = vmul.f32 %v13334_v23, %v12977_v57  ;;  %v19814_v3 = vld [vmem:[#allocation76_spill] sm:$0xff] }
 0x1f6   : > { %v13447_v59 = vpop.permute.xlu0 %807  ;;  %19771 = vst [vmem:[#allocation29_spill] sm:$0xff] %v13455_v33  ;;  %v13462_v53 = vmul.f32 %v13455_v33, %v13124_v62  ;;  %v816_v13 = vsel %vm811_vm6, %v802_v38, %v804_v61  ;;  %v2102_v31 = vmul.f32 %v19748_v21, %v19770_v24  ;;  %v2104_v21 = vmul.f32 %v13346_v6, %v12989_v56 }
 0x1f7   : > { %v806_v27 = vpop.permute.xlu1 %805  ;;  %v2202_v6 = vmul.f32 %v13372_v46, %v12977_v57  ;;  %v19778_v57 = vld [vmem:[#allocation47_spill] sm:$0xff] }
 0x1f8   : > { %2030 = vrot.lane.b32.xlu0 %v2004_v5, %s12219_s17  ;;  %19773 = vst [vmem:[#allocation8_spill] sm:$0xff] %v13462_v53  ;;  %v19774_v53 = vld [vmem:[#allocation33_spill] sm:$0xff]  ;;  %v817_v23 = vsel %vm811_vm6, %v804_v61, %v806_v27  ;;  %v818_v38 = vsel %vm811_vm6, %v806_v27, %v13447_v59  ;;  %v19776_v61 = vld [vmem:[#allocation38_spill] sm:$0xff] }
 0x1f9   : > { %2028 = vrot.lane.b32.xlu1 %v2003_v52, %s12219_s17  ;;  %v832_v2 = vadd.f32 %v816_v13, %v19774_v53  ;;  %v834_v17 = vadd.f32 %v818_v38, %v19776_v61 }
 0x1fa   : > { %v904_v22 = vpop.permute.xlu0 %903 }
 0x1fb   : > { %v902_v28 = vpop.permute.xlu1 %901 }
 0x1fc   : > { %2034 = vrot.lane.b32.xlu0 %v2006_v25, %s12219_s17  ;;  %v915_v52 = vsel %vm446_vm0, %v902_v28, %v904_v22  ;;  %v2105_v25 = vmul.f32 %v13355_v9, %v19772_v29  ;;  %v19775_v9 = vld [vmem:[#allocation39_spill] sm:$0xff] }
 0x1fd   : > { %2032 = vrot.lane.b32.xlu1 %v2005_v34, %s12219_s17  ;;  %v931_v39 = vadd.f32 %v915_v52, %v832_v2  ;;  %v19777_v2 = vld [vmem:[#allocation44_spill] sm:$0xff] }
 0x1fe   : > { %v908_v63 = vpop.permute.xlu0 %907 }
 0x1ff   : > { %v906_v5 = vpop.permute.xlu1 %905 }
 0x200   : > { %2129 = vrot.lane.b32.xlu0 %v2103_v11, %s12217_s27  ;;  %v916_v11 = vsel %vm446_vm0, %v904_v22, %v906_v5  ;;  %v917_v53 = vsel %vm446_vm0, %v906_v5, %v908_v63  ;;  %v2201_v22 = vmul.f32 %v19756_v36, %v19770_v24  ;;  %v2204_v36 = vmul.f32 %v13387_v30, %v19772_v29  ;;  %v19779_v24 = vld [vmem:[#allocation45_spill] sm:$0xff] }
 0x201   : > { %2127 = vrot.lane.b32.xlu1 %v2102_v31, %s12217_s27  ;;  %v833_v31 = vadd.f32 %v817_v23, %v19775_v9  ;;  %v933_v5 = vadd.f32 %v917_v53, %v834_v17  ;;  %v1340_v53 = vmul.f32 %v13399_v18, %v12889_v41  ;;  %v19782_v9 = vld [vmem:[#allocation14_spill] sm:$0xff]  ;;  %v19783_v30 = vld [vmem:[#allocation73_spill] sm:$0xff] }
 0x202   : > { %v1003_v34 = vpop.permute.xlu0 %1002  ;;  %v19785_v18 = vld [vmem:[#allocation18_spill] sm:$0xff] }
 0x203   : > { %v1001_v28 = vpop.permute.xlu1 %1000  ;;  %v932_v52 = vadd.f32 %v916_v11, %v833_v31 }
 0x204   : > { %v1014_v13 = vsel %vm762_vm5, %v1001_v28, %v1003_v34  ;;  %2133 = vrot.lane.b32.xlu0 %v2105_v25, %s12217_s27 }
 0x205   : > { %v1030_v16 = vadd.f32 %v1014_v13, %v931_v39  ;;  %2131 = vrot.lane.b32.xlu1 %v2104_v21, %s12217_s27  ;;  %v19780_v21 = vld [vmem:[#allocation46_spill] sm:$0xff] }
 0x206   : > { %v1007_v27 = vpop.permute.xlu0 %1006  ;;  %v19781_v13 = vld [vmem:[#allocation66_spill] sm:$0xff] }
 0x207   : > { %v1069_v28 = vadd.f32 %v19777_v2, %v1030_v16  ;;  %v1005_v33 = vpop.permute.xlu1 %1004  ;;  %v2203_v16 = vmul.f32 %v13378_v48, %v12989_v56  ;;  %v2611_v31 = vmul.f32 %v19782_v9, %v19781_v13  ;;  %v2710_v2 = vmul.f32 %v19785_v18, %v19781_v13 }
 0x208   : > { %v1015_v25 = vsel %vm762_vm5, %v1003_v34, %v1005_v33  ;;  %v1016_v23 = vsel %vm762_vm5, %v1005_v33, %v1007_v27  ;;  %2228 = vrot.lane.b32.xlu0 %v2202_v6, %s12218_s30 }
 0x209   : > { %v1031_v39 = vadd.f32 %v1015_v25, %v932_v52  ;;  %v1032_v38 = vadd.f32 %v1016_v23, %v933_v5  ;;  %2226 = vrot.lane.b32.xlu1 %v2201_v22, %s12218_s30  ;;  %v13501_v46 = vadd.f32 %v19778_v57, %v1069_v28  ;;  %v19784_v52 = vld [vmem:[#allocation61_spill] sm:$0xff]  ;;  %v19786_v25 = vld [vmem:[#allocation50_spill] sm:$0xff] }
 0x20a   : > { %v1406_v17 = vpop.permute.xlu0 %1405  ;;  %v2007_v5 = vmul.f32 %v19784_v52, %v12703_v37 }
 0x20b   : > { %v1070_v34 = vadd.f32 %v19779_v24, %v1031_v39  ;;  %v1071_v33 = vadd.f32 %v19780_v21, %v1032_v38  ;;  %v810_v11 = vpop.permute.xlu1 %809 }
 0x20c   : > { %2232 = vrot.lane.b32.xlu0 %v2204_v36, %s12218_s30  ;;  %v819_v48 = vsel %vm811_vm6, %v13447_v59, %v810_v11  ;;  %v2106_v59 = vmul.f32 %v19784_v52, %v19752_v1  ;;  %v19787_v36 = vld [vmem:[#allocation22_spill] sm:$0xff]  ;;  %v2205_v11 = vmul.f32 %v19784_v52, %v19758_v8 }
 0x20d   : > { %2230 = vrot.lane.b32.xlu1 %v2203_v16, %s12218_s30  ;;  %v13516_v61 = vadd.f32 %v19783_v30, %v1070_v34  ;;  %v13518_v6 = vadd.f32 %v1340_v53, %v1071_v33  ;;  %v835_v23 = vadd.f32 %v819_v48, %v19786_v25  ;;  %v2809_v16 = vmul.f32 %v19787_v36, %v19781_v13  ;;  %v19788_v34 = vld [vmem:[#allocation5_spill] sm:$0xff]  ;;  %v19789_v53 = vld [vmem:[#allocation34_spill] sm:$0xff] }
 0x20e   : > { %v1505_v22 = vpop.permute.xlu0 %1504  ;;  %v1329_v21 = vrot.slane %v12849_v7, %v19788_v34 }
 0x20f   : > { %v910_v41 = vpop.permute.xlu1 %909 }
 0x210   : > { %v918_v28 = vsel %vm446_vm0, %v908_v63, %v910_v41  ;;  %2631 = vrot.lane.b32.xlu0 %v2611_v31, %s12219_s17  ;;  %v1341_v48 = vmul.f32 %v1329_v21, %v12911_v42 }
 0x211   : > { %2036 = vrot.lane.b32.xlu1 %v2007_v5, %s12219_s17  ;;  %v934_v38 = vadd.f32 %v918_v28, %v835_v23  ;;  %v19790_v5 = vld [vmem:[#allocation15_spill] sm:$0xff] }
 0x212   : > { %v1604_v39 = vpop.permute.xlu0 %1603 }
 0x213   : > { %v1009_v57 = vpop.permute.xlu1 %1008 }
 0x214   : > { %v1017_v24 = vsel %vm762_vm5, %v1007_v27, %v1009_v57  ;;  %2730 = vrot.lane.b32.xlu0 %v2710_v2, %s12217_s27  ;;  %v13546_v27 = vsel %vm762_vm5, %v19782_v9, %v19790_v5  ;;  %v19791_v2 = vld [vmem:[#allocation63_spill] sm:$0xff] }
 0x215   : > { %v1033_v63 = vadd.f32 %v1017_v24, %v934_v38  ;;  %2135 = vrot.lane.b32.xlu1 %v2106_v59, %s12217_s27  ;;  %v2002_v28 = vmul.f32 %v12703_v37, %v19791_v2  ;;  %v19792_v59 = vld [vmem:[#allocation68_spill] sm:$0xff]  ;;  %v19793_v24 = vld [vmem:[#allocation19_spill] sm:$0xff] }
 0x216   : > { %v800_v33 = vpop.permute.xlu0 %799  ;;  %v2612_v38 = vmul.f32 %v13546_v27, %v19792_v59 }
 0x217   : > { %v1072_v31 = vadd.f32 %v19789_v53, %v1033_v63  ;;  %v1408_v30 = vpop.permute.xlu1 %1407  ;;  %v815_v41 = vsel %vm811_vm6, %v13318_v40, %v800_v33  ;;  %v13564_v40 = vsel %vm446_vm0, %v19785_v18, %v19793_v24  ;;  %v19794_v63 = vld [vmem:[#allocation51_spill] sm:$0xff] }
 0x218   : > { %2829 = vrot.lane.b32.xlu0 %v2809_v16, %s12218_s30  ;;  %v1425_v25 = vsel %vm811_vm6, %v1406_v17, %v1408_v30  ;;  %v831_v33 = vadd.f32 %v815_v41, %v19794_v63  ;;  %v2101_v17 = vmul.f32 %v19752_v1, %v19791_v2  ;;  %v19796_v1 = vld [vmem:[#allocation59_spill] sm:$0xff] }
 0x219   : > { %2234 = vrot.lane.b32.xlu1 %v2205_v11, %s12218_s30  ;;  %v13552_v7 = vadd.f32 %v1341_v48, %v1072_v31  ;;  %v1441_v37 = vadd.f32 %v1425_v25, %v13415_v19  ;;  %v2711_v31 = vmul.f32 %v13564_v40, %v19792_v59  ;;  %v19797_v63 = vld [vmem:[#allocation35_spill] sm:$0xff] }
 0x21a   : > { %v900_v23 = vpop.permute.xlu0 %899 }
 0x21b   : > { %v914_v57 = vsel %vm446_vm0, %v13350_v32, %v900_v23  ;;  %v1507_v16 = vpop.permute.xlu1 %1506 }
 0x21c   : > { %v1524_v11 = vsel %vm446_vm0, %v1505_v22, %v1507_v16  ;;  %2026 = vrot.lane.b32.xlu0 %v2002_v28, %s12219_s17  ;;  %v930_v32 = vadd.f32 %v914_v57, %v831_v33  ;;  %v19795_v22 = vld [vmem:[#allocation23_spill] sm:$0xff] }
 0x21d   : > { %2633 = vrot.lane.b32.xlu1 %v2612_v38, %s12219_s17  ;;  %v1540_v48 = vadd.f32 %v1524_v11, %v1441_v37  ;;  %v13580_v28 = vsel %vm811_vm6, %v19787_v36, %v19795_v22  ;;  %v1670_v38 = vmul.f32 %v19796_v1, %v12862_v54  ;;  %v1337_v37 = vmul.f32 %v1329_v21, %v12864_v45  ;;  %v19801_v1 = vld [vmem:[#allocation20_spill] sm:$0xff] }
 0x21e   : > { %v999_v53 = vpop.permute.xlu0 %998  ;;  %v2810_v54 = vmul.f32 %v13580_v28, %v19792_v59 }
 0x21f   : > { %v1013_v41 = vsel %vm762_vm5, %v13404_v26, %v999_v53  ;;  %v1606_v23 = vpop.permute.xlu1 %1605  ;;  %v2200_v26 = vmul.f32 %v19758_v8, %v19791_v2 }
 0x220   : > { %v1029_v19 = vadd.f32 %v1013_v41, %v930_v32  ;;  %v1623_v25 = vsel %vm762_vm5, %v1604_v39, %v1606_v23  ;;  %2125 = vrot.lane.b32.xlu0 %v2101_v17, %s12217_s27  ;;  %v19798_v32 = vld [vmem:[#allocation54_spill] sm:$0xff]  ;;  %v19799_v39 = vld [vmem:[#allocation16_spill] sm:$0xff] }
 0x221   : > { %v1639_v57 = vadd.f32 %v1623_v25, %v1540_v48  ;;  %2732 = vrot.lane.b32.xlu1 %v2711_v31, %s12217_s27  ;;  %v1947_v53 = vmul.f32 %v19798_v32, %v12931_v43  ;;  %v13596_v17 = vsel %vm762_vm5, %v19790_v5, %v19799_v39  ;;  %v19800_v43 = vld [vmem:[#allocation67_spill] sm:$0xff]  ;;  %v2616_v25 = vmul.f32 %v19782_v9, %v13038_v60  ;;  %v19802_v32 = vld [vmem:[#allocation26_spill] sm:$0xff] }
 0x222   : > { %v1068_v33 = vadd.f32 %v19797_v63, %v1029_v19  ;;  %v1410_v11 = vpop.permute.xlu0 %1409  ;;  %v2613_v19 = vmul.f32 %v13596_v17, %v19800_v43  ;;  %v2715_v9 = vmul.f32 %v19785_v18, %v13038_v60 }
 0x223   : > { %v1678_v31 = vadd.f32 %v1670_v38, %v1639_v57  ;;  %v1416_v48 = vpop.permute.xlu1 %1415  ;;  %v1426_v41 = vsel %vm811_vm6, %v1408_v30, %v1410_v11  ;;  %v13614_v38 = vsel %vm446_vm0, %v19793_v24, %v19801_v1  ;;  %v13627_v24 = vsel %vm811_vm6, %v19795_v22, %v19802_v32 }
 0x224   : > { %2224 = vrot.lane.b32.xlu0 %v2200_v26, %s12218_s30  ;;  %v13601_v8 = vadd.f32 %v1337_v37, %v1068_v33  ;;  %v1442_v30 = vadd.f32 %v1426_v41, %v13434_v55  ;;  %v2712_v63 = vmul.f32 %v13614_v38, %v19800_v43  ;;  %v1948_v22 = vmul.f32 %v13147_v10, %v12948_v0 }
 0x225   : > { %2831 = vrot.lane.b32.xlu1 %v2810_v54, %s12218_s30  ;;  %v13605_v21 = vadd.f32 %v1947_v53, %v1678_v31  ;;  %v1671_v53 = vmul.f32 %v13060_v58, %v12851_v47  ;;  %v2811_v31 = vmul.f32 %v13627_v24, %v19800_v43  ;;  %v19803_v47 = vld [vmem:[#allocation17_spill] sm:$0xff] }
 0x226   : > { %v1509_v5 = vpop.permute.xlu0 %1508  ;;  %v13647_v58 = vsel %vm762_vm5, %v19799_v39, %v19803_v47  ;;  %v2620_v50 = vmul.f32 %v19814_v3, %v19803_v47 }
 0x227   : > { %v1525_v57 = vsel %vm446_vm0, %v1507_v16, %v1509_v5  ;;  %v1515_v26 = vpop.permute.xlu1 %1514 }
 0x228   : > { %2635 = vrot.lane.b32.xlu0 %v2613_v19, %s12219_s17  ;;  %v1541_v33 = vadd.f32 %v1525_v57, %v1442_v30  ;;  %v19804_v30 = vld [vmem:[#allocation69_spill] sm:$0xff] }
 0x229   : > { %2641 = vrot.lane.b32.xlu1 %v2616_v25, %s12219_s17  ;;  %v2614_v39 = vmul.f32 %v13647_v58, %v19804_v30 }
 0x22a   : > { %v1608_v37 = vpop.permute.xlu0 %1607 }
 0x22b   : > { %v1624_v16 = vsel %vm762_vm5, %v1606_v23, %v1608_v37  ;;  %v1614_v55 = vpop.permute.xlu1 %1613  ;;  %v2814_v23 = vmul.f32 %v19787_v36, %v13038_v60  ;;  %v2617_v36 = vmul.f32 %v13546_v27, %v13052_v20 }
 0x22c   : > { %v1640_v54 = vadd.f32 %v1624_v16, %v1541_v33  ;;  %2734 = vrot.lane.b32.xlu0 %v2712_v63, %s12217_s27 }
 0x22d   : > { %2740 = vrot.lane.b32.xlu1 %v2715_v9, %s12217_s27  ;;  %v19805_v9 = vld [vmem:[#allocation21_spill] sm:$0xff] }
 0x22e   : > { %v1679_v18 = vadd.f32 %v1671_v53, %v1640_v54  ;;  %v13636_v41 = vpop.permute.xlu0 %1417  ;;  %v2716_v54 = vmul.f32 %v13564_v40, %v13052_v20 }
 0x22f   : > { %v13642_v19 = vpop.permute.xlu1 %1411  ;;  %v1429_v57 = vsel %vm811_vm6, %v1416_v48, %v13636_v41  ;;  %v13670_v48 = vsel %vm446_vm0, %v19801_v1, %v19805_v9 }
 0x230   : > { %2833 = vrot.lane.b32.xlu0 %v2811_v31, %s12218_s30  ;;  %v13650_v25 = vadd.f32 %v1948_v22, %v1679_v18  ;;  %v1427_v10 = vsel %vm811_vm6, %v1410_v11, %v13642_v19  ;;  %v1445_v11 = vadd.f32 %v1429_v57, %v13501_v46  ;;  %v2713_v46 = vmul.f32 %v13670_v48, %v19804_v30 }
 0x231   : > { %2839 = vrot.lane.b32.xlu1 %v2814_v23, %s12218_s30  ;;  %v1443_v27 = vadd.f32 %v1427_v10, %v13437_v49  ;;  %v13694_v22 = vrot.slane %v12936_v15, %v19762_v51  ;;  %v19807_v23 = vld [vmem:[#allocation27_spill] sm:$0xff] }
 0x232   : > { %v13657_v60 = vpop.permute.xlu0 %1516  ;;  %v2803_v40 = vsel %vm811_vm6, %v19802_v32, %v19807_v23 }
 0x233   : > { %v1528_v63 = vsel %vm446_vm0, %v1515_v26, %v13657_v60  ;;  %v13665_v33 = vpop.permute.xlu1 %1510  ;;  %v19806_v26 = vld [vmem:[#allocation53_spill] sm:$0xff]  ;;  %v2812_v32 = vmul.f32 %v2803_v40, %v19804_v30 }
 0x234   : > { %v1526_v16 = vsel %vm446_vm0, %v1509_v5, %v13665_v33  ;;  %2643 = vrot.lane.b32.xlu0 %v2617_v36, %s12219_s17  ;;  %v13680_v53 = vrot.slane %v19806_v26, %v19762_v51  ;;  %v1544_v1 = vadd.f32 %v1528_v63, %v1445_v11  ;;  %v19808_v63 = vld [vmem:[#allocation62_spill] sm:$0xff] }
 0x235   : > { %2637 = vrot.lane.b32.xlu1 %v2614_v39, %s12219_s17  ;;  %v1542_v5 = vadd.f32 %v1526_v16, %v1443_v27  ;;  %v2815_v39 = vmul.f32 %v13580_v28, %v13052_v20  ;;  %v3526_v28 = vld [vmem:[%s19317_s3 + $0x8] sm:$0xff] }
 0x236   : > { %v13684_v31 = vpop.permute.xlu0 %1615  ;;  %v1672_v36 = vmul.f32 %v13680_v53, %v12864_v45 }
 0x237   : > { %v1627_v18 = vsel %vm762_vm5, %v1614_v55, %v13684_v31  ;;  %v13690_v49 = vpop.permute.xlu1 %1609 }
 0x238   : > { %v1643_v57 = vadd.f32 %v1627_v18, %v1544_v1  ;;  %v1625_v10 = vsel %vm762_vm5, %v1608_v37, %v13690_v49  ;;  %2742 = vrot.lane.b32.xlu0 %v2716_v54, %s12217_s27  ;;  %v1949_v37 = vmul.f32 %v13694_v22, %v12965_v44  ;;  %v19809_v54 = vld [vmem:[#allocation57_spill] sm:$0xff] }
 0x239   : > { %v1641_v55 = vadd.f32 %v1625_v10, %v1542_v5  ;;  %2736 = vrot.lane.b32.xlu1 %v2713_v46, %s12217_s27  ;;  %v1665_v46 = vrot.slane %v19806_v26, %v19788_v34  ;;  %v3530_v5 = vld [vmem:[%s19317_s3 + $0x28] sm:$0xff]  ;;  %v3528_v18 = vld [vmem:[%s19317_s3 + $0x18] sm:$0xff] }
 0x23a   : > { %v1682_v11 = vadd.f32 %v19808_v63, %v1643_v57  ;;  %v1414_v16 = vpop.permute.xlu0 %1413  ;;  %v2615_v57 = vmul.f32 %v19803_v47, %v13079_v4  ;;  %v11598_v10 = vpack.c.bf16 %v3530_v5, %v3526_v28  ;;  %v13792_v47 = vmul.f32 %v13680_v53, %v12911_v42 }
 0x23b   : > { %v1680_v27 = vadd.f32 %v1672_v36, %v1641_v55  ;;  %v1420_v1 = vpop.permute.xlu1 %1419  ;;  %v3532_v36 = vld [vmem:[%s19317_s3 + $0x38] sm:$0xff] }
 0x23c   : > { %2841 = vrot.lane.b32.xlu0 %v2815_v39, %s12218_s30  ;;  %v13713_v45 = vadd.f32 %v19809_v54, %v1682_v11  ;;  %v19810_v39 = vld [vmem:[#allocation72_spill] sm:$0xff]  ;;  %v11726_v11 = vpack.c.bf16 %v3532_v36, %v3528_v18  ;;  %11599 = vmatprep.subr.bf16.mxu1 %v11598_v10  ;;  %v19811_v54 = vld [vmem:[#allocation49_spill] sm:$0xff]  ;;  %v3534_v10 = vld [vmem:[%s19317_s3 + $0x48] sm:$0xff]  ;;  %v1430_v42 = vsel %vm811_vm6, %v13636_v41, %v1420_v1 }
 0x23d   : > { %2835 = vrot.lane.b32.xlu1 %v2812_v32, %s12218_s30  ;;  %v13718_v20 = vadd.f32 %v1949_v37, %v1680_v27  ;;  %v2618_v63 = vmul.f32 %v13596_v17, %v19810_v39  ;;  %v3525_v32 = vld [vmem:[%s19317_s3] sm:$0xff]  ;;  %v3527_v37 = vld [vmem:[%s19317_s3 + $0x10] sm:$0xff]  ;;  %v13747_v28 = vmul.f32 %v19811_v54, %v1665_v46  ;;  %v3538_v36 = vld [vmem:[%s19317_s3 + $0x68] sm:$0xff] }
 0x23e   : > { %v1422_v26 = vpop.permute.xlu0 %1421  ;;  %v3529_v27 = vld [vmem:[%s19317_s3 + $0x20] sm:$0xff]  ;;  %v19812_v17 = vld [vmem:[#allocation52_spill] sm:$0xff]  ;;  %11727 = vmatprep.subr.bf16.mxu0 %v11726_v11 }
 0x23f   : > { %v1424_v55 = vpop.permute.xlu1 %1423  ;;  %v13750_v5 = vmul.f32 %v1665_v46, %v19812_v17  ;;  %v11600_v18 = vpack.c.bf16 %v3529_v27, %v3525_v32  ;;  %v2717_v46 = vmul.f32 %v13614_v38, %v19810_v39  ;;  %v19813_v17 = vld [vmem:[#allocation75_spill] sm:$0xff]  ;;  %v11602_v32 = vpack.c.bf16 %v3538_v36, %v3534_v10  ;;  %v3536_v27 = vld [vmem:[%s19317_s3 + $0x58] sm:$0xff]  ;;  %v3535_v41 = vld [vmem:[%s19317_s3 + $0x50] sm:$0xff] }
 0x240   : > { %2639 = vrot.lane.b32.xlu0 %v2615_v57, %s12219_s17  ;;  %v3531_v57 = vld [vmem:[%s19317_s3 + $0x30] sm:$0xff]  ;;  %v13776_v38 = vmul.f32 %v13670_v48, %v19813_v17  ;;  %v13787_v10 = vmul.f32 %v2803_v40, %v19813_v17  ;;  %v13803_v48 = vmul.f32 %v19807_v23, %v13079_v4  ;;  %v1431_v53 = vsel %vm811_vm6, %v1420_v1, %v1422_v26 }
 0x241   : > { %2645 = vrot.lane.b32.xlu1 %v2618_v63, %s12219_s17  ;;  %v2619_v63 = vmul.f32 %v13647_v58, %v19813_v17  ;;  %v11728_v11 = vpack.c.bf16 %v3531_v57, %v3527_v37  ;;  %v13780_v58 = vrot.slane %v12936_v15, %v19788_v34  ;;  %11601 = vmatpush1.bf16.msra.mxu1 %v11600_v18  ;;  %v3539_v36 = vld [vmem:[%s19317_s3 + $0x70] sm:$0xff] }
 0x242   : > { %v1513_v54 = vpop.permute.xlu0 %1512  ;;  %v11730_v37 = vpack.c.bf16 %v3540_v14, %v3536_v27  ;;  %v13784_v57 = vmul.f32 %v13627_v24, %v19810_v39  ;;  %v2714_v15 = vmul.f32 %v19805_v9, %v13079_v4  ;;  %v2719_v14 = vmul.f32 %v19814_v3, %v19805_v9  ;;  %11603 = vmatprep.subr.bf16.mxu1 %v11602_v32  ;;  %v3544_v32 = vld [vmem:[%s19317_s3 + $0x98] sm:$0xff]  ;;  %v19832_v4 = vld [vmem:[#allocation94_spill] sm:$0xff] }
 0x243   : > { %v1519_v30 = vpop.permute.xlu1 %1518  ;;  %11729 = vmatpush1.bf16.msra.mxu0 %v11728_v11  ;;  %v1428_v24 = vsel %vm811_vm6, %v13642_v19, %v1414_v16  ;;  %v13810_v18 = vmul.f32 %v13694_v22, %v12989_v56  ;;  %v3537_v19 = vld [vmem:[%s19317_s3 + $0x60] sm:$0xff]  ;;  %v1432_v9 = vsel %vm811_vm6, %v1422_v26, %v1424_v55  ;;  %v1527_v16 = vsel %vm446_vm0, %v13665_v33, %v1513_v54  ;;  %v3546_v26 = vld [vmem:[%s19317_s3 + $0xa8] sm:$0xff]  ;;  %v3548_v27 = vld [vmem:[%s19317_s3 + $0xb8] sm:$0xff] }
 0x244   : > { %2647 = vrot.lane.b32.xlu0 %v2619_v63, %s12219_s17  ;;  %11731 = vmatprep.subr.bf16.mxu0 %v11730_v37  ;;  %v13826_v22 = vmul.f32 %v13780_v58, %v19746_v35  ;;  %v3542_v63 = vld [vmem:[%s19317_s3 + $0x88] sm:$0xff]  ;;  %v1444_v33 = vadd.f32 %v1428_v24, %v13601_v8  ;;  %v1529_v55 = vsel %vm446_vm0, %v13657_v60, %v1519_v30 }
 0x245   : > { %2649 = vrot.lane.b32.xlu1 %v2620_v50, %s12219_s17  ;;  %v3533_v50 = vld [vmem:[%s19317_s3 + $0x40] sm:$0xff]  ;;  %v11732_v54 = vpack.c.bf16 %v3539_v36, %v3535_v41  ;;  %v11606_v11 = vpack.c.bf16 %v3546_v26, %v3542_v63  ;;  %v1446_v37 = vadd.f32 %v1430_v42, %v13516_v61  ;;  %v11734_v8 = vpack.c.bf16 %v3548_v27, %v3544_v32  ;;  %v3552_v63 = vld [vmem:[%s19317_s3 + $0xd8] sm:$0xff]  ;;  %v3555_v32 = vld [vmem:[%s19317_s3 + $0xf0] sm:$0xff] }
 0x246   : > { %v1521_v40 = vpop.permute.xlu0 %1520  ;;  %v11604_v1 = vpack.c.bf16 %v3537_v19, %v3533_v50  ;;  %v1447_v50 = vadd.f32 %v1431_v53, %v13518_v6  ;;  %v1448_v60 = vadd.f32 %v1432_v9, %v13552_v7  ;;  %v3541_v41 = vld [vmem:[%s19317_s3 + $0x80] sm:$0xff]  ;;  %v3543_v6 = vld [vmem:[%s19317_s3 + $0x90] sm:$0xff]  ;;  %v3556_v26 = vld [vmem:[%s19317_s3 + $0xf8] sm:$0xff]  ;;  %v2283_v2 = vmul.f32 %v19832_v4, %v12948_v0 }
 0x247   : > { %v1523_v56 = vpop.permute.xlu1 %1522  ;;  %v1530_v24 = vsel %vm446_vm0, %v1519_v30, %v1521_v40  ;;  %11733 = vmatpush1.bf16.msra.mxu0 %v11732_v54  ;;  %v3545_v61 = vld [vmem:[%s19317_s3 + $0xa0] sm:$0xff]  ;;  %v3547_v9 = vld [vmem:[%s19317_s3 + $0xb0] sm:$0xff]  ;;  %v3598_v0 = vld [vmem:[%s19317_s3 + $0x248] sm:$0xff] }
 0x248   : > { %2738 = vrot.lane.b32.xlu0 %v2714_v15, %s12217_s27  ;;  %11605 = vmatpush1.bf16.msra.mxu1 %v11604_v1  ;;  %v1543_v15 = vadd.f32 %v1527_v16, %v1444_v33  ;;  %v1531_v7 = vsel %vm446_vm0, %v1521_v40, %v1523_v56  ;;  %v11608_v53 = vpack.c.bf16 %v3545_v61, %v3541_v41  ;;  %v3550_v16 = vld [vmem:[%s19317_s3 + $0xc8] sm:$0xff]  ;;  %v3549_v33 = vld [vmem:[%s19317_s3 + $0xc0] sm:$0xff]  ;;  %v3600_v4 = vld [vmem:[%s19317_s3 + $0x258] sm:$0xff] }
 0x249   : > { %2744 = vrot.lane.b32.xlu1 %v2717_v46, %s12217_s27  ;;  %11607 = vmatprep.subr.bf16.mxu1 %v11606_v11  ;;  %v1545_v46 = vadd.f32 %v1529_v55, %v1446_v37  ;;  %v3554_v1 = vld [vmem:[%s19317_s3 + $0xe8] sm:$0xff]  ;;  %v1546_v55 = vadd.f32 %v1530_v24, %v1447_v50  ;;  %v3551_v11 = vld [vmem:[%s19317_s3 + $0xd0] sm:$0xff]  ;;  %v3560_v24 = vld [vmem:[%s19317_s3 + $0x118] sm:$0xff] }
 0x24a   : > { %v1612_v19 = vpop.permute.xlu0 %1611  ;;  %11735 = vmatprep.subr.bf16.mxu0 %v11734_v8  ;;  %v11610_v56 = vpack.c.bf16 %v3554_v1, %v3550_v16  ;;  %v11740_v50 = vpack.c.bf16 %v3555_v32, %v3551_v11  ;;  %v3558_v8 = vld [vmem:[%s19317_s3 + $0x108] sm:$0xff]  ;;  %v19815_v41 = vld [vmem:[#allocation78_spill] sm:$0xff]  ;;  %v3559_v1 = vld [vmem:[%s19317_s3 + $0x110] sm:$0xff] }
 0x24b   : > { %v1626_v30 = vsel %vm762_vm5, %v13690_v49, %v1612_v19  ;;  %v1618_v42 = vpop.permute.xlu1 %1617  ;;  %v11736_v49 = vpack.c.bf16 %v3547_v9, %v3543_v6  ;;  %v1547_v19 = vadd.f32 %v1531_v7, %v1448_v60  ;;  %v3561_v9 = vld [vmem:[%s19317_s3 + $0x120] sm:$0xff] }
 0x24c   : > { %v1642_v36 = vadd.f32 %v1626_v30, %v1543_v15  ;;  %v1628_v40 = vsel %vm762_vm5, %v13684_v31, %v1618_v42  ;;  %2746 = vrot.lane.b32.xlu0 %v13776_v38, %s12217_s27  ;;  %11609 = vmatpush1.bf16.msra.mxu1 %v11608_v53  ;;  %v11738_v31 = vpack.c.bf16 %v3556_v26, %v3552_v63  ;;  %v3553_v38 = vld [vmem:[%s19317_s3 + $0xe0] sm:$0xff]  ;;  %v3562_v15 = vld [vmem:[%s19317_s3 + $0x128] sm:$0xff]  ;;  %v3564_v30 = vld [vmem:[%s19317_s3 + $0x138] sm:$0xff] }
 0x24d   : > { %v1644_v54 = vadd.f32 %v1628_v40, %v1545_v46  ;;  %2748 = vrot.lane.b32.xlu1 %v2719_v14, %s12217_s27  ;;  %11737 = vmatpush1.bf16.msra.mxu0 %v11736_v49  ;;  %v11612_v14 = vpack.c.bf16 %v3553_v38, %v3549_v33  ;;  %v11614_v46 = vpack.c.bf16 %v3562_v15, %v3558_v8  ;;  %v3557_v53 = vld [vmem:[%s19317_s3 + $0x100] sm:$0xff]  ;;  %v3566_v40 = vld [vmem:[%s19317_s3 + $0x148] sm:$0xff]  ;;  %v3568_v26 = vld [vmem:[%s19317_s3 + $0x158] sm:$0xff] }
 0x24e   : > { %v1681_v27 = vadd.f32 %v13750_v5, %v1642_v36  ;;  %v1620_v37 = vpop.permute.xlu0 %1619  ;;  %11611 = vmatprep.subr.bf16.mxu1 %v11610_v56  ;;  %11739 = vmatprep.subr.bf16.mxu0 %v11738_v31  ;;  %v11742_v16 = vpack.c.bf16 %v3564_v30, %v3560_v24  ;;  %v3563_v36 = vld [vmem:[%s19317_s3 + $0x130] sm:$0xff]  ;;  %v11616_v56 = vpack.c.bf16 %v3561_v9, %v3557_v53  ;;  %v3570_v63 = vld [vmem:[%s19317_s3 + $0x168] sm:$0xff]  ;;  %v3572_v33 = vld [vmem:[%s19317_s3 + $0x178] sm:$0xff] }
 0x24f   : > { %v1683_v5 = vadd.f32 %v19815_v41, %v1644_v54  ;;  %v1629_v61 = vsel %vm762_vm5, %v1618_v42, %v1620_v37  ;;  %v1622_v6 = vpop.permute.xlu1 %1621  ;;  %v11744_v54 = vpack.c.bf16 %v3563_v36, %v3559_v1  ;;  %v11618_v31 = vpack.c.bf16 %v3570_v63, %v3566_v40  ;;  %v3574_v15 = vld [vmem:[%s19317_s3 + $0x188] sm:$0xff]  ;;  %v19818_v24 = vld [vmem:[#allocation77_spill] sm:$0xff]  ;;  %v3573_v36 = vld [vmem:[%s19317_s3 + $0x180] sm:$0xff] }
 0x250   : > { %v1645_v60 = vadd.f32 %v1629_v61, %v1546_v55  ;;  %v1630_v7 = vsel %vm762_vm5, %v1620_v37, %v1622_v6  ;;  %2837 = vrot.lane.b32.xlu0 %v13803_v48, %s12218_s30  ;;  %v13921_v42 = vadd.f32 %v13826_v22, %v1681_v27  ;;  %v19817_v48 = vld [vmem:[#allocation96_spill] sm:$0xff]  ;;  %11613 = vmatpush1.bf16.msra.mxu1 %v11612_v14  ;;  %v3569_v14 = vld [vmem:[%s19317_s3 + $0x160] sm:$0xff]  ;;  %v19820_v30 = vld [vmem:[#allocation43_spill] sm:$0xff] }
 0x251   : > { %v1646_v49 = vadd.f32 %v1630_v7, %v1547_v19  ;;  %2843 = vrot.lane.b32.xlu1 %v13784_v57, %s12218_s30  ;;  %v13935_v22 = vadd.f32 %v19817_v48, %v1683_v5  ;;  %11741 = vmatpush1.bf16.msra.mxu0 %v11740_v50  ;;  %v2818_v38 = vmul.f32 %v19814_v3, %v19807_v23  ;;  %v3567_v23 = vld [vmem:[%s19317_s3 + $0x150] sm:$0xff]  ;;  %v19819_v19 = vld [vmem:[#allocation30_spill] sm:$0xff]  ;;  %v19821_v53 = vld [vmem:[#allocation37_spill] sm:$0xff] }
 0x252   : > { %19816 = vst [vmem:[#allocation9_spill] sm:$0xff] %v13921_v42  ;;  %v1684_v55 = vadd.f32 %v13792_v47, %v1645_v60  ;;  %v13947_v57 = vpop.permute.xlu0 %2018  ;;  %11615 = vmatprep.subr.bf16.mxu1 %v11614_v46  ;;  %v1954_v27 = vmul.f32 %v13780_v58, %v19772_v29  ;;  %11743 = vmatprep.subr.bf16.mxu0 %v11742_v16  ;;  %v3565_v47 = vld [vmem:[%s19317_s3 + $0x140] sm:$0xff]  ;;  %v3571_v58 = vld [vmem:[%s19317_s3 + $0x170] sm:$0xff]  ;;  %v3580_v46 = vld [vmem:[%s19317_s3 + $0x1b8] sm:$0xff] }
 0x253   : > { %v1685_v11 = vadd.f32 %v13747_v28, %v1646_v49  ;;  %v13952_v32 = vpop.permute.xlu1 %2020  ;;  %v11746_v37 = vpack.c.bf16 %v3572_v33, %v3568_v26  ;;  %v11620_v8 = vpack.c.bf16 %v3569_v14, %v3565_v47  ;;  %v3224_v41 = vmul.f32 %v19819_v19, %v19818_v24  ;;  %v19822_v60 = vld [vmem:[#allocation55_spill] sm:$0xff]  ;;  %v3577_v40 = vld [vmem:[%s19317_s3 + $0x1a0] sm:$0xff]  ;;  %v3575_v49 = vld [vmem:[%s19317_s3 + $0x190] sm:$0xff] }
 0x254   : > { %2845 = vrot.lane.b32.xlu0 %v13787_v10, %s12218_s30  ;;  %v13968_v28 = vadd.f32 %v13810_v18, %v1684_v55  ;;  %11617 = vmatpush1.bf16.msra.mxu1 %v11616_v56  ;;  %v3578_v10 = vld [vmem:[%s19317_s3 + $0x1a8] sm:$0xff]  ;;  %v3576_v18 = vld [vmem:[%s19317_s3 + $0x198] sm:$0xff]  ;;  %v11748_v61 = vpack.c.bf16 %v3571_v58, %v3567_v23  ;;  %v13995_v9 = vsel %vm762_vm5, %v19821_v53, %v19820_v30  ;;  %v19824_v56 = vld [vmem:[#allocation60_spill] sm:$0xff] }
 0x255   : > { %2847 = vrot.lane.b32.xlu1 %v2818_v38, %s12218_s30  ;;  %v13974_v50 = vadd.f32 %v1954_v27, %v1685_v11  ;;  %11745 = vmatpush1.bf16.msra.mxu0 %v11744_v54  ;;  %v11622_v6 = vpack.c.bf16 %v3578_v10, %v3574_v15  ;;  %v3323_v7 = vmul.f32 %v19822_v60, %v19818_v24  ;;  %v19823_v48 = vld [vmem:[#allocation65_spill] sm:$0xff]  ;;  %v3579_v26 = vld [vmem:[%s19317_s3 + $0x1b0] sm:$0xff]  ;;  %v3586_v38 = vld [vmem:[%s19317_s3 + $0x1e8] sm:$0xff] }
 0x256   : > { %v13987_v5 = vpop.permute.xlu0 %2022  ;;  %11619 = vmatprep.subr.bf16.mxu1 %v11618_v31  ;;  %11747 = vmatprep.subr.bf16.mxu0 %v11746_v37  ;;  %v11750_v1 = vpack.c.bf16 %v3580_v46, %v3576_v18  ;;  %v14013_v63 = vsel %vm446_vm0, %v19824_v56, %v19823_v48  ;;  %v3216_v33 = vsel %vm762_vm5, %v19819_v19, %v19821_v53  ;;  %v3582_v31 = vld [vmem:[%s19317_s3 + $0x1c8] sm:$0xff]  ;;  %v3584_v11 = vld [vmem:[%s19317_s3 + $0x1d8] sm:$0xff]  ;;  %v3585_v15 = vld [vmem:[%s19317_s3 + $0x1e0] sm:$0xff] }
 0x257   : > { %v13999_v16 = vpop.permute.xlu1 %2024  ;;  %v14025_v55 = vsel %vm446_vm0, %v19822_v60, %v19824_v56  ;;  %v11624_v54 = vpack.c.bf16 %v3577_v40, %v3573_v36  ;;  %v19825_v27 = vld [vmem:[#allocation83_spill] sm:$0xff]  ;;  %v11752_v14 = vpack.c.bf16 %v3579_v26, %v3575_v49  ;;  %v11626_v23 = vpack.c.bf16 %v3586_v38, %v3582_v31  ;;  %v3588_v58 = vld [vmem:[%s19317_s3 + $0x1f8] sm:$0xff]  ;;  %v19826_v46 = vld [vmem:[#allocation70_spill] sm:$0xff] }
 0x258   : > { %3244 = vrot.lane.b32.xlu0 %v3224_v41, %s12219_s17  ;;  %11621 = vmatpush1.bf16.msra.mxu1 %v11620_v8  ;;  %v3226_v37 = vmul.f32 %v13995_v9, %v19825_v27  ;;  %v3581_v8 = vld [vmem:[%s19317_s3 + $0x1c0] sm:$0xff]  ;;  %v3325_v10 = vmul.f32 %v14013_v63, %v19825_v27  ;;  %v11754_v41 = vpack.c.bf16 %v3588_v58, %v3584_v11  ;;  %v19828_v40 = vld [vmem:[#allocation48_spill] sm:$0xff]  ;;  %v19833_v42 = vld [vmem:[#allocation95_spill] sm:$0xff] }
 0x259   : > { %3343 = vrot.lane.b32.xlu1 %v3323_v7, %s12217_s27  ;;  %11749 = vmatpush1.bf16.msra.mxu0 %v11748_v61  ;;  %v3583_v61 = vld [vmem:[%s19317_s3 + $0x1d0] sm:$0xff]  ;;  %v14058_v53 = vmul.f32 %v19826_v46, %v19781_v13  ;;  %v14064_v49 = vsel %vm762_vm5, %v19820_v30, %v19828_v40  ;;  %v11628_v38 = vpack.c.bf16 %v3585_v15, %v3581_v8  ;;  %v3590_v30 = vld [vmem:[%s19317_s3 + $0x208] sm:$0xff]  ;;  %v3596_v8 = vld [vmem:[%s19317_s3 + $0x238] sm:$0xff] }
 0x25a   : > { %v2118_v47 = vpop.permute.xlu0 %2117  ;;  %11623 = vmatprep.subr.bf16.mxu1 %v11622_v6  ;;  %11751 = vmatprep.subr.bf16.mxu0 %v11750_v1  ;;  %v3587_v6 = vld [vmem:[%s19317_s3 + $0x1f0] sm:$0xff]  ;;  %v19829_v1 = vld [vmem:[#allocation105_spill] sm:$0xff]  ;;  %v2038_v11 = vsel %vm811_vm6, %v13947_v57, %v13952_v32  ;;  %v3589_v15 = vld [vmem:[%s19317_s3 + $0x200] sm:$0xff]  ;;  %v14127_v17 = vmul.f32 %v19833_v42, %v12965_v44 }
 0x25b   : > { %v2120_v18 = vpop.permute.xlu1 %2119  ;;  %v19827_v7 = vld [vmem:[#allocation80_spill] sm:$0xff]  ;;  %v14069_v56 = vsel %vm446_vm0, %v19823_v48, %v19829_v1  ;;  %v3594_v48 = vld [vmem:[%s19317_s3 + $0x228] sm:$0xff] }
 0x25c   : > { %v3225_v36 = vmul.f32 %v3216_v33, %v19827_v7  ;;  %3248 = vrot.lane.b32.xlu0 %v3226_v37, %s12219_s17  ;;  %v19830_v26 = vld [vmem:[#allocation84_spill] sm:$0xff]  ;;  %v3324_v13 = vmul.f32 %v14025_v55, %v19827_v7  ;;  %11625 = vmatpush1.bf16.msra.mxu1 %v11624_v54  ;;  %v11756_v54 = vpack.c.bf16 %v3587_v6, %v3583_v61  ;;  %v19831_v46 = vld [vmem:[#allocation87_spill] sm:$0xff] }
 0x25d   : > { %v14074_v31 = vmul.f32 %v19819_v19, %v19830_v26  ;;  %3347 = vrot.lane.b32.xlu1 %v3325_v10, %s12217_s27  ;;  %v3592_v19 = vld [vmem:[%s19317_s3 + $0x218] sm:$0xff]  ;;  %11753 = vmatpush1.bf16.msra.mxu0 %v11752_v14  ;;  %v11630_v58 = vpack.c.bf16 %v3594_v48, %v3590_v30  ;;  %v3593_v10 = vld [vmem:[%s19317_s3 + $0x220] sm:$0xff]  ;;  %v3227_v57 = vmul.f32 %v14064_v49, %v19831_v46  ;;  %v3591_v48 = vld [vmem:[%s19317_s3 + $0x210] sm:$0xff] }
 0x25e   : > { %v2122_v37 = vpop.permute.xlu0 %2121  ;;  %11627 = vmatprep.subr.bf16.mxu1 %v11626_v23  ;;  %v3326_v14 = vmul.f32 %v14069_v56, %v19831_v46  ;;  %v14109_v61 = vld [vmem:[%s19316_s2 + $0x26] ss:$8 sm:$0xf]  ;;  %11755 = vmatprep.subr.bf16.mxu0 %v11754_v41  ;;  %v11758_v30 = vpack.c.bf16 %v3596_v8, %v3592_v19  ;;  %v2137_v46 = vsel %vm446_vm0, %v2118_v47, %v2120_v18 }
 0x25f   : > { %v14104_v23 = vpop.permute.xlu1 %2123  ;;  %v14113_v6 = vrot.slane %v14109_v61, %v19762_v51  ;;  %v3595_v3 = vld [vmem:[%s19317_s3 + $0x230] sm:$0xff]  ;;  %v3230_v41 = vmul.f32 %v3216_v33, %v13109_v12  ;;  %v2054_v19 = vadd.f32 %v2038_v11, %v13605_v21  ;;  %v2039_v8 = vsel %vm811_vm6, %v13952_v32, %v13987_v5  ;;  %v3602_v44 = vld [vmem:[%s19317_s3 + $0x268] sm:$0xff] }
 0x260   : > { %3345 = vrot.lane.b32.xlu0 %v3324_v13, %s12217_s27  ;;  %11629 = vmatpush1.bf16.msra.mxu1 %v11628_v38  ;;  %v11632_v47 = vpack.c.bf16 %v3593_v10, %v3589_v15  ;;  %v2040_v21 = vsel %vm811_vm6, %v13987_v5, %v13999_v16  ;;  %v11760_v32 = vpack.c.bf16 %v3595_v3, %v3591_v48  ;;  %v3603_v48 = vld [vmem:[%s19317_s3 + $0x270] sm:$0xff] }
 0x261   : > { %3246 = vrot.lane.b32.xlu1 %v3225_v36, %s12219_s17  ;;  %11757 = vmatpush1.bf16.msra.mxu0 %v11756_v54  ;;  %v11634_v33 = vpack.c.bf16 %v3602_v44, %v3598_v0  ;;  %v3604_v36 = vld [vmem:[%s19317_s3 + $0x278] sm:$0xff]  ;;  %v2153_v13 = vadd.f32 %v2137_v46, %v2054_v19  ;;  %v2138_v38 = vsel %vm446_vm0, %v2120_v18, %v2122_v37  ;;  %v3606_v19 = vld [vmem:[%s19317_s3 + $0x288] sm:$0xff] }
 0x262   : > { %v2217_v42 = vpop.permute.xlu0 %2216  ;;  %11631 = vmatprep.subr.bf16.mxu1 %v11630_v58  ;;  %v2285_v15 = vmul.f32 %v14113_v6, %v19746_v35  ;;  %11759 = vmatprep.subr.bf16.mxu0 %v11758_v30  ;;  %v11762_v10 = vpack.c.bf16 %v3604_v36, %v3600_v4  ;;  %v2055_v5 = vadd.f32 %v2039_v8, %v13650_v25  ;;  %v14161_v58 = vld [vmem:[%s19316_s2 + $0x27] ss:$8 sm:$0xf] }
 0x263   : > { %v2219_v11 = vpop.permute.xlu1 %2218  ;;  %v2139_v54 = vsel %vm446_vm0, %v2122_v37, %v14104_v23  ;;  %v14165_v18 = vrot.slane %v14161_v58, %v19762_v51  ;;  %v3597_v35 = vld [vmem:[%s19317_s3 + $0x240] sm:$0xff]  ;;  %v3599_v37 = vld [vmem:[%s19317_s3 + $0x250] sm:$0xff]  ;;  %v2056_v46 = vadd.f32 %v2040_v21, %v13718_v20  ;;  %v3610_v8 = vld [vmem:[%s19317_s3 + $0x2a8] sm:$0xff] }
 0x264   : > { %v2236_v3 = vsel %vm762_vm5, %v2217_v42, %v2219_v11  ;;  %3349 = vrot.lane.b32.xlu0 %v3326_v14, %s12217_s27  ;;  %v3601_v25 = vld [vmem:[%s19317_s3 + $0x260] sm:$0xff]  ;;  %11633 = vmatpush1.bf16.msra.mxu1 %v11632_v47  ;;  %v2154_v0 = vadd.f32 %v2138_v38, %v2055_v5  ;;  %v11764_v20 = vpack.c.bf16 %v3603_v48, %v3599_v37  ;;  %v3608_v47 = vld [vmem:[%s19317_s3 + $0x298] sm:$0xff]  ;;  %v3607_v5 = vld [vmem:[%s19317_s3 + $0x290] sm:$0xff] }
 0x265   : > { %v2252_v14 = vadd.f32 %v2236_v3, %v2153_v13  ;;  %3250 = vrot.lane.b32.xlu1 %v3227_v57, %s12219_s17  ;;  %v11636_v30 = vpack.c.bf16 %v3601_v25, %v3597_v35  ;;  %11761 = vmatpush1.bf16.msra.mxu0 %v11760_v32  ;;  %v11638_v57 = vpack.c.bf16 %v3610_v8, %v3606_v19  ;;  %v3612_v4 = vld [vmem:[%s19317_s3 + $0x2b8] sm:$0xff]  ;;  %v3605_v21 = vld [vmem:[%s19317_s3 + $0x280] sm:$0xff]  ;;  %v3611_v3 = vld [vmem:[%s19317_s3 + $0x2b0] sm:$0xff] }
 0x266   : > { %v2221_v44 = vpop.permute.xlu0 %2220  ;;  %11635 = vmatprep.subr.bf16.mxu1 %v11634_v33  ;;  %v2155_v42 = vadd.f32 %v2139_v54, %v2056_v46  ;;  %11763 = vmatprep.subr.bf16.mxu0 %v11762_v10  ;;  %v11766_v33 = vpack.c.bf16 %v3612_v4, %v3608_v47  ;;  %v3609_v38 = vld [vmem:[%s19317_s3 + $0x2a0] sm:$0xff]  ;;  %v19835_v35 = vld [vmem:[#allocation100_spill] sm:$0xff]  ;;  %v3614_v48 = vld [vmem:[%s19317_s3 + $0x2c8] sm:$0xff] }
 0x267   : > { %v2291_v36 = vadd.f32 %v2283_v2, %v2252_v14  ;;  %v2237_v13 = vsel %vm762_vm5, %v2219_v11, %v2221_v44  ;;  %v14197_v32 = vpop.permute.xlu1 %2222  ;;  %v19834_v11 = vld [vmem:[#allocation92_spill] sm:$0xff]  ;;  %v2561_v25 = vmul.f32 %v19835_v35, %v19792_v59  ;;  %v11640_v14 = vpack.c.bf16 %v3609_v38, %v3605_v21  ;;  %v3620_v8 = vld [vmem:[%s19317_s3 + $0x2f8] sm:$0xff] }
 0x268   : > { %v2253_v54 = vadd.f32 %v2237_v13, %v2154_v0  ;;  %v2238_v2 = vsel %vm762_vm5, %v2221_v44, %v14197_v32  ;;  %3256 = vrot.lane.b32.xlu0 %v3230_v41, %s12219_s17  ;;  %v3232_v10 = vmul.f32 %v14064_v49, %v19834_v11  ;;  %11637 = vmatpush1.bf16.msra.mxu1 %v11636_v30  ;;  %v3618_v49 = vld [vmem:[%s19317_s3 + $0x2e8] sm:$0xff]  ;;  %v3616_v41 = vld [vmem:[%s19317_s3 + $0x2d8] sm:$0xff]  ;;  %v3613_v0 = vld [vmem:[%s19317_s3 + $0x2c0] sm:$0xff] }
 0x269   : > { %v2254_v37 = vadd.f32 %v2238_v2, %v2155_v42  ;;  %3254 = vrot.lane.b32.xlu1 %v14074_v31, %s12219_s17  ;;  %v14218_v46 = vadd.f32 %v14058_v53, %v2291_v36  ;;  %11765 = vmatpush1.bf16.msra.mxu0 %v11764_v20  ;;  %v11768_v53 = vpack.c.bf16 %v3611_v3, %v3607_v5  ;;  %v3617_v44 = vld [vmem:[%s19317_s3 + $0x2e0] sm:$0xff]  ;;  %v3615_v21 = vld [vmem:[%s19317_s3 + $0x2d0] sm:$0xff]  ;;  %v3622_v13 = vld [vmem:[%s19317_s3 + $0x308] sm:$0xff] }
 0x26a   : > { %v2292_v19 = vadd.f32 %v14127_v17, %v2253_v54  ;;  %v14230_v31 = vpop.permute.xlu0 %2030  ;;  %11639 = vmatprep.subr.bf16.mxu1 %v11638_v57  ;;  %v11642_v30 = vpack.c.bf16 %v3618_v49, %v3614_v48  ;;  %v3231_v20 = vmul.f32 %v13995_v9, %v13124_v62  ;;  %v2562_v57 = vmul.f32 %v14165_v18, %v19800_v43  ;;  %v3619_v42 = vld [vmem:[%s19317_s3 + $0x2f0] sm:$0xff]  ;;  %v3624_v38 = vld [vmem:[%s19317_s3 + $0x318] sm:$0xff]  ;;  %v19836_v5 = vld [vmem:[#allocation91_spill] sm:$0xff] }
 0x26b   : > { %v2293_v47 = vadd.f32 %v2285_v15, %v2254_v37  ;;  %v2029_v17 = vpop.permute.xlu1 %2028  ;;  %11767 = vmatprep.subr.bf16.mxu0 %v11766_v33  ;;  %v11770_v4 = vpack.c.bf16 %v3620_v8, %v3616_v41  ;;  %v11644_v36 = vpack.c.bf16 %v3617_v44, %v3613_v0  ;;  %v3626_v33 = vld [vmem:[%s19317_s3 + $0x328] sm:$0xff]  ;;  %v3228_v3 = vmul.f32 %v19828_v40, %v19836_v5  ;;  %v3628_v35 = vld [vmem:[%s19317_s3 + $0x338] sm:$0xff]  ;;  %v3625_v37 = vld [vmem:[%s19317_s3 + $0x320] sm:$0xff] }
 0x26c   : > { %3260 = vrot.lane.b32.xlu0 %v3232_v10, %s12219_s17  ;;  %v14252_v15 = vadd.f32 %v2561_v25, %v2292_v19  ;;  %11641 = vmatpush1.bf16.msra.mxu1 %v11640_v14  ;;  %v11772_v2 = vpack.c.bf16 %v3619_v42, %v3615_v21  ;;  %v11646_v10 = vpack.c.bf16 %v3626_v33, %v3622_v13  ;;  %v3621_v25 = vld [vmem:[%s19317_s3 + $0x300] sm:$0xff]  ;;  %v19837_v14 = vld [vmem:[#allocation89_spill] sm:$0xff]  ;;  %v3623_v19 = vld [vmem:[%s19317_s3 + $0x310] sm:$0xff] }
 0x26d   : > { %3258 = vrot.lane.b32.xlu1 %v3231_v20, %s12219_s17  ;;  %v14255_v9 = vadd.f32 %v2562_v57, %v2293_v47  ;;  %11769 = vmatpush1.bf16.msra.mxu0 %v11768_v53  ;;  %v3233_v48 = vmul.f32 %v19837_v14, %v19828_v40  ;;  %v11774_v41 = vpack.c.bf16 %v3628_v35, %v3624_v38  ;;  %v3627_v53 = vld [vmem:[%s19317_s3 + $0x330] sm:$0xff]  ;;  %v3630_v40 = vld [vmem:[%s19317_s3 + $0x348] sm:$0xff]  ;;  %v3632_v0 = vld [vmem:[%s19317_s3 + $0x358] sm:$0xff] }
 0x26e   : > { %v14268_v54 = vpop.permute.xlu0 %2034  ;;  %11643 = vmatprep.subr.bf16.mxu1 %v11642_v30  ;;  %11771 = vmatprep.subr.bf16.mxu0 %v11770_v4  ;;  %v11648_v30 = vpack.c.bf16 %v3625_v37, %v3621_v25  ;;  %v3634_v8 = vld [vmem:[%s19317_s3 + $0x368] sm:$0xff]  ;;  %v3328_v44 = vmul.f32 %v19822_v60, %v19830_v26  ;;  %v11776_v20 = vpack.c.bf16 %v3627_v53, %v3623_v19  ;;  %v3636_v4 = vld [vmem:[%s19317_s3 + $0x378] sm:$0xff]  ;;  %v3629_v21 = vld [vmem:[%s19317_s3 + $0x340] sm:$0xff] }
 0x26f   : > { %v2033_v49 = vpop.permute.xlu1 %2032  ;;  %v11650_v57 = vpack.c.bf16 %v3634_v8, %v3630_v40  ;;  %v3633_v42 = vld [vmem:[%s19317_s3 + $0x360] sm:$0xff]  ;;  %v3327_v60 = vmul.f32 %v19829_v1, %v19836_v5  ;;  %v11778_v13 = vpack.c.bf16 %v3636_v4, %v3632_v0  ;;  %v3631_v33 = vld [vmem:[%s19317_s3 + $0x350] sm:$0xff]  ;;  %v3642_v35 = vld [vmem:[%s19317_s3 + $0x3a8] sm:$0xff]  ;;  %v2042_v37 = vsel %vm811_vm6, %v2029_v17, %v14230_v31 }
 0x270   : > { %3252 = vrot.lane.b32.xlu0 %v3228_v3, %s12219_s17  ;;  %11645 = vmatpush1.bf16.msra.mxu1 %v11644_v36  ;;  %v3635_v38 = vld [vmem:[%s19317_s3 + $0x370] sm:$0xff]  ;;  %v3330_v3 = vmul.f32 %v14013_v63, %v13124_v62  ;;  %v3640_v25 = vld [vmem:[%s19317_s3 + $0x398] sm:$0xff]  ;;  %v3637_v53 = vld [vmem:[%s19317_s3 + $0x380] sm:$0xff]  ;;  %v3329_v17 = vmul.f32 %v14025_v55, %v13109_v12  ;;  %v2058_v12 = vadd.f32 %v2042_v37, %v13713_v45 }
 0x271   : > { %3262 = vrot.lane.b32.xlu1 %v3233_v48, %s12219_s17  ;;  %11773 = vmatpush1.bf16.msra.mxu0 %v11772_v2  ;;  %v11652_v2 = vpack.c.bf16 %v3633_v42, %v3629_v21  ;;  %v11780_v48 = vpack.c.bf16 %v3635_v38, %v3631_v33  ;;  %v3644_v19 = vld [vmem:[%s19317_s3 + $0x3b8] sm:$0xff]  ;;  %v3639_v0 = vld [vmem:[%s19317_s3 + $0x390] sm:$0xff]  ;;  %v3331_v21 = vmul.f32 %v14069_v56, %v19834_v11  ;;  %v3650_v56 = vld [vmem:[%s19317_s3 + $0x3e8] sm:$0xff] }
 0x272   : > { %v2130_v47 = vpop.permute.xlu0 %2129  ;;  %11647 = vmatprep.subr.bf16.mxu1 %v11646_v10  ;;  %11775 = vmatprep.subr.bf16.mxu0 %v11774_v41  ;;  %v3638_v10 = vld [vmem:[%s19317_s3 + $0x388] sm:$0xff]  ;;  %v11782_v8 = vpack.c.bf16 %v3644_v19, %v3640_v25  ;;  %v3332_v42 = vmul.f32 %v19837_v14, %v19829_v1  ;;  %v3645_v25 = vld [vmem:[%s19317_s3 + $0x3c0] sm:$0xff]  ;;  %v3647_v19 = vld [vmem:[%s19317_s3 + $0x3d0] sm:$0xff] }
 0x273   : > { %v2128_v36 = vpop.permute.xlu1 %2127  ;;  %v11654_v41 = vpack.c.bf16 %v3642_v35, %v3638_v10  ;;  %v12193_v33 = vld [vmem:[%s19316_s2 + $0x47] ss:$8 sm:$0xf] }
 0x274   : > { %3353 = vrot.lane.b32.xlu0 %v3328_v44, %s12217_s27  ;;  %11649 = vmatpush1.bf16.msra.mxu1 %v11648_v30  ;;  %v3641_v30 = vld [vmem:[%s19317_s3 + $0x3a0] sm:$0xff]  ;;  %v3643_v44 = vld [vmem:[%s19317_s3 + $0x3b0] sm:$0xff]  ;;  %v2141_v4 = vsel %vm446_vm0, %v2128_v36, %v2130_v47  ;;  %v3405_v38 = vrot.slane %v12193_v33, %v19788_v34  ;;  %v3646_v1 = vld [vmem:[%s19317_s3 + $0x3c8] sm:$0xff] }
 0x275   : > { %3351 = vrot.lane.b32.xlu1 %v3327_v60, %s12217_s27  ;;  %11777 = vmatpush1.bf16.msra.mxu0 %v11776_v20  ;;  %v2043_v20 = vsel %vm811_vm6, %v14230_v31, %v2033_v49  ;;  %v11656_v55 = vpack.c.bf16 %v3641_v30, %v3637_v53  ;;  %v11658_v10 = vpack.c.bf16 %v3650_v56, %v3646_v1  ;;  %v3652_v35 = vld [vmem:[%s19317_s3 + $0x3f8] sm:$0xff]  ;;  %v3651_v53 = vld [vmem:[%s19317_s3 + $0x3f0] sm:$0xff]  ;;  %v19838_v30 = vld [vmem:[#allocation71_spill] sm:$0xff] }
 0x276   : > { %v14332_v63 = vpop.permute.xlu0 %2133  ;;  %11651 = vmatprep.subr.bf16.mxu1 %v11650_v57  ;;  %11779 = vmatprep.subr.bf16.mxu0 %v11778_v13  ;;  %v2044_v57 = vsel %vm811_vm6, %v2033_v49, %v14268_v54  ;;  %v11784_v49 = vpack.c.bf16 %v3643_v44, %v3639_v0  ;;  %v2059_v60 = vadd.f32 %v2043_v20, %v13935_v22  ;;  %v3648_v22 = vld [vmem:[%s19317_s3 + $0x3d8] sm:$0xff] }
 0x277   : > { %v2132_v40 = vpop.permute.xlu1 %2131  ;;  %v2060_v36 = vadd.f32 %v2044_v57, %v13968_v28  ;;  %v2157_v13 = vadd.f32 %v2141_v4, %v2058_v12  ;;  %v19839_v20 = vld [vmem:[#allocation97_spill] sm:$0xff]  ;;  %v2289_v12 = vmul.f32 %v14113_v6, %v19772_v29 }
 0x278   : > { %3357 = vrot.lane.b32.xlu0 %v3330_v3, %s12217_s27  ;;  %11653 = vmatpush1.bf16.msra.mxu1 %v11652_v2  ;;  %v2142_v28 = vsel %vm446_vm0, %v2130_v47, %v2132_v40  ;;  %v2143_v3 = vsel %vm446_vm0, %v2132_v40, %v14332_v63  ;;  %v3649_v47 = vld [vmem:[%s19317_s3 + $0x3e0] sm:$0xff]  ;;  %v19842_v29 = vld [vmem:[#allocation85_spill] sm:$0xff] }
 0x279   : > { %3355 = vrot.lane.b32.xlu1 %v3329_v17, %s12217_s27  ;;  %11781 = vmatpush1.bf16.msra.mxu0 %v11780_v48  ;;  %v11786_v48 = vpack.c.bf16 %v3652_v35, %v3648_v22  ;;  %v3422_v17 = vmul.f32 %v19838_v30, %v19818_v24  ;;  %v2158_v0 = vadd.f32 %v2142_v28, %v2059_v60 }
 0x27a   : > { %v2229_v31 = vpop.permute.xlu0 %2228  ;;  %11655 = vmatprep.subr.bf16.mxu1 %v11654_v41  ;;  %11783 = vmatprep.subr.bf16.mxu0 %v11782_v8  ;;  %v11660_v41 = vpack.c.bf16 %v3649_v47, %v3645_v25  ;;  %v11788_v8 = vpack.c.bf16 %v3651_v53, %v3647_v19  ;;  %v2159_v44 = vadd.f32 %v2143_v3, %v2060_v36  ;;  %v19841_v36 = vld [vmem:[#allocation90_spill] sm:$0xff]  ;;  %v3654_v47 = vld [vmem:[%s19317_s3 + $0x408] sm:$0xff] }
 0x27b   : > { %v2227_v45 = vpop.permute.xlu1 %2226  ;;  %v3423_v6 = vmul.f32 %v19842_v29, %v19827_v7  ;;  %v2566_v28 = vmul.f32 %v14165_v18, %v19810_v39  ;;  %v3658_v39 = vld [vmem:[%s19317_s3 + $0x428] sm:$0xff]  ;;  %v3656_v18 = vld [vmem:[%s19317_s3 + $0x418] sm:$0xff] }
 0x27c   : > { %v2240_v2 = vsel %vm762_vm5, %v2227_v45, %v2229_v31  ;;  %3361 = vrot.lane.b32.xlu0 %v3332_v42, %s12217_s27  ;;  %11657 = vmatpush1.bf16.msra.mxu1 %v11656_v55  ;;  %v3424_v45 = vmul.f32 %v19841_v36, %v19825_v27  ;;  %v19846_v36 = vld [vmem:[#allocation9_spill] sm:$0xff] }
 0x27d   : > { %v2256_v37 = vadd.f32 %v2240_v2, %v2157_v13  ;;  %3359 = vrot.lane.b32.xlu1 %v3331_v21, %s12217_s27  ;;  %11785 = vmatpush1.bf16.msra.mxu0 %v11784_v49  ;;  %v19840_v49 = vld [vmem:[#allocation74_spill] sm:$0xff] }
 0x27e   : > { %v2233_v40 = vpop.permute.xlu0 %2232  ;;  %11659 = vmatprep.subr.bf16.mxu1 %v11658_v10  ;;  %11787 = vmatprep.subr.bf16.mxu0 %v11786_v48  ;;  %v11662_v48 = vpack.c.bf16 %v3658_v39, %v3654_v47  ;;  %v19849_v39 = vld [vmem:[#allocation69_spill] sm:$0xff] }
 0x27f   : > { %v2295_v57 = vadd.f32 %v19839_v20, %v2256_v37  ;;  %v2231_v4 = vpop.permute.xlu1 %2230 }
 0x280   : > { %v2241_v55 = vsel %vm762_vm5, %v2229_v31, %v2231_v4  ;;  %v2242_v21 = vsel %vm762_vm5, %v2231_v4, %v2233_v40  ;;  %3442 = vrot.lane.b32.xlu0 %v3422_v17, %s12218_s30  ;;  %11661 = vmatpush1.bf16.msra.mxu1 %v11660_v41  ;;  %v19843_v31 = vld [vmem:[#allocation98_spill] sm:$0xff]  ;;  %v2278_v41 = vrot.slane %v14109_v61, %v19788_v34  ;;  %v19845_v61 = vld [vmem:[#allocation75_spill] sm:$0xff] }
 0x281   : > { %v2257_v42 = vadd.f32 %v2241_v55, %v2158_v0  ;;  %v2258_v13 = vadd.f32 %v2242_v21, %v2159_v44  ;;  %3412 = vrot.lane.b32.xlu1 %v3405_v38, %s12219_s17  ;;  %v14409_v60 = vadd.f32 %v19840_v49, %v2295_v57  ;;  %11789 = vmatpush1.bf16.msra.mxu0 %v11788_v8  ;;  %v19844_v38 = vld [vmem:[#allocation102_spill] sm:$0xff] }
 0x282   : > { %v2632_v33 = vpop.permute.xlu0 %2631  ;;  %11663 = vmatprep.subr.bf16.mxu1 %v11662_v48  ;;  %v2555_v57 = vrot.slane %v14161_v58, %v19788_v34 }
 0x283   : > { %v2296_v1 = vadd.f32 %v19843_v31, %v2257_v42  ;;  %v2297_v56 = vadd.f32 %v2289_v12, %v2258_v13  ;;  %v2037_v22 = vpop.permute.xlu1 %2036 }
 0x284   : > { %3446 = vrot.lane.b32.xlu0 %v3424_v45, %s12218_s30  ;;  %v2045_v10 = vsel %vm811_vm6, %v14268_v54, %v2037_v22  ;;  %v3660_v54 = vld [vmem:[%s19317_s3 + $0x438] sm:$0xff]  ;;  %v2567_v21 = vmul.f32 %v2555_v57, %v19845_v61  ;;  %v19847_v22 = vld [vmem:[#allocation63_spill] sm:$0xff] }
 0x285   : > { %3444 = vrot.lane.b32.xlu1 %v3423_v6, %s12218_s30  ;;  %v14421_v3 = vadd.f32 %v19844_v38, %v2296_v1  ;;  %v14423_v2 = vadd.f32 %v2566_v28, %v2297_v56  ;;  %v2061_v19 = vadd.f32 %v2045_v10, %v13974_v50  ;;  %v11790_v53 = vpack.c.bf16 %v3660_v54, %v3656_v18  ;;  %v19850_v18 = vld [vmem:[#allocation81_spill] sm:$0xff] }
 0x286   : > { %v2731_v35 = vpop.permute.xlu0 %2730 }
 0x287   : > { %v2136_v25 = vpop.permute.xlu1 %2135  ;;  %11791 = vmatprep.subr.bf16.mxu0 %v11790_v53 }
 0x288   : > { %v2144_v37 = vsel %vm446_vm0, %v14332_v63, %v2136_v25  ;;  %v2290_v63 = vmul.f32 %v19784_v52, %v2278_v41 }
 0x289   : > { %v2160_v8 = vadd.f32 %v2144_v37, %v2061_v19  ;;  %v3173_v37 = vmul.f32 %v19850_v18, %v19818_v24  ;;  %v19851_v24 = vld [vmem:[#allocation103_spill] sm:$0xff] }
 0x28a   : > { %v2830_v17 = vpop.permute.xlu0 %2829 }
 0x28b   : > { %v2235_v0 = vpop.permute.xlu1 %2234 }
 0x28c   : > { %v2243_v44 = vsel %vm762_vm5, %v2233_v40, %v2235_v0 }
 0x28d   : > { %v2259_v20 = vadd.f32 %v2243_v44, %v2160_v8 }
 0x28e   : > { %v2027_v4 = vpop.permute.xlu0 %2026 }
 0x28f   : > { %v2298_v12 = vadd.f32 %v2290_v63, %v2259_v20  ;;  %v2634_v55 = vpop.permute.xlu1 %2633  ;;  %v2041_v50 = vsel %vm811_vm6, %v13999_v16, %v2027_v4 }
 0x290   : > { %v2651_v13 = vsel %vm811_vm6, %v2632_v33, %v2634_v55  ;;  %v2057_v45 = vadd.f32 %v2041_v50, %v19846_v36  ;;  %v2286_v33 = vmul.f32 %v2278_v41, %v19847_v22 }
 0x291   : > { %v14451_v42 = vadd.f32 %v2567_v21, %v2298_v12  ;;  %v2667_v29 = vadd.f32 %v2651_v13, %v14218_v46  ;;  %v2563_v46 = vmul.f32 %v2555_v57, %v19849_v39  ;;  %v2897_v57 = vmul.f32 %v19851_v24, %v19800_v43 }
 0x292   : > { %v2126_v49 = vpop.permute.xlu0 %2125 }
 0x293   : > { %v2140_v52 = vsel %vm446_vm0, %v14104_v23, %v2126_v49  ;;  %v2733_v40 = vpop.permute.xlu1 %2732  ;;  %v19848_v23 = vld [vmem:[#allocation99_spill] sm:$0xff] }
 0x294   : > { %v2750_v58 = vsel %vm446_vm0, %v2731_v35, %v2733_v40  ;;  %v2156_v6 = vadd.f32 %v2140_v52, %v2057_v45  ;;  %v2896_v10 = vmul.f32 %v19848_v23, %v19792_v59 }
 0x295   : > { %v2766_v1 = vadd.f32 %v2750_v58, %v2667_v29 }
 0x296   : > { %v2225_v31 = vpop.permute.xlu0 %2224 }
 0x297   : > { %v2239_v16 = vsel %vm762_vm5, %v14197_v32, %v2225_v31  ;;  %v2832_v56 = vpop.permute.xlu1 %2831 }
 0x298   : > { %v2255_v28 = vadd.f32 %v2239_v16, %v2156_v6  ;;  %v2849_v38 = vsel %vm762_vm5, %v2830_v17, %v2832_v56  ;;  %v12194_v6 = vld [vmem:[%s19316_s2 + $0x43] ss:$8 sm:$0xf] }
 0x299   : > { %v2865_v25 = vadd.f32 %v2849_v38, %v2766_v1  ;;  %v2887_v31 = vrot.slane %v12194_v6, %v19762_v51 }
 0x29a   : > { %v2294_v47 = vadd.f32 %v2286_v33, %v2255_v28  ;;  %v2636_v35 = vpop.permute.xlu0 %2635 }
 0x29b   : > { %v2904_v48 = vadd.f32 %v2896_v10, %v2865_v25  ;;  %v2642_v54 = vpop.permute.xlu1 %2641  ;;  %v2652_v19 = vsel %vm811_vm6, %v2634_v55, %v2636_v35  ;;  %v19852_v55 = vld [vmem:[#allocation58_spill] sm:$0xff]  ;;  %v2898_v23 = vmul.f32 %v2887_v31, %v19849_v39  ;;  %v19853_v25 = vld [vmem:[#allocation101_spill] sm:$0xff] }
 0x29c   : > { %v2571_v32 = vadd.f32 %v2563_v46, %v2294_v47  ;;  %v2668_v59 = vadd.f32 %v2652_v19, %v14252_v15  ;;  %v3174_v50 = vmul.f32 %v19852_v55, %v19827_v7 }
 0x29d   : > { %v14469_v41 = vadd.f32 %v3173_v37, %v2904_v48  ;;  %v19854_v48 = vld [vmem:[#allocation86_spill] sm:$0xff] }
 0x29e   : > { %v2735_v53 = vpop.permute.xlu0 %2734 }
 0x29f   : > { %v2751_v17 = vsel %vm446_vm0, %v2733_v40, %v2735_v53  ;;  %v2741_v8 = vpop.permute.xlu1 %2740 }
 0x2a0   : > { %v2767_v0 = vadd.f32 %v2751_v17, %v2668_v59 }
 0x2a2   : > { %v2834_v44 = vpop.permute.xlu0 %2833 }
 0x2a3   : > { %v2850_v63 = vsel %vm762_vm5, %v2832_v56, %v2834_v44  ;;  %v2840_v20 = vpop.permute.xlu1 %2839 }
 0x2a4   : > { %v2866_v4 = vadd.f32 %v2850_v63, %v2767_v0  ;;  %v2891_v63 = vrot.slane %v12194_v6, %v19788_v34 }
 0x2a6   : > { %v2905_v12 = vadd.f32 %v2897_v57, %v2866_v4  ;;  %v2644_v21 = vpop.permute.xlu0 %2643 }
 0x2a7   : > { %v2638_v13 = vpop.permute.xlu1 %2637  ;;  %v2655_v52 = vsel %vm811_vm6, %v2642_v54, %v2644_v21 }
 0x2a8   : > { %v14478_v49 = vadd.f32 %v3174_v50, %v2905_v12  ;;  %v2653_v15 = vsel %vm811_vm6, %v2636_v35, %v2638_v13  ;;  %v2671_v58 = vadd.f32 %v2655_v52, %v14409_v60  ;;  %v12195_v60 = vld [vmem:[%s19316_s2 + $0x44] ss:$8 sm:$0xf] }
 0x2a9   : > { %v2669_v29 = vadd.f32 %v2653_v15, %v14255_v9  ;;  %v3164_v28 = vrot.slane %v12195_v60, %v19762_v51 }
 0x2aa   : > { %v2743_v40 = vpop.permute.xlu0 %2742 }
 0x2ab   : > { %v2754_v36 = vsel %vm446_vm0, %v2741_v8, %v2743_v40  ;;  %v2737_v45 = vpop.permute.xlu1 %2736  ;;  %v3175_v37 = vmul.f32 %v3164_v28, %v19825_v27 }
 0x2ac   : > { %v2752_v43 = vsel %vm446_vm0, %v2735_v53, %v2737_v45  ;;  %v2770_v1 = vadd.f32 %v2754_v36, %v2671_v58 }
 0x2ad   : > { %v2768_v56 = vadd.f32 %v2752_v43, %v2669_v29 }
 0x2ae   : > { %v2842_v16 = vpop.permute.xlu0 %2841 }
 0x2af   : > { %v2853_v22 = vsel %vm762_vm5, %v2840_v20, %v2842_v16  ;;  %v2836_v33 = vpop.permute.xlu1 %2835 }
 0x2b0   : > { %v2869_v38 = vadd.f32 %v2853_v22, %v2770_v1  ;;  %v2851_v9 = vsel %vm762_vm5, %v2834_v44, %v2836_v33 }
 0x2b1   : > { %v2867_v10 = vadd.f32 %v2851_v9, %v2768_v56  ;;  %v19856_v9 = vld [vmem:[#allocation87_spill] sm:$0xff] }
 0x2b2   : > { %v2908_v47 = vadd.f32 %v19853_v25, %v2869_v38  ;;  %v2640_v35 = vpop.permute.xlu0 %2639  ;;  %v19857_v25 = vld [vmem:[#allocation104_spill] sm:$0xff] }
 0x2b3   : > { %v2906_v46 = vadd.f32 %v2898_v23, %v2867_v10  ;;  %v2646_v18 = vpop.permute.xlu1 %2645  ;;  %v2654_v0 = vsel %vm811_vm6, %v2638_v13, %v2640_v35  ;;  %v3168_v13 = vrot.slane %v12195_v60, %v19788_v34 }
 0x2b4   : > { %v14500_v54 = vadd.f32 %v19854_v48, %v2908_v47  ;;  %v2656_v39 = vsel %vm811_vm6, %v2644_v21, %v2646_v18  ;;  %v2670_v57 = vadd.f32 %v2654_v0, %v2571_v32  ;;  %v19855_v21 = vld [vmem:[#allocation79_spill] sm:$0xff]  ;;  %v3179_v0 = vmul.f32 %v3164_v28, %v13124_v62 }
 0x2b5   : > { %v14502_v19 = vadd.f32 %v3175_v37, %v2906_v46  ;;  %v2672_v12 = vadd.f32 %v2656_v39, %v14421_v3  ;;  %v2899_v36 = vmul.f32 %v2891_v63, %v19855_v21  ;;  %v3176_v23 = vmul.f32 %v3168_v13, %v19856_v9 }
 0x2b6   : > { %v2648_v53 = vpop.permute.xlu0 %2647 }
 0x2b7   : > { %v2650_v17 = vpop.permute.xlu1 %2649  ;;  %v2657_v55 = vsel %vm811_vm6, %v2646_v18, %v2648_v53 }
 0x2b8   : > { %v2658_v50 = vsel %vm811_vm6, %v2648_v53, %v2650_v17  ;;  %v19859_v53 = vld [vmem:[#allocation6_spill] sm:$0xff] }
 0x2b9   : > { %v2674_v1 = vadd.f32 %v2658_v50, %v14451_v42  ;;  %v19858_v42 = vld [vmem:[#allocation76_spill] sm:$0xff] }
 0x2ba   : > { %v2739_v8 = vpop.permute.xlu0 %2738  ;;  %v2903_v37 = vmul.f32 %v19858_v42, %v2891_v63  ;;  %v3657_v42 = vld [vmem:[%s19317_s3 + $0x420] sm:$0xff] }
 0x2bb   : > { %v2745_v59 = vpop.permute.xlu1 %2744  ;;  %v2753_v20 = vsel %vm446_vm0, %v2737_v45, %v2739_v8 }
 0x2bc   : > { %v2755_v4 = vsel %vm446_vm0, %v2743_v40, %v2745_v59  ;;  %v2769_v52 = vadd.f32 %v2753_v20, %v2670_v57  ;;  %v2673_v40 = vadd.f32 %v2657_v55, %v14423_v2  ;;  %v2902_v2 = vmul.f32 %v2887_v31, %v19845_v61 }
 0x2bd   : > { %v2771_v58 = vadd.f32 %v2755_v4, %v2672_v12  ;;  %v3180_v20 = vmul.f32 %v3168_v13, %v19834_v11 }
 0x2be   : > { %v2747_v44 = vpop.permute.xlu0 %2746 }
 0x2bf   : > { %v2749_v24 = vpop.permute.xlu1 %2748  ;;  %v2756_v43 = vsel %vm446_vm0, %v2745_v59, %v2747_v44 }
 0x2c0   : > { %v2757_v3 = vsel %vm446_vm0, %v2747_v44, %v2749_v24  ;;  %v2772_v22 = vadd.f32 %v2756_v43, %v2673_v40 }
 0x2c1   : > { %v2773_v10 = vadd.f32 %v2757_v3, %v2674_v1 }
 0x2c2   : > { %v2838_v15 = vpop.permute.xlu0 %2837 }
 0x2c3   : > { %v2852_v45 = vsel %vm762_vm5, %v2836_v33, %v2838_v15  ;;  %v2844_v32 = vpop.permute.xlu1 %2843 }
 0x2c4   : > { %v2868_v29 = vadd.f32 %v2852_v45, %v2769_v52  ;;  %v2854_v6 = vsel %vm762_vm5, %v2842_v16, %v2844_v32 }
 0x2c5   : > { %v2870_v56 = vadd.f32 %v2854_v6, %v2771_v58 }
 0x2c6   : > { %v2907_v60 = vadd.f32 %v2899_v36, %v2868_v29  ;;  %v2846_v38 = vpop.permute.xlu0 %2845 }
 0x2c7   : > { %v2909_v47 = vadd.f32 %v19857_v25, %v2870_v56  ;;  %v2855_v33 = vsel %vm762_vm5, %v2844_v32, %v2846_v38  ;;  %v2848_v35 = vpop.permute.xlu1 %2847 }
 0x2c8   : > { %v2871_v46 = vadd.f32 %v2855_v33, %v2772_v22  ;;  %v2856_v18 = vsel %vm762_vm5, %v2846_v38, %v2848_v35  ;;  %v14525_v16 = vadd.f32 %v3176_v23, %v2907_v60  ;;  %v19860_v22 = vld [vmem:[#allocation82_spill] sm:$0xff]  ;;  %v3427_v35 = vmul.f32 %v19838_v30, %v19830_v26  ;;  %v19862_v26 = vld [vmem:[#allocation29_spill] sm:$0xff] }
 0x2c9   : > { %v2872_v48 = vadd.f32 %v2856_v18, %v2773_v10  ;;  %v14529_v17 = vadd.f32 %v19859_v53, %v2909_v47  ;;  %v3653_v18 = vld [vmem:[%s19317_s3 + $0x400] sm:$0xff]  ;;  %v3510_v30 = vmul.f32 %v19862_v26, %v19825_v27  ;;  %v3664_v27 = vld [vmem:[%s19317_s3 + $0x458] sm:$0xff] }
 0x2ca   : > { %v2910_v8 = vadd.f32 %v2902_v2, %v2871_v46  ;;  %v3245_v59 = vpop.permute.xlu0 %3244 }
 0x2cb   : > { %v2911_v39 = vadd.f32 %v2903_v37, %v2872_v48  ;;  %v3344_v44 = vpop.permute.xlu1 %3343  ;;  %v19861_v37 = vld [vmem:[#allocation7_spill] sm:$0xff] }
 0x2cc   : > { %v14533_v61 = vadd.f32 %v3179_v0, %v2910_v8  ;;  %v3509_v48 = vmul.f32 %v19861_v37, %v19827_v7  ;;  %v3659_v0 = vld [vmem:[%s19317_s3 + $0x430] sm:$0xff]  ;;  %v3666_v7 = vld [vmem:[%s19317_s3 + $0x468] sm:$0xff]  ;;  %v3669_v37 = vld [vmem:[%s19317_s3 + $0x480] sm:$0xff] }
 0x2cd   : > { %v14535_v31 = vadd.f32 %v3180_v20, %v2911_v39  ;;  %v3662_v39 = vld [vmem:[%s19317_s3 + $0x448] sm:$0xff]  ;;  %v3668_v20 = vld [vmem:[%s19317_s3 + $0x478] sm:$0xff] }
 0x2ce   : > { %v14537_v24 = vpop.permute.xlu0 %3248 }
 0x2cf   : > { %v14539_v57 = vpop.permute.xlu1 %3347 }
 0x2d2   : > { %v3346_v63 = vpop.permute.xlu0 %3345 }
 0x2d3   : > { %v3247_v4 = vpop.permute.xlu1 %3246  ;;  %v3363_v10 = vsel %vm446_vm0, %v3344_v44, %v3346_v63  ;;  %v3364_v25 = vsel %vm446_vm0, %v3346_v63, %v14539_v57  ;;  %v19863_v44 = vld [vmem:[#allocation88_spill] sm:$0xff] }
 0x2d4   : > { %v3264_v40 = vsel %vm811_vm6, %v3245_v59, %v3247_v4  ;;  %v3265_v3 = vsel %vm811_vm6, %v3247_v4, %v14537_v24  ;;  %v3655_v59 = vld [vmem:[%s19317_s3 + $0x410] sm:$0xff] }
 0x2d5   : > { %v3280_v6 = vadd.f32 %v3264_v40, %v14469_v41  ;;  %v3281_v1 = vadd.f32 %v3265_v3, %v14478_v49  ;;  %v14624_v40 = vld [vmem:[%s19320_s6 + $0x1] ss:$8 sm:$0xf] }
 0x2d6   : > { %v14541_v12 = vpop.permute.xlu0 %3349 }
 0x2d7   : > { %v14543_v55 = vpop.permute.xlu1 %3250  ;;  %v3379_v49 = vadd.f32 %v3363_v10, %v3280_v6  ;;  %v3380_v33 = vadd.f32 %v3364_v25, %v3281_v1  ;;  %v11792_v6 = vpack.c.bf16 %v3659_v0, %v3655_v59  ;;  %v3661_v1 = vld [vmem:[%s19317_s3 + $0x440] sm:$0xff]  ;;  %v3663_v10 = vld [vmem:[%s19317_s3 + $0x450] sm:$0xff]  ;;  %v3670_v25 = vld [vmem:[%s19317_s3 + $0x488] sm:$0xff] }
 0x2d8   : > { %v3675_v59 = vld [vmem:[%s19317_s3 + $0x4b0] sm:$0xff]  ;;  %v3678_v0 = vld [vmem:[%s19317_s3 + $0x4c8] sm:$0xff] }
 0x2da   : > { %v14545_v50 = vpop.permute.xlu0 %3256 }
 0x2db   : > { %v14547_v62 = vpop.permute.xlu1 %3254 }
 0x2de   : > { %v14549_v28 = vpop.permute.xlu0 %3260 }
 0x2df   : > { %v14551_v52 = vpop.permute.xlu1 %3258 }
 0x2e2   : > { %v14553_v15 = vpop.permute.xlu0 %3252 }
 0x2e3   : > { %v14555_v13 = vpop.permute.xlu1 %3262 }
 0x2e6   : > { %v14557_v21 = vpop.permute.xlu0 %3353 }
 0x2e7   : > { %v14559_v36 = vpop.permute.xlu1 %3351 }
 0x2ea   : > { %v14561_v58 = vpop.permute.xlu0 %3357 }
 0x2eb   : > { %v14563_v43 = vpop.permute.xlu1 %3355 }
 0x2ee   : > { %v14565_v45 = vpop.permute.xlu0 %3361 }
 0x2ef   : > { %v14567_v32 = vpop.permute.xlu1 %3359 }
 0x2f2   : > { %v3443_v29 = vpop.permute.xlu0 %3442 }
 0x2f3   : > { %v3413_v56 = vpop.permute.xlu1 %3412 }
 0x2f4   : > { %v3416_v60 = vsel %vm811_vm6, %v19860_v22, %v3413_v56  ;;  %v3426_v38 = vmul.f32 %v3413_v56, %v19836_v5  ;;  %v3665_v22 = vld [vmem:[%s19317_s3 + $0x460] sm:$0xff] }
 0x2f5   : > { %v3425_v23 = vmul.f32 %v3416_v60, %v19856_v9  ;;  %v3430_v3 = vmul.f32 %v3416_v60, %v19834_v11  ;;  %v3667_v60 = vld [vmem:[%s19317_s3 + $0x470] sm:$0xff] }
 0x2f6   : > { %3450 = vrot.lane.b32.xlu0 %v3426_v38, %s12218_s30  ;;  %v14582_v47 = vpop.permute.xlu0 %3446  ;;  %v11666_v38 = vpack.c.bf16 %v3666_v7, %v3662_v39  ;;  %v3682_v39 = vld [vmem:[%s19317_s3 + $0x4e8] sm:$0xff]  ;;  %v3684_v7 = vld [vmem:[%s19317_s3 + $0x4f8] sm:$0xff] }
 0x2f7   : > { %3448 = vrot.lane.b32.xlu1 %v3425_v23, %s12218_s30  ;;  %v3445_v41 = vpop.permute.xlu1 %3444  ;;  %v11794_v23 = vpack.c.bf16 %v3668_v20, %v3664_v27  ;;  %v19866_v27 = vld [vmem:[#allocation3_spill] sm:$0xff] }
 0x2f8   : > { %v3462_v2 = vsel %vm762_vm5, %v3443_v29, %v3445_v41  ;;  %v3463_v46 = vsel %vm762_vm5, %v3445_v41, %v14582_v47  ;;  %v11664_v29 = vpack.c.bf16 %v3657_v42, %v3653_v18  ;;  %v19864_v41 = vld [vmem:[#allocation2_spill] sm:$0xff]  ;;  %v11668_v18 = vpack.c.bf16 %v3665_v22, %v3661_v1  ;;  %v3679_v22 = vld [vmem:[%s19317_s3 + $0x4d0] sm:$0xff] }
 0x2f9   : > { %v3478_v53 = vadd.f32 %v3462_v2, %v3379_v49  ;;  %v3479_v8 = vadd.f32 %v3463_v46, %v3380_v33  ;;  %v4507_v49 = vrot.slane %v14624_v40, %v19864_v41  ;;  %v3674_v33 = vld [vmem:[%s19317_s3 + $0x4a8] sm:$0xff]  ;;  %v3676_v2 = vld [vmem:[%s19317_s3 + $0x4b8] sm:$0xff]  ;;  %v11796_v42 = vpack.c.bf16 %v3667_v60, %v3663_v10 }
 0x2fa   : > { %3454 = vrot.lane.b32.xlu0 %v19863_v44, %s12218_s30  ;;  %v19865_v46 = vld [vmem:[#allocation93_spill] sm:$0xff]  ;;  %v4511_v20 = vrot.slane %v14624_v40, %v19866_v27  ;;  %v3690_v10 = vld [vmem:[%s19317_s3 + $0x528] sm:$0xff] }
 0x2fb   : > { %v3517_v63 = vadd.f32 %v3509_v48, %v3478_v53  ;;  %3452 = vrot.lane.b32.xlu1 %v3427_v35, %s12218_s30  ;;  %v3518_v4 = vadd.f32 %v3510_v30, %v3479_v8  ;;  %v3672_v35 = vld [vmem:[%s19317_s3 + $0x498] sm:$0xff]  ;;  %v3673_v48 = vld [vmem:[%s19317_s3 + $0x4a0] sm:$0xff]  ;;  %v3431_v53 = vmul.f32 %v19837_v14, %v3413_v56  ;;  %v11670_v8 = vpack.c.bf16 %v3674_v33, %v3670_v25  ;;  %v3671_v30 = vld [vmem:[%s19317_s3 + $0x490] sm:$0xff] }
 0x2fc   : > { %v11798_v26 = vpack.c.bf16 %v3676_v2, %v3672_v35  ;;  %v4515_v56 = vrot.slane %v14624_v40, %v19762_v51  ;;  %v3680_v44 = vld [vmem:[%s19317_s3 + $0x4d8] sm:$0xff]  ;;  %v3685_v2 = vld [vmem:[%s19317_s3 + $0x500] sm:$0xff] }
 0x2fd   : > { %3867 = vmatprep.mubr.f32.mxu1 %v3518_v4  ;;  %4021 = vmatprep.mubr.f32.mxu0 %v3518_v4  ;;  %v11800_v4 = vpack.c.bf16 %v3675_v59, %v3671_v30  ;;  %v11802_v1 = vpack.c.bf16 %v3684_v7, %v3680_v44  ;;  %v3688_v60 = vld [vmem:[%s19317_s3 + $0x518] sm:$0xff]  ;;  %v3695_v7 = vld [vmem:[%s19317_s3 + $0x550] sm:$0xff] }
 0x2fe   : > { %3458 = vrot.lane.b32.xlu0 %v3430_v3, %s12218_s30  ;;  %3868 = vmatmul.mubr.f32.vlgmr.msra.gmra.mrb[24].mxu1 %v3517_v63  ;;  %v3677_v3 = vld [vmem:[%s19317_s3 + $0x4c0] sm:$0xff]  ;;  %v3692_v25 = vld [vmem:[%s19317_s3 + $0x538] sm:$0xff] }
 0x2ff   : > { %4022 = vmatmul.mubr.f32.vlgmr.msra.gmra.mrb[26].mxu0 %v3517_v63  ;;  %3456 = vrot.lane.b32.xlu1 %v19865_v46, %s12218_s30  ;;  %v11672_v63 = vpack.c.bf16 %v3673_v48, %v3669_v37  ;;  %v3689_v46 = vld [vmem:[%s19317_s3 + $0x520] sm:$0xff]  ;;  %v3691_v37 = vld [vmem:[%s19317_s3 + $0x530] sm:$0xff]  ;;  %v3694_v48 = vld [vmem:[%s19317_s3 + $0x548] sm:$0xff] }
 0x300   : > { %11665 = vmatpush1.bf16.msra.mxu1 %v11664_v29  ;;  %11793 = vmatpush1.bf16.msra.mxu0 %v11792_v6  ;;  %v3681_v29 = vld [vmem:[%s19317_s3 + $0x4e0] sm:$0xff]  ;;  %v11674_v6 = vpack.c.bf16 %v3682_v39, %v3678_v0  ;;  %v11680_v30 = vpack.c.bf16 %v3689_v46, %v3685_v2  ;;  %v3716_v2 = vld [vmem:[%s19317_s3 + $0x5f8] sm:$0xff] }
 0x301   : > { %11667 = vmatprep.subr.bf16.mxu1 %v11666_v38  ;;  %11795 = vmatprep.subr.bf16.mxu0 %v11794_v23  ;;  %v3683_v38 = vld [vmem:[%s19317_s3 + $0x4f0] sm:$0xff]  ;;  %v3686_v23 = vld [vmem:[%s19317_s3 + $0x508] sm:$0xff]  ;;  %v11676_v33 = vpack.c.bf16 %v3681_v29, %v3677_v3  ;;  %v3693_v0 = vld [vmem:[%s19317_s3 + $0x540] sm:$0xff] }
 0x302   : > { %4520 = vrot.lane.b32.xlu0 %v4507_v49, %s12219_s17  ;;  %v4519_v49 = vrot.slane %v14624_v40, %v19788_v34  ;;  %v11804_v35 = vpack.c.bf16 %v3683_v38, %v3679_v22  ;;  %v3687_v40 = vld [vmem:[%s19317_s3 + $0x510] sm:$0xff]  ;;  %v3704_v3 = vld [vmem:[%s19317_s3 + $0x598] sm:$0xff]  ;;  %v3701_v22 = vld [vmem:[%s19317_s3 + $0x580] sm:$0xff] }
 0x303   : > { %3460 = vrot.lane.b32.xlu1 %v3431_v53, %s12218_s30  ;;  %v3698_v53 = vld [vmem:[%s19317_s3 + $0x568] sm:$0xff]  ;;  %v11808_v59 = vpack.c.bf16 %v3691_v37, %v3687_v40  ;;  %v3708_v29 = vld [vmem:[%s19317_s3 + $0x5b8] sm:$0xff]  ;;  %v3705_v38 = vld [vmem:[%s19317_s3 + $0x5a0] sm:$0xff] }
 0x304   : > { %11669 = vmatpush1.bf16.msra.mxu1 %v11668_v18  ;;  %11797 = vmatpush1.bf16.msra.mxu0 %v11796_v42  ;;  %v11678_v18 = vpack.c.bf16 %v3690_v10, %v3686_v23  ;;  %v11806_v42 = vpack.c.bf16 %v3692_v25, %v3688_v60  ;;  %v11682_v39 = vpack.c.bf16 %v3698_v53, %v3694_v48  ;;  %v3703_v60 = vld [vmem:[%s19317_s3 + $0x590] sm:$0xff]  ;;  %v3713_v40 = vld [vmem:[%s19317_s3 + $0x5e0] sm:$0xff] }
 0x305   : > { %11671 = vmatprep.subr.bf16.mxu1 %v11670_v8  ;;  %11799 = vmatprep.subr.bf16.mxu0 %v11798_v26  ;;  %v3696_v8 = vld [vmem:[%s19317_s3 + $0x558] sm:$0xff]  ;;  %v11814_v10 = vpack.c.bf16 %v3708_v29, %v3704_v3  ;;  %v3707_v25 = vld [vmem:[%s19317_s3 + $0x5b0] sm:$0xff]  ;;  %v11688_v46 = vpack.c.bf16 %v3705_v38, %v3701_v22  ;;  %v3726_v29 = vld [vmem:[%s19317_s3 + $0x648] sm:$0xff] }
 0x306   : > { %4524 = vrot.lane.b32.xlu0 %v4515_v56, %s12219_s17  ;;  %v3700_v26 = vld [vmem:[%s19317_s3 + $0x578] sm:$0xff]  ;;  %v3697_v56 = vld [vmem:[%s19317_s3 + $0x560] sm:$0xff]  ;;  %v3711_v53 = vld [vmem:[%s19317_s3 + $0x5d0] sm:$0xff] }
 0x307   : > { %4522 = vrot.lane.b32.xlu1 %v4511_v20, %s12219_s17  ;;  %v11810_v44 = vpack.c.bf16 %v3700_v26, %v3696_v8  ;;  %v3699_v20 = vld [vmem:[%s19317_s3 + $0x570] sm:$0xff]  ;;  %v3718_v26 = vld [vmem:[%s19317_s3 + $0x608] sm:$0xff]  ;;  %v3732_v22 = vld [vmem:[%s19317_s3 + $0x678] sm:$0xff] }
 0x308   : > { %11673 = vmatpush1.bf16.msra.mxu1 %v11672_v63  ;;  %11801 = vmatpush1.bf16.msra.mxu0 %v11800_v4  ;;  %v3702_v63 = vld [vmem:[%s19317_s3 + $0x588] sm:$0xff]  ;;  %v3715_v8 = vld [vmem:[%s19317_s3 + $0x5f0] sm:$0xff] }
 0x309   : > { %11675 = vmatprep.subr.bf16.mxu1 %v11674_v6  ;;  %11803 = vmatprep.subr.bf16.mxu0 %v11802_v1  ;;  %v3706_v4 = vld [vmem:[%s19317_s3 + $0x5a8] sm:$0xff]  ;;  %v11684_v6 = vpack.c.bf16 %v3697_v56, %v3693_v0  ;;  %v11812_v1 = vpack.c.bf16 %v3699_v20, %v3695_v7  ;;  %v3724_v0 = vld [vmem:[%s19317_s3 + $0x638] sm:$0xff]  ;;  %v3721_v7 = vld [vmem:[%s19317_s3 + $0x620] sm:$0xff] }
 0x30a   : > { %v11686_v23 = vpack.c.bf16 %v3706_v4, %v3702_v63  ;;  %v3719_v4 = vld [vmem:[%s19317_s3 + $0x610] sm:$0xff] }
 0x30b   : > { %4526 = vrot.lane.b32.xlu1 %v4519_v49, %s12219_s17  ;;  %v3710_v49 = vld [vmem:[%s19317_s3 + $0x5c8] sm:$0xff]  ;;  %v3723_v3 = vld [vmem:[%s19317_s3 + $0x630] sm:$0xff] }
 0x30c   : > { %11677 = vmatpush1.bf16.msra.mxu1 %v11676_v33  ;;  %11805 = vmatpush1.bf16.msra.mxu0 %v11804_v35  ;;  %v3714_v33 = vld [vmem:[%s19317_s3 + $0x5e8] sm:$0xff]  ;;  %v3712_v35 = vld [vmem:[%s19317_s3 + $0x5d8] sm:$0xff] }
 0x30d   : > { %11679 = vmatprep.subr.bf16.mxu1 %v11678_v18  ;;  %11807 = vmatprep.subr.bf16.mxu0 %v11806_v42  ;;  %v11816_v18 = vpack.c.bf16 %v3707_v25, %v3703_v60  ;;  %v3709_v42 = vld [vmem:[%s19317_s3 + $0x5c0] sm:$0xff]  ;;  %v11690_v37 = vpack.c.bf16 %v3714_v33, %v3710_v49  ;;  %v11818_v48 = vpack.c.bf16 %v3716_v2, %v3712_v35  ;;  %v3727_v33 = vld [vmem:[%s19317_s3 + $0x650] sm:$0xff]  ;;  %v3734_v2 = vld [vmem:[%s19317_s3 + $0x688] sm:$0xff] }
 0x30e   : > { %v11692_v56 = vpack.c.bf16 %v3713_v40, %v3709_v42  ;;  %v3729_v60 = vld [vmem:[%s19317_s3 + $0x660] sm:$0xff]  ;;  %v3731_v35 = vld [vmem:[%s19317_s3 + $0x670] sm:$0xff]  ;;  %v3740_v42 = vld [vmem:[%s19317_s3 + $0x6b8] sm:$0xff] }
 0x310   : > { %11681 = vmatpush1.bf16.msra.mxu1 %v11680_v30  ;;  %11809 = vmatpush1.bf16.msra.mxu0 %v11808_v59  ;;  %v3722_v30 = vld [vmem:[%s19317_s3 + $0x628] sm:$0xff]  ;;  %v3720_v59 = vld [vmem:[%s19317_s3 + $0x618] sm:$0xff] }
 0x311   : > { %11683 = vmatprep.subr.bf16.mxu1 %v11682_v39  ;;  %11811 = vmatprep.subr.bf16.mxu0 %v11810_v44  ;;  %v11820_v39 = vpack.c.bf16 %v3715_v8, %v3711_v53  ;;  %v3717_v44 = vld [vmem:[%s19317_s3 + $0x600] sm:$0xff]  ;;  %v11694_v20 = vpack.c.bf16 %v3722_v30, %v3718_v26  ;;  %v11822_v63 = vpack.c.bf16 %v3724_v0, %v3720_v59  ;;  %v3735_v30 = vld [vmem:[%s19317_s3 + $0x690] sm:$0xff]  ;;  %v3742_v0 = vld [vmem:[%s19317_s3 + $0x6c8] sm:$0xff] }
 0x312   : > { %v11696_v38 = vpack.c.bf16 %v3721_v7, %v3717_v44  ;;  %v3737_v53 = vld [vmem:[%s19317_s3 + $0x6a0] sm:$0xff]  ;;  %v3739_v59 = vld [vmem:[%s19317_s3 + $0x6b0] sm:$0xff]  ;;  %v3748_v44 = vld [vmem:[%s19317_s3 + $0x6f8] sm:$0xff] }
 0x314   : > { %11685 = vmatpush1.bf16.msra.mxu1 %v11684_v6  ;;  %11813 = vmatpush1.bf16.msra.mxu0 %v11812_v1  ;;  %v3730_v6 = vld [vmem:[%s19317_s3 + $0x668] sm:$0xff]  ;;  %v3728_v1 = vld [vmem:[%s19317_s3 + $0x658] sm:$0xff] }
 0x315   : > { %11687 = vmatprep.subr.bf16.mxu1 %v11686_v23  ;;  %11815 = vmatprep.subr.bf16.mxu0 %v11814_v10  ;;  %v11824_v23 = vpack.c.bf16 %v3723_v3, %v3719_v4  ;;  %v3725_v10 = vld [vmem:[%s19317_s3 + $0x640] sm:$0xff]  ;;  %v11698_v25 = vpack.c.bf16 %v3730_v6, %v3726_v29  ;;  %v11826_v49 = vpack.c.bf16 %v3732_v22, %v3728_v1  ;;  %v3743_v6 = vld [vmem:[%s19317_s3 + $0x6d0] sm:$0xff]  ;;  %v3750_v22 = vld [vmem:[%s19317_s3 + $0x708] sm:$0xff] }
 0x316   : > { %v11700_v40 = vpack.c.bf16 %v3729_v60, %v3725_v10  ;;  %v3745_v4 = vld [vmem:[%s19317_s3 + $0x6e0] sm:$0xff]  ;;  %v3747_v1 = vld [vmem:[%s19317_s3 + $0x6f0] sm:$0xff]  ;;  %v3756_v10 = vld [vmem:[%s19317_s3 + $0x738] sm:$0xff] }
 0x318   : > { %11689 = vmatpush1.bf16.msra.mxu1 %v11688_v46  ;;  %11817 = vmatpush1.bf16.msra.mxu0 %v11816_v18  ;;  %v3738_v46 = vld [vmem:[%s19317_s3 + $0x6a8] sm:$0xff]  ;;  %v3736_v18 = vld [vmem:[%s19317_s3 + $0x698] sm:$0xff] }
 0x319   : > { %11691 = vmatprep.subr.bf16.mxu1 %v11690_v37  ;;  %11819 = vmatprep.subr.bf16.mxu0 %v11818_v48  ;;  %v11828_v37 = vpack.c.bf16 %v3731_v35, %v3727_v33  ;;  %v3733_v48 = vld [vmem:[%s19317_s3 + $0x680] sm:$0xff]  ;;  %v11702_v8 = vpack.c.bf16 %v3738_v46, %v3734_v2  ;;  %v11830_v26 = vpack.c.bf16 %v3740_v42, %v3736_v18  ;;  %v3751_v46 = vld [vmem:[%s19317_s3 + $0x710] sm:$0xff]  ;;  %v3758_v42 = vld [vmem:[%s19317_s3 + $0x748] sm:$0xff] }
 0x31a   : > { %v11704_v7 = vpack.c.bf16 %v3737_v53, %v3733_v48  ;;  %v3753_v33 = vld [vmem:[%s19317_s3 + $0x720] sm:$0xff]  ;;  %v3755_v18 = vld [vmem:[%s19317_s3 + $0x730] sm:$0xff]  ;;  %v3764_v48 = vld [vmem:[%s19317_s3 + $0x778] sm:$0xff] }
 0x31c   : > { %11693 = vmatpush1.bf16.msra.mxu1 %v11692_v56  ;;  %11821 = vmatpush1.bf16.msra.mxu0 %v11820_v39  ;;  %v3746_v56 = vld [vmem:[%s19317_s3 + $0x6e8] sm:$0xff]  ;;  %v3744_v39 = vld [vmem:[%s19317_s3 + $0x6d8] sm:$0xff] }
 0x31d   : > { %11695 = vmatprep.subr.bf16.mxu1 %v11694_v20  ;;  %11823 = vmatprep.subr.bf16.mxu0 %v11822_v63  ;;  %v11832_v20 = vpack.c.bf16 %v3739_v59, %v3735_v30  ;;  %v3741_v63 = vld [vmem:[%s19317_s3 + $0x6c0] sm:$0xff]  ;;  %v11706_v3 = vpack.c.bf16 %v3746_v56, %v3742_v0  ;;  %v11834_v29 = vpack.c.bf16 %v3748_v44, %v3744_v39  ;;  %v3759_v56 = vld [vmem:[%s19317_s3 + $0x750] sm:$0xff]  ;;  %v3766_v44 = vld [vmem:[%s19317_s3 + $0x788] sm:$0xff] }
 0x31e   : > { %v11708_v60 = vpack.c.bf16 %v3745_v4, %v3741_v63  ;;  %v3761_v30 = vld [vmem:[%s19317_s3 + $0x760] sm:$0xff]  ;;  %v3763_v39 = vld [vmem:[%s19317_s3 + $0x770] sm:$0xff]  ;;  %v3772_v63 = vld [vmem:[%s19317_s3 + $0x7b8] sm:$0xff] }
 0x320   : > { %11697 = vmatpush1.bf16.msra.mxu1 %v11696_v38  ;;  %11825 = vmatpush1.bf16.msra.mxu0 %v11824_v23  ;;  %v3754_v38 = vld [vmem:[%s19317_s3 + $0x728] sm:$0xff]  ;;  %v3752_v23 = vld [vmem:[%s19317_s3 + $0x718] sm:$0xff] }
 0x321   : > { %11699 = vmatprep.subr.bf16.mxu1 %v11698_v25  ;;  %11827 = vmatprep.subr.bf16.mxu0 %v11826_v49  ;;  %v11836_v25 = vpack.c.bf16 %v3747_v1, %v3743_v6  ;;  %v3749_v49 = vld [vmem:[%s19317_s3 + $0x700] sm:$0xff]  ;;  %v11710_v35 = vpack.c.bf16 %v3754_v38, %v3750_v22  ;;  %v11838_v2 = vpack.c.bf16 %v3756_v10, %v3752_v23  ;;  %v3767_v38 = vld [vmem:[%s19317_s3 + $0x790] sm:$0xff]  ;;  %v3774_v10 = vld [vmem:[%s19317_s3 + $0x7c8] sm:$0xff] }
 0x322   : > { %v11712_v53 = vpack.c.bf16 %v3753_v33, %v3749_v49  ;;  %v3769_v6 = vld [vmem:[%s19317_s3 + $0x7a0] sm:$0xff]  ;;  %v3771_v23 = vld [vmem:[%s19317_s3 + $0x7b0] sm:$0xff]  ;;  %v3780_v49 = vld [vmem:[%s19317_s3 + $0x7f8] sm:$0xff] }
 0x324   : > { %11701 = vmatpush1.bf16.msra.mxu1 %v11700_v40  ;;  %11829 = vmatpush1.bf16.msra.mxu0 %v11828_v37  ;;  %v3762_v40 = vld [vmem:[%s19317_s3 + $0x768] sm:$0xff]  ;;  %v3760_v37 = vld [vmem:[%s19317_s3 + $0x758] sm:$0xff] }
 0x325   : > { %11703 = vmatprep.subr.bf16.mxu1 %v11702_v8  ;;  %11831 = vmatprep.subr.bf16.mxu0 %v11830_v26  ;;  %v11840_v8 = vpack.c.bf16 %v3755_v18, %v3751_v46  ;;  %v3757_v26 = vld [vmem:[%s19317_s3 + $0x740] sm:$0xff]  ;;  %v11714_v59 = vpack.c.bf16 %v3762_v40, %v3758_v42  ;;  %v11842_v0 = vpack.c.bf16 %v3764_v48, %v3760_v37  ;;  %v3775_v40 = vld [vmem:[%s19317_s3 + $0x7d0] sm:$0xff] }
 0x326   : > { %v11716_v4 = vpack.c.bf16 %v3761_v30, %v3757_v26  ;;  %v3777_v42 = vld [vmem:[%s19317_s3 + $0x7e0] sm:$0xff]  ;;  %v3779_v37 = vld [vmem:[%s19317_s3 + $0x7f0] sm:$0xff]  ;;  %v3266_v26 = vsel %vm811_vm6, %v14537_v24, %v14543_v55  ;;  %v3267_v30 = vsel %vm811_vm6, %v14543_v55, %v14553_v15  ;;  %v3365_v55 = vsel %vm446_vm0, %v14539_v57, %v14541_v12 }
 0x328   : > { %11705 = vmatpush1.bf16.msra.mxu1 %v11704_v7  ;;  %11833 = vmatpush1.bf16.msra.mxu0 %v11832_v20  ;;  %v3770_v7 = vld [vmem:[%s19317_s3 + $0x7a8] sm:$0xff]  ;;  %v3768_v20 = vld [vmem:[%s19317_s3 + $0x798] sm:$0xff] }
 0x329   : > { %11707 = vmatprep.subr.bf16.mxu1 %v11706_v3  ;;  %11835 = vmatprep.subr.bf16.mxu0 %v11834_v29  ;;  %v11844_v3 = vpack.c.bf16 %v3763_v39, %v3759_v56  ;;  %v3765_v29 = vld [vmem:[%s19317_s3 + $0x780] sm:$0xff]  ;;  %v11718_v1 = vpack.c.bf16 %v3770_v7, %v3766_v44  ;;  %v11846_v22 = vpack.c.bf16 %v3772_v63, %v3768_v20 }
 0x32a   : > { %v11720_v33 = vpack.c.bf16 %v3769_v6, %v3765_v29  ;;  %v3366_v39 = vsel %vm446_vm0, %v14541_v12, %v14559_v36  ;;  %v3283_v44 = vadd.f32 %v3267_v30, %v14525_v16  ;;  %v3367_v16 = vsel %vm446_vm0, %v14557_v21, %v14563_v43 }
 0x32b   : > { %v3269_v6 = vsel %vm811_vm6, %v14545_v50, %v14551_v52 }
 0x32c   : > { %11709 = vmatpush1.bf16.msra.mxu1 %v11708_v60  ;;  %11837 = vmatpush1.bf16.msra.mxu0 %v11836_v25  ;;  %v3778_v60 = vld [vmem:[%s19317_s3 + $0x7e8] sm:$0xff]  ;;  %v3776_v25 = vld [vmem:[%s19317_s3 + $0x7d8] sm:$0xff]  ;;  %v3382_v7 = vadd.f32 %v3366_v39, %v3283_v44  ;;  %v4155_v44 = vld [vmem:[%s19319_s5] sm:$0xff] }
 0x32d   : > { %11711 = vmatprep.subr.bf16.mxu1 %v11710_v35  ;;  %11839 = vmatprep.subr.bf16.mxu0 %v11838_v2  ;;  %v11848_v35 = vpack.c.bf16 %v3771_v23, %v3767_v38  ;;  %v3773_v2 = vld [vmem:[%s19317_s3 + $0x7c0] sm:$0xff]  ;;  %v11722_v46 = vpack.c.bf16 %v3778_v60, %v3774_v10  ;;  %v11850_v18 = vpack.c.bf16 %v3780_v49, %v3776_v25 }
 0x32e   : > { %v11724_v48 = vpack.c.bf16 %v3777_v42, %v3773_v2  ;;  %v3271_v60 = vsel %vm811_vm6, %v14549_v28, %v14555_v13 }
 0x330   : > { %11713 = vmatpush1.bf16.msra.mxu1 %v11712_v53  ;;  %11841 = vmatpush1.bf16.msra.mxu0 %v11840_v8  ;;  %v11852_v53 = vpack.c.bf16 %v3779_v37, %v3775_v40  ;;  %v19867_v8 = vmov 0.0   ;;  %v19869_v37 = vld [vmem:[#allocation8_spill] sm:$0xff] }
 0x331   : > { %11715 = vmatprep.subr.bf16.mxu1 %v11714_v59  ;;  %11843 = vmatprep.subr.bf16.mxu0 %v11842_v0  ;;  %v3282_v59 = vadd.f32 %v3266_v26, %v14502_v19  ;;  %v12196_v0 = vld [vmem:[%s19316_s2 + $0x60] ss:$8 sm:$0xf]  ;;  %v3268_v19 = vsel %vm811_vm6, %v14547_v62, %v14545_v50  ;;  %v3285_v50 = vadd.f32 %v3269_v6, %v14529_v17 }
 0x332   : > { %v3504_v56 = vrot.slane %v12196_v0, %v19788_v34  ;;  %v3500_v24 = vrot.slane %v12196_v0, %v19762_v51  ;;  %v3284_v57 = vadd.f32 %v3268_v19, %v14500_v54  ;;  %v3368_v54 = vsel %vm446_vm0, %v14563_v43, %v14561_v58  ;;  %v19868_v43 = vld [vmem:[#allocation24_spill] sm:$0xff] }
 0x333   : > { %v3381_v63 = vadd.f32 %v3365_v55, %v3282_v59  ;;  %v3384_v49 = vadd.f32 %v3368_v54, %v3285_v50 }
 0x334   : > { %11717 = vmatpush1.bf16.msra.mxu1 %v11716_v4  ;;  %11845 = vmatpush1.bf16.msra.mxu0 %v11844_v3  ;;  %v3512_v4 = vmul.f32 %v3504_v56, %v19836_v5  ;;  %v3511_v12 = vmul.f32 %v3500_v24, %v19856_v9  ;;  %v3270_v5 = vsel %vm811_vm6, %v14551_v52, %v14549_v28 }
 0x335   : > { %11719 = vmatprep.subr.bf16.mxu1 %v11718_v1  ;;  %11847 = vmatprep.subr.bf16.mxu0 %v11846_v22  ;;  %v3383_v1 = vadd.f32 %v3367_v16, %v3284_v57  ;;  %v3369_v9 = vsel %vm446_vm0, %v14561_v58, %v14567_v32  ;;  %v3286_v10 = vadd.f32 %v3270_v5, %v14533_v61 }
 0x336   : > { %v3370_v58 = vsel %vm446_vm0, %v14567_v32, %v14565_v45  ;;  %v3287_v61 = vadd.f32 %v3271_v60, %v14535_v31  ;;  %v3515_v28 = vmul.f32 %v3500_v24, %v19834_v11  ;;  %v3516_v30 = vmul.f32 %v19837_v14, %v3504_v56  ;;  %v11111_v14 = vld [vmem:[%s19320_s6 + $0x2] ss:$8 sm:$0xf] }
 0x337   : > { %v4606_v56 = vrot.slane %v11111_v14, %v19864_v41  ;;  %v4610_v39 = vrot.slane %v11111_v14, %v19866_v27  ;;  %v4156_v24 = vld [vmem:[%s19319_s5 + $0x8] sm:$0xff]  ;;  %v4614_v55 = vrot.slane %v11111_v14, %v19762_v51  ;;  %v4618_v19 = vrot.slane %v11111_v14, %v19788_v34 }
 0x338   : > { %11721 = vmatpush1.bf16.msra.mxu1 %v11720_v33  ;;  %11849 = vmatpush1.bf16.msra.mxu0 %v11848_v35  ;;  %v3385_v33 = vadd.f32 %v3369_v9, %v3286_v10  ;;  %v3386_v13 = vadd.f32 %v3370_v58, %v3287_v61  ;;  %v11115_v14 = vld [vmem:[%s19320_s6 + $0x6] ss:$8 sm:$0xf] }
 0x339   : > { %11723 = vmatprep.subr.bf16.mxu1 %v11722_v46  ;;  %11851 = vmatprep.subr.bf16.mxu0 %v11850_v18 }
 0x33c   : > { %11725 = vmatpush1.bf16.msra.mxu1 %v11724_v48  ;;  %11853 = vmatpush1.bf16.msra.mxu0 %v11852_v53 }
 0x33d   : > { %11439 = vmatprep.subr.mxu1 %v19867_v8 }
 0x368   : > { %v3451_v15 = vpop.permute.xlu0 %3450 }
 0x369   : > { %v3449_v20 = vpop.permute.xlu1 %3448 }
 0x36a   : > { %v3464_v36 = vsel %vm762_vm5, %v14582_v47, %v3449_v20  ;;  %v3465_v3 = vsel %vm762_vm5, %v3449_v20, %v3451_v15 }
 0x36b   : > { %v3480_v62 = vadd.f32 %v3464_v36, %v3381_v63  ;;  %v3481_v29 = vadd.f32 %v3465_v3, %v3382_v7  ;;  %v11112_v63 = vld [vmem:[%s19320_s6 + $0x3] ss:$8 sm:$0xf] }
 0x36c   : > { %v3455_v21 = vpop.permute.xlu0 %3454  ;;  %v4709_v16 = vrot.slane %v11112_v63, %v19866_v27  ;;  %v4705_v36 = vrot.slane %v11112_v63, %v19864_v41  ;;  %v4717_v3 = vrot.slane %v11112_v63, %v19788_v34  ;;  %v4713_v57 = vrot.slane %v11112_v63, %v19762_v51 }
 0x36d   : > { %v3519_v22 = vadd.f32 %v3511_v12, %v3480_v62  ;;  %v3453_v47 = vpop.permute.xlu1 %3452  ;;  %v3520_v38 = vadd.f32 %v3512_v4, %v3481_v29  ;;  %v11114_v12 = vld [vmem:[%s19320_s6 + $0x5] ss:$8 sm:$0xf] }
 0x36e   : > { %v3466_v23 = vsel %vm762_vm5, %v3453_v47, %v3455_v21  ;;  %v4847_v62 = vrot.slane %v11114_v12, %v19866_v27  ;;  %v4843_v29 = vrot.slane %v11114_v12, %v19864_v41  ;;  %v4855_v6 = vrot.slane %v11114_v12, %v19788_v34 }
 0x36f   : > { %v3482_v52 = vadd.f32 %v3466_v23, %v3383_v1  ;;  %v4851_v5 = vrot.slane %v11114_v12, %v19762_v51 }
 0x370   : > { %v3459_v25 = vpop.permute.xlu0 %3458 }
 0x371   : > { %v3457_v35 = vpop.permute.xlu1 %3456  ;;  %v3521_v2 = vadd.f32 %v19868_v43, %v3482_v52 }
 0x372   : > { %v3467_v46 = vsel %vm762_vm5, %v3455_v21, %v3457_v35  ;;  %v3468_v17 = vsel %vm762_vm5, %v3457_v35, %v3459_v25  ;;  %v3781_v21 = vld [vmem:[%s19318_s4] sm:$0xf] }
 0x373   : > { %v3483_v18 = vadd.f32 %v3467_v46, %v3384_v49  ;;  %v3484_v42 = vadd.f32 %v3468_v17, %v3385_v33  ;;  %v3786_v1 = vrot.slane %v3781_v21, %v19864_v41  ;;  %v3790_v47 = vrot.slane %v3781_v21, %v19866_v27 }
 0x374   : > { %v15053_v32 = vpop.permute.xlu0 %4520 }
 0x375   : > { %v3461_v40 = vpop.permute.xlu1 %3460  ;;  %v3522_v48 = vadd.f32 %v19869_v37, %v3483_v18  ;;  %v3523_v53 = vadd.f32 %v3515_v28, %v3484_v42 }
 0x376   : > { %v3469_v26 = vsel %vm762_vm5, %v3459_v25, %v3461_v40 }
 0x377   : > { %v3485_v45 = vadd.f32 %v3469_v26, %v3386_v13  ;;  %3873 = vmatprep.mubr.f32.mxu1 %v3522_v48  ;;  %4027 = vmatprep.mubr.f32.mxu0 %v3522_v48 }
 0x378   : > { %3874 = vmatmul.mubr.f32.gmra.mrb[26].mxu1 %v3521_v2  ;;  %4028 = vmatmul.mubr.f32.gmra.mrb[28].mxu0 %v3521_v2  ;;  %v15084_v15 = vpop.permute.xlu0 %4524 }
 0x379   : > { %v15055_v31 = vpop.permute.xlu1 %4522  ;;  %3944 = vmatprep.mubr.f32.mxu1 %v3520_v38  ;;  %4098 = vmatprep.mubr.f32.mxu0 %v3520_v38  ;;  %v3524_v11 = vadd.f32 %v3516_v30, %v3485_v45  ;;  %v3798_v38 = vrot.slane %v3781_v21, %v19788_v34 }
 0x37a   : > { %v4528_v59 = vsel %vm811_vm6, %v15053_v32, %v15055_v31 }
 0x37b   : > { %v4537_v0 = vmul.f32 0.0, %v4528_v59 }
 0x37c   : > { %3945 = vmatmul.mubr.f32.vlgmr.msra.gmra.mrb[24].mxu1 %v3519_v22  ;;  %4099 = vmatmul.mubr.f32.vlgmr.msra.gmra.mrb[26].mxu0 %v3519_v22  ;;  %v3794_v22 = vrot.slane %v3781_v21, %v19762_v51 }
 0x37d   : > { %3950 = vmatprep.mubr.f32.mxu1 %v3524_v11  ;;  %4104 = vmatprep.mubr.f32.mxu0 %v3524_v11  ;;  %v15130_v49 = vpop.permute.xlu1 %4526 }
 0x37e   : > { %4568 = vrot.lane.b32.xlu0 %v4537_v0, %s12218_s30  ;;  %4558 = vrot.lane.b32.xlu1 %v4537_v0, %s12218_s30 }
 0x37f   : > { %11440 = vmatpush3.msra.mxu1 %v19867_v8 }
 0x380   : > { %3951 = vmatmul.mubr.f32.gmra.mrb[26].mxu1 %v3523_v53  ;;  %4105 = vmatmul.mubr.f32.gmra.mrb[28].mxu0 %v3523_v53 }
 0x381   : > { %11441 = vmatprep.mubr.msk.f32.mxu1 %vm469_vm4, %v4155_v44  ;;  %4381 = vmatprep.mubr.f32.mxu0 %v19867_v8  ;;  %v4942_v44 = vrot.slane %v11115_v14, %v19864_v41 }
 0x382   : > { %4619 = vrot.lane.b32.xlu0 %v4606_v56, %s12217_s27  ;;  %4621 = vrot.lane.b32.xlu1 %v4610_v39, %s12217_s27  ;;  %v4946_v39 = vrot.slane %v11115_v14, %v19866_v27 }
 0x384   : > { %11442 = vmatmul.mubr.msk.f32.vlgmr.msra.gmra.mrb[28].mxu1 %vm469_vm4, %v4156_v24  ;;  %v4954_v24 = vrot.slane %v11115_v14, %v19788_v34 }
 0x385   : > { %4304 = vmatprep.mubr.f32.mxu1 %v19867_v8 }
 0x386   : > { %4623 = vrot.lane.b32.xlu0 %v4614_v55, %s12217_s27  ;;  %4625 = vrot.lane.b32.xlu1 %v4618_v19, %s12217_s27  ;;  %v4950_v55 = vrot.slane %v11115_v14, %v19762_v51 }
 0x3f0   : > { %v15086_v7 = vpop.permute.xlu0 %4568  ;;  %v15152_v48 = vpop.permute.xlu1 %4558 }
 0x3f1   : > { %19870 = vst [vmem:[#allocation25_spill] sm:$0xff] %v15086_v7  ;;  %19873 = vst [vmem:[#allocation10_spill] sm:$0xff] %v15152_v48 }
 0x3f4   : > { %v15088_v20 = vpop.permute.xlu0 %4619  ;;  %v15154_v53 = vpop.permute.xlu1 %4621 }
 0x3f5   : > { %v4635_v4 = vmul.f32 0.0, %v15088_v20 }
 0x3f7   : > { %4665 = vrot.lane.b32.xlu1 %v4635_v4, %s12217_s27  ;;  %4655 = vrot.lane.b32.xlu0 %v4635_v4, %s12217_s27 }
 0x3f8   : > { %v15156_v26 = vpop.permute.xlu1 %4625  ;;  %v15182_v19 = vpop.permute.xlu0 %4623 }
 0x3fb   : > { %4720 = vrot.lane.b32.xlu1 %v4709_v16, %s12218_s30  ;;  %4718 = vrot.lane.b32.xlu0 %v4705_v36, %s12218_s30 }
 0x3ff   : > { %4724 = vrot.lane.b32.xlu1 %v4717_v3, %s12218_s30  ;;  %4722 = vrot.lane.b32.xlu0 %v4713_v57, %s12218_s30 }
 0x403   : > { %4858 = vrot.lane.b32.xlu1 %v4847_v62, %s12219_s17  ;;  %4856 = vrot.lane.b32.xlu0 %v4843_v29, %s12219_s17 }
 0x407   : > { %4862 = vrot.lane.b32.xlu1 %v4855_v6, %s12219_s17  ;;  %4860 = vrot.lane.b32.xlu0 %v4851_v5, %s12219_s17 }
 0x44f   : > { %v3946_v54 = vpop.f32.mrb[24].mxu1  ;;  %v4100_v9 = vpop.f32.mrb[26].mxu0 }
 0x450   : > { %v15122_v23 = vadd.f32 %v3946_v54, %v3786_v1  ;;  %v15124_v50 = vadd.f32 %v4100_v9, %v3794_v22  ;;  %v3948_v10 = vpop.f32.mrb[25].mxu1  ;;  %v4102_v52 = vpop.f32.mrb[27].mxu0 }
 0x451   : > { %v15126_v60 = vadd.f32 %v3948_v10, %v3790_v47  ;;  %v15128_v25 = vadd.f32 %v4102_v52, %v3798_v38 }
 0x453   : > { %v3952_v43 = vpop.f32.mrb[26].mxu1  ;;  %v4106_v2 = vpop.f32.mrb[28].mxu0 }
 0x454   : > { %v15136_v58 = vadd.f32 %v3952_v43, %v3786_v1  ;;  %v15138_v46 = vadd.f32 %v4106_v2, %v3794_v22  ;;  %v3954_v17 = vpop.f32.mrb[27].mxu1  ;;  %v4108_v61 = vpop.f32.mrb[29].mxu0  ;;  %v11133_v1 = vld [vmem:[%s19320_s6 + $0x20] ss:$8 sm:$0xf] }
 0x455   : > { %v15140_v18 = vadd.f32 %v3954_v17, %v3790_v47  ;;  %v15142_v42 = vadd.f32 %v4108_v61, %v3798_v38  ;;  %v5397_v47 = vrot.slane %v11133_v1, %v19864_v41  ;;  %v5401_v38 = vrot.slane %v11133_v1, %v19866_v27  ;;  %v11134_v61 = vld [vmem:[%s19320_s6 + $0x21] ss:$8 sm:$0xf] }
 0x456   : > { %v5405_v54 = vrot.slane %v11133_v1, %v19762_v51  ;;  %v5409_v9 = vrot.slane %v11133_v1, %v19788_v34 }
 0x457   : > { %v15148_v40 = vpop.f32.mrb[28].mxu1 }
 0x458   : > { %19871 = vst [vmem:[#allocation36_spill] sm:$0xff] %v15148_v40  ;;  %v15150_v37 = vpop.f32.mrb[29].mxu1 }
 0x459   : > { %19872 = vst [vmem:[#allocation11_spill] sm:$0xff] %v15150_v37 }
 0x469   : > { %v15158_v30 = vpop.permute.xlu1 %4665  ;;  %v15184_v63 = vpop.permute.xlu0 %4655 }
 0x46a   : > { %19874 = vst [vmem:[#allocation12_spill] sm:$0xff] %v15158_v30  ;;  %19875 = vst [vmem:[#allocation13_spill] sm:$0xff] %v15184_v63 }
 0x46d   : > { %v15160_v45 = vpop.permute.xlu1 %4720  ;;  %v15186_v4 = vpop.permute.xlu0 %4718 }
 0x471   : > { %v15162_v11 = vpop.permute.xlu1 %4724  ;;  %v15188_v16 = vpop.permute.xlu0 %4722 }
 0x475   : > { %v15164_v59 = vpop.permute.xlu1 %4858  ;;  %v15190_v36 = vpop.permute.xlu0 %4856 }
 0x479   : > { %v15166_v0 = vpop.permute.xlu1 %4862  ;;  %v15192_v3 = vpop.permute.xlu0 %4860 }
 0x47a   : > { %v4876_v56 = vmul.f32 0.0, %v15166_v0 }
 0x47c   : > { %4910 = vrot.lane.b32.xlu1 %v4876_v56, %s12218_s30  ;;  %4900 = vrot.lane.b32.xlu0 %v4876_v56, %s12218_s30  ;;  %v5496_v56 = vrot.slane %v11134_v61, %v19864_v41 }
 0x480   : > { %4957 = vrot.lane.b32.xlu1 %v4946_v39, %s12217_s27  ;;  %4955 = vrot.lane.b32.xlu0 %v4942_v44, %s12217_s27  ;;  %v5500_v39 = vrot.slane %v11134_v61, %v19866_v27  ;;  %v5504_v44 = vrot.slane %v11134_v61, %v19762_v51 }
 0x484   : > { %4961 = vrot.lane.b32.xlu1 %v4954_v24, %s12217_s27  ;;  %4959 = vrot.lane.b32.xlu0 %v4950_v55, %s12217_s27  ;;  %v5508_v24 = vrot.slane %v11134_v61, %v19788_v34  ;;  %v11137_v61 = vld [vmem:[%s19320_s6 + $0x24] ss:$8 sm:$0xf] }
 0x4ee   : > { %v15194_v57 = vpop.permute.xlu1 %4910  ;;  %v15196_v12 = vpop.permute.xlu0 %4900 }
 0x4ef   : > { %19876 = vst [vmem:[#allocation31_spill] sm:$0xff] %v15194_v57  ;;  %19877 = vst [vmem:[#allocation40_spill] sm:$0xff] %v15196_v12 }
 0x4f2   : > { %v15198_v62 = vpop.permute.xlu1 %4957  ;;  %v15200_v29 = vpop.permute.xlu0 %4955 }
 0x4f6   : > { %v15202_v6 = vpop.permute.xlu1 %4961  ;;  %v15204_v5 = vpop.permute.xlu0 %4959 }
 0x4f7   : > { %v4965_v21 = vsel %vm446_vm0, %v15204_v5, %v15202_v6 }
 0x4f8   : > { %v4974_v22 = vmul.f32 0.0, %v4965_v21 }
 0x4fa   : > { %5007 = vrot.lane.b32.xlu0 %v4974_v22, %s12217_s27  ;;  %4997 = vrot.lane.b32.xlu1 %v4974_v22, %s12217_s27  ;;  %v11135_v22 = vld [vmem:[%s19320_s6 + $0x22] ss:$8 sm:$0xf] }
 0x4fe   : > { %5410 = vrot.lane.b32.xlu0 %v5397_v47, %s12219_s17  ;;  %5412 = vrot.lane.b32.xlu1 %v5401_v38, %s12219_s17  ;;  %v5595_v38 = vrot.slane %v11135_v22, %v19864_v41 }
 0x502   : > { %5414 = vrot.lane.b32.xlu0 %v5405_v54, %s12219_s17  ;;  %5416 = vrot.lane.b32.xlu1 %v5409_v9, %s12219_s17  ;;  %v5599_v54 = vrot.slane %v11135_v22, %v19866_v27  ;;  %v5603_v9 = vrot.slane %v11135_v22, %v19762_v51 }
 0x56c   : > { %v15222_v10 = vpop.permute.xlu0 %5007  ;;  %v15224_v52 = vpop.permute.xlu1 %4997 }
 0x56d   : > { %19878 = vst [vmem:[#allocation42_spill] sm:$0xff] %v15222_v10  ;;  %19879 = vst [vmem:[#allocation28_spill] sm:$0xff] %v15224_v52  ;;  %v11156_v10 = vld [vmem:[%s19320_s6 + $0x27] ss:$8 sm:$0xf] }
 0x56e   : > { %v6295_v30 = vrot.slane %v11156_v10, %v19762_v51  ;;  %v6299_v7 = vrot.slane %v11156_v10, %v19788_v34 }
 0x570   : > { %v15226_v43 = vpop.permute.xlu0 %5410  ;;  %v15228_v2 = vpop.permute.xlu1 %5412 }
 0x571   : > { %v5418_v17 = vsel %vm811_vm6, %v15226_v43, %v15228_v2 }
 0x572   : > { %v5427_v14 = vmul.f32 0.0, %v5418_v17  ;;  %v5607_v17 = vrot.slane %v11135_v22, %v19788_v34 }
 0x574   : > { %5458 = vrot.lane.b32.xlu0 %v5427_v14, %s12218_s30  ;;  %5448 = vrot.lane.b32.xlu1 %v5427_v14, %s12218_s30  ;;  %v15246_v55 = vpop.permute.xlu0 %5414  ;;  %v5733_v14 = vrot.slane %v11137_v61, %v19864_v41 }
 0x578   : > { %5509 = vrot.lane.b32.xlu0 %v5496_v56, %s12217_s27  ;;  %5511 = vrot.lane.b32.xlu1 %v5500_v39, %s12217_s27  ;;  %v5737_v56 = vrot.slane %v11137_v61, %v19866_v27  ;;  %v5741_v39 = vrot.slane %v11137_v61, %v19762_v51 }
 0x57c   : > { %5513 = vrot.lane.b32.xlu0 %v5504_v44, %s12217_s27  ;;  %5515 = vrot.lane.b32.xlu1 %v5508_v24, %s12217_s27  ;;  %v5745_v44 = vrot.slane %v11137_v61, %v19788_v34  ;;  %v15277_v24 = vpop.permute.xlu1 %5416 }
 0x5e6   : > { %v15248_v21 = vpop.permute.xlu0 %5458  ;;  %v15279_v22 = vpop.permute.xlu1 %5448 }
 0x5e7   : > { %19880 = vst [vmem:[#allocation41_spill] sm:$0xff] %v15248_v21  ;;  %19881 = vst [vmem:[#allocation32_spill] sm:$0xff] %v15279_v22 }
 0x5ea   : > { %v15250_v1 = vpop.permute.xlu0 %5509 }
 0x5eb   : > { %v5525_v47 = vmul.f32 0.0, %v15250_v1 }
 0x5ed   : > { %5545 = vrot.lane.b32.xlu0 %v5525_v47, %s12217_s27  ;;  %5555 = vrot.lane.b32.xlu1 %v5525_v47, %s12217_s27  ;;  %v15281_v47 = vpop.permute.xlu1 %5511 }
 0x5ee   : > { %v15309_v33 = vpop.permute.xlu0 %5513 }
 0x5f1   : > { %5608 = vrot.lane.b32.xlu0 %v5595_v38, %s12218_s30  ;;  %5610 = vrot.lane.b32.xlu1 %v5599_v54, %s12218_s30  ;;  %v15283_v38 = vpop.permute.xlu1 %5515 }
 0x5f5   : > { %5612 = vrot.lane.b32.xlu0 %v5603_v9, %s12218_s30  ;;  %5614 = vrot.lane.b32.xlu1 %v5607_v17, %s12218_s30 }
 0x5f9   : > { %5746 = vrot.lane.b32.xlu0 %v5733_v14, %s12219_s17  ;;  %5748 = vrot.lane.b32.xlu1 %v5737_v56, %s12219_s17  ;;  %v11138_v56 = vld [vmem:[%s19320_s6 + $0x25] ss:$8 sm:$0xf] }
 0x5fa   : > { %v5832_v13 = vrot.slane %v11138_v56, %v19864_v41  ;;  %v5844_v28 = vrot.slane %v11138_v56, %v19788_v34  ;;  %v5840_v35 = vrot.slane %v11138_v56, %v19762_v51 }
 0x5fd   : > { %5750 = vrot.lane.b32.xlu0 %v5741_v39, %s12219_s17  ;;  %5752 = vrot.lane.b32.xlu1 %v5745_v44, %s12219_s17  ;;  %v5836_v44 = vrot.slane %v11138_v56, %v19866_v27 }
 0x65f   : > { %v15285_v54 = vpop.permute.xlu1 %5555 }
 0x660   : > { %19882 = vst [vmem:[#allocation56_spill] sm:$0xff] %v15285_v54  ;;  %v15311_v54 = vpop.permute.xlu0 %5545 }
 0x661   : > { %19884 = vst [vmem:[#allocation33_spill] sm:$0xff] %v15311_v54 }
 0x663   : > { %v15287_v9 = vpop.permute.xlu1 %5610 }
 0x667   : > { %v15289_v17 = vpop.permute.xlu1 %5614 }
 0x66b   : > { %v15291_v14 = vpop.permute.xlu1 %5748 }
 0x66f   : > { %v15293_v61 = vpop.permute.xlu1 %5752 }
 0x670   : > { %19883 = vst [vmem:[#allocation64_spill] sm:$0xff] %v15293_v61  ;;  %v5766_v39 = vmul.f32 0.0, %v15293_v61 }
 0x672   : > { %5800 = vrot.lane.b32.xlu1 %v5766_v39, %s12218_s30  ;;  %5790 = vrot.lane.b32.xlu0 %v5766_v39, %s12218_s30  ;;  %v15313_v39 = vpop.permute.xlu0 %5608 }
 0x676   : > { %5847 = vrot.lane.b32.xlu1 %v5836_v44, %s12217_s27  ;;  %5845 = vrot.lane.b32.xlu0 %v5832_v13, %s12217_s27  ;;  %v15315_v21 = vpop.permute.xlu0 %5612 }
 0x67a   : > { %5851 = vrot.lane.b32.xlu1 %v5844_v28, %s12217_s27  ;;  %5849 = vrot.lane.b32.xlu0 %v5840_v35, %s12217_s27  ;;  %v15317_v22 = vpop.permute.xlu0 %5746 }
 0x67e   : > { %v15319_v44 = vpop.permute.xlu0 %5750 }
 0x6e4   : > { %v15321_v13 = vpop.permute.xlu1 %5800  ;;  %v15323_v52 = vpop.permute.xlu0 %5790 }
 0x6e5   : > { %19885 = vst [vmem:[#allocation39_spill] sm:$0xff] %v15321_v13  ;;  %19886 = vst [vmem:[#allocation38_spill] sm:$0xff] %v15323_v52  ;;  %v6287_v52 = vrot.slane %v11156_v10, %v19864_v41  ;;  %v6291_v13 = vrot.slane %v11156_v10, %v19866_v27  ;;  %v11157_v10 = vld [vmem:[%s19320_s6 + $0x40] ss:$8 sm:$0xf] }
 0x6e8   : > { %v15325_v56 = vpop.permute.xlu1 %5847  ;;  %v15327_v28 = vpop.permute.xlu0 %5845 }
 0x6ec   : > { %v15329_v35 = vpop.permute.xlu1 %5851  ;;  %v15331_v12 = vpop.permute.xlu0 %5849 }
 0x6ed   : > { %19887 = vst [vmem:[#allocation44_spill] sm:$0xff] %v15331_v12  ;;  %v5855_v54 = vsel %vm446_vm0, %v15331_v12, %v15329_v35 }
 0x6ee   : > { %v5864_v57 = vmul.f32 0.0, %v5855_v54 }
 0x6f0   : > { %5897 = vrot.lane.b32.xlu0 %v5864_v57, %s12217_s27  ;;  %5887 = vrot.lane.b32.xlu1 %v5864_v57, %s12217_s27 }
 0x6f4   : > { %6300 = vrot.lane.b32.xlu0 %v6287_v52, %s12219_s17  ;;  %6302 = vrot.lane.b32.xlu1 %v6291_v13, %s12219_s17 }
 0x6f8   : > { %6304 = vrot.lane.b32.xlu0 %v6295_v30, %s12219_s17  ;;  %6306 = vrot.lane.b32.xlu1 %v6299_v7, %s12219_s17  ;;  %v6386_v7 = vrot.slane %v11157_v10, %v19864_v41  ;;  %v6390_v30 = vrot.slane %v11157_v10, %v19866_v27 }
 0x762   : > { %v15349_v54 = vpop.permute.xlu0 %5897  ;;  %v15351_v12 = vpop.permute.xlu1 %5887 }
 0x763   : > { %19888 = vst [vmem:[#allocation47_spill] sm:$0xff] %v15349_v54  ;;  %19889 = vst [vmem:[#allocation45_spill] sm:$0xff] %v15351_v12  ;;  %v6394_v12 = vrot.slane %v11157_v10, %v19762_v51  ;;  %v6398_v54 = vrot.slane %v11157_v10, %v19788_v34 }
 0x766   : > { %v15353_v57 = vpop.permute.xlu0 %6300  ;;  %v15355_v61 = vpop.permute.xlu1 %6302 }
 0x767   : > { %19890 = vst [vmem:[#allocation46_spill] sm:$0xff] %v15353_v57  ;;  %19891 = vst [vmem:[#allocation66_spill] sm:$0xff] %v15355_v61  ;;  %v6308_v52 = vsel %vm811_vm6, %v15353_v57, %v15355_v61 }
 0x768   : > { %v6317_v13 = vmul.f32 0.0, %v6308_v52 }
 0x76a   : > { %6348 = vrot.lane.b32.xlu0 %v6317_v13, %s12218_s30  ;;  %6338 = vrot.lane.b32.xlu1 %v6317_v13, %s12218_s30  ;;  %v15373_v52 = vpop.permute.xlu0 %6304 }
 0x76b   : > { %19892 = vst [vmem:[#allocation14_spill] sm:$0xff] %v15373_v52  ;;  %v11160_v52 = vld [vmem:[%s19320_s6 + $0x43] ss:$8 sm:$0xf] }
 0x76e   : > { %6399 = vrot.lane.b32.xlu0 %v6386_v7, %s12217_s27  ;;  %6401 = vrot.lane.b32.xlu1 %v6390_v30, %s12217_s27  ;;  %v11158_v7 = vld [vmem:[%s19320_s6 + $0x41] ss:$8 sm:$0xf] }
 0x76f   : > { %v6493_v10 = vrot.slane %v11158_v7, %v19762_v51 }
 0x772   : > { %6403 = vrot.lane.b32.xlu0 %v6394_v12, %s12217_s27  ;;  %6405 = vrot.lane.b32.xlu1 %v6398_v54, %s12217_s27  ;;  %v6485_v12 = vrot.slane %v11158_v7, %v19864_v41  ;;  %v6489_v54 = vrot.slane %v11158_v7, %v19866_v27 }
 0x7dc   : > { %v15375_v61 = vpop.permute.xlu0 %6348 }
 0x7dd   : > { %19893 = vst [vmem:[#allocation73_spill] sm:$0xff] %v15375_v61  ;;  %v6497_v61 = vrot.slane %v11158_v7, %v19788_v34  ;;  %v6635_v7 = vrot.slane %v11160_v52, %v19788_v34 }
 0x7e0   : > { %v15377_v13 = vpop.permute.xlu0 %6399 }
 0x7e1   : > { %19894 = vst [vmem:[#allocation61_spill] sm:$0xff] %v15377_v13  ;;  %v6415_v30 = vmul.f32 0.0, %v15377_v13  ;;  %v6627_v13 = vrot.slane %v11160_v52, %v19866_v27 }
 0x7e3   : > { %6435 = vrot.lane.b32.xlu0 %v6415_v30, %s12217_s27  ;;  %6445 = vrot.lane.b32.xlu1 %v6415_v30, %s12217_s27  ;;  %v6623_v30 = vrot.slane %v11160_v52, %v19864_v41 }
 0x7e7   : > { %6498 = vrot.lane.b32.xlu0 %v6485_v12, %s12218_s30  ;;  %6500 = vrot.lane.b32.xlu1 %v6489_v54, %s12218_s30  ;;  %v6631_v12 = vrot.slane %v11160_v52, %v19762_v51  ;;  %v15404_v54 = vpop.permute.xlu1 %6306 }
 0x7e8   : > { %19895 = vst [vmem:[#allocation18_spill] sm:$0xff] %v15404_v54 }
 0x7eb   : > { %6502 = vrot.lane.b32.xlu0 %v6493_v10, %s12218_s30  ;;  %6504 = vrot.lane.b32.xlu1 %v6497_v61, %s12218_s30  ;;  %v15406_v10 = vpop.permute.xlu1 %6338 }
 0x7ec   : > { %19896 = vst [vmem:[#allocation50_spill] sm:$0xff] %v15406_v10 }
 0x7ef   : > { %6636 = vrot.lane.b32.xlu0 %v6623_v30, %s12219_s17  ;;  %6638 = vrot.lane.b32.xlu1 %v6627_v13, %s12219_s17  ;;  %v15408_v61 = vpop.permute.xlu1 %6401 }
 0x7f0   : > { %19897 = vst [vmem:[#allocation22_spill] sm:$0xff] %v15408_v61 }
 0x7f3   : > { %6640 = vrot.lane.b32.xlu0 %v6631_v12, %s12219_s17  ;;  %6642 = vrot.lane.b32.xlu1 %v6635_v7, %s12219_s17  ;;  %v15410_v57 = vpop.permute.xlu1 %6405  ;;  %v11161_v12 = vld [vmem:[%s19320_s6 + $0x44] ss:$8 sm:$0xf] }
 0x7f4   : > { %19898 = vst [vmem:[#allocation34_spill] sm:$0xff] %v15410_v57  ;;  %v6722_v10 = vrot.slane %v11161_v12, %v19864_v41 }
 0x855   : > { %v15412_v63 = vpop.permute.xlu1 %6445 }
 0x856   : > { %19899 = vst [vmem:[#allocation15_spill] sm:$0xff] %v15412_v63  ;;  %v6726_v63 = vrot.slane %v11161_v12, %v19866_v27 }
 0x859   : > { %v15414_v30 = vpop.permute.xlu1 %6500 }
 0x85a   : > { %19900 = vst [vmem:[#allocation68_spill] sm:$0xff] %v15414_v30  ;;  %v6730_v30 = vrot.slane %v11161_v12, %v19762_v51 }
 0x85d   : > { %v15416_v13 = vpop.permute.xlu1 %6504 }
 0x85e   : > { %19901 = vst [vmem:[#allocation19_spill] sm:$0xff] %v15416_v13  ;;  %v6734_v13 = vrot.slane %v11161_v12, %v19788_v34 }
 0x861   : > { %v15418_v48 = vpop.permute.xlu1 %6638 }
 0x862   : > { %19902 = vst [vmem:[#allocation51_spill] sm:$0xff] %v15418_v48 }
 0x865   : > { %v15420_v52 = vpop.permute.xlu1 %6642 }
 0x866   : > { %19903 = vst [vmem:[#allocation23_spill] sm:$0xff] %v15420_v52  ;;  %v6656_v7 = vmul.f32 0.0, %v15420_v52  ;;  %v15436_v52 = vpop.permute.xlu0 %6403 }
 0x867   : > { %19904 = vst [vmem:[#allocation59_spill] sm:$0xff] %v15436_v52 }
 0x868   : > { %6690 = vrot.lane.b32.xlu1 %v6656_v7, %s12218_s30  ;;  %6680 = vrot.lane.b32.xlu0 %v6656_v7, %s12218_s30 }
 0x86a   : > { %v15438_v48 = vpop.permute.xlu0 %6435 }
 0x86b   : > { %19905 = vst [vmem:[#allocation35_spill] sm:$0xff] %v15438_v48 }
 0x86c   : > { %6737 = vrot.lane.b32.xlu1 %v6726_v63, %s12217_s27  ;;  %6735 = vrot.lane.b32.xlu0 %v6722_v10, %s12217_s27 }
 0x86e   : > { %v15440_v7 = vpop.permute.xlu0 %6498 }
 0x86f   : > { %19906 = vst [vmem:[#allocation54_spill] sm:$0xff] %v15440_v7 }
 0x870   : > { %6741 = vrot.lane.b32.xlu1 %v6734_v13, %s12217_s27  ;;  %6739 = vrot.lane.b32.xlu0 %v6730_v30, %s12217_s27 }
 0x872   : > { %v15442_v54 = vpop.permute.xlu0 %6502 }
 0x873   : > { %19907 = vst [vmem:[#allocation16_spill] sm:$0xff] %v15442_v54 }
 0x876   : > { %v15444_v57 = vpop.permute.xlu0 %6636 }
 0x877   : > { %19908 = vst [vmem:[#allocation67_spill] sm:$0xff] %v15444_v57 }
 0x87a   : > { %v15446_v63 = vpop.permute.xlu0 %6640 }
 0x87b   : > { %19909 = vst [vmem:[#allocation20_spill] sm:$0xff] %v15446_v63  ;;  %v11179_v63 = vld [vmem:[%s19320_s6 + $0x46] ss:$8 sm:$0xf] }
 0x8da   : > { %v15448_v10 = vpop.permute.xlu1 %6690  ;;  %v15450_v61 = vpop.permute.xlu0 %6680 }
 0x8db   : > { %19910 = vst [vmem:[#allocation26_spill] sm:$0xff] %v15448_v10  ;;  %19911 = vst [vmem:[#allocation17_spill] sm:$0xff] %v15450_v61  ;;  %v7177_v61 = vrot.slane %v11179_v63, %v19864_v41  ;;  %v7181_v10 = vrot.slane %v11179_v63, %v19866_v27 }
 0x8de   : > { %v15452_v12 = vpop.permute.xlu1 %6737  ;;  %v15454_v13 = vpop.permute.xlu0 %6735 }
 0x8df   : > { %19912 = vst [vmem:[#allocation21_spill] sm:$0xff] %v15452_v12  ;;  %19913 = vst [vmem:[#allocation53_spill] sm:$0xff] %v15454_v13  ;;  %v7185_v12 = vrot.slane %v11179_v63, %v19762_v51 }
 0x8e2   : > { %v15456_v30 = vpop.permute.xlu1 %6741  ;;  %v15458_v52 = vpop.permute.xlu0 %6739 }
 0x8e3   : > { %19914 = vst [vmem:[#allocation27_spill] sm:$0xff] %v15456_v30  ;;  %19915 = vst [vmem:[#allocation62_spill] sm:$0xff] %v15458_v52  ;;  %v6745_v48 = vsel %vm446_vm0, %v15458_v52, %v15456_v30  ;;  %v7189_v52 = vrot.slane %v11179_v63, %v19788_v34  ;;  %v11180_v63 = vld [vmem:[%s19320_s6 + $0x47] ss:$8 sm:$0xf] }
 0x8e4   : > { %v6754_v54 = vmul.f32 0.0, %v6745_v48 }
 0x8e6   : > { %6787 = vrot.lane.b32.xlu0 %v6754_v54, %s12217_s27  ;;  %6777 = vrot.lane.b32.xlu1 %v6754_v54, %s12217_s27 }
 0x8ea   : > { %7190 = vrot.lane.b32.xlu0 %v7177_v61, %s12219_s17  ;;  %7192 = vrot.lane.b32.xlu1 %v7181_v10, %s12219_s17 }
 0x8ee   : > { %7194 = vrot.lane.b32.xlu0 %v7185_v12, %s12219_s17  ;;  %7196 = vrot.lane.b32.xlu1 %v7189_v52, %s12219_s17  ;;  %v7276_v52 = vrot.slane %v11180_v63, %v19864_v41  ;;  %v7280_v12 = vrot.slane %v11180_v63, %v19866_v27 }
 0x958   : > { %v15476_v48 = vpop.permute.xlu0 %6787  ;;  %v15478_v13 = vpop.permute.xlu1 %6777 }
 0x959   : > { %19916 = vst [vmem:[#allocation57_spill] sm:$0xff] %v15476_v48  ;;  %19917 = vst [vmem:[#allocation72_spill] sm:$0xff] %v15478_v13  ;;  %v7284_v13 = vrot.slane %v11180_v63, %v19762_v51  ;;  %v7288_v48 = vrot.slane %v11180_v63, %v19788_v34 }
 0x95c   : > { %v15480_v54 = vpop.permute.xlu0 %7190  ;;  %v15482_v7 = vpop.permute.xlu1 %7192 }
 0x95d   : > { %19918 = vst [vmem:[#allocation49_spill] sm:$0xff] %v15480_v54  ;;  %19919 = vst [vmem:[#allocation52_spill] sm:$0xff] %v15482_v7  ;;  %v7198_v61 = vsel %vm811_vm6, %v15480_v54, %v15482_v7 }
 0x95e   : > { %v7207_v10 = vmul.f32 0.0, %v7198_v61 }
 0x960   : > { %7238 = vrot.lane.b32.xlu0 %v7207_v10, %s12218_s30  ;;  %7228 = vrot.lane.b32.xlu1 %v7207_v10, %s12218_s30  ;;  %v15500_v61 = vpop.permute.xlu0 %7194 }
 0x961   : > { %19920 = vst [vmem:[#allocation78_spill] sm:$0xff] %v15500_v61  ;;  %v11183_v61 = vld [vmem:[%s19320_s6 + $0x62] ss:$8 sm:$0xf] }
 0x964   : > { %7289 = vrot.lane.b32.xlu0 %v7276_v52, %s12217_s27  ;;  %7291 = vrot.lane.b32.xlu1 %v7280_v12, %s12217_s27  ;;  %v11181_v52 = vld [vmem:[%s19320_s6 + $0x60] ss:$8 sm:$0xf] }
 0x965   : > { %v7383_v63 = vrot.slane %v11181_v52, %v19762_v51 }
 0x968   : > { %7293 = vrot.lane.b32.xlu0 %v7284_v13, %s12217_s27  ;;  %7295 = vrot.lane.b32.xlu1 %v7288_v48, %s12217_s27  ;;  %v7375_v13 = vrot.slane %v11181_v52, %v19864_v41  ;;  %v7379_v48 = vrot.slane %v11181_v52, %v19866_v27 }
 0x9d2   : > { %v15502_v7 = vpop.permute.xlu0 %7238 }
 0x9d3   : > { %19921 = vst [vmem:[#allocation96_spill] sm:$0xff] %v15502_v7  ;;  %v7387_v7 = vrot.slane %v11181_v52, %v19788_v34  ;;  %v7525_v52 = vrot.slane %v11183_v61, %v19788_v34 }
 0x9d6   : > { %v15504_v10 = vpop.permute.xlu0 %7289 }
 0x9d7   : > { %19922 = vst [vmem:[#allocation77_spill] sm:$0xff] %v15504_v10  ;;  %v7305_v12 = vmul.f32 0.0, %v15504_v10  ;;  %v7517_v10 = vrot.slane %v11183_v61, %v19866_v27 }
 0x9d9   : > { %7325 = vrot.lane.b32.xlu0 %v7305_v12, %s12217_s27  ;;  %7335 = vrot.lane.b32.xlu1 %v7305_v12, %s12217_s27  ;;  %v7513_v12 = vrot.slane %v11183_v61, %v19864_v41 }
 0x9dd   : > { %7388 = vrot.lane.b32.xlu0 %v7375_v13, %s12218_s30  ;;  %7390 = vrot.lane.b32.xlu1 %v7379_v48, %s12218_s30  ;;  %v7521_v13 = vrot.slane %v11183_v61, %v19762_v51  ;;  %v15531_v48 = vpop.permute.xlu1 %7196 }
 0x9de   : > { %19923 = vst [vmem:[#allocation30_spill] sm:$0xff] %v15531_v48 }
 0x9e1   : > { %7392 = vrot.lane.b32.xlu0 %v7383_v63, %s12218_s30  ;;  %7394 = vrot.lane.b32.xlu1 %v7387_v7, %s12218_s30  ;;  %v15533_v63 = vpop.permute.xlu1 %7228 }
 0x9e2   : > { %19924 = vst [vmem:[#allocation43_spill] sm:$0xff] %v15533_v63 }
 0x9e5   : > { %7526 = vrot.lane.b32.xlu0 %v7513_v12, %s12219_s17  ;;  %7528 = vrot.lane.b32.xlu1 %v7517_v10, %s12219_s17  ;;  %v15535_v7 = vpop.permute.xlu1 %7291 }
 0x9e6   : > { %19925 = vst [vmem:[#allocation37_spill] sm:$0xff] %v15535_v7 }
 0x9e9   : > { %7530 = vrot.lane.b32.xlu0 %v7521_v13, %s12219_s17  ;;  %7532 = vrot.lane.b32.xlu1 %v7525_v52, %s12219_s17  ;;  %v15537_v54 = vpop.permute.xlu1 %7295  ;;  %v11184_v13 = vld [vmem:[%s19320_s6 + $0x63] ss:$8 sm:$0xf] }
 0x9ea   : > { %19926 = vst [vmem:[#allocation55_spill] sm:$0xff] %v15537_v54  ;;  %v7612_v63 = vrot.slane %v11184_v13, %v19864_v41 }
 0xa4b   : > { %v15539_v57 = vpop.permute.xlu1 %7335 }
 0xa4c   : > { %19927 = vst [vmem:[#allocation65_spill] sm:$0xff] %v15539_v57  ;;  %v7616_v57 = vrot.slane %v11184_v13, %v19866_v27 }
 0xa4f   : > { %v15541_v12 = vpop.permute.xlu1 %7390 }
 0xa50   : > { %19928 = vst [vmem:[#allocation60_spill] sm:$0xff] %v15541_v12  ;;  %v7620_v12 = vrot.slane %v11184_v13, %v19762_v51 }
 0xa53   : > { %v15543_v10 = vpop.permute.xlu1 %7394 }
 0xa54   : > { %19929 = vst [vmem:[#allocation83_spill] sm:$0xff] %v15543_v10  ;;  %v7624_v10 = vrot.slane %v11184_v13, %v19788_v34 }
 0xa57   : > { %v15545_v30 = vpop.permute.xlu1 %7528 }
 0xa58   : > { %19930 = vst [vmem:[#allocation70_spill] sm:$0xff] %v15545_v30 }
 0xa5b   : > { %v15547_v61 = vpop.permute.xlu1 %7532 }
 0xa5c   : > { %19931 = vst [vmem:[#allocation80_spill] sm:$0xff] %v15547_v61  ;;  %v7546_v52 = vmul.f32 0.0, %v15547_v61  ;;  %v15563_v61 = vpop.permute.xlu0 %7293 }
 0xa5d   : > { %19932 = vst [vmem:[#allocation48_spill] sm:$0xff] %v15563_v61 }
 0xa5e   : > { %7580 = vrot.lane.b32.xlu1 %v7546_v52, %s12218_s30  ;;  %7570 = vrot.lane.b32.xlu0 %v7546_v52, %s12218_s30 }
 0xa60   : > { %v15565_v30 = vpop.permute.xlu0 %7325 }
 0xa61   : > { %19933 = vst [vmem:[#allocation105_spill] sm:$0xff] %v15565_v30 }
 0xa62   : > { %7627 = vrot.lane.b32.xlu1 %v7616_v57, %s12217_s27  ;;  %7625 = vrot.lane.b32.xlu0 %v7612_v63, %s12217_s27 }
 0xa64   : > { %v15567_v52 = vpop.permute.xlu0 %7388 }
 0xa65   : > { %19934 = vst [vmem:[#allocation84_spill] sm:$0xff] %v15567_v52 }
 0xa66   : > { %7631 = vrot.lane.b32.xlu1 %v7624_v10, %s12217_s27  ;;  %7629 = vrot.lane.b32.xlu0 %v7620_v12, %s12217_s27 }
 0xa68   : > { %v15569_v48 = vpop.permute.xlu0 %7392 }
 0xa69   : > { %19935 = vst [vmem:[#allocation94_spill] sm:$0xff] %v15569_v48 }
 0xa6c   : > { %v15571_v54 = vpop.permute.xlu0 %7526 }
 0xa6d   : > { %19936 = vst [vmem:[#allocation95_spill] sm:$0xff] %v15571_v54 }
 0xa70   : > { %v15573_v57 = vpop.permute.xlu0 %7530 }
 0xa71   : > { %19937 = vst [vmem:[#allocation92_spill] sm:$0xff] %v15573_v57  ;;  %v11202_v57 = vld [vmem:[%s19320_s6 + $0x65] ss:$8 sm:$0xf] }
 0xad0   : > { %v15575_v63 = vpop.permute.xlu1 %7580  ;;  %v15577_v7 = vpop.permute.xlu0 %7570 }
 0xad1   : > { %19938 = vst [vmem:[#allocation100_spill] sm:$0xff] %v15575_v63  ;;  %19939 = vst [vmem:[#allocation91_spill] sm:$0xff] %v15577_v7  ;;  %v8067_v7 = vrot.slane %v11202_v57, %v19864_v41  ;;  %v8071_v63 = vrot.slane %v11202_v57, %v19866_v27 }
 0xad4   : > { %v15579_v13 = vpop.permute.xlu1 %7627  ;;  %v15581_v10 = vpop.permute.xlu0 %7625 }
 0xad5   : > { %19940 = vst [vmem:[#allocation89_spill] sm:$0xff] %v15579_v13  ;;  %19941 = vst [vmem:[#allocation71_spill] sm:$0xff] %v15581_v10  ;;  %v8075_v13 = vrot.slane %v11202_v57, %v19762_v51 }
 0xad8   : > { %v15583_v12 = vpop.permute.xlu1 %7631  ;;  %v15585_v61 = vpop.permute.xlu0 %7629 }
 0xad9   : > { %19942 = vst [vmem:[#allocation97_spill] sm:$0xff] %v15583_v12  ;;  %19943 = vst [vmem:[#allocation74_spill] sm:$0xff] %v15585_v61  ;;  %v7635_v30 = vsel %vm446_vm0, %v15585_v61, %v15583_v12  ;;  %v8079_v61 = vrot.slane %v11202_v57, %v19788_v34  ;;  %v11203_v57 = vld [vmem:[%s19320_s6 + $0x66] ss:$8 sm:$0xf] }
 0xada   : > { %v7644_v48 = vmul.f32 0.0, %v7635_v30 }
 0xadc   : > { %7677 = vrot.lane.b32.xlu0 %v7644_v48, %s12217_s27  ;;  %7667 = vrot.lane.b32.xlu1 %v7644_v48, %s12217_s27 }
 0xae0   : > { %8080 = vrot.lane.b32.xlu0 %v8067_v7, %s12219_s17  ;;  %8082 = vrot.lane.b32.xlu1 %v8071_v63, %s12219_s17 }
 0xae4   : > { %8084 = vrot.lane.b32.xlu0 %v8075_v13, %s12219_s17  ;;  %8086 = vrot.lane.b32.xlu1 %v8079_v61, %s12219_s17  ;;  %v8166_v61 = vrot.slane %v11203_v57, %v19864_v41  ;;  %v8170_v13 = vrot.slane %v11203_v57, %v19866_v27 }
 0xb4e   : > { %v15603_v30 = vpop.permute.xlu0 %7677  ;;  %v15605_v10 = vpop.permute.xlu1 %7667 }
 0xb4f   : > { %19944 = vst [vmem:[#allocation90_spill] sm:$0xff] %v15603_v30  ;;  %19945 = vst [vmem:[#allocation85_spill] sm:$0xff] %v15605_v10  ;;  %v8174_v10 = vrot.slane %v11203_v57, %v19762_v51  ;;  %v8178_v30 = vrot.slane %v11203_v57, %v19788_v34 }
 0xb52   : > { %v15607_v48 = vpop.permute.xlu0 %8080  ;;  %v15609_v52 = vpop.permute.xlu1 %8082 }
 0xb53   : > { %19946 = vst [vmem:[#allocation98_spill] sm:$0xff] %v15607_v48  ;;  %19947 = vst [vmem:[#allocation102_spill] sm:$0xff] %v15609_v52  ;;  %v8088_v7 = vsel %vm811_vm6, %v15607_v48, %v15609_v52 }
 0xb54   : > { %v8097_v63 = vmul.f32 0.0, %v8088_v7 }
 0xb56   : > { %8128 = vrot.lane.b32.xlu0 %v8097_v63, %s12218_s30  ;;  %8118 = vrot.lane.b32.xlu1 %v8097_v63, %s12218_s30  ;;  %v15627_v7 = vpop.permute.xlu0 %8084 }
 0xb57   : > { %19948 = vst [vmem:[#allocation75_spill] sm:$0xff] %v15627_v7  ;;  %v11206_v7 = vld [vmem:[%s19320_s6 + $0x81] ss:$8 sm:$0xf] }
 0xb5a   : > { %8179 = vrot.lane.b32.xlu0 %v8166_v61, %s12217_s27  ;;  %8181 = vrot.lane.b32.xlu1 %v8170_v13, %s12217_s27  ;;  %v11204_v61 = vld [vmem:[%s19320_s6 + $0x67] ss:$8 sm:$0xf] }
 0xb5b   : > { %v8273_v57 = vrot.slane %v11204_v61, %v19762_v51 }
 0xb5e   : > { %8183 = vrot.lane.b32.xlu0 %v8174_v10, %s12217_s27  ;;  %8185 = vrot.lane.b32.xlu1 %v8178_v30, %s12217_s27  ;;  %v8265_v10 = vrot.slane %v11204_v61, %v19864_v41  ;;  %v8269_v30 = vrot.slane %v11204_v61, %v19866_v27 }
 0xbc8   : > { %v15629_v52 = vpop.permute.xlu0 %8128 }
 0xbc9   : > { %19949 = vst [vmem:[#allocation9_spill] sm:$0xff] %v15629_v52  ;;  %v8277_v52 = vrot.slane %v11204_v61, %v19788_v34  ;;  %v8415_v61 = vrot.slane %v11206_v7, %v19788_v34 }
 0xbcc   : > { %v15631_v63 = vpop.permute.xlu0 %8179 }
 0xbcd   : > { %19950 = vst [vmem:[#allocation63_spill] sm:$0xff] %v15631_v63  ;;  %v8195_v13 = vmul.f32 0.0, %v15631_v63  ;;  %v8407_v63 = vrot.slane %v11206_v7, %v19866_v27 }
 0xbcf   : > { %8215 = vrot.lane.b32.xlu0 %v8195_v13, %s12217_s27  ;;  %8225 = vrot.lane.b32.xlu1 %v8195_v13, %s12217_s27  ;;  %v8403_v13 = vrot.slane %v11206_v7, %v19864_v41 }
 0xbd3   : > { %8278 = vrot.lane.b32.xlu0 %v8265_v10, %s12218_s30  ;;  %8280 = vrot.lane.b32.xlu1 %v8269_v30, %s12218_s30  ;;  %v8411_v10 = vrot.slane %v11206_v7, %v19762_v51  ;;  %v15658_v30 = vpop.permute.xlu1 %8086 }
 0xbd4   : > { %19951 = vst [vmem:[#allocation99_spill] sm:$0xff] %v15658_v30 }
 0xbd7   : > { %8282 = vrot.lane.b32.xlu0 %v8273_v57, %s12218_s30  ;;  %8284 = vrot.lane.b32.xlu1 %v8277_v52, %s12218_s30  ;;  %v15660_v57 = vpop.permute.xlu1 %8118 }
 0xbd8   : > { %19952 = vst [vmem:[#allocation69_spill] sm:$0xff] %v15660_v57 }
 0xbdb   : > { %8416 = vrot.lane.b32.xlu0 %v8403_v13, %s12219_s17  ;;  %8418 = vrot.lane.b32.xlu1 %v8407_v63, %s12219_s17  ;;  %v15662_v52 = vpop.permute.xlu1 %8181 }
 0xbdc   : > { %19953 = vst [vmem:[#allocation81_spill] sm:$0xff] %v15662_v52 }
 0xbdf   : > { %8420 = vrot.lane.b32.xlu0 %v8411_v10, %s12219_s17  ;;  %8422 = vrot.lane.b32.xlu1 %v8415_v61, %s12219_s17  ;;  %v15664_v48 = vpop.permute.xlu1 %8185  ;;  %v11207_v10 = vld [vmem:[%s19320_s6 + $0x82] ss:$8 sm:$0xf] }
 0xbe0   : > { %19954 = vst [vmem:[#allocation103_spill] sm:$0xff] %v15664_v48  ;;  %v8502_v57 = vrot.slane %v11207_v10, %v19864_v41 }
 0xc41   : > { %v15666_v54 = vpop.permute.xlu1 %8225 }
 0xc42   : > { %19955 = vst [vmem:[#allocation58_spill] sm:$0xff] %v15666_v54  ;;  %v8506_v54 = vrot.slane %v11207_v10, %v19866_v27 }
 0xc45   : > { %v15668_v13 = vpop.permute.xlu1 %8280 }
 0xc46   : > { %19956 = vst [vmem:[#allocation101_spill] sm:$0xff] %v15668_v13  ;;  %v8510_v13 = vrot.slane %v11207_v10, %v19762_v51 }
 0xc49   : > { %v15670_v63 = vpop.permute.xlu1 %8284 }
 0xc4a   : > { %19957 = vst [vmem:[#allocation86_spill] sm:$0xff] %v15670_v63  ;;  %v8514_v63 = vrot.slane %v11207_v10, %v19788_v34 }
 0xc4d   : > { %v15672_v12 = vpop.permute.xlu1 %8418 }
 0xc4e   : > { %19958 = vst [vmem:[#allocation79_spill] sm:$0xff] %v15672_v12 }
 0xc51   : > { %v15674_v7 = vpop.permute.xlu1 %8422 }
 0xc52   : > { %19959 = vst [vmem:[#allocation87_spill] sm:$0xff] %v15674_v7  ;;  %v8436_v61 = vmul.f32 0.0, %v15674_v7  ;;  %v15690_v7 = vpop.permute.xlu0 %8183 }
 0xc53   : > { %19960 = vst [vmem:[#allocation104_spill] sm:$0xff] %v15690_v7 }
 0xc54   : > { %8470 = vrot.lane.b32.xlu1 %v8436_v61, %s12218_s30  ;;  %8460 = vrot.lane.b32.xlu0 %v8436_v61, %s12218_s30 }
 0xc56   : > { %v15692_v12 = vpop.permute.xlu0 %8215 }
 0xc57   : > { %19961 = vst [vmem:[#allocation76_spill] sm:$0xff] %v15692_v12 }
 0xc58   : > { %8517 = vrot.lane.b32.xlu1 %v8506_v54, %s12217_s27  ;;  %8515 = vrot.lane.b32.xlu0 %v8502_v57, %s12217_s27 }
 0xc5a   : > { %v15694_v61 = vpop.permute.xlu0 %8278 }
 0xc5b   : > { %19962 = vst [vmem:[#allocation6_spill] sm:$0xff] %v15694_v61 }
 0xc5c   : > { %8521 = vrot.lane.b32.xlu1 %v8514_v63, %s12217_s27  ;;  %8519 = vrot.lane.b32.xlu0 %v8510_v13, %s12217_s27 }
 0xc5e   : > { %v15696_v30 = vpop.permute.xlu0 %8282 }
 0xc5f   : > { %19963 = vst [vmem:[#allocation82_spill] sm:$0xff] %v15696_v30 }
 0xc62   : > { %v15698_v48 = vpop.permute.xlu0 %8416 }
 0xc63   : > { %19964 = vst [vmem:[#allocation7_spill] sm:$0xff] %v15698_v48 }
 0xc66   : > { %v15700_v54 = vpop.permute.xlu0 %8420 }
 0xc67   : > { %19965 = vst [vmem:[#allocation29_spill] sm:$0xff] %v15700_v54  ;;  %v11225_v54 = vld [vmem:[%s19320_s6 + $0x84] ss:$8 sm:$0xf] }
 0xcc6   : > { %v15702_v57 = vpop.permute.xlu1 %8470  ;;  %v15704_v52 = vpop.permute.xlu0 %8460 }
 0xcc7   : > { %19966 = vst [vmem:[#allocation88_spill] sm:$0xff] %v15702_v57  ;;  %19967 = vst [vmem:[#allocation93_spill] sm:$0xff] %v15704_v52  ;;  %v8957_v52 = vrot.slane %v11225_v54, %v19864_v41  ;;  %v8961_v57 = vrot.slane %v11225_v54, %v19866_v27 }
 0xcca   : > { %v15706_v10 = vpop.permute.xlu1 %8517  ;;  %v15708_v63 = vpop.permute.xlu0 %8515 }
 0xccb   : > { %19968 = vst [vmem:[#allocation24_spill] sm:$0xff] %v15706_v10  ;;  %19969 = vst [vmem:[#allocation8_spill] sm:$0xff] %v15708_v63  ;;  %v8965_v10 = vrot.slane %v11225_v54, %v19762_v51 }
 0xcce   : > { %v15710_v13 = vpop.permute.xlu1 %8521  ;;  %v15712_v7 = vpop.permute.xlu0 %8519 }
 0xccf   : > { %19970 = vst [vmem:[#allocation106_spill] sm:$0xff] %v15710_v13  ;;  %19971 = vst [vmem:[#allocation107_spill] sm:$0xff] %v15712_v7  ;;  %v8525_v12 = vsel %vm446_vm0, %v15712_v7, %v15710_v13  ;;  %v8969_v7 = vrot.slane %v11225_v54, %v19788_v34  ;;  %v11226_v54 = vld [vmem:[%s19320_s6 + $0x85] ss:$8 sm:$0xf] }
 0xcd0   : > { %v8534_v30 = vmul.f32 0.0, %v8525_v12 }
 0xcd2   : > { %8567 = vrot.lane.b32.xlu0 %v8534_v30, %s12217_s27  ;;  %8557 = vrot.lane.b32.xlu1 %v8534_v30, %s12217_s27 }
 0xcd6   : > { %8970 = vrot.lane.b32.xlu0 %v8957_v52, %s12219_s17  ;;  %8972 = vrot.lane.b32.xlu1 %v8961_v57, %s12219_s17 }
 0xcda   : > { %8974 = vrot.lane.b32.xlu0 %v8965_v10, %s12219_s17  ;;  %8976 = vrot.lane.b32.xlu1 %v8969_v7, %s12219_s17  ;;  %v9056_v7 = vrot.slane %v11226_v54, %v19864_v41  ;;  %v9060_v10 = vrot.slane %v11226_v54, %v19866_v27 }
 0xd44   : > { %v15730_v12 = vpop.permute.xlu0 %8567  ;;  %v15732_v63 = vpop.permute.xlu1 %8557 }
 0xd45   : > { %19972 = vst [vmem:[#allocation108_spill] sm:$0xff] %v15730_v12  ;;  %19973 = vst [vmem:[#allocation109_spill] sm:$0xff] %v15732_v63  ;;  %v9064_v63 = vrot.slane %v11226_v54, %v19762_v51  ;;  %v9068_v12 = vrot.slane %v11226_v54, %v19788_v34  ;;  %v19979_v54 = vpack.i.bf16 %v15126_v60, %v15122_v23 }
 0xd46   : > { %v4536_v23 = vmul.f32 %v15053_v32, %v15150_v37  ;;  %v4980_v60 = vmul.f32 %v15148_v40, %v15202_v6 }
 0xd48   : > { %v15734_v30 = vpop.permute.xlu0 %8970  ;;  %v15736_v61 = vpop.permute.xlu1 %8972 }
 0xd49   : > { %19974 = vst [vmem:[#allocation110_spill] sm:$0xff] %v15734_v30  ;;  %19975 = vst [vmem:[#allocation111_spill] sm:$0xff] %v15736_v61  ;;  %v8978_v52 = vsel %vm811_vm6, %v15734_v30, %v15736_v61 }
 0xd4a   : > { %v8987_v57 = vmul.f32 0.0, %v8978_v52 }
 0xd4c   : > { %9018 = vrot.lane.b32.xlu0 %v8987_v57, %s12218_s30  ;;  %9008 = vrot.lane.b32.xlu1 %v8987_v57, %s12218_s30  ;;  %v15754_v52 = vpop.permute.xlu0 %8974 }
 0xd4d   : > { %19976 = vst [vmem:[#allocation112_spill] sm:$0xff] %v15754_v52 }
 0xd50   : > { %9069 = vrot.lane.b32.xlu0 %v9056_v7, %s12217_s27  ;;  %9071 = vrot.lane.b32.xlu1 %v9060_v10, %s12217_s27  ;;  %v11227_v7 = vld [vmem:[%s19320_s6 + $0x86] ss:$8 sm:$0xf] }
 0xd54   : > { %9073 = vrot.lane.b32.xlu0 %v9064_v63, %s12217_s27  ;;  %9075 = vrot.lane.b32.xlu1 %v9068_v12, %s12217_s27  ;;  %v9155_v63 = vrot.slane %v11227_v7, %v19864_v41  ;;  %v9159_v12 = vrot.slane %v11227_v7, %v19866_v27  ;;  %v19982_v7 = vpack.i.bf16 %v15142_v42, %v15138_v46 }
 0xdbe   : > { %v15756_v61 = vpop.permute.xlu0 %9018 }
 0xdbf   : > { %19977 = vst [vmem:[#allocation113_spill] sm:$0xff] %v15756_v61  ;;  %v19980_v61 = vpack.i.bf16 %v15128_v25, %v15124_v50  ;;  %v4975_v50 = vmul.f32 %v15202_v6, %v15150_v37  ;;  %v15798_v25 = vpop.permute.xlu1 %8976 }
 0xdc0   : > { %19983 = vst [vmem:[#allocation115_spill] sm:$0xff] %v15798_v25 }
 0xdc2   : > { %v15758_v57 = vpop.permute.xlu0 %9069 }
 0xdc3   : > { %19978 = vst [vmem:[#allocation114_spill] sm:$0xff] %v15758_v57  ;;  %v9085_v10 = vmul.f32 0.0, %v15758_v57 }
 0xdc5   : > { %9105 = vrot.lane.b32.xlu0 %v9085_v10, %s12217_s27  ;;  %9115 = vrot.lane.b32.xlu1 %v9085_v10, %s12217_s27  ;;  %v19981_v10 = vpack.i.bf16 %v15140_v18, %v15136_v58  ;;  %v15800_v58 = vpop.permute.xlu1 %9008 }
 0xdc6   : > { %19984 = vst [vmem:[#allocation116_spill] sm:$0xff] %v15800_v58 }
 0xdc9   : > { %9168 = vrot.lane.b32.xlu0 %v9155_v63, %s12218_s30  ;;  %9170 = vrot.lane.b32.xlu1 %v9159_v12, %s12218_s30  ;;  %v4541_v63 = vmul.f32 %v15148_v40, %v15053_v32  ;;  %v15802_v46 = vpop.permute.xlu1 %9071  ;;  %v15804_v32 = vpop.permute.xlu0 %9073 }
 0xdca   : > { %19985 = vst [vmem:[#allocation117_spill] sm:$0xff] %v15802_v46  ;;  %19986 = vst [vmem:[#allocation118_spill] sm:$0xff] %v15804_v32 }
 0xdcd   : > { %12136 = vrot.lane.b32.xlu0 %v19979_v54, %s12218_s30  ;;  %12141 = vrot.lane.b32.xlu1 %v19980_v61, %s12218_s30  ;;  %v15806_v18 = vpop.permute.xlu1 %9075 }
 0xdce   : > { %19987 = vst [vmem:[#allocation119_spill] sm:$0xff] %v15806_v18 }
 0xdd1   : > { %12146 = vrot.lane.b32.xlu0 %v19981_v10, %s12218_s30  ;;  %12151 = vrot.lane.b32.xlu1 %v19982_v7, %s12218_s30 }
 0xdd5   : > { %4556 = vrot.lane.b32.xlu0 %v4536_v23, %s12218_s30  ;;  %4566 = vrot.lane.b32.xlu1 %v4541_v63, %s12218_s30 }
 0xdd9   : > { %4999 = vrot.lane.b32.xlu0 %v4975_v50, %s12217_s27  ;;  %5009 = vrot.lane.b32.xlu1 %v4980_v60, %s12217_s27 }
 0xe37   : > { %v15808_v42 = vpop.permute.xlu0 %9105  ;;  %v15810_v61 = vpop.permute.xlu1 %9115 }
 0xe38   : > { %19988 = vst [vmem:[#allocation120_spill] sm:$0xff] %v15808_v42  ;;  %19989 = vst [vmem:[#allocation121_spill] sm:$0xff] %v15810_v61 }
 0xe3b   : > { %v15812_v12 = vpop.permute.xlu0 %9168  ;;  %v15814_v6 = vpop.permute.xlu1 %9170 }
 0xe3c   : > { %19990 = vst [vmem:[#allocation122_spill] sm:$0xff] %v15812_v12  ;;  %19991 = vst [vmem:[#allocation123_spill] sm:$0xff] %v15814_v6 }
 0xe3f   : > { %v12137_v54 = vpop.permute.xlu0 %12136  ;;  %v12142_v10 = vpop.permute.xlu1 %12141 }
 0xe40   : > { %v12139_v7 = vunpack.i.h.bf16 %v12137_v54  ;;  %v12138_v63 = vunpack.i.l.bf16 %v12137_v54  ;;  %v12143_v23 = vunpack.i.l.bf16 %v12142_v10  ;;  %v12144_v50 = vunpack.i.h.bf16 %v12142_v10 }
 0xe42   : > { %v4135_v61 = vsel %vm762_vm5, %v12138_v63, %v12139_v7  ;;  %v4136_v42 = vsel %vm762_vm5, %v12139_v7, %v12143_v23  ;;  %v4137_v57 = vsel %vm762_vm5, %v12143_v23, %v12144_v50  ;;  %v11185_v23 = vld [vmem:[%s19319_s5 + $0x40] sm:$0xff] }
 0xe43   : > { %v12147_v60 = vpop.permute.xlu0 %12146  ;;  %v12152_v58 = vpop.permute.xlu1 %12151 }
 0xe44   : > { %v12149_v25 = vunpack.i.h.bf16 %v12147_v60  ;;  %v12148_v32 = vunpack.i.l.bf16 %v12147_v60  ;;  %v12154_v52 = vunpack.i.h.bf16 %v12152_v58  ;;  %v12153_v18 = vunpack.i.l.bf16 %v12152_v58 }
 0xe45   : > { %v16071_v58 = vsel %vm446_vm0, %v15088_v20, %v15154_v53 }
 0xe46   : > { %v4138_v46 = vsel %vm762_vm5, %v12148_v32, %v12149_v25  ;;  %v4139_v54 = vsel %vm762_vm5, %v12149_v25, %v12153_v18  ;;  %v4140_v10 = vsel %vm762_vm5, %v12153_v18, %v12154_v52  ;;  %v15833_v13 = vpack.c.bf16 %v12148_v32, %v12138_v63  ;;  %v11117_v32 = vld [vmem:[%s19319_s5 + $0x18] sm:$0xff]  ;;  %v11139_v18 = vld [vmem:[%s19319_s5 + $0x20] sm:$0xff] }
 0xe47   : > { %v15823_v30 = vpack.c.bf16 %v4138_v46, %v4135_v61  ;;  %v15825_v48 = vpack.c.bf16 %v4140_v10, %v4137_v57  ;;  %v15827_v60 = vpack.c.bf16 %v4139_v54, %v4136_v42  ;;  %v15841_v25 = vpack.c.bf16 %v12154_v52, %v12144_v50  ;;  %v12197_v52 = vld [vmem:[%s19319_s5] sm:$0xff]  ;;  %v11116_v57 = vld [vmem:[%s19319_s5 + $0x10] sm:$0xff]  ;;  %v12198_v46 = vld [vmem:[%s19319_s5 + $0x8] sm:$0xff] }
 0xe48   : > { %v11140_v42 = vld [vmem:[%s19319_s5 + $0x28] sm:$0xff]  ;;  %v11162_v61 = vld [vmem:[%s19319_s5 + $0x30] sm:$0xff]  ;;  %v11163_v63 = vld [vmem:[%s19319_s5 + $0x38] sm:$0xff] }
 0xe49   : > { %11855 = vmatprep.subr.bf16.mxu1 %v15823_v30  ;;  %11860 = vmatprep.subr.bf16.mxu0 %v15825_v48  ;;  %v11186_v50 = vld [vmem:[%s19319_s5 + $0x48] sm:$0xff]  ;;  %v11208_v54 = vld [vmem:[%s19319_s5 + $0x50] sm:$0xff]  ;;  %v11209_v10 = vld [vmem:[%s19319_s5 + $0x58] sm:$0xff] }
 0xe4a   : > { %11858 = vmatpush1.bf16.msk.msra.mxu1 %vm15829_vm8, %v15833_v13  ;;  %11862 = vmatpush1.bf16.msra.mxu0 %v15827_v60 }
 0xe4b   : > { %11865 = vmatprep.subr.msk.bf16.mxu1 %vm15837_vm9, %v15841_v25  ;;  %11451 = vmatprep.subr.mxu0 %v19867_v8 }
 0xe4d   : > { %11102 = vmatmul.mubr.msk.f32.vlgmr.msra.gmra.mrb[30].mxu1 %vm469_vm4, %v12197_v52  ;;  %11104 = vmatmul.mubr.msk.f32.vlgmr.msra.gmra.mrb[30].mxu0 %vm469_vm4, %v12197_v52 }
 0xe4e   : > { %11868 = vmatpush3.bf16.msk.msra.mxu1 %vm15837_vm9, %v15841_v25  ;;  %11452 = vmatpush3.msra.mxu0 %v19867_v8 }
 0xe4f   : > { %11870 = vmatprep.subr.bf16.mxu1 %v15823_v30  ;;  %11875 = vmatprep.subr.bf16.mxu0 %v15825_v48 }
 0xe50   : > { %4310 = vmatprep.mubr.f32.mxu1 %v19867_v8  ;;  %4387 = vmatprep.mubr.f32.mxu0 %v19867_v8 }
 0xe51   : > { %11103 = vmatmul.mubr.msk.f32.gmra.mrb[32].mxu1 %vm469_vm4, %v12198_v46  ;;  %11105 = vmatmul.mubr.msk.f32.gmra.mrb[32].mxu0 %vm469_vm4, %v12198_v46 }
 0xe52   : > { %11448 = vmatprep.mubr.msk.f32.mxu1 %vm469_vm4, %v12197_v52  ;;  %11453 = vmatprep.mubr.msk.f32.mxu0 %vm469_vm4, %v11116_v57  ;;  %v11231_v52 = vld [vmem:[%s19319_s5 + $0x60] sm:$0xff] }
 0xe55   : > { %11449 = vmatmul.mubr.msk.f32.vlgmr.msra.gmra.mrb[34].mxu1 %vm469_vm4, %v12198_v46  ;;  %11454 = vmatmul.mubr.msk.f32.vlgmr.msra.gmra.mrb[34].mxu0 %vm469_vm4, %v11117_v32 }
 0xe56   : > { %11873 = vmatpush1.bf16.msk.msra.mxu1 %vm15829_vm8, %v15833_v13  ;;  %11877 = vmatpush1.bf16.msra.mxu0 %v15827_v60 }
 0xe57   : > { %11880 = vmatprep.subr.msk.bf16.mxu1 %vm15837_vm9, %v15841_v25  ;;  %5185 = vmatprep.mubr.f32.mxu1 %v19867_v8 }
 0xe58   : > { %5262 = vmatprep.mubr.f32.mxu0 %v19867_v8  ;;  %11463 = vmatprep.subr.mxu0 %v19867_v8 }
 0xe59   : > { %11124 = vmatmul.mubr.msk.f32.vlgmr.msra.gmra.mrb[36].mxu1 %vm469_vm4, %v11116_v57  ;;  %11126 = vmatmul.mubr.msk.f32.vlgmr.msra.gmra.mrb[36].mxu0 %vm469_vm4, %v11116_v57 }
 0xe5a   : > { %11883 = vmatpush3.bf16.msk.msra.mxu1 %vm15837_vm9, %v15841_v25  ;;  %11464 = vmatpush3.msra.mxu0 %v19867_v8 }
 0xe5b   : > { %11885 = vmatprep.subr.bf16.mxu1 %v15823_v30  ;;  %11890 = vmatprep.subr.bf16.mxu0 %v15825_v48 }
 0xe5c   : > { %5191 = vmatprep.mubr.f32.mxu1 %v19867_v8  ;;  %5268 = vmatprep.mubr.f32.mxu0 %v19867_v8 }
 0xe5d   : > { %11125 = vmatmul.mubr.msk.f32.gmra.mrb[38].mxu1 %vm469_vm4, %v11117_v32  ;;  %11127 = vmatmul.mubr.msk.f32.gmra.mrb[38].mxu0 %vm469_vm4, %v11117_v32 }
 0xe5e   : > { %11460 = vmatprep.mubr.msk.f32.mxu1 %vm469_vm4, %v11116_v57  ;;  %11465 = vmatprep.mubr.msk.f32.mxu0 %vm469_vm4, %v11139_v18 }
 0xe61   : > { %11461 = vmatmul.mubr.msk.f32.vlgmr.msra.gmra.mrb[40].mxu1 %vm469_vm4, %v11117_v32  ;;  %11466 = vmatmul.mubr.msk.f32.vlgmr.msra.gmra.mrb[40].mxu0 %vm469_vm4, %v11140_v42 }
 0xe62   : > { %11888 = vmatpush1.bf16.msk.msra.mxu1 %vm15829_vm8, %v15833_v13  ;;  %11892 = vmatpush1.bf16.msra.mxu0 %v15827_v60 }
 0xe63   : > { %11895 = vmatprep.subr.msk.bf16.mxu1 %vm15837_vm9, %v15841_v25  ;;  %6075 = vmatprep.mubr.f32.mxu1 %v19867_v8 }
 0xe64   : > { %6152 = vmatprep.mubr.f32.mxu0 %v19867_v8  ;;  %11475 = vmatprep.subr.mxu0 %v19867_v8 }
 0xe65   : > { %11147 = vmatmul.mubr.msk.f32.vlgmr.msra.gmra.mrb[42].mxu1 %vm469_vm4, %v11139_v18  ;;  %11149 = vmatmul.mubr.msk.f32.vlgmr.msra.gmra.mrb[42].mxu0 %vm469_vm4, %v11139_v18 }
 0xe66   : > { %11898 = vmatpush3.bf16.msk.msra.mxu1 %vm15837_vm9, %v15841_v25  ;;  %11476 = vmatpush3.msra.mxu0 %v19867_v8 }
 0xe67   : > { %11900 = vmatprep.subr.bf16.mxu1 %v15823_v30  ;;  %11905 = vmatprep.subr.bf16.mxu0 %v15825_v48 }
 0xe68   : > { %6081 = vmatprep.mubr.f32.mxu1 %v19867_v8  ;;  %6158 = vmatprep.mubr.f32.mxu0 %v19867_v8 }
 0xe69   : > { %11148 = vmatmul.mubr.msk.f32.gmra.mrb[44].mxu1 %vm469_vm4, %v11140_v42  ;;  %11150 = vmatmul.mubr.msk.f32.gmra.mrb[44].mxu0 %vm469_vm4, %v11140_v42 }
 0xe6a   : > { %11472 = vmatprep.mubr.msk.f32.mxu1 %vm469_vm4, %v11139_v18  ;;  %11477 = vmatprep.mubr.msk.f32.mxu0 %vm469_vm4, %v11162_v61 }
 0xe6d   : > { %11473 = vmatmul.mubr.msk.f32.vlgmr.msra.gmra.mrb[46].mxu1 %vm469_vm4, %v11140_v42  ;;  %11478 = vmatmul.mubr.msk.f32.vlgmr.msra.gmra.mrb[46].mxu0 %vm469_vm4, %v11163_v63 }
 0xe6e   : > { %11903 = vmatpush1.bf16.msk.msra.mxu1 %vm15829_vm8, %v15833_v13  ;;  %11907 = vmatpush1.bf16.msra.mxu0 %v15827_v60 }
 0xe6f   : > { %11910 = vmatprep.subr.msk.bf16.mxu1 %vm15837_vm9, %v15841_v25  ;;  %6965 = vmatprep.mubr.f32.mxu1 %v19867_v8 }
 0xe70   : > { %7042 = vmatprep.mubr.f32.mxu0 %v19867_v8  ;;  %11487 = vmatprep.subr.mxu0 %v19867_v8 }
 0xe71   : > { %11170 = vmatmul.mubr.msk.f32.vlgmr.msra.gmra.mrb[48].mxu1 %vm469_vm4, %v11162_v61  ;;  %11172 = vmatmul.mubr.msk.f32.vlgmr.msra.gmra.mrb[48].mxu0 %vm469_vm4, %v11162_v61 }
 0xe72   : > { %11913 = vmatpush3.bf16.msk.msra.mxu1 %vm15837_vm9, %v15841_v25  ;;  %11488 = vmatpush3.msra.mxu0 %v19867_v8 }
 0xe73   : > { %11915 = vmatprep.subr.bf16.mxu1 %v15823_v30  ;;  %11920 = vmatprep.subr.bf16.mxu0 %v15825_v48 }
 0xe74   : > { %6971 = vmatprep.mubr.f32.mxu1 %v19867_v8  ;;  %7048 = vmatprep.mubr.f32.mxu0 %v19867_v8 }
 0xe75   : > { %11171 = vmatmul.mubr.msk.f32.gmra.mrb[50].mxu1 %vm469_vm4, %v11163_v63  ;;  %11173 = vmatmul.mubr.msk.f32.gmra.mrb[50].mxu0 %vm469_vm4, %v11163_v63 }
 0xe76   : > { %11484 = vmatprep.mubr.msk.f32.mxu1 %vm469_vm4, %v11162_v61  ;;  %11489 = vmatprep.mubr.msk.f32.mxu0 %vm469_vm4, %v11185_v23 }
 0xe79   : > { %11485 = vmatmul.mubr.msk.f32.vlgmr.msra.gmra.mrb[52].mxu1 %vm469_vm4, %v11163_v63  ;;  %11490 = vmatmul.mubr.msk.f32.vlgmr.msra.gmra.mrb[52].mxu0 %vm469_vm4, %v11186_v50 }
 0xe7a   : > { %11918 = vmatpush1.bf16.msk.msra.mxu1 %vm15829_vm8, %v15833_v13  ;;  %11922 = vmatpush1.bf16.msra.mxu0 %v15827_v60 }
 0xe7b   : > { %11925 = vmatprep.subr.msk.bf16.mxu1 %vm15837_vm9, %v15841_v25  ;;  %7855 = vmatprep.mubr.f32.mxu1 %v19867_v8 }
 0xe7c   : > { %7932 = vmatprep.mubr.f32.mxu0 %v19867_v8  ;;  %11499 = vmatprep.subr.mxu0 %v19867_v8 }
 0xe7d   : > { %11193 = vmatmul.mubr.msk.f32.vlgmr.msra.gmra.mrb[54].mxu1 %vm469_vm4, %v11185_v23  ;;  %11195 = vmatmul.mubr.msk.f32.vlgmr.msra.gmra.mrb[54].mxu0 %vm469_vm4, %v11185_v23 }
 0xe7e   : > { %11928 = vmatpush3.bf16.msk.msra.mxu1 %vm15837_vm9, %v15841_v25  ;;  %11500 = vmatpush3.msra.mxu0 %v19867_v8 }
 0xe7f   : > { %11930 = vmatprep.subr.bf16.mxu1 %v15823_v30  ;;  %11935 = vmatprep.subr.bf16.mxu0 %v15825_v48 }
 0xe80   : > { %7861 = vmatprep.mubr.f32.mxu1 %v19867_v8  ;;  %7938 = vmatprep.mubr.f32.mxu0 %v19867_v8 }
 0xe81   : > { %11194 = vmatmul.mubr.msk.f32.gmra.mrb[56].mxu1 %vm469_vm4, %v11186_v50  ;;  %11196 = vmatmul.mubr.msk.f32.gmra.mrb[56].mxu0 %vm469_vm4, %v11186_v50 }
 0xe82   : > { %11496 = vmatprep.mubr.msk.f32.mxu1 %vm469_vm4, %v11185_v23  ;;  %11501 = vmatprep.mubr.msk.f32.mxu0 %vm469_vm4, %v11208_v54 }
 0xe85   : > { %11497 = vmatmul.mubr.msk.f32.vlgmr.msra.gmra.mrb[58].mxu1 %vm469_vm4, %v11186_v50  ;;  %11502 = vmatmul.mubr.msk.f32.vlgmr.msra.gmra.mrb[58].mxu0 %vm469_vm4, %v11209_v10 }
 0xe86   : > { %11933 = vmatpush1.bf16.msk.msra.mxu1 %vm15829_vm8, %v15833_v13  ;;  %11937 = vmatpush1.bf16.msra.mxu0 %v15827_v60 }
 0xe87   : > { %11940 = vmatprep.subr.msk.bf16.mxu1 %vm15837_vm9, %v15841_v25  ;;  %8745 = vmatprep.mubr.f32.mxu1 %v19867_v8 }
 0xe88   : > { %8822 = vmatprep.mubr.f32.mxu0 %v19867_v8  ;;  %11511 = vmatprep.subr.mxu0 %v19867_v8 }
 0xe89   : > { %11216 = vmatmul.mubr.msk.f32.vlgmr.msra.gmra.mrb[60].mxu1 %vm469_vm4, %v11208_v54  ;;  %11218 = vmatmul.mubr.msk.f32.vlgmr.msra.gmra.mrb[60].mxu0 %vm469_vm4, %v11208_v54 }
 0xe8a   : > { %11943 = vmatpush3.bf16.msk.msra.mxu1 %vm15837_vm9, %v15841_v25  ;;  %11512 = vmatpush3.msra.mxu0 %v19867_v8 }
 0xe8b   : > { %11945 = vmatprep.subr.bf16.mxu1 %v15823_v30  ;;  %11950 = vmatprep.subr.bf16.mxu0 %v15825_v48  ;;  %v11232_v48 = vld [vmem:[%s19319_s5 + $0x68] sm:$0xff]  ;;  %v12200_v30 = vld [vmem:[%s12301_s26 + $0x18] sm:$0xff] }
 0xe8c   : > { %8751 = vmatprep.mubr.f32.mxu1 %v19867_v8  ;;  %8828 = vmatprep.mubr.f32.mxu0 %v19867_v8 }
 0xe8d   : > { %11217 = vmatmul.mubr.msk.f32.gmra.mrb[62].mxu1 %vm469_vm4, %v11209_v10  ;;  %11219 = vmatmul.mubr.msk.f32.gmra.mrb[62].mxu0 %vm469_vm4, %v11209_v10 }
 0xe8e   : > { %11508 = vmatprep.mubr.msk.f32.mxu1 %vm469_vm4, %v11208_v54  ;;  %11513 = vmatprep.mubr.msk.f32.mxu0 %vm469_vm4, %v11231_v52  ;;  %v16109_v54 = vsel %vm811_vm6, %v15190_v36, %v15164_v59 }
 0xe91   : > { %11509 = vmatmul.mubr.msk.f32.vlgmr.msra.gmra.mrb[64].mxu1 %vm469_vm4, %v11209_v10  ;;  %11514 = vmatmul.mubr.msk.f32.vlgmr.msra.gmra.mrb[64].mxu0 %vm469_vm4, %v11232_v48 }
 0xe92   : > { %11948 = vmatpush1.bf16.msk.msra.mxu1 %vm15829_vm8, %v15833_v13  ;;  %11952 = vmatpush1.bf16.msra.mxu0 %v15827_v60  ;;  %v12199_v13 = vld [vmem:[%s12301_s26 + $0x8] sm:$0xff]  ;;  %v16066_v60 = vsel %vm811_vm6, %v15055_v31, %v15084_v15  ;;  %v16090_v31 = vsel %vm446_vm0, %v15182_v19, %v15156_v26 }
 0xe93   : > { %11955 = vmatprep.subr.msk.bf16.mxu1 %vm15837_vm9, %v15841_v25  ;;  %9635 = vmatprep.mubr.f32.mxu1 %v19867_v8 }
 0xe94   : > { %9712 = vmatprep.mubr.f32.mxu0 %v19867_v8 }
 0xe95   : > { %11239 = vmatmul.mubr.msk.f32.vlgmr.msra.gmra.mrb[66].mxu1 %vm469_vm4, %v11231_v52  ;;  %11241 = vmatmul.mubr.msk.f32.vlgmr.msra.gmra.mrb[66].mxu0 %vm469_vm4, %v11231_v52 }
 0xe96   : > { %11958 = vmatpush3.bf16.msk.msra.mxu1 %vm15837_vm9, %v15841_v25  ;;  %9641 = vmatprep.mubr.f32.mxu1 %v19867_v8 }
 0xe97   : > { %9718 = vmatprep.mubr.f32.mxu0 %v19867_v8  ;;  %v16137_v8 = vsel %vm762_vm5, %v15160_v45, %v15188_v16 }
 0xe99   : > { %11240 = vmatmul.mubr.msk.f32.gmra.mrb[68].mxu1 %vm469_vm4, %v11232_v48  ;;  %11242 = vmatmul.mubr.msk.f32.gmra.mrb[68].mxu0 %vm469_vm4, %v11232_v48 }
 0xe9a   : > { %11520 = vmatprep.mubr.msk.f32.mxu1 %vm469_vm4, %v11231_v52  ;;  %10540 = vmatprep.mubr.f32.mxu0 %v12199_v13 }
 0xe9d   : > { %11521 = vmatmul.mubr.msk.f32.vlgmr.msra.gmra.mrb[70].mxu1 %vm469_vm4, %v11232_v48 }
 0xe9e   : > { %10615 = vmatprep.mubr.f32.mxu1 %v12200_v30 }
 0xf20   : > { %v16073_v7 = vpop.f32.mrb[30].mxu1  ;;  %v16075_v25 = vpop.f32.mrb[30].mxu0 }
 0xf21   : > { %19996 = vst [vmem:[#allocation124_spill] sm:$0xff] %v16073_v7  ;;  %19997 = vst [vmem:[#allocation125_spill] sm:$0xff] %v16075_v25  ;;  %v4538_v57 = vmul.f32 %v16066_v60, %v16073_v7  ;;  %v4636_v46 = vmul.f32 %v16071_v58, %v16073_v7  ;;  %v16081_v32 = vpop.f32.mrb[31].mxu1  ;;  %v16083_v18 = vpop.f32.mrb[31].mxu0  ;;  %v4638_v23 = vmul.f32 %v16090_v31, %v16075_v25 }
 0xf22   : > { %v4540_v50 = vmul.f32 %v15130_v49, %v16075_v25  ;;  %v4873_v30 = vmul.f32 %v16109_v54, %v16075_v25 }
 0xf23   : > { %4560 = vrot.lane.b32.xlu0 %v4538_v57, %s12218_s30  ;;  %4657 = vrot.lane.b32.xlu1 %v4636_v46, %s12217_s27  ;;  %v4734_v57 = vmul.f32 %v15186_v4, %v16073_v7  ;;  %v16127_v46 = vsel %vm811_vm6, %v15084_v15, %v15130_v49  ;;  %v4736_v15 = vmul.f32 %v16137_v8, %v16075_v25 }
 0xf24   : > { %v16092_v20 = vpop.f32.mrb[32].mxu1  ;;  %v16094_v42 = vpop.f32.mrb[32].mxu0 }
 0xf25   : > { %19998 = vst [vmem:[#allocation126_spill] sm:$0xff] %v16094_v42  ;;  %v16096_v61 = vpop.f32.mrb[33].mxu1  ;;  %v16098_v63 = vpop.f32.mrb[33].mxu0 }
 0xf27   : > { %4661 = vrot.lane.b32.xlu1 %v4638_v23, %s12217_s27  ;;  %4564 = vrot.lane.b32.xlu0 %v4540_v50, %s12218_s30 }
 0xf28   : > { %v16111_v10 = vpop.f32.mrb[34].mxu1  ;;  %v16113_v52 = vpop.f32.mrb[34].mxu0 }
 0xf29   : > { %v16115_v48 = vpop.f32.mrb[35].mxu1  ;;  %v16117_v13 = vpop.f32.mrb[35].mxu0 }
 0xf2b   : > { %4894 = vrot.lane.b32.xlu1 %v4873_v30, %s12218_s30  ;;  %4754 = vrot.lane.b32.xlu0 %v4734_v57, %s12219_s17  ;;  %v4539_v30 = vmul.f32 %v16127_v46, %v16081_v32  ;;  %v16151_v57 = vsel %vm762_vm5, %v15186_v4, %v15160_v45  ;;  %v16170_v45 = vsel %vm762_vm5, %v15188_v16, %v15162_v11 }
 0xf2c   : > { %v16130_v23 = vpop.f32.mrb[36].mxu1  ;;  %v16132_v50 = vpop.f32.mrb[36].mxu0  ;;  %v4735_v41 = vmul.f32 %v16151_v57, %v16081_v32 }
 0xf2d   : > { %19999 = vst [vmem:[#allocation127_spill] sm:$0xff] %v16132_v50  ;;  %v16139_v27 = vpop.f32.mrb[37].mxu1  ;;  %v16141_v34 = vpop.f32.mrb[37].mxu0 }
 0xf2e   : > { %20000 = vst [vmem:[#allocation128_spill] sm:$0xff] %v16141_v34 }
 0xf2f   : > { %4562 = vrot.lane.b32.xlu1 %v4539_v30, %s12218_s30  ;;  %4758 = vrot.lane.b32.xlu0 %v4736_v15, %s12219_s17  ;;  %v4971_v30 = vmul.f32 %v15200_v29, %v16075_v25 }
 0xf30   : > { %v16154_v40 = vpop.f32.mrb[38].mxu1  ;;  %v16156_v7 = vpop.f32.mrb[38].mxu0 }
 0xf31   : > { %20001 = vst [vmem:[#allocation129_spill] sm:$0xff] %v16156_v7  ;;  %v16158_v51 = vpop.f32.mrb[39].mxu1  ;;  %v16160_v37 = vpop.f32.mrb[39].mxu0 }
 0xf32   : > { %20002 = vst [vmem:[#allocation130_spill] sm:$0xff] %v16158_v51  ;;  %20003 = vst [vmem:[#allocation131_spill] sm:$0xff] %v16160_v37  ;;  %v4628_v37 = vsel %vm446_vm0, %v15154_v53, %v15182_v19 }
 0xf33   : > { %4756 = vrot.lane.b32.xlu1 %v4735_v41, %s12219_s17  ;;  %4991 = vrot.lane.b32.xlu0 %v4971_v30, %s12217_s27  ;;  %v4737_v41 = vmul.f32 %v16170_v45, %v16083_v18  ;;  %v4637_v16 = vmul.f32 %v4628_v37, %v16081_v32  ;;  %v16191_v30 = vsel %vm446_vm0, %v15200_v29, %v15198_v62 }
 0xf34   : > { %v16173_v15 = vpop.f32.mrb[40].mxu1  ;;  %v16175_v51 = vpop.f32.mrb[40].mxu0 }
 0xf35   : > { %20004 = vst [vmem:[#allocation132_spill] sm:$0xff] %v16173_v15  ;;  %20005 = vst [vmem:[#allocation133_spill] sm:$0xff] %v16175_v51  ;;  %v16180_v7 = vpop.f32.mrb[41].mxu1  ;;  %v16182_v25 = vpop.f32.mrb[41].mxu0 }
 0xf36   : > { %20006 = vst [vmem:[#allocation134_spill] sm:$0xff] %v16180_v7  ;;  %20007 = vst [vmem:[#allocation135_spill] sm:$0xff] %v16182_v25  ;;  %v4972_v7 = vmul.f32 %v16191_v30, %v16083_v18 }
 0xf37   : > { %4760 = vrot.lane.b32.xlu1 %v4737_v41, %s12219_s17  ;;  %4659 = vrot.lane.b32.xlu0 %v4637_v16, %s12217_s27  ;;  %v4639_v41 = vmul.f32 %v15156_v26, %v16083_v18 }
 0xf38   : > { %v16194_v51 = vpop.f32.mrb[42].mxu1  ;;  %v16196_v53 = vpop.f32.mrb[42].mxu0 }
 0xf39   : > { %20008 = vst [vmem:[#allocation136_spill] sm:$0xff] %v16194_v51  ;;  %20009 = vst [vmem:[#allocation137_spill] sm:$0xff] %v16196_v53  ;;  %v16198_v19 = vpop.f32.mrb[43].mxu1  ;;  %v16200_v25 = vpop.f32.mrb[43].mxu0  ;;  %v4543_v53 = vmul.f32 %v16066_v60, %v16092_v20  ;;  %v4872_v51 = vmul.f32 %v15190_v36, %v16081_v32 }
 0xf3a   : > { %20010 = vst [vmem:[#allocation138_spill] sm:$0xff] %v16198_v19  ;;  %20011 = vst [vmem:[#allocation139_spill] sm:$0xff] %v16200_v25 }
 0xf3b   : > { %4993 = vrot.lane.b32.xlu1 %v4972_v7, %s12217_s27  ;;  %4663 = vrot.lane.b32.xlu0 %v4639_v41, %s12217_s27 }
 0xf3c   : > { %v16208_v15 = vpop.f32.mrb[44].mxu1  ;;  %v16210_v16 = vpop.f32.mrb[44].mxu0 }
 0xf3d   : > { %20012 = vst [vmem:[#allocation140_spill] sm:$0xff] %v16208_v15  ;;  %20013 = vst [vmem:[#allocation141_spill] sm:$0xff] %v16210_v16  ;;  %v16214_v19 = vpop.f32.mrb[45].mxu1  ;;  %v16216_v25 = vpop.f32.mrb[45].mxu0  ;;  %v4865_v16 = vsel %vm811_vm6, %v15164_v59, %v15192_v3  ;;  %v4739_v59 = vmul.f32 %v15186_v4, %v16092_v20  ;;  %v4741_v4 = vmul.f32 %v16137_v8, %v16094_v42 }
 0xf3e   : > { %20014 = vst [vmem:[#allocation142_spill] sm:$0xff] %v16214_v19  ;;  %20015 = vst [vmem:[#allocation143_spill] sm:$0xff] %v16216_v25  ;;  %v4545_v25 = vmul.f32 %v15130_v49, %v16094_v42  ;;  %v4874_v15 = vmul.f32 %v4865_v16, %v16083_v18  ;;  %v4641_v49 = vmul.f32 %v16071_v58, %v16092_v20 }
 0xf3f   : > { %4570 = vrot.lane.b32.xlu1 %v4543_v53, %s12218_s30  ;;  %4892 = vrot.lane.b32.xlu0 %v4872_v51, %s12218_s30  ;;  %v4878_v8 = vmul.f32 %v16109_v54, %v16094_v42 }
 0xf40   : > { %v16222_v7 = vpop.f32.mrb[46].mxu1  ;;  %v16224_v41 = vpop.f32.mrb[46].mxu0 }
 0xf41   : > { %20016 = vst [vmem:[#allocation144_spill] sm:$0xff] %v16222_v7  ;;  %20017 = vst [vmem:[#allocation145_spill] sm:$0xff] %v16224_v41  ;;  %v16229_v60 = vpop.f32.mrb[47].mxu1  ;;  %v16231_v19 = vpop.f32.mrb[47].mxu0 }
 0xf42   : > { %20018 = vst [vmem:[#allocation146_spill] sm:$0xff] %v16229_v60  ;;  %20019 = vst [vmem:[#allocation147_spill] sm:$0xff] %v16231_v19  ;;  %v20080_v19 = vld [vmem:[#allocation36_spill] sm:$0xff] }
 0xf43   : > { %4574 = vrot.lane.b32.xlu1 %v4545_v25, %s12218_s30  ;;  %4896 = vrot.lane.b32.xlu0 %v4874_v15, %s12218_s30 }
 0xf44   : > { %v16238_v51 = vpop.f32.mrb[48].mxu1  ;;  %v16240_v53 = vpop.f32.mrb[48].mxu0 }
 0xf45   : > { %20020 = vst [vmem:[#allocation148_spill] sm:$0xff] %v16238_v51  ;;  %20021 = vst [vmem:[#allocation149_spill] sm:$0xff] %v16240_v53  ;;  %v16244_v41 = vpop.f32.mrb[49].mxu1  ;;  %v16246_v60 = vpop.f32.mrb[49].mxu0 }
 0xf46   : > { %20022 = vst [vmem:[#allocation150_spill] sm:$0xff] %v16244_v41  ;;  %20023 = vst [vmem:[#allocation151_spill] sm:$0xff] %v16246_v60  ;;  %v4643_v60 = vmul.f32 %v16090_v31, %v16094_v42 }
 0xf47   : > { %4764 = vrot.lane.b32.xlu1 %v4739_v59, %s12219_s17  ;;  %4667 = vrot.lane.b32.xlu0 %v4641_v49, %s12217_s27 }
 0xf48   : > { %v16252_v25 = vpop.f32.mrb[50].mxu1  ;;  %v16254_v15 = vpop.f32.mrb[50].mxu0 }
 0xf49   : > { %20024 = vst [vmem:[#allocation152_spill] sm:$0xff] %v16252_v25  ;;  %20025 = vst [vmem:[#allocation153_spill] sm:$0xff] %v16254_v15  ;;  %v16256_v51 = vpop.f32.mrb[51].mxu1  ;;  %v16258_v53 = vpop.f32.mrb[51].mxu0 }
 0xf4a   : > { %20026 = vst [vmem:[#allocation154_spill] sm:$0xff] %v16256_v51  ;;  %20027 = vst [vmem:[#allocation155_spill] sm:$0xff] %v16258_v53  ;;  %v4976_v53 = vmul.f32 %v15200_v29, %v16094_v42  ;;  %v4544_v29 = vmul.f32 %v16127_v46, %v16096_v61 }
 0xf4b   : > { %4768 = vrot.lane.b32.xlu1 %v4741_v4, %s12219_s17  ;;  %4671 = vrot.lane.b32.xlu0 %v4643_v60, %s12217_s27 }
 0xf4c   : > { %v16266_v58 = vpop.f32.mrb[52].mxu1  ;;  %v16268_v59 = vpop.f32.mrb[52].mxu0 }
 0xf4d   : > { %20028 = vst [vmem:[#allocation156_spill] sm:$0xff] %v16266_v58  ;;  %20029 = vst [vmem:[#allocation157_spill] sm:$0xff] %v16268_v59  ;;  %v16270_v49 = vpop.f32.mrb[53].mxu1  ;;  %v16272_v15 = vpop.f32.mrb[53].mxu0 }
 0xf4e   : > { %20030 = vst [vmem:[#allocation158_spill] sm:$0xff] %v16270_v49  ;;  %20031 = vst [vmem:[#allocation159_spill] sm:$0xff] %v16272_v15  ;;  %v4642_v15 = vmul.f32 %v4628_v37, %v16096_v61  ;;  %v4740_v37 = vmul.f32 %v16151_v57, %v16096_v61 }
 0xf4f   : > { %5001 = vrot.lane.b32.xlu1 %v4976_v53, %s12217_s27  ;;  %4904 = vrot.lane.b32.xlu0 %v4878_v8, %s12218_s30 }
 0xf50   : > { %v16280_v31 = vpop.f32.mrb[54].mxu1  ;;  %v16282_v60 = vpop.f32.mrb[54].mxu0 }
 0xf51   : > { %20032 = vst [vmem:[#allocation160_spill] sm:$0xff] %v16280_v31  ;;  %20033 = vst [vmem:[#allocation161_spill] sm:$0xff] %v16282_v60  ;;  %v16284_v4 = vpop.f32.mrb[55].mxu1  ;;  %v16286_v59 = vpop.f32.mrb[55].mxu0 }
 0xf52   : > { %20034 = vst [vmem:[#allocation162_spill] sm:$0xff] %v16284_v4  ;;  %20035 = vst [vmem:[#allocation163_spill] sm:$0xff] %v16286_v59  ;;  %v4644_v59 = vmul.f32 %v15156_v26, %v16098_v63  ;;  %v4742_v26 = vmul.f32 %v16170_v45, %v16098_v63  ;;  %v20063_v4 = vld [vmem:[#allocation130_spill] sm:$0xff] }
 0xf53   : > { %4669 = vrot.lane.b32.xlu1 %v4642_v15, %s12217_s27  ;;  %4572 = vrot.lane.b32.xlu0 %v4544_v29, %s12218_s30 }
 0xf54   : > { %v16293_v54 = vpop.f32.mrb[56].mxu1  ;;  %v16295_v53 = vpop.f32.mrb[56].mxu0 }
 0xf55   : > { %20036 = vst [vmem:[#allocation164_spill] sm:$0xff] %v16293_v54  ;;  %20037 = vst [vmem:[#allocation165_spill] sm:$0xff] %v16295_v53  ;;  %v16297_v8 = vpop.f32.mrb[57].mxu1  ;;  %v16299_v60 = vpop.f32.mrb[57].mxu0 }
 0xf56   : > { %20038 = vst [vmem:[#allocation166_spill] sm:$0xff] %v16297_v8  ;;  %20039 = vst [vmem:[#allocation167_spill] sm:$0xff] %v16299_v60  ;;  %v4877_v60 = vmul.f32 %v15190_v36, %v16096_v61  ;;  %v4977_v36 = vmul.f32 %v16191_v30, %v16098_v63  ;;  %v20061_v8 = vld [vmem:[#allocation4_spill] sm:$0xff] }
 0xf57   : > { %4673 = vrot.lane.b32.xlu1 %v4644_v59, %s12217_s27  ;;  %4766 = vrot.lane.b32.xlu0 %v4740_v37, %s12219_s17 }
 0xf58   : > { %v16307_v46 = vpop.f32.mrb[58].mxu1  ;;  %v16309_v15 = vpop.f32.mrb[58].mxu0 }
 0xf59   : > { %20040 = vst [vmem:[#allocation168_spill] sm:$0xff] %v16307_v46  ;;  %20041 = vst [vmem:[#allocation169_spill] sm:$0xff] %v16309_v15  ;;  %v16311_v29 = vpop.f32.mrb[59].mxu1  ;;  %v16313_v53 = vpop.f32.mrb[59].mxu0 }
 0xf5a   : > { %20042 = vst [vmem:[#allocation170_spill] sm:$0xff] %v16311_v29  ;;  %20043 = vst [vmem:[#allocation171_spill] sm:$0xff] %v16313_v53  ;;  %v4879_v53 = vmul.f32 %v4865_v16, %v16098_v63 }
 0xf5b   : > { %4902 = vrot.lane.b32.xlu1 %v4877_v60, %s12218_s30  ;;  %4770 = vrot.lane.b32.xlu0 %v4742_v26, %s12219_s17  ;;  %v4866_v26 = vsel %vm811_vm6, %v15192_v3, %v15166_v0  ;;  %v16357_v0 = vsel %vm762_vm5, %v15812_v12, %v15814_v6  ;;  %v4738_v3 = vmul.f32 %v15162_v11, %v16115_v48  ;;  %v20054_v12 = vld [vmem:[#allocation129_spill] sm:$0xff] }
 0xf5c   : > { %v16321_v57 = vpop.f32.mrb[60].mxu1  ;;  %v16323_v59 = vpop.f32.mrb[60].mxu0  ;;  %v4880_v30 = vmul.f32 %v16111_v10, %v4866_v26  ;;  %20052 = vst [vmem:[#allocation180_spill] sm:$0xff] %v16357_v0  ;;  %v5762_v6 = vmul.f32 %v15317_v22, %v16139_v27 }
 0xf5d   : > { %20044 = vst [vmem:[#allocation172_spill] sm:$0xff] %v16321_v57  ;;  %20045 = vst [vmem:[#allocation173_spill] sm:$0xff] %v16323_v59  ;;  %v16325_v37 = vpop.f32.mrb[61].mxu1  ;;  %v16327_v15 = vpop.f32.mrb[61].mxu0  ;;  %v20057_v59 = vld [vmem:[#allocation11_spill] sm:$0xff] }
 0xf5e   : > { %20046 = vst [vmem:[#allocation174_spill] sm:$0xff] %v16325_v37  ;;  %20047 = vst [vmem:[#allocation175_spill] sm:$0xff] %v16327_v15  ;;  %v4743_v15 = vmul.f32 %v16111_v10, %v15162_v11  ;;  %v5870_v11 = vmul.f32 %v16113_v52, %v15329_v35 }
 0xf5f   : > { %4906 = vrot.lane.b32.xlu1 %v4879_v53, %s12218_s30  ;;  %5003 = vrot.lane.b32.xlu0 %v4977_v36, %s12217_s27  ;;  %v4964_v53 = vsel %vm446_vm0, %v15198_v62, %v15204_v5  ;;  %v5431_v62 = vmul.f32 %v16113_v52, %v15226_v43 }
 0xf60   : > { %v16334_v45 = vpop.f32.mrb[62].mxu1  ;;  %v16336_v60 = vpop.f32.mrb[62].mxu0  ;;  %v4978_v36 = vmul.f32 %v16111_v10, %v4964_v53  ;;  %v4973_v5 = vmul.f32 %v4964_v53, %v16115_v48  ;;  %v5517_v53 = vsel %vm446_vm0, %v15250_v1, %v15281_v47 }
 0xf61   : > { %20048 = vst [vmem:[#allocation176_spill] sm:$0xff] %v16334_v45  ;;  %20049 = vst [vmem:[#allocation177_spill] sm:$0xff] %v16336_v60  ;;  %v16343_v37 = vpop.f32.mrb[63].mxu1  ;;  %v16345_v16 = vpop.f32.mrb[63].mxu0 }
 0xf62   : > { %20050 = vst [vmem:[#allocation178_spill] sm:$0xff] %v16343_v37  ;;  %20051 = vst [vmem:[#allocation179_spill] sm:$0xff] %v16345_v16 }
 0xf63   : > { %4772 = vrot.lane.b32.xlu1 %v4743_v15, %s12219_s17  ;;  %4908 = vrot.lane.b32.xlu0 %v4880_v30, %s12218_s30  ;;  %v16364_v15 = vmul.f32 %v16357_v0, %v16343_v37  ;;  %v5426_v30 = vmul.f32 %v15226_v43, %v16117_v13  ;;  %v5419_v43 = vsel %vm811_vm6, %v15228_v2, %v15246_v55  ;;  %v20055_v37 = vld [vmem:[#allocation2_spill] sm:$0xff] }
 0xf64   : > { %v16403_v2 = vsel %vm811_vm6, %v15317_v22, %v15291_v14  ;;  %v5435_v0 = vmul.f32 %v15277_v24, %v20054_v12 }
 0xf65   : > { %20053 = vst [vmem:[#allocation181_spill] sm:$0xff] %v16364_v15  ;;  %v16447_v15 = vpop.permute.xlu1 %4566 }
 0xf67   : > { %5005 = vrot.lane.b32.xlu1 %v4978_v36, %s12217_s27  ;;  %4762 = vrot.lane.b32.xlu0 %v4738_v3, %s12219_s17  ;;  %v4875_v36 = vmul.f32 %v4866_v26, %v16115_v48  ;;  %v5865_v3 = vmul.f32 %v15329_v35, %v16117_v13  ;;  %v5519_v35 = vsel %vm446_vm0, %v15309_v33, %v15283_v38 }
 0xf68   : > { %v5528_v1 = vmul.f32 %v5519_v35, %v16132_v50  ;;  %v5430_v26 = vmul.f32 %v15277_v24, %v16132_v50 }
 0xf6b   : > { %5456 = vrot.lane.b32.xlu1 %v5431_v62, %s12218_s30  ;;  %4995 = vrot.lane.b32.xlu0 %v4973_v5, %s12217_s27  ;;  %v5526_v62 = vmul.f32 %v5517_v53, %v16130_v23  ;;  %v5428_v5 = vmul.f32 %v5419_v43, %v16130_v23 }
 0xf6f   : > { %5899 = vrot.lane.b32.xlu1 %v5870_v11, %s12217_s27  ;;  %5446 = vrot.lane.b32.xlu0 %v5426_v30, %s12218_s30  ;;  %v5763_v11 = vmul.f32 %v16403_v2, %v16132_v50  ;;  %v5624_v30 = vmul.f32 %v15313_v39, %v16130_v23 }
 0xf73   : > { %4898 = vrot.lane.b32.xlu1 %v4875_v36, %s12218_s30  ;;  %5889 = vrot.lane.b32.xlu0 %v5865_v3, %s12217_s27  ;;  %v16414_v36 = vsel %vm811_vm6, %v15246_v55, %v15277_v24  ;;  %v5617_v3 = vsel %vm762_vm5, %v15287_v9, %v15315_v21  ;;  %v5531_v24 = vmul.f32 %v5517_v53, %v16154_v40  ;;  %v20058_v53 = vld [vmem:[#allocation10_spill] sm:$0xff] }
 0xf77   : > { %5547 = vrot.lane.b32.xlu1 %v5526_v62, %s12217_s27  ;;  %5450 = vrot.lane.b32.xlu0 %v5428_v5, %s12218_s30  ;;  %v5429_v62 = vmul.f32 %v16414_v36, %v16139_v27  ;;  %v5626_v5 = vmul.f32 %v5617_v3, %v16132_v50 }
 0xf7b   : > { %5551 = vrot.lane.b32.xlu1 %v5528_v1, %s12217_s27  ;;  %5454 = vrot.lane.b32.xlu0 %v5430_v26, %s12218_s30  ;;  %v16427_v1 = vsel %vm762_vm5, %v15313_v39, %v15287_v9  ;;  %v5861_v26 = vmul.f32 %v15327_v28, %v16132_v50  ;;  %v5518_v9 = vsel %vm446_vm0, %v15281_v47, %v15309_v33 }
 0xf7c   : > { %v5625_v55 = vmul.f32 %v16427_v1, %v16139_v27  ;;  %v5529_v47 = vmul.f32 %v15283_v38, %v16141_v34  ;;  %v5532_v31 = vmul.f32 %v5518_v9, %v20063_v4 }
 0xf7f   : > { %5784 = vrot.lane.b32.xlu1 %v5763_v11, %s12218_s30  ;;  %5644 = vrot.lane.b32.xlu0 %v5624_v30, %s12219_s17  ;;  %v16438_v11 = vsel %vm762_vm5, %v15315_v21, %v15289_v17  ;;  %v16453_v21 = vsel %vm446_vm0, %v15327_v28, %v15325_v56 }
 0xf80   : > { %v5627_v30 = vmul.f32 %v16438_v11, %v16141_v34  ;;  %v5862_v33 = vmul.f32 %v16453_v21, %v16141_v34 }
 0xf83   : > { %5452 = vrot.lane.b32.xlu1 %v5429_v62, %s12218_s30  ;;  %5648 = vrot.lane.b32.xlu0 %v5626_v5, %s12219_s17  ;;  %v5527_v62 = vmul.f32 %v5518_v9, %v16139_v27  ;;  %v4557_v5 = vpop.permute.xlu0 %4556 }
 0xf84   : > { %v4576_v29 = vsel %vm762_vm5, %v4557_v5, %v20058_v53  ;;  %v5768_v5 = vmul.f32 %v16403_v2, %v20054_v12  ;;  %v5434_v2 = vmul.f32 %v16414_v36, %v20063_v4 }
 0xf87   : > { %5646 = vrot.lane.b32.xlu1 %v5625_v55, %s12219_s17  ;;  %5881 = vrot.lane.b32.xlu0 %v5861_v26, %s12217_s27  ;;  %v16462_v55 = vpop.permute.xlu0 %4999  ;;  %v16464_v26 = vpop.permute.xlu1 %5009 }
 0xf8b   : > { %5650 = vrot.lane.b32.xlu1 %v5627_v30, %s12219_s17  ;;  %5549 = vrot.lane.b32.xlu0 %v5527_v62, %s12217_s27  ;;  %v5433_v30 = vmul.f32 %v5419_v43, %v16154_v40  ;;  %v16474_v62 = vsel %vm811_vm6, %v15291_v14, %v15319_v44  ;;  %v5629_v14 = vmul.f32 %v15313_v39, %v16154_v40 }
 0xf8c   : > { %v5764_v43 = vmul.f32 %v16474_v62, %v16141_v34  ;;  %v5533_v39 = vmul.f32 %v5519_v35, %v20054_v12  ;;  %v5866_v35 = vmul.f32 %v15327_v28, %v20054_v12  ;;  %v20083_v34 = vld [vmem:[#allocation12_spill] sm:$0xff] }
 0xf8f   : > { %5883 = vrot.lane.b32.xlu1 %v5862_v33, %s12217_s27  ;;  %5553 = vrot.lane.b32.xlu0 %v5529_v47, %s12217_s27 }
 0xf93   : > { %5460 = vrot.lane.b32.xlu1 %v5433_v30, %s12218_s30  ;;  %5782 = vrot.lane.b32.xlu0 %v5762_v6, %s12218_s30  ;;  %v16488_v6 = vld [vmem:[%s19320_s6] ss:$8 sm:$0xf] }
 0xf94   : > { %v16500_v60 = vrot.slane %v16488_v6, %v20055_v37  ;;  %v16537_v54 = vrot.slane %v16488_v6, %v20061_v8 }
 0xf95   : > { %v16476_v33 = vpop.permute.xlu0 %4560  ;;  %v16478_v47 = vpop.permute.xlu1 %4657 }
 0xf96   : > { %v4493_v57 = vmul.f32 %v16500_v60, %v20057_v59  ;;  %v4497_v42 = vmul.f32 %v20080_v19, %v16500_v60  ;;  %v20084_v60 = vld [vmem:[#allocation22_spill] sm:$0xff] }
 0xf97   : > { %5464 = vrot.lane.b32.xlu1 %v5435_v0, %s12218_s30  ;;  %5786 = vrot.lane.b32.xlu0 %v5764_v43, %s12218_s30  ;;  %v5631_v43 = vmul.f32 %v5617_v3, %v20054_v12  ;;  %v20059_v3 = vld [vmem:[#allocation13_spill] sm:$0xff] }
 0xf98   : > { %v4675_v59 = vsel %vm446_vm0, %v20059_v3, %v16478_v47  ;;  %v4592_v46 = vadd.f32 %v4576_v29, %v4493_v57 }
 0xf99   : > { %v16493_v30 = vpop.permute.xlu1 %4661  ;;  %v16495_v16 = vpop.permute.xlu0 %4564 }
 0xf9a   : > { %v4691_v28 = vadd.f32 %v4675_v59, %v4592_v46  ;;  %v20064_v59 = vld [vmem:[#allocation124_spill] sm:$0xff] }
 0xf9b   : > { %5654 = vrot.lane.b32.xlu1 %v5629_v14, %s12219_s17  ;;  %5557 = vrot.lane.b32.xlu0 %v5531_v24, %s12217_s27  ;;  %v16516_v14 = vld [vmem:[%s19320_s6 + $0x4] ss:$8 sm:$0xf]  ;;  %v4495_v9 = vmul.f32 %v16537_v54, %v20064_v59 }
 0xf9d   : > { %v16504_v0 = vpop.permute.xlu1 %4894  ;;  %v4755_v45 = vpop.permute.xlu0 %4754 }
 0xf9e   : > { %20056 = vst [vmem:[#allocation182_spill] sm:$0xff] %v16504_v0 }
 0xf9f   : > { %5658 = vrot.lane.b32.xlu1 %v5631_v43, %s12219_s17  ;;  %5561 = vrot.lane.b32.xlu0 %v5533_v39, %s12217_s27  ;;  %v16533_v39 = vrot.slane %v16516_v14, %v20055_v37 }
 0xfa1   : > { %v16519_v24 = vpop.permute.xlu1 %4562  ;;  %v16526_v43 = vpop.permute.xlu0 %4758  ;;  %v4821_v46 = vmul.f32 %v16533_v39, %v16081_v32 }
 0xfa2   : > { %20060 = vst [vmem:[#allocation11_spill] sm:$0xff] %v16526_v43 }
 0xfa3   : > { %5891 = vrot.lane.b32.xlu1 %v5866_v35, %s12217_s27  ;;  %5794 = vrot.lane.b32.xlu0 %v5768_v5, %s12218_s30  ;;  %v4578_v35 = vsel %vm762_vm5, %v16476_v33, %v16519_v24  ;;  %v20065_v5 = vld [vmem:[#allocation131_spill] sm:$0xff] }
 0xfa4   : > { %v5534_v36 = vmul.f32 %v15283_v38, %v20065_v5  ;;  %v4594_v51 = vadd.f32 %v4578_v35, %v4495_v9  ;;  %v5632_v59 = vmul.f32 %v16438_v11, %v20065_v5  ;;  %v16589_v9 = vld [vmem:[%s19320_s6 + $0x7] ss:$8 sm:$0xf] }
 0xfa5   : > { %v16540_v3 = vpop.permute.xlu1 %4756  ;;  %v4992_v57 = vpop.permute.xlu0 %4991  ;;  %v16601_v11 = vrot.slane %v16589_v9, %v20055_v37  ;;  %v4825_v37 = vmul.f32 %v16533_v39, %v16096_v61 }
 0xfa6   : > { %20062 = vst [vmem:[#allocation10_spill] sm:$0xff] %v16540_v3  ;;  %v4774_v29 = vsel %vm811_vm6, %v4755_v45, %v16540_v3 }
 0xfa7   : > { %v4790_v49 = vadd.f32 %v4774_v29, %v4691_v28  ;;  %5559 = vrot.lane.b32.xlu1 %v5532_v31, %s12217_s27  ;;  %5462 = vrot.lane.b32.xlu0 %v5434_v2, %s12218_s30  ;;  %v5630_v31 = vmul.f32 %v16427_v1, %v20063_v4  ;;  %v16566_v28 = vrot.slane %v16516_v14, %v20061_v8 }
 0xfa8   : > { %v5767_v1 = vmul.f32 %v15317_v22, %v20063_v4 }
 0xfa9   : > { %v16556_v45 = vpop.permute.xlu1 %4760  ;;  %v4829_v58 = vadd.f32 %v4821_v46, %v4790_v49  ;;  %v16560_v25 = vpop.permute.xlu0 %4659 }
 0xfaa   : > { %v4677_v29 = vsel %vm446_vm0, %v16560_v25, %v16493_v30  ;;  %v4776_v38 = vsel %vm811_vm6, %v16526_v43, %v16556_v45 }
 0xfab   : > { %5563 = vrot.lane.b32.xlu1 %v5534_v36, %s12217_s27  ;;  %v4693_v2 = vadd.f32 %v4677_v29, %v4594_v51  ;;  %5656 = vrot.lane.b32.xlu0 %v5630_v31, %s12219_s17  ;;  %v4823_v51 = vmul.f32 %v16566_v28, %v16083_v18  ;;  %v5769_v31 = vmul.f32 %v16474_v62, %v20065_v5 }
 0xfac   : > { %v5867_v29 = vmul.f32 %v16453_v21, %v20065_v5  ;;  %v5375_v21 = vmul.f32 %v16601_v11, %v16117_v13  ;;  %v20072_v5 = vld [vmem:[#allocation134_spill] sm:$0xff] }
 0xfad   : > { %v16576_v49 = vpop.permute.xlu1 %4993  ;;  %v4792_v35 = vadd.f32 %v4776_v38, %v4693_v2  ;;  %v16580_v46 = vpop.permute.xlu0 %4663  ;;  %v5628_v13 = vmul.f32 %v15289_v17, %v20072_v5 }
 0xfae   : > { %20066 = vst [vmem:[#allocation13_spill] sm:$0xff] %v16576_v49 }
 0xfaf   : > { %5792 = vrot.lane.b32.xlu1 %v5767_v1, %s12218_s30  ;;  %5660 = vrot.lane.b32.xlu0 %v5632_v59, %s12219_s17  ;;  %v16593_v36 = vadd.f32 %v4823_v51, %v4792_v35  ;;  %v20068_v1 = vld [vmem:[#allocation64_spill] sm:$0xff]  ;;  %v5011_v51 = vsel %vm446_vm0, %v4992_v57, %v16576_v49 }
 0xfb0   : > { %v5756_v62 = vsel %vm811_vm6, %v15319_v44, %v20068_v1  ;;  %v20069_v35 = vld [vmem:[#allocation132_spill] sm:$0xff] }
 0xfb1   : > { %v16595_v22 = vpop.permute.xlu1 %4570  ;;  %v4893_v18 = vpop.permute.xlu0 %4892  ;;  %v5633_v59 = vmul.f32 %v20069_v35, %v15289_v17 }
 0xfb2   : > { %20067 = vst [vmem:[#allocation4_spill] sm:$0xff] %v16595_v22  ;;  %v4912_v2 = vsel %vm762_vm5, %v4893_v18, %v16504_v0  ;;  %v20095_v0 = vld [vmem:[#allocation5_spill] sm:$0xff] }
 0xfb3   : > { %5796 = vrot.lane.b32.xlu1 %v5769_v31, %s12218_s30  ;;  %v4928_v38 = vadd.f32 %v4912_v2, %v4829_v58  ;;  %5893 = vrot.lane.b32.xlu0 %v5867_v29, %s12217_s27  ;;  %v5770_v31 = vmul.f32 %v20069_v35, %v5756_v62  ;;  %v20070_v29 = vld [vmem:[#allocation44_spill] sm:$0xff] }
 0xfb4   : > { %v5854_v44 = vsel %vm446_vm0, %v15325_v56, %v20070_v29 }
 0xfb5   : > { %v16616_v41 = vpop.permute.xlu1 %4574  ;;  %v5027_v58 = vadd.f32 %v5011_v51, %v4928_v38  ;;  %v16621_v18 = vpop.permute.xlu0 %4896  ;;  %v5868_v57 = vmul.f32 %v20069_v35, %v5854_v44  ;;  %v20074_v38 = vld [vmem:[#allocation46_spill] sm:$0xff]  ;;  %v20078_v35 = vld [vmem:[#allocation135_spill] sm:$0xff] }
 0xfb7   : > { %5662 = vrot.lane.b32.xlu1 %v5633_v59, %s12219_s17  ;;  %5798 = vrot.lane.b32.xlu0 %v5770_v31, %s12218_s30  ;;  %v16628_v2 = vadd.f32 %v5375_v21, %v5027_v58  ;;  %v20075_v59 = vld [vmem:[#allocation133_spill] sm:$0xff]  ;;  %v5863_v21 = vmul.f32 %v5854_v44, %v20072_v5  ;;  %v20077_v58 = vld [vmem:[#allocation27_spill] sm:$0xff] }
 0xfb8   : > { %v6321_v51 = vmul.f32 %v20075_v59, %v20074_v38  ;;  %v6760_v17 = vmul.f32 %v20075_v59, %v20077_v58  ;;  %v20081_v44 = vld [vmem:[#allocation25_spill] sm:$0xff] }
 0xfb9   : > { %20071 = vst [vmem:[#allocation130_spill] sm:$0xff] %v16628_v2  ;;  %v4765_v1 = vpop.permute.xlu1 %4764  ;;  %v16633_v12 = vpop.permute.xlu0 %4667  ;;  %v20094_v2 = vld [vmem:[#allocation18_spill] sm:$0xff] }
 0xfba   : > { %20073 = vst [vmem:[#allocation124_spill] sm:$0xff] %v16633_v12 }
 0xfbb   : > { %5895 = vrot.lane.b32.xlu1 %v5868_v57, %s12217_s27  ;;  %5652 = vrot.lane.b32.xlu0 %v5628_v13, %s12219_s17  ;;  %v6316_v57 = vmul.f32 %v20074_v38, %v20078_v35  ;;  %v6755_v38 = vmul.f32 %v20077_v58, %v20078_v35  ;;  %v20086_v58 = vld [vmem:[#allocation14_spill] sm:$0xff] }
 0xfbc   : > { %v20087_v35 = vld [vmem:[#allocation66_spill] sm:$0xff] }
 0xfbd   : > { %v16639_v56 = vpop.permute.xlu1 %4768  ;;  %v4672_v31 = vpop.permute.xlu0 %4671 }
 0xfbe   : > { %20076 = vst [vmem:[#allocation64_spill] sm:$0xff] %v16639_v56 }
 0xfbf   : > { %6346 = vrot.lane.b32.xlu1 %v6321_v51, %s12218_s30  ;;  %5885 = vrot.lane.b32.xlu0 %v5863_v21, %s12217_s27  ;;  %v4580_v51 = vsel %vm762_vm5, %v16447_v15, %v20081_v44  ;;  %v5765_v21 = vmul.f32 %v5756_v62, %v20072_v5  ;;  %v4499_v5 = vmul.f32 %v16537_v54, %v16092_v20  ;;  %v20090_v54 = vld [vmem:[#allocation34_spill] sm:$0xff] }
 0xfc0   : > { %v4596_v62 = vadd.f32 %v4580_v51, %v4497_v42  ;;  %v20091_v51 = vld [vmem:[#allocation59_spill] sm:$0xff] }
 0xfc1   : > { %v5002_v29 = vpop.permute.xlu1 %5001  ;;  %v16648_v13 = vpop.permute.xlu0 %4904 }
 0xfc2   : > { %20079 = vst [vmem:[#allocation44_spill] sm:$0xff] %v16648_v13 }
 0xfc3   : > { %6789 = vrot.lane.b32.xlu1 %v6760_v17, %s12217_s27  ;;  %6336 = vrot.lane.b32.xlu0 %v6316_v57, %s12218_s30  ;;  %v4679_v17 = vsel %vm446_vm0, %v20083_v34, %v16633_v12  ;;  %v20085_v57 = vld [vmem:[#allocation61_spill] sm:$0xff]  ;;  %v16679_v34 = vsel %vm811_vm6, %v20087_v35, %v20086_v58  ;;  %v20088_v12 = vld [vmem:[#allocation136_spill] sm:$0xff]  ;;  %v16693_v35 = vsel %vm446_vm0, %v20091_v51, %v20090_v54 }
 0xfc4   : > { %v16671_v15 = vsel %vm446_vm0, %v20085_v57, %v20084_v60  ;;  %v4695_v57 = vadd.f32 %v4679_v17, %v4596_v62  ;;  %20092 = vst [vmem:[#allocation36_spill] sm:$0xff] %v16693_v35 }
 0xfc5   : > { %v16658_v59 = vpop.permute.xlu1 %4669  ;;  %v4573_v7 = vpop.permute.xlu0 %4572  ;;  %v6416_v44 = vmul.f32 %v16671_v15, %v20088_v12 }
 0xfc6   : > { %20082 = vst [vmem:[#allocation46_spill] sm:$0xff] %v16658_v59  ;;  %v4582_v19 = vsel %vm762_vm5, %v16595_v22, %v4573_v7  ;;  %v6318_v22 = vmul.f32 %v16679_v34, %v20088_v12 }
 0xfc7   : > { %5788 = vrot.lane.b32.xlu1 %v5765_v21, %s12218_s30  ;;  %6779 = vrot.lane.b32.xlu0 %v6755_v38, %s12217_s27  ;;  %v4598_v50 = vadd.f32 %v4582_v19, %v4499_v5  ;;  %v4681_v5 = vsel %vm446_vm0, %v16658_v59, %v4672_v31  ;;  %v20093_v19 = vld [vmem:[#allocation137_spill] sm:$0xff]  ;;  %v20097_v59 = vld [vmem:[#allocation67_spill] sm:$0xff] }
 0xfc8   : > { %v6320_v49 = vmul.f32 %v20094_v2, %v20093_v19 }
 0xfc9   : > { %v4674_v21 = vpop.permute.xlu1 %4673  ;;  %v16685_v42 = vpop.permute.xlu0 %4766  ;;  %v4697_v62 = vadd.f32 %v4681_v5, %v4598_v50  ;;  %v4827_v5 = vmul.f32 %v16566_v28, %v16098_v63  ;;  %v16739_v28 = vsel %vm811_vm6, %v20086_v58, %v20094_v2 }
 0xfca   : > { %20089 = vst [vmem:[#allocation27_spill] sm:$0xff] %v16685_v42  ;;  %v4778_v20 = vsel %vm811_vm6, %v4765_v1, %v16685_v42  ;;  %v6418_v1 = vmul.f32 %v16693_v35, %v20093_v19  ;;  %v4682_v3 = vsel %vm446_vm0, %v4672_v31, %v4674_v21  ;;  %v5379_v31 = vmul.f32 %v16113_v52, %v16601_v11 }
 0xfcb   : > { %6437 = vrot.lane.b32.xlu1 %v6416_v44, %s12217_s27  ;;  %v4794_v38 = vadd.f32 %v4778_v20, %v4695_v57  ;;  %6340 = vrot.lane.b32.xlu0 %v6318_v22, %s12218_s30  ;;  %v4488_v57 = vrot.slane %v16488_v6, %v20095_v0  ;;  %v20096_v20 = vld [vmem:[#allocation51_spill] sm:$0xff] }
 0xfcc   : > { %v16714_v50 = vsel %vm811_vm6, %v20097_v59, %v20096_v20 }
 0xfcd   : > { %v4903_v17 = vpop.permute.xlu1 %4902  ;;  %v4771_v44 = vpop.permute.xlu0 %4770  ;;  %v4833_v42 = vadd.f32 %v4825_v37, %v4794_v38  ;;  %v4583_v37 = vsel %vm762_vm5, %v4573_v7, %v16616_v41 }
 0xfce   : > { %v4780_v22 = vsel %vm811_vm6, %v16639_v56, %v4771_v44  ;;  %v4916_v39 = vsel %vm762_vm5, %v4903_v17, %v16648_v13  ;;  %v4500_v56 = vmul.f32 %v4488_v57, %v16096_v61  ;;  %v6653_v17 = vmul.f32 %v16714_v50, %v20093_v19 }
 0xfcf   : > { %6441 = vrot.lane.b32.xlu1 %v6418_v1, %s12217_s27  ;;  %v4796_v38 = vadd.f32 %v4780_v22, %v4697_v62  ;;  %6344 = vrot.lane.b32.xlu0 %v6320_v49, %s12218_s30  ;;  %v20098_v1 = vld [vmem:[#allocation54_spill] sm:$0xff]  ;;  %v4932_v43 = vadd.f32 %v4916_v39, %v4833_v42  ;;  %v4816_v49 = vrot.slane %v16516_v14, %v20095_v0  ;;  %v20099_v42 = vld [vmem:[#allocation16_spill] sm:$0xff] }
 0xfd0   : > { %v6514_v13 = vmul.f32 %v20098_v1, %v20088_v12  ;;  %v4599_v63 = vadd.f32 %v4583_v37, %v4500_v56  ;;  %v20100_v62 = vld [vmem:[#allocation68_spill] sm:$0xff]  ;;  %v20101_v37 = vld [vmem:[#allocation138_spill] sm:$0xff] }
 0xfd1   : > { %v16722_v35 = vpop.permute.xlu1 %4906  ;;  %v16729_v7 = vpop.permute.xlu0 %5003  ;;  %v4835_v41 = vadd.f32 %v4827_v5, %v4796_v38  ;;  %v16747_v56 = vsel %vm762_vm5, %v20100_v62, %v20099_v42  ;;  %v6319_v58 = vmul.f32 %v16739_v28, %v20101_v37  ;;  %v4496_v38 = vmul.f32 %v4488_v57, %v16081_v32 }
 0xfd2   : > { %v5015_v61 = vsel %vm446_vm0, %v5002_v29, %v16729_v7  ;;  %v4579_v29 = vsel %vm762_vm5, %v16519_v24, %v16495_v16  ;;  %v4698_v22 = vadd.f32 %v4682_v3, %v4599_v63  ;;  %v6516_v11 = vmul.f32 %v16747_v56, %v20093_v19 }
 0xfd3   : > { %6674 = vrot.lane.b32.xlu1 %v6653_v17, %s12218_s30  ;;  %v5031_v21 = vadd.f32 %v5015_v61, %v4932_v43  ;;  %6534 = vrot.lane.b32.xlu0 %v6514_v13, %s12219_s17  ;;  %v4828_v5 = vmul.f32 %v16111_v10, %v4816_v49  ;;  %v4678_v16 = vsel %vm446_vm0, %v16493_v30, %v16580_v46  ;;  %v20102_v61 = vld [vmem:[#allocation31_spill] sm:$0xff] }
 0xfd4   : > { %v16770_v32 = vsel %vm446_vm0, %v20084_v60, %v20091_v51  ;;  %v5366_v10 = vrot.slane %v16589_v9, %v20061_v8  ;;  %v4595_v30 = vadd.f32 %v4579_v29, %v4496_v38  ;;  %v5370_v60 = vrot.slane %v16589_v9, %v20095_v0 }
 0xfd5   : > { %v4773_v39 = vpop.permute.xlu1 %4772  ;;  %v4909_v52 = vpop.permute.xlu0 %4908  ;;  %v16758_v13 = vadd.f32 %v5379_v31, %v5031_v21 }
 0xfd6   : > { %v4781_v43 = vsel %vm811_vm6, %v4771_v44, %v4773_v39  ;;  %v4918_v24 = vsel %vm762_vm5, %v16722_v35, %v4909_v52  ;;  %v16775_v44 = vsel %vm762_vm5, %v20098_v1, %v20100_v62  ;;  %v4694_v51 = vadd.f32 %v4678_v16, %v4595_v30  ;;  %v20103_v62 = vld [vmem:[#allocation42_spill] sm:$0xff] }
 0xfd7   : > { %v4797_v3 = vadd.f32 %v4781_v43, %v4698_v22  ;;  %6342 = vrot.lane.b32.xlu1 %v6319_v58, %s12218_s30  ;;  %6538 = vrot.lane.b32.xlu0 %v6516_v11, %s12219_s17  ;;  %v4934_v46 = vadd.f32 %v4918_v24, %v4835_v41  ;;  %v6515_v63 = vmul.f32 %v16775_v44, %v20101_v37  ;;  %v20104_v41 = vld [vmem:[#allocation53_spill] sm:$0xff]  ;;  %v20105_v11 = vld [vmem:[#allocation19_spill] sm:$0xff] }
 0xfd8   : > { %v4919_v31 = vsel %vm762_vm5, %v4909_v52, %v20102_v61  ;;  %v6751_v22 = vmul.f32 %v20104_v41, %v20093_v19  ;;  %v5381_v39 = vmul.f32 %v5366_v10, %v16154_v40  ;;  %v16800_v52 = vsel %vm762_vm5, %v20099_v42, %v20105_v11 }
 0xfd9   : > { %v4836_v57 = vadd.f32 %v4828_v5, %v4797_v3  ;;  %v16780_v17 = vpop.permute.xlu1 %5005  ;;  %v4763_v21 = vpop.permute.xlu0 %4762  ;;  %v5018_v5 = vsel %vm446_vm0, %v20103_v62, %v16464_v26  ;;  %v4824_v16 = vmul.f32 %v4816_v49, %v16115_v48  ;;  %v6417_v26 = vmul.f32 %v16770_v32, %v20101_v37  ;;  %v20107_v49 = vld [vmem:[#allocation21_spill] sm:$0xff] }
 0xfda   : > { %v5017_v29 = vsel %vm446_vm0, %v16780_v17, %v20103_v62  ;;  %v4777_v38 = vsel %vm811_vm6, %v16556_v45, %v4763_v21  ;;  %v20106_v45 = vld [vmem:[#allocation139_spill] sm:$0xff] }
 0xfdb   : > { %v4935_v58 = vadd.f32 %v4919_v31, %v4836_v57  ;;  %v5033_v43 = vadd.f32 %v5017_v29, %v4934_v46  ;;  %6536 = vrot.lane.b32.xlu1 %v6515_v63, %s12219_s17  ;;  %v4793_v24 = vadd.f32 %v4777_v38, %v4694_v51  ;;  %6771 = vrot.lane.b32.xlu0 %v6751_v22, %s12217_s27  ;;  %v20108_v21 = vld [vmem:[#allocation3_spill] sm:$0xff] }
 0xfdc   : > { %v6517_v3 = vmul.f32 %v16800_v52, %v20106_v45  ;;  %v5382_v46 = vmul.f32 %v5370_v60, %v20063_v4  ;;  %v16824_v51 = vsel %vm446_vm0, %v20104_v41, %v20107_v49  ;;  %v4480_v62 = vrot.slane %v16488_v6, %v20108_v21 }
 0xfdd   : > { %v16807_v40 = vpop.permute.xlu1 %5456  ;;  %v5034_v30 = vadd.f32 %v5018_v5, %v4935_v58  ;;  %v16812_v57 = vadd.f32 %v5381_v39, %v5033_v43  ;;  %v4832_v42 = vadd.f32 %v4824_v16, %v4793_v24  ;;  %v16814_v63 = vpop.permute.xlu0 %4995  ;;  %v6752_v31 = vmul.f32 %v16824_v51, %v20106_v45  ;;  %v20109_v39 = vld [vmem:[#allocation140_spill] sm:$0xff] }
 0xfde   : > { %v6419_v22 = vmul.f32 %v20090_v54, %v20106_v45  ;;  %v6323_v58 = vmul.f32 %v16679_v34, %v20109_v39  ;;  %v16839_v43 = vmul.f32 0.0, %v4480_v62  ;;  %v20110_v16 = vld [vmem:[#allocation40_spill] sm:$0xff]  ;;  %v4577_v34 = vsel %vm762_vm5, %v20058_v53, %v16476_v33 }
 0xfdf   : > { %6540 = vrot.lane.b32.xlu1 %v6517_v3, %s12219_s17  ;;  %v16819_v48 = vadd.f32 %v5382_v46, %v5034_v30  ;;  %6439 = vrot.lane.b32.xlu0 %v6417_v26, %s12217_s27  ;;  %v6652_v3 = vmul.f32 %v20097_v59, %v20101_v37  ;;  %v20111_v30 = vld [vmem:[#allocation20_spill] sm:$0xff]  ;;  %v4676_v53 = vsel %vm446_vm0, %v16478_v47, %v16560_v25 }
 0xfe0   : > { %v16852_v46 = vsel %vm811_vm6, %v20096_v20, %v20111_v30  ;;  %v20112_v62 = vld [vmem:[#allocation28_spill] sm:$0xff]  ;;  %v6519_v25 = vmul.f32 %v20098_v1, %v20109_v39 }
 0xfe1   : > { %v16827_v61 = vpop.permute.xlu1 %5899  ;;  %v5447_v29 = vpop.permute.xlu0 %5446  ;;  %v5013_v20 = vsel %vm446_vm0, %v16814_v63, %v20112_v62 }
 0xfe3   : > { %6773 = vrot.lane.b32.xlu1 %v6752_v31, %s12217_s27  ;;  %6443 = vrot.lane.b32.xlu0 %v6419_v22, %s12217_s27  ;;  %v5014_v22 = vsel %vm446_vm0, %v20112_v62, %v16462_v55  ;;  %v5378_v55 = vmul.f32 %v5370_v60, %v16139_v27  ;;  %v16888_v60 = vrot.slane %v16516_v14, %v20108_v21  ;;  %v20115_v62 = vld [vmem:[#allocation10_spill] sm:$0xff] }
 0xfe5   : > { %v4899_v38 = vpop.permute.xlu1 %4898  ;;  %v16845_v24 = vpop.permute.xlu0 %5889 }
 0xfe6   : > { %v4914_v5 = vsel %vm762_vm5, %v16621_v18, %v4899_v38  ;;  %v4915_v6 = vsel %vm762_vm5, %v4899_v38, %v20110_v16  ;;  %v5377_v38 = vmul.f32 %v5366_v10, %v16130_v23  ;;  %v20113_v16 = vld [vmem:[#allocation141_spill] sm:$0xff]  ;;  %v4593_v23 = vadd.f32 %v4577_v34, %v16839_v43 }
 0xfe7   : > { %v4930_v26 = vadd.f32 %v4914_v5, %v16593_v36  ;;  %v4931_v31 = vadd.f32 %v4915_v6, %v4832_v42  ;;  %6350 = vrot.lane.b32.xlu1 %v6323_v58, %s12218_s30  ;;  %6672 = vrot.lane.b32.xlu0 %v6652_v3, %s12218_s30  ;;  %v6325_v33 = vmul.f32 %v20094_v2, %v20113_v16 }
 0xfe8   : > { %v6654_v5 = vmul.f32 %v16852_v46, %v20106_v45  ;;  %v4692_v3 = vadd.f32 %v4676_v53, %v4593_v23  ;;  %v6421_v34 = vmul.f32 %v16671_v15, %v20109_v39  ;;  %v6521_v14 = vmul.f32 %v16747_v56, %v20113_v16  ;;  %v20117_v53 = vld [vmem:[#allocation36_spill] sm:$0xff] }
 0xfe9   : > { %v5029_v36 = vadd.f32 %v5013_v20, %v4930_v26  ;;  %v5030_v42 = vadd.f32 %v5014_v22, %v4931_v31  ;;  %v16872_v58 = vpop.permute.xlu1 %5547  ;;  %v5451_v10 = vpop.permute.xlu0 %5450  ;;  %v20114_v31 = vld [vmem:[#allocation11_spill] sm:$0xff]  ;;  %v20116_v20 = vld [vmem:[#allocation125_spill] sm:$0xff]  ;;  %v20119_v56 = vld [vmem:[#allocation32_spill] sm:$0xff] }
 0xfea   : > { %v4775_v22 = vsel %vm811_vm6, %v20115_v62, %v20114_v31  ;;  %v16914_v23 = vld [vmem:[%s19320_s6 + $0x23] ss:$8 sm:$0xf] }
 0xfeb   : > { %6354 = vrot.lane.b32.xlu1 %v6325_v33, %s12218_s30  ;;  %v16879_v6 = vadd.f32 %v5378_v55, %v5030_v42  ;;  %v5385_v2 = vadd.f32 %v5377_v38, %v5029_v36  ;;  %6676 = vrot.lane.b32.xlu0 %v6654_v5, %s12218_s30  ;;  %v4791_v38 = vadd.f32 %v4775_v22, %v4692_v3  ;;  %v20118_v42 = vld [vmem:[#allocation182_spill] sm:$0xff]  ;;  %v20121_v22 = vld [vmem:[#allocation33_spill] sm:$0xff] }
 0xfec   : > { %v4822_v33 = vmul.f32 %v16888_v60, %v20116_v20  ;;  %v6423_v36 = vmul.f32 %v20117_v53, %v20113_v16  ;;  %v4913_v55 = vsel %vm762_vm5, %v20118_v42, %v16621_v18  ;;  %v5466_v3 = vsel %vm762_vm5, %v5447_v29, %v20119_v56 }
 0xfed   : > { %v16884_v47 = vpop.permute.xlu1 %5551  ;;  %v16892_v26 = vpop.permute.xlu0 %5454  ;;  %v6756_v18 = vmul.f32 %v20104_v41, %v20113_v16  ;;  %v6658_v20 = vmul.f32 %v16714_v50, %v20113_v16 }
 0xfee   : > { %v4830_v5 = vadd.f32 %v4822_v33, %v4791_v38  ;;  %v5362_v38 = vrot.slane %v16589_v9, %v20108_v21  ;;  %v20122_v33 = vld [vmem:[#allocation130_spill] sm:$0xff] }
 0xfef   : > { %6544 = vrot.lane.b32.xlu1 %v6519_v25, %s12219_s17  ;;  %6447 = vrot.lane.b32.xlu0 %v6421_v34, %s12217_s27  ;;  %v20120_v25 = vld [vmem:[#allocation13_spill] sm:$0xff]  ;;  %v5482_v53 = vadd.f32 %v5466_v3, %v20122_v33 }
 0xff0   : > { %v5012_v34 = vsel %vm446_vm0, %v20120_v25, %v16814_v63  ;;  %v4929_v62 = vadd.f32 %v4913_v55, %v4830_v5  ;;  %v20123_v63 = vld [vmem:[#allocation2_spill] sm:$0xff]  ;;  %v16942_v25 = vmul.f32 0.0, %v5362_v38  ;;  %v20125_v38 = vld [vmem:[#allocation143_spill] sm:$0xff] }
 0xff1   : > { %v16899_v1 = vpop.permute.xlu1 %5784  ;;  %v5645_v15 = vpop.permute.xlu0 %5644  ;;  %v20124_v5 = vld [vmem:[#allocation142_spill] sm:$0xff] }
 0xff2   : > { %v5028_v41 = vadd.f32 %v5012_v34, %v4929_v62  ;;  %v6422_v9 = vmul.f32 %v16770_v32, %v20124_v5  ;;  %v6324_v3 = vmul.f32 %v16739_v28, %v20124_v5  ;;  %v6424_v28 = vmul.f32 %v20090_v54, %v20125_v38 }
 0xff3   : > { %6548 = vrot.lane.b32.xlu1 %v6521_v14, %s12219_s17  ;;  %6451 = vrot.lane.b32.xlu0 %v6423_v36, %s12217_s27  ;;  %v5565_v14 = vsel %vm446_vm0, %v20121_v22, %v16872_v58  ;;  %v16937_v36 = vrot.slane %v16914_v23, %v20123_v63 }
 0xff4   : > { %v5581_v42 = vadd.f32 %v5565_v14, %v5482_v53  ;;  %v5384_v14 = vadd.f32 %v16942_v25, %v5028_v41  ;;  %v16968_v41 = vrot.slane %v16914_v23, %v20061_v8 }
 0xff5   : > { %v16922_v31 = vpop.permute.xlu1 %5452  ;;  %v5649_v29 = vpop.permute.xlu0 %5648  ;;  %v5711_v32 = vmul.f32 %v16937_v36, %v16139_v27  ;;  %v6520_v27 = vmul.f32 %v16775_v44, %v20124_v5 }
 0xff6   : > { %v5468_v34 = vsel %vm762_vm5, %v5451_v10, %v16922_v31 }
 0xff7   : > { %6781 = vrot.lane.b32.xlu1 %v6756_v18, %s12217_s27  ;;  %6684 = vrot.lane.b32.xlu0 %v6658_v20, %s12218_s30  ;;  %v5467_v18 = vsel %vm762_vm5, %v20119_v56, %v5451_v10  ;;  %v16962_v56 = vrot.slane %v16914_v23, %v20108_v21  ;;  %v5484_v33 = vadd.f32 %v5468_v34, %v5385_v2 }
 0xff8   : > { %v5483_v10 = vadd.f32 %v5467_v18, %v5384_v14  ;;  %v6657_v18 = vmul.f32 %v20097_v59, %v20124_v5  ;;  %v20126_v14 = vld [vmem:[#allocation127_spill] sm:$0xff] }
 0xff9   : > { %v5647_v55 = vpop.permute.xlu1 %5646  ;;  %v5882_v22 = vpop.permute.xlu0 %5881 }
 0xffa   : > { %v5664_v50 = vsel %vm811_vm6, %v5645_v15, %v5647_v55  ;;  %v5665_v2 = vsel %vm811_vm6, %v5647_v55, %v5649_v29 }
 0xffb   : > { %v5680_v62 = vadd.f32 %v5664_v50, %v5581_v42  ;;  %6449 = vrot.lane.b32.xlu1 %v6422_v9, %s12217_s27  ;;  %6352 = vrot.lane.b32.xlu0 %v6324_v3, %s12218_s30 }
 0xffd   : > { %v16956_v15 = vpop.permute.xlu1 %5650  ;;  %v5719_v20 = vadd.f32 %v5711_v32, %v5680_v62  ;;  %v5550_v53 = vpop.permute.xlu0 %5549 }
 0xffe   : > { %v5566_v42 = vsel %vm446_vm0, %v16872_v58, %v5550_v53  ;;  %v5567_v54 = vsel %vm446_vm0, %v5550_v53, %v16884_v47  ;;  %v5666_v44 = vsel %vm811_vm6, %v5649_v29, %v16956_v15  ;;  %v6522_v58 = vmul.f32 %v16800_v52, %v20125_v38  ;;  %v16994_v29 = vld [vmem:[%s19320_s6 + $0x26] ss:$8 sm:$0xf] }
 0xfff   : > { %6453 = vrot.lane.b32.xlu1 %v6424_v28, %s12217_s27  ;;  %v5582_v9 = vadd.f32 %v5566_v42, %v5483_v10  ;;  %v5583_v50 = vadd.f32 %v5567_v54, %v5484_v33  ;;  %6546 = vrot.lane.b32.xlu0 %v6520_v27, %s12219_s17  ;;  %v5712_v28 = vmul.f32 %v16962_v56, %v20126_v14  ;;  %v20127_v10 = vld [vmem:[#allocation128_spill] sm:$0xff] }
0x1000   : > { %v5713_v55 = vmul.f32 %v16968_v41, %v20127_v10  ;;  %v6659_v53 = vmul.f32 %v16852_v46, %v20125_v38  ;;  %v17006_v27 = vrot.slane %v16994_v29, %v20123_v63  ;;  %v6757_v54 = vmul.f32 %v16824_v51, %v20125_v38  ;;  %v20130_v46 = vld [vmem:[#allocation23_spill] sm:$0xff]  ;;  %v20132_v51 = vld [vmem:[#allocation46_spill] sm:$0xff]  ;;  %v20133_v14 = vld [vmem:[#allocation124_spill] sm:$0xff] }
0x1001   : > { %v16979_v3 = vpop.permute.xlu1 %5883  ;;  %v5681_v34 = vadd.f32 %v5665_v2, %v5582_v9  ;;  %v5682_v62 = vadd.f32 %v5666_v44, %v5583_v50  ;;  %v16985_v32 = vpop.permute.xlu0 %5553  ;;  %v20128_v9 = vld [vmem:[#allocation4_spill] sm:$0xff]  ;;  %v20129_v50 = vld [vmem:[#allocation25_spill] sm:$0xff] }
0x1002   : > { %v4581_v2 = vsel %vm762_vm5, %v20129_v50, %v20128_v9  ;;  %v5901_v10 = vsel %vm446_vm0, %v5882_v22, %v16979_v3  ;;  %v20135_v50 = vld [vmem:[#allocation64_spill] sm:$0xff] }
0x1003   : > { %6682 = vrot.lane.b32.xlu1 %v6657_v18, %s12218_s30  ;;  %6550 = vrot.lane.b32.xlu0 %v6522_v58, %s12219_s17  ;;  %v16998_v59 = vadd.f32 %v5712_v28, %v5681_v34  ;;  %v17000_v52 = vadd.f32 %v5713_v55, %v5682_v62  ;;  %v6646_v58 = vsel %vm811_vm6, %v20111_v30, %v20130_v46  ;;  %v20131_v34 = vld [vmem:[#allocation144_spill] sm:$0xff] }
0x1004   : > { %v6523_v62 = vmul.f32 %v20131_v34, %v20105_v11  ;;  %v4680_v28 = vsel %vm446_vm0, %v20133_v14, %v20132_v51  ;;  %v20137_v51 = vld [vmem:[#allocation62_spill] sm:$0xff] }
0x1005   : > { %v5461_v33 = vpop.permute.xlu1 %5460  ;;  %v5783_v42 = vpop.permute.xlu0 %5782  ;;  %v6744_v22 = vsel %vm446_vm0, %v20107_v49, %v20137_v51  ;;  %v20140_v49 = vld [vmem:[#allocation49_spill] sm:$0xff]  ;;  %v5016_v51 = vsel %vm446_vm0, %v16729_v7, %v16780_v17 }
0x1006   : > { %v5802_v44 = vsel %vm762_vm5, %v5783_v42, %v16899_v1  ;;  %v6660_v42 = vmul.f32 %v20131_v34, %v6646_v58  ;;  %v20145_v17 = vld [vmem:[#allocation41_spill] sm:$0xff] }
0x1007   : > { %6686 = vrot.lane.b32.xlu1 %v6659_v53, %s12218_s30  ;;  %v5818_v18 = vadd.f32 %v5802_v44, %v5719_v20  ;;  %6783 = vrot.lane.b32.xlu0 %v6757_v54, %s12217_s27  ;;  %v20134_v53 = vld [vmem:[#allocation135_spill] sm:$0xff]  ;;  %v4597_v54 = vadd.f32 %v4581_v2, %v16839_v43  ;;  %v6758_v43 = vmul.f32 %v20131_v34, %v6744_v22 }
0x1008   : > { %v6265_v20 = vmul.f32 %v17006_v27, %v20134_v53  ;;  %v20136_v44 = vld [vmem:[#allocation27_spill] sm:$0xff] }
0x1009   : > { %v17027_v55 = vpop.permute.xlu1 %5464  ;;  %v5917_v30 = vadd.f32 %v5901_v10, %v5818_v18  ;;  %v17033_v9 = vpop.permute.xlu0 %5786  ;;  %v4779_v46 = vsel %vm811_vm6, %v20136_v44, %v20135_v50  ;;  %v4696_v14 = vadd.f32 %v4680_v28, %v4597_v54  ;;  %v20138_v18 = vld [vmem:[#allocation146_spill] sm:$0xff]  ;;  %v20141_v28 = vld [vmem:[#allocation145_spill] sm:$0xff] }
0x100a   : > { %v6518_v10 = vmul.f32 %v20105_v11, %v20138_v18  ;;  %v6753_v44 = vmul.f32 %v6744_v22, %v20138_v18  ;;  %v6655_v7 = vmul.f32 %v6646_v58, %v20138_v18 }
0x100b   : > { %6552 = vrot.lane.b32.xlu1 %v6523_v62, %s12219_s17  ;;  %6688 = vrot.lane.b32.xlu0 %v6660_v42, %s12218_s30  ;;  %v17043_v53 = vadd.f32 %v6265_v20, %v5917_v30  ;;  %v4795_v38 = vadd.f32 %v4779_v46, %v4696_v14  ;;  %v20139_v62 = vld [vmem:[#allocation126_spill] sm:$0xff]  ;;  %v7211_v42 = vmul.f32 %v20141_v28, %v20140_v49  ;;  %v20142_v20 = vld [vmem:[#allocation44_spill] sm:$0xff]  ;;  %v20143_v14 = vld [vmem:[#allocation97_spill] sm:$0xff] }
0x100c   : > { %v4826_v50 = vmul.f32 %v16888_v60, %v20139_v62  ;;  %v4917_v54 = vsel %vm762_vm5, %v20142_v20, %v16722_v35  ;;  %v20144_v35 = vld [vmem:[#allocation147_spill] sm:$0xff] }
0x100d   : > { %v5655_v2 = vpop.permute.xlu1 %5654  ;;  %v5558_v16 = vpop.permute.xlu0 %5557  ;;  %v7206_v22 = vmul.f32 %v20140_v49, %v20144_v35  ;;  %v7645_v49 = vmul.f32 %v20143_v14, %v20144_v35 }
0x100e   : > { %v4834_v11 = vadd.f32 %v4826_v50, %v4795_v38  ;;  %v5470_v50 = vsel %vm762_vm5, %v16807_v40, %v20145_v17  ;;  %v20147_v40 = vld [vmem:[#allocation37_spill] sm:$0xff] }
0x100f   : > { %6785 = vrot.lane.b32.xlu1 %v6758_v43, %s12217_s27  ;;  %6542 = vrot.lane.b32.xlu0 %v6518_v10, %s12219_s17  ;;  %v7650_v43 = vmul.f32 %v20141_v28, %v20143_v14 }
0x1010   : > { %v4933_v60 = vadd.f32 %v4917_v54, %v4834_v11  ;;  %v20146_v11 = vld [vmem:[#allocation56_spill] sm:$0xff] }
0x1011   : > { %v5659_v30 = vpop.permute.xlu1 %5658  ;;  %v17058_v46 = vpop.permute.xlu0 %5561 }
0x1012   : > { %v5032_v38 = vadd.f32 %v5016_v51, %v4933_v60  ;;  %v5569_v51 = vsel %vm446_vm0, %v20146_v11, %v5558_v16 }
0x1013   : > { %7236 = vrot.lane.b32.xlu1 %v7211_v42, %s12218_s30  ;;  %6775 = vrot.lane.b32.xlu0 %v6753_v44, %s12217_s27  ;;  %v5471_v42 = vsel %vm762_vm5, %v20145_v17, %v5461_v33  ;;  %v5486_v17 = vadd.f32 %v5470_v50, %v16758_v13  ;;  %v20152_v50 = vld [vmem:[#allocation55_spill] sm:$0xff] }
0x1014   : > { %v5388_v54 = vadd.f32 %v16942_v25, %v5032_v38  ;;  %v20149_v25 = vld [vmem:[#allocation78_spill] sm:$0xff]  ;;  %v20150_v38 = vld [vmem:[#allocation52_spill] sm:$0xff] }
0x1015   : > { %v17067_v10 = vpop.permute.xlu1 %5891  ;;  %v17071_v62 = vpop.permute.xlu0 %5794  ;;  %v17099_v11 = vsel %vm811_vm6, %v20150_v38, %v20149_v25  ;;  %v5585_v34 = vadd.f32 %v5569_v51, %v5486_v17  ;;  %v5715_v51 = vmul.f32 %v16937_v36, %v20063_v4 }
0x1016   : > { %v5487_v14 = vadd.f32 %v5471_v42, %v5388_v54  ;;  %v20153_v42 = vld [vmem:[#allocation48_spill] sm:$0xff] }
0x1017   : > { %7679 = vrot.lane.b32.xlu1 %v7650_v43, %s12217_s27  ;;  %7226 = vrot.lane.b32.xlu0 %v7206_v22, %s12218_s30  ;;  %v20148_v43 = vld [vmem:[#allocation77_spill] sm:$0xff] }
0x1018   : > { %v17092_v22 = vsel %vm446_vm0, %v20148_v43, %v20147_v40 }
0x1019   : > { %v5560_v20 = vpop.permute.xlu1 %5559  ;;  %v5463_v44 = vpop.permute.xlu0 %5462 }
0x101a   : > { %v5570_v60 = vsel %vm446_vm0, %v5558_v16, %v5560_v20  ;;  %v5472_v58 = vsel %vm762_vm5, %v5461_v33, %v5463_v44  ;;  %v20151_v16 = vld [vmem:[#allocation148_spill] sm:$0xff] }
0x101b   : > { %6678 = vrot.lane.b32.xlu1 %v6655_v7, %s12218_s30  ;;  %7669 = vrot.lane.b32.xlu0 %v7645_v49, %s12217_s27  ;;  %v7306_v33 = vmul.f32 %v17092_v22, %v20151_v16  ;;  %v7208_v7 = vmul.f32 %v17099_v11, %v20151_v16  ;;  %v5586_v43 = vadd.f32 %v5570_v60, %v5487_v14  ;;  %v20155_v14 = vld [vmem:[#allocation149_spill] sm:$0xff] }
0x101c   : > { %v5488_v28 = vadd.f32 %v5472_v58, %v16812_v57  ;;  %v17109_v49 = vsel %vm446_vm0, %v20153_v42, %v20152_v50  ;;  %v20154_v57 = vld [vmem:[#allocation129_spill] sm:$0xff]  ;;  %v5571_v58 = vsel %vm446_vm0, %v5560_v20, %v17058_v46  ;;  %v20158_v20 = vld [vmem:[#allocation95_spill] sm:$0xff] }
0x101d   : > { %v5564_v18 = vpop.permute.xlu1 %5563  ;;  %v5657_v13 = vpop.permute.xlu0 %5656  ;;  %v5716_v60 = vmul.f32 %v16962_v56, %v20154_v57  ;;  %v20157_v56 = vld [vmem:[#allocation70_spill] sm:$0xff]  ;;  %v20160_v57 = vld [vmem:[#allocation84_spill] sm:$0xff] }
0x101e   : > { %v5668_v54 = vsel %vm811_vm6, %v5655_v2, %v5657_v13  ;;  %v5669_v38 = vsel %vm811_vm6, %v5657_v13, %v5659_v30  ;;  %v7308_v2 = vmul.f32 %v17109_v49, %v20155_v14  ;;  %v5587_v19 = vadd.f32 %v5571_v58, %v5488_v28 }
0x101f   : > { %7327 = vrot.lane.b32.xlu1 %v7306_v33, %s12217_s27  ;;  %v5684_v35 = vadd.f32 %v5668_v54, %v5585_v34  ;;  %v5685_v45 = vadd.f32 %v5669_v38, %v5586_v43  ;;  %7230 = vrot.lane.b32.xlu0 %v7208_v7, %s12218_s30  ;;  %v20156_v34 = vld [vmem:[#allocation30_spill] sm:$0xff]  ;;  %v17134_v54 = vsel %vm811_vm6, %v20158_v20, %v20157_v56 }
0x1020   : > { %v7210_v43 = vmul.f32 %v20156_v34, %v20155_v14  ;;  %v5473_v28 = vsel %vm762_vm5, %v5463_v44, %v17027_v55  ;;  %v5572_v58 = vsel %vm446_vm0, %v17058_v46, %v5564_v18  ;;  %v5706_v55 = vrot.slane %v16914_v23, %v20095_v0  ;;  %v20161_v18 = vld [vmem:[#allocation133_spill] sm:$0xff]  ;;  %v20162_v23 = vld [vmem:[#allocation94_spill] sm:$0xff] }
0x1021   : > { %v5793_v17 = vpop.permute.xlu1 %5792  ;;  %v5723_v13 = vadd.f32 %v5715_v51, %v5684_v35  ;;  %v5661_v33 = vpop.permute.xlu0 %5660  ;;  %v17125_v7 = vadd.f32 %v5716_v60, %v5685_v45  ;;  %v20159_v45 = vld [vmem:[#allocation131_spill] sm:$0xff]  ;;  %v7404_v60 = vmul.f32 %v20160_v57, %v20151_v16  ;;  %v6269_v46 = vmul.f32 %v20161_v18, %v17006_v27 }
0x1022   : > { %v5806_v4 = vsel %vm762_vm5, %v5793_v17, %v17071_v62  ;;  %v5670_v36 = vsel %vm811_vm6, %v5659_v30, %v5661_v33  ;;  %v5717_v38 = vmul.f32 %v16968_v41, %v20159_v45  ;;  %v7543_v30 = vmul.f32 %v17134_v54, %v20155_v14 }
0x1023   : > { %7331 = vrot.lane.b32.xlu1 %v7308_v2, %s12217_s27  ;;  %v5686_v35 = vadd.f32 %v5670_v36, %v5587_v19  ;;  %7234 = vrot.lane.b32.xlu0 %v7210_v43, %s12218_s30  ;;  %v5822_v17 = vadd.f32 %v5806_v4, %v5723_v13  ;;  %v5489_v41 = vadd.f32 %v5473_v28, %v16819_v48  ;;  %v20163_v4 = vld [vmem:[#allocation60_spill] sm:$0xff] }
0x1024   : > { %v17161_v43 = vsel %vm811_vm6, %v20149_v25, %v20156_v34  ;;  %v17169_v48 = vsel %vm762_vm5, %v20163_v4, %v20162_v23  ;;  %v17178_v27 = vrot.slane %v16994_v29, %v20061_v8 }
0x1025   : > { %v17141_v51 = vpop.permute.xlu1 %5796  ;;  %v17149_v2 = vpop.permute.xlu0 %5893  ;;  %v5725_v19 = vadd.f32 %v5717_v38, %v5686_v35  ;;  %v5588_v36 = vadd.f32 %v5572_v58, %v5489_v41  ;;  %v20164_v35 = vld [vmem:[#allocation150_spill] sm:$0xff]  ;;  %v17200_v41 = vsel %vm762_vm5, %v20160_v57, %v20163_v4  ;;  %v20167_v4 = vld [vmem:[#allocation47_spill] sm:$0xff] }
0x1026   : > { %v5905_v44 = vsel %vm446_vm0, %v17067_v10, %v17149_v2  ;;  %v5469_v10 = vsel %vm762_vm5, %v16922_v31, %v16892_v26  ;;  %v7209_v25 = vmul.f32 %v17161_v43, %v20164_v35  ;;  %v5568_v26 = vsel %vm446_vm0, %v16884_v47, %v16985_v32 }
0x1027   : > { %7564 = vrot.lane.b32.xlu1 %v7543_v30, %s12218_s30  ;;  %v5921_v13 = vadd.f32 %v5905_v44, %v5822_v17  ;;  %7424 = vrot.lane.b32.xlu0 %v7404_v60, %s12219_s17  ;;  %v7406_v30 = vmul.f32 %v17169_v48, %v20155_v14  ;;  %v20165_v17 = vld [vmem:[#allocation132_spill] sm:$0xff]  ;;  %v5485_v18 = vadd.f32 %v5469_v10, %v16879_v6 }
0x1028   : > { %v5718_v44 = vmul.f32 %v20165_v17, %v5706_v55  ;;  %v6271_v47 = vmul.f32 %v17178_v27, %v20109_v39  ;;  %v6260_v17 = vrot.slane %v16994_v29, %v20095_v0 }
0x1029   : > { %v5663_v28 = vpop.permute.xlu1 %5662  ;;  %v5799_v38 = vpop.permute.xlu0 %5798  ;;  %v17183_v60 = vadd.f32 %v6269_v46, %v5921_v13 }
0x102a   : > { %v5671_v45 = vsel %vm811_vm6, %v5661_v33, %v5663_v28  ;;  %v5808_v58 = vsel %vm762_vm5, %v17141_v51, %v5799_v38  ;;  %v17195_v33 = vsel %vm446_vm0, %v20147_v40, %v20153_v42  ;;  %v7405_v40 = vmul.f32 %v17200_v41, %v20164_v35 }
0x102b   : > { %v5687_v31 = vadd.f32 %v5671_v45, %v5588_v36  ;;  %7232 = vrot.lane.b32.xlu1 %v7209_v25, %s12218_s30  ;;  %7428 = vrot.lane.b32.xlu0 %v7406_v30, %s12219_s17  ;;  %v5824_v46 = vadd.f32 %v5808_v58, %v5725_v19  ;;  %v5584_v42 = vadd.f32 %v5568_v26, %v5485_v18  ;;  %v20166_v36 = vld [vmem:[#allocation39_spill] sm:$0xff]  ;;  %v20170_v26 = vld [vmem:[#allocation134_spill] sm:$0xff] }
0x102c   : > { %v5809_v28 = vsel %vm762_vm5, %v5799_v38, %v20166_v36  ;;  %v20168_v25 = vld [vmem:[#allocation71_spill] sm:$0xff]  ;;  %v5908_v58 = vsel %vm446_vm0, %v20167_v4, %v16827_v61  ;;  %v6272_v36 = vmul.f32 %v6260_v17, %v20124_v5 }
0x102d   : > { %v5726_v32 = vadd.f32 %v5718_v44, %v5687_v31  ;;  %v17206_v13 = vpop.permute.xlu1 %5895  ;;  %v5653_v10 = vpop.permute.xlu0 %5652  ;;  %v7641_v45 = vmul.f32 %v20168_v25, %v20155_v14  ;;  %v20169_v44 = vld [vmem:[#allocation83_spill] sm:$0xff]  ;;  %v5714_v31 = vmul.f32 %v5706_v55, %v20170_v26  ;;  %v7307_v55 = vmul.f32 %v17195_v33, %v20164_v35 }
0x102e   : > { %v5907_v6 = vsel %vm446_vm0, %v17206_v13, %v20167_v4  ;;  %v5667_v19 = vsel %vm811_vm6, %v16956_v15, %v5653_v10  ;;  %v17225_v38 = vsel %vm762_vm5, %v20162_v23, %v20169_v44 }
0x102f   : > { %v5825_v39 = vadd.f32 %v5809_v28, %v5726_v32  ;;  %v5923_v30 = vadd.f32 %v5907_v6, %v5824_v46  ;;  %7426 = vrot.lane.b32.xlu1 %v7405_v40, %s12219_s17  ;;  %v5683_v18 = vadd.f32 %v5667_v19, %v5584_v42  ;;  %7661 = vrot.lane.b32.xlu0 %v7641_v45, %s12217_s27  ;;  %v20171_v46 = vld [vmem:[#allocation151_spill] sm:$0xff]  ;;  %v20172_v42 = vld [vmem:[#allocation89_spill] sm:$0xff] }
0x1030   : > { %v7407_v40 = vmul.f32 %v17225_v38, %v20171_v46  ;;  %v17247_v4 = vsel %vm446_vm0, %v20168_v25, %v20172_v42 }
0x1031   : > { %v5924_v15 = vadd.f32 %v5908_v58, %v5825_v39  ;;  %v17232_v32 = vpop.permute.xlu1 %6346  ;;  %v17237_v28 = vadd.f32 %v6271_v47, %v5923_v30  ;;  %v5722_v23 = vadd.f32 %v5714_v31, %v5683_v18  ;;  %v5886_v6 = vpop.permute.xlu0 %5885  ;;  %v7642_v47 = vmul.f32 %v17247_v4, %v20171_v46  ;;  %v20173_v30 = vld [vmem:[#allocation152_spill] sm:$0xff]  ;;  %v20174_v58 = vld [vmem:[#allocation38_spill] sm:$0xff] }
0x1032   : > { %v7309_v39 = vmul.f32 %v20152_v50, %v20171_v46  ;;  %v7213_v19 = vmul.f32 %v17099_v11, %v20173_v30 }
0x1033   : > { %7430 = vrot.lane.b32.xlu1 %v7407_v40, %s12219_s17  ;;  %v17242_v61 = vadd.f32 %v6272_v36, %v5924_v15  ;;  %7329 = vrot.lane.b32.xlu0 %v7307_v55, %s12217_s27  ;;  %v7542_v40 = vmul.f32 %v20158_v20, %v20164_v35 }
0x1035   : > { %v17250_v10 = vpop.permute.xlu1 %6789  ;;  %v6337_v45 = vpop.permute.xlu0 %6336 }
0x1037   : > { %7663 = vrot.lane.b32.xlu1 %v7642_v47, %s12217_s27  ;;  %7333 = vrot.lane.b32.xlu0 %v7309_v39, %s12217_s27  ;;  %v20175_v47 = vld [vmem:[#allocation92_spill] sm:$0xff]  ;;  %v6267_v39 = vmul.f32 %v17178_v27, %v20088_v12 }
0x1038   : > { %v17273_v11 = vsel %vm811_vm6, %v20157_v56, %v20175_v47  ;;  %v6268_v56 = vmul.f32 %v6260_v17, %v20101_v37 }
0x1039   : > { %v5789_v26 = vpop.permute.xlu1 %5788  ;;  %v17264_v15 = vpop.permute.xlu0 %6779  ;;  %v7544_v12 = vmul.f32 %v17273_v11, %v20171_v46 }
0x103a   : > { %v5804_v31 = vsel %vm762_vm5, %v17033_v9, %v5789_v26  ;;  %v5805_v18 = vsel %vm762_vm5, %v5789_v26, %v20174_v58  ;;  %v20176_v26 = vld [vmem:[#allocation45_spill] sm:$0xff] }
0x103b   : > { %v5820_v36 = vadd.f32 %v5804_v31, %v17000_v52  ;;  %v5821_v55 = vadd.f32 %v5805_v18, %v5722_v23  ;;  %7240 = vrot.lane.b32.xlu1 %v7213_v19, %s12218_s30  ;;  %v5904_v58 = vsel %vm446_vm0, %v20176_v26, %v16845_v24  ;;  %v5903_v14 = vsel %vm446_vm0, %v5886_v6, %v20176_v26  ;;  %v20177_v31 = vld [vmem:[#allocation153_spill] sm:$0xff] }
0x103c   : > { %7562 = vrot.lane.b32.xlu0 %v7542_v40, %s12218_s30  ;;  %v7215_v18 = vmul.f32 %v20156_v34, %v20177_v31  ;;  %v7311_v34 = vmul.f32 %v17092_v22, %v20173_v30  ;;  %v5803_v26 = vsel %vm762_vm5, %v16899_v1, %v17033_v9  ;;  %v17315_v22 = vld [vmem:[%s19320_s6 + $0x42] ss:$8 sm:$0xf]  ;;  %v7646_v1 = vmul.f32 %v20168_v25, %v20177_v31 }
0x103d   : > { %v5919_v52 = vadd.f32 %v5903_v14, %v5820_v36  ;;  %v5920_v23 = vadd.f32 %v5904_v58, %v5821_v55  ;;  %v6438_v19 = vpop.permute.xlu1 %6437  ;;  %v6341_v35 = vpop.permute.xlu0 %6340  ;;  %v7409_v14 = vmul.f32 %v20160_v57, %v20173_v30  ;;  %v7411_v55 = vmul.f32 %v17169_v48, %v20177_v31  ;;  %v20178_v58 = vld [vmem:[#allocation50_spill] sm:$0xff] }
0x103e   : > { %v7313_v57 = vmul.f32 %v17109_v49, %v20177_v31  ;;  %v5902_v48 = vsel %vm446_vm0, %v16979_v3, %v5886_v6  ;;  %v5819_v9 = vadd.f32 %v5803_v26, %v16998_v59  ;;  %v17337_v3 = vrot.slane %v17315_v22, %v20123_v63 }
0x103f   : > { %7244 = vrot.lane.b32.xlu1 %v7215_v18, %s12218_s30  ;;  %v6275_v24 = vadd.f32 %v6267_v39, %v5919_v52  ;;  %v17289_v27 = vadd.f32 %v6268_v56, %v5920_v23  ;;  %v6356_v52 = vsel %vm762_vm5, %v6337_v45, %v20178_v58  ;;  %v20179_v23 = vld [vmem:[#allocation35_spill] sm:$0xff]  ;;  %v6252_v56 = vrot.slane %v16994_v29, %v20108_v21 }
0x1040   : > { %7566 = vrot.lane.b32.xlu0 %v7544_v12, %s12218_s30  ;;  %v6455_v18 = vsel %vm446_vm0, %v20179_v23, %v6438_v19  ;;  %v7548_v45 = vmul.f32 %v17134_v54, %v20177_v31  ;;  %v5918_v25 = vadd.f32 %v5902_v48, %v5819_v9  ;;  %v6357_v26 = vsel %vm762_vm5, %v20178_v58, %v6341_v35  ;;  %v20181_v9 = vld [vmem:[#allocation155_spill] sm:$0xff] }
0x1041   : > { %v17294_v40 = vpop.permute.xlu1 %6441  ;;  %v17298_v17 = vpop.permute.xlu0 %6344 }
0x1043   : > { %7434 = vrot.lane.b32.xlu1 %v7409_v14, %s12219_s17  ;;  %v6372_v14 = vadd.f32 %v6356_v52, %v17043_v53 }
0x1044   : > { %7337 = vrot.lane.b32.xlu0 %v7311_v34, %s12217_s27  ;;  %v20180_v34 = vld [vmem:[#allocation154_spill] sm:$0xff] }
0x1045   : > { %v17302_v36 = vpop.permute.xlu1 %6674  ;;  %v6535_v39 = vpop.permute.xlu0 %6534  ;;  %v6471_v59 = vadd.f32 %v6455_v18, %v6372_v14  ;;  %v7312_v29 = vmul.f32 %v17195_v33, %v20180_v34  ;;  %v7214_v53 = vmul.f32 %v17161_v43, %v20180_v34  ;;  %v6601_v33 = vmul.f32 %v17337_v3, %v20101_v37 }
0x1046   : > { %v7314_v43 = vmul.f32 %v20152_v50, %v20181_v9  ;;  %v7410_v58 = vmul.f32 %v17200_v41, %v20180_v34  ;;  %v17368_v37 = vrot.slane %v17315_v22, %v20061_v8 }
0x1047   : > { %7438 = vrot.lane.b32.xlu1 %v7411_v55, %s12219_s17  ;;  %v17342_v55 = vmul.f32 0.0, %v6252_v56 }
0x1048   : > { %7341 = vrot.lane.b32.xlu0 %v7313_v57, %s12217_s27 }
0x1049   : > { %v17322_v49 = vpop.permute.xlu1 %6342  ;;  %v6539_v12 = vpop.permute.xlu0 %6538 }
0x104a   : > { %v6358_v52 = vsel %vm762_vm5, %v6341_v35, %v17322_v49 }
0x104b   : > { %7671 = vrot.lane.b32.xlu1 %v7646_v1, %s12217_s27  ;;  %v6274_v1 = vadd.f32 %v17342_v55, %v5918_v25  ;;  %v6374_v18 = vadd.f32 %v6358_v52, %v6275_v24 }
0x104c   : > { %7574 = vrot.lane.b32.xlu0 %v7548_v45, %s12218_s30  ;;  %v17364_v45 = vrot.slane %v17315_v22, %v20108_v21 }
0x104d   : > { %v6537_v6 = vpop.permute.xlu1 %6536  ;;  %v6772_v57 = vpop.permute.xlu0 %6771  ;;  %v6373_v35 = vadd.f32 %v6357_v26, %v6274_v1  ;;  %v20183_v1 = vld [vmem:[#allocation139_spill] sm:$0xff] }
0x104e   : > { %v6554_v54 = vsel %vm811_vm6, %v6535_v39, %v6537_v6  ;;  %v6555_v24 = vsel %vm811_vm6, %v6537_v6, %v6539_v12  ;;  %v6603_v6 = vmul.f32 %v17368_v37, %v20183_v1 }
0x104f   : > { %v6570_v48 = vadd.f32 %v6554_v54, %v6471_v59  ;;  %7339 = vrot.lane.b32.xlu1 %v7312_v29, %s12217_s27  ;;  %v7547_v54 = vmul.f32 %v20158_v20, %v20180_v34 }
0x1050   : > { %7242 = vrot.lane.b32.xlu0 %v7214_v53, %s12218_s30 }
0x1051   : > { %v17356_v39 = vpop.permute.xlu1 %6540  ;;  %v6609_v23 = vadd.f32 %v6601_v33, %v6570_v48  ;;  %v6440_v56 = vpop.permute.xlu0 %6439  ;;  %v20182_v48 = vld [vmem:[#allocation137_spill] sm:$0xff] }
0x1052   : > { %v6456_v14 = vsel %vm446_vm0, %v6438_v19, %v6440_v56  ;;  %v6457_v50 = vsel %vm446_vm0, %v6440_v56, %v17294_v40  ;;  %v6556_v59 = vsel %vm811_vm6, %v6539_v12, %v17356_v39  ;;  %v7412_v19 = vmul.f32 %v17225_v38, %v20181_v9  ;;  %v17393_v12 = vld [vmem:[%s19320_s6 + $0x45] ss:$8 sm:$0xf] }
0x1053   : > { %7343 = vrot.lane.b32.xlu1 %v7314_v43, %s12217_s27  ;;  %v6472_v41 = vadd.f32 %v6456_v14, %v6373_v35  ;;  %v6473_v25 = vadd.f32 %v6457_v50, %v6374_v18  ;;  %v6602_v33 = vmul.f32 %v17364_v45, %v20182_v48  ;;  %v17405_v35 = vrot.slane %v17393_v12, %v20123_v63  ;;  %v20187_v48 = vld [vmem:[#allocation74_spill] sm:$0xff] }
0x1054   : > { %7436 = vrot.lane.b32.xlu0 %v7410_v58, %s12219_s17  ;;  %v7549_v58 = vmul.f32 %v17273_v11, %v20181_v9  ;;  %v7647_v56 = vmul.f32 %v17247_v4, %v20181_v9  ;;  %v20186_v4 = vld [vmem:[#allocation147_spill] sm:$0xff] }
0x1055   : > { %v17378_v29 = vpop.permute.xlu1 %6773  ;;  %v6571_v53 = vadd.f32 %v6555_v24, %v6472_v41  ;;  %v6572_v26 = vadd.f32 %v6556_v59, %v6473_v25  ;;  %v17384_v52 = vpop.permute.xlu0 %6443  ;;  %v20184_v41 = vld [vmem:[#allocation80_spill] sm:$0xff] }
0x1056   : > { %v7536_v11 = vsel %vm811_vm6, %v20175_v47, %v20184_v41  ;;  %v20185_v25 = vld [vmem:[#allocation156_spill] sm:$0xff]  ;;  %v6791_v59 = vsel %vm446_vm0, %v6772_v57, %v17378_v29  ;;  %v7634_v47 = vsel %vm446_vm0, %v20172_v42, %v20187_v48  ;;  %v5807_v42 = vsel %vm762_vm5, %v17071_v62, %v17141_v51  ;;  %v20192_v62 = vld [vmem:[#allocation159_spill] sm:$0xff] }
0x1057   : > { %7572 = vrot.lane.b32.xlu1 %v7547_v54, %s12218_s30  ;;  %v17397_v20 = vadd.f32 %v6602_v33, %v6571_v53  ;;  %v17399_v38 = vadd.f32 %v6603_v6, %v6572_v26  ;;  %v7413_v24 = vmul.f32 %v20185_v25, %v20169_v44  ;;  %v7550_v53 = vmul.f32 %v20185_v25, %v7536_v11  ;;  %v20188_v6 = vld [vmem:[#allocation158_spill] sm:$0xff] }
0x1058   : > { %7440 = vrot.lane.b32.xlu0 %v7412_v19, %s12219_s17  ;;  %v7155_v19 = vmul.f32 %v17405_v35, %v20186_v4  ;;  %v7648_v57 = vmul.f32 %v20185_v25, %v7634_v47  ;;  %v5823_v4 = vadd.f32 %v5807_v42, %v17125_v7  ;;  %v20193_v7 = vld [vmem:[#allocation73_spill] sm:$0xff] }
0x1059   : > { %v6351_v43 = vpop.permute.xlu1 %6350  ;;  %v6673_v18 = vpop.permute.xlu0 %6672 }
0x105a   : > { %v6692_v14 = vsel %vm762_vm5, %v6673_v18, %v17302_v36 }
0x105b   : > { %7576 = vrot.lane.b32.xlu1 %v7549_v58, %s12218_s30  ;;  %v6708_v50 = vadd.f32 %v6692_v14, %v6609_v23  ;;  %v7408_v58 = vmul.f32 %v20169_v44, %v20188_v6  ;;  %v20190_v14 = vld [vmem:[#allocation157_spill] sm:$0xff]  ;;  %v5906_v44 = vsel %vm446_vm0, %v17149_v2, %v17206_v13  ;;  %v7545_v2 = vmul.f32 %v7536_v11, %v20188_v6 }
0x105c   : > { %7673 = vrot.lane.b32.xlu0 %v7647_v56, %s12217_s27  ;;  %v20189_v56 = vld [vmem:[#allocation98_spill] sm:$0xff]  ;;  %v5922_v48 = vadd.f32 %v5906_v44, %v5823_v4  ;;  %v6360_v13 = vsel %vm762_vm5, %v17232_v32, %v20193_v7  ;;  %v20195_v32 = vld [vmem:[#allocation81_spill] sm:$0xff] }
0x105d   : > { %v17420_v54 = vpop.permute.xlu1 %6354  ;;  %v6807_v23 = vadd.f32 %v6791_v59, %v6708_v50  ;;  %v17425_v26 = vpop.permute.xlu0 %6676  ;;  %v8101_v50 = vmul.f32 %v20190_v14, %v20189_v56  ;;  %v8096_v51 = vmul.f32 %v20189_v56, %v20192_v62 }
0x105f   : > { %7442 = vrot.lane.b32.xlu1 %v7413_v24, %s12219_s17  ;;  %v17432_v33 = vadd.f32 %v7155_v19, %v6807_v23  ;;  %v7643_v24 = vmul.f32 %v7634_v47, %v20188_v6  ;;  %v20191_v19 = vld [vmem:[#allocation106_spill] sm:$0xff] }
0x1060   : > { %7578 = vrot.lane.b32.xlu0 %v7550_v53, %s12218_s30  ;;  %v8540_v53 = vmul.f32 %v20190_v14, %v20191_v19  ;;  %v8535_v56 = vmul.f32 %v20191_v19, %v20192_v62 }
0x1061   : > { %v6545_v1 = vpop.permute.xlu1 %6544  ;;  %v6448_v18 = vpop.permute.xlu0 %6447 }
0x1063   : > { %7675 = vrot.lane.b32.xlu1 %v7648_v57, %s12217_s27  ;;  %v6361_v57 = vsel %vm762_vm5, %v20193_v7, %v6351_v43  ;;  %v6376_v7 = vadd.f32 %v6360_v13, %v17183_v60  ;;  %v20200_v13 = vld [vmem:[#allocation103_spill] sm:$0xff] }
0x1064   : > { %7432 = vrot.lane.b32.xlu0 %v7408_v58, %s12219_s17 }
0x1065   : > { %v6549_v41 = vpop.permute.xlu1 %6548  ;;  %v17445_v59 = vpop.permute.xlu0 %6451 }
0x1067   : > { %8126 = vrot.lane.b32.xlu1 %v8101_v50, %s12218_s30  ;;  %v6278_v50 = vadd.f32 %v17342_v55, %v5922_v48  ;;  %v20197_v55 = vld [vmem:[#allocation75_spill] sm:$0xff]  ;;  %v20198_v48 = vld [vmem:[#allocation102_spill] sm:$0xff] }
0x1068   : > { %7665 = vrot.lane.b32.xlu0 %v7643_v24, %s12217_s27  ;;  %v20194_v24 = vld [vmem:[#allocation15_spill] sm:$0xff] }
0x1069   : > { %v17455_v23 = vpop.permute.xlu1 %6781  ;;  %v17459_v47 = vpop.permute.xlu0 %6684  ;;  %v6459_v44 = vsel %vm446_vm0, %v20194_v24, %v6448_v18  ;;  %v6377_v19 = vadd.f32 %v6361_v57, %v6278_v50  ;;  %v17487_v24 = vsel %vm811_vm6, %v20198_v48, %v20197_v55  ;;  %v20201_v57 = vld [vmem:[#allocation104_spill] sm:$0xff] }
0x106a   : > { %v6475_v25 = vadd.f32 %v6459_v44, %v6376_v7  ;;  %v6605_v44 = vmul.f32 %v17337_v3, %v20124_v5 }
0x106b   : > { %8569 = vrot.lane.b32.xlu1 %v8540_v53, %s12217_s27  ;;  %v20196_v53 = vld [vmem:[#allocation63_spill] sm:$0xff] }
0x106c   : > { %8116 = vrot.lane.b32.xlu0 %v8096_v51, %s12218_s30  ;;  %v17480_v51 = vsel %vm446_vm0, %v20196_v53, %v20195_v32 }
0x106d   : > { %v6450_v58 = vpop.permute.xlu1 %6449  ;;  %v6353_v42 = vpop.permute.xlu0 %6352 }
0x106e   : > { %v6460_v4 = vsel %vm446_vm0, %v6448_v18, %v6450_v58  ;;  %v6362_v11 = vsel %vm762_vm5, %v6351_v43, %v6353_v42  ;;  %v20199_v18 = vld [vmem:[#allocation160_spill] sm:$0xff] }
0x106f   : > { %7568 = vrot.lane.b32.xlu1 %v7545_v2, %s12218_s30  ;;  %v8196_v43 = vmul.f32 %v17480_v51, %v20199_v18  ;;  %v8098_v2 = vmul.f32 %v17487_v24, %v20199_v18  ;;  %v6476_v53 = vadd.f32 %v6460_v4, %v6377_v19  ;;  %v6378_v14 = vadd.f32 %v6362_v11, %v17237_v28  ;;  %v20202_v28 = vld [vmem:[#allocation141_spill] sm:$0xff] }
0x1070   : > { %8559 = vrot.lane.b32.xlu0 %v8535_v56, %s12217_s27  ;;  %v17497_v56 = vsel %vm446_vm0, %v20201_v57, %v20200_v13  ;;  %v6606_v4 = vmul.f32 %v17364_v45, %v20202_v28  ;;  %v6461_v11 = vsel %vm446_vm0, %v6450_v58, %v17445_v59  ;;  %v20203_v19 = vld [vmem:[#allocation161_spill] sm:$0xff]  ;;  %v20205_v45 = vld [vmem:[#allocation79_spill] sm:$0xff]  ;;  %v20208_v28 = vld [vmem:[#allocation6_spill] sm:$0xff] }
0x1071   : > { %v6454_v6 = vpop.permute.xlu1 %6453  ;;  %v6547_v60 = vpop.permute.xlu0 %6546  ;;  %v6477_v62 = vadd.f32 %v6461_v11, %v6378_v14  ;;  %v20206_v58 = vld [vmem:[#allocation7_spill] sm:$0xff] }
0x1072   : > { %v6558_v50 = vsel %vm811_vm6, %v6545_v1, %v6547_v60  ;;  %v6559_v48 = vsel %vm811_vm6, %v6547_v60, %v6549_v41  ;;  %v8198_v1 = vmul.f32 %v17497_v56, %v20203_v19  ;;  %v6462_v11 = vsel %vm446_vm0, %v17445_v59, %v6454_v6  ;;  %v20209_v6 = vld [vmem:[#allocation145_spill] sm:$0xff] }
0x1073   : > { %8217 = vrot.lane.b32.xlu1 %v8196_v43, %s12217_s27  ;;  %v6574_v9 = vadd.f32 %v6558_v50, %v6475_v25  ;;  %v6575_v31 = vadd.f32 %v6559_v48, %v6476_v53  ;;  %v20204_v25 = vld [vmem:[#allocation99_spill] sm:$0xff]  ;;  %v17522_v50 = vsel %vm811_vm6, %v20206_v58, %v20205_v45  ;;  %v7159_v59 = vmul.f32 %v20209_v6, %v17405_v35 }
0x1074   : > { %8120 = vrot.lane.b32.xlu0 %v8098_v2, %s12218_s30  ;;  %v8100_v53 = vmul.f32 %v20204_v25, %v20203_v19  ;;  %v17566_v35 = vrot.slane %v17393_v12, %v20061_v8 }
0x1075   : > { %v6683_v7 = vpop.permute.xlu1 %6682  ;;  %v6613_v60 = vadd.f32 %v6605_v44, %v6574_v9  ;;  %v6551_v43 = vpop.permute.xlu0 %6550  ;;  %v17513_v2 = vadd.f32 %v6606_v4, %v6575_v31  ;;  %v6363_v9 = vsel %vm762_vm5, %v6353_v42, %v17420_v54  ;;  %v20207_v31 = vld [vmem:[#allocation143_spill] sm:$0xff]  ;;  %v8294_v4 = vmul.f32 %v20208_v28, %v20199_v18 }
0x1076   : > { %v6696_v5 = vsel %vm762_vm5, %v6683_v7, %v17459_v47  ;;  %v6560_v3 = vsel %vm811_vm6, %v6549_v41, %v6551_v43  ;;  %v6607_v48 = vmul.f32 %v17368_v37, %v20207_v31  ;;  %v8433_v41 = vmul.f32 %v17522_v50, %v20203_v19 }
0x1077   : > { %8221 = vrot.lane.b32.xlu1 %v8198_v1, %s12217_s27  ;;  %v6576_v14 = vadd.f32 %v6560_v3, %v6477_v62  ;;  %v6712_v7 = vadd.f32 %v6696_v5, %v6613_v60  ;;  %v6596_v62 = vrot.slane %v17315_v22, %v20095_v0  ;;  %v6379_v37 = vadd.f32 %v6363_v9, %v17242_v61  ;;  %v20210_v22 = vld [vmem:[#allocation82_spill] sm:$0xff]  ;;  %v20211_v5 = vld [vmem:[#allocation101_spill] sm:$0xff] }
0x1078   : > { %8124 = vrot.lane.b32.xlu0 %v8100_v53, %s12218_s30  ;;  %v17549_v53 = vsel %vm811_vm6, %v20197_v55, %v20204_v25  ;;  %v17557_v61 = vsel %vm762_vm5, %v20211_v5, %v20210_v22 }
0x1079   : > { %v17529_v44 = vpop.permute.xlu1 %6686  ;;  %v17537_v1 = vpop.permute.xlu0 %6783  ;;  %v6615_v54 = vadd.f32 %v6607_v48, %v6576_v14  ;;  %v6478_v3 = vadd.f32 %v6462_v11, %v6379_v37  ;;  %v20212_v14 = vld [vmem:[#allocation162_spill] sm:$0xff]  ;;  %v17588_v37 = vsel %vm762_vm5, %v20208_v28, %v20211_v5  ;;  %v20215_v5 = vld [vmem:[#allocation57_spill] sm:$0xff] }
0x107a   : > { %v6795_v42 = vsel %vm446_vm0, %v17455_v23, %v17537_v1  ;;  %v6359_v23 = vsel %vm762_vm5, %v17322_v49, %v17298_v17  ;;  %v8099_v55 = vmul.f32 %v17549_v53, %v20212_v14  ;;  %v6458_v17 = vsel %vm446_vm0, %v17294_v40, %v17384_v52 }
0x107b   : > { %8454 = vrot.lane.b32.xlu1 %v8433_v41, %s12218_s30  ;;  %v6811_v60 = vadd.f32 %v6795_v42, %v6712_v7  ;;  %v8296_v41 = vmul.f32 %v17557_v61, %v20203_v19  ;;  %v20213_v7 = vld [vmem:[#allocation144_spill] sm:$0xff]  ;;  %v6375_v6 = vadd.f32 %v6359_v23, %v17289_v27  ;;  %v7161_v40 = vmul.f32 %v17566_v35, %v20173_v30 }
0x107c   : > { %8314 = vrot.lane.b32.xlu0 %v8294_v4, %s12219_s17  ;;  %v6608_v42 = vmul.f32 %v20213_v7, %v6596_v62  ;;  %v7150_v7 = vrot.slane %v17393_v12, %v20095_v0 }
0x107d   : > { %v6553_v9 = vpop.permute.xlu1 %6552  ;;  %v6689_v48 = vpop.permute.xlu0 %6688  ;;  %v17571_v4 = vadd.f32 %v7159_v59, %v6811_v60 }
0x107e   : > { %v6561_v31 = vsel %vm811_vm6, %v6551_v43, %v6553_v9  ;;  %v6698_v11 = vsel %vm762_vm5, %v17529_v44, %v6689_v48  ;;  %v17583_v43 = vsel %vm446_vm0, %v20195_v32, %v20201_v57  ;;  %v8295_v32 = vmul.f32 %v17588_v37, %v20212_v14 }
0x107f   : > { %v6577_v49 = vadd.f32 %v6561_v31, %v6478_v3  ;;  %8122 = vrot.lane.b32.xlu1 %v8099_v55, %s12218_s30  ;;  %v6714_v59 = vadd.f32 %v6698_v11, %v6615_v54  ;;  %v6474_v57 = vadd.f32 %v6458_v17, %v6375_v6  ;;  %v20214_v3 = vld [vmem:[#allocation26_spill] sm:$0xff]  ;;  %v20216_v55 = vld [vmem:[#allocation8_spill] sm:$0xff]  ;;  %v6798_v11 = vsel %vm446_vm0, %v20215_v5, %v17250_v10 }
0x1080   : > { %8318 = vrot.lane.b32.xlu0 %v8296_v41, %s12219_s17  ;;  %v6699_v9 = vsel %vm762_vm5, %v6689_v48, %v20214_v3  ;;  %v8531_v31 = vmul.f32 %v20216_v55, %v20203_v19  ;;  %v20218_v17 = vld [vmem:[#allocation146_spill] sm:$0xff]  ;;  %v7162_v3 = vmul.f32 %v7150_v7, %v20180_v34 }
0x1081   : > { %v6616_v52 = vadd.f32 %v6608_v42, %v6577_v49  ;;  %v17594_v60 = vpop.permute.xlu1 %6785  ;;  %v6543_v23 = vpop.permute.xlu0 %6542  ;;  %v20217_v42 = vld [vmem:[#allocation86_spill] sm:$0xff]  ;;  %v6604_v49 = vmul.f32 %v6596_v62, %v20218_v17  ;;  %v8197_v62 = vmul.f32 %v17583_v43, %v20212_v14 }
0x1082   : > { %v6797_v27 = vsel %vm446_vm0, %v17594_v60, %v20215_v5  ;;  %v6557_v54 = vsel %vm811_vm6, %v17356_v39, %v6543_v23  ;;  %v17613_v48 = vsel %vm762_vm5, %v20210_v22, %v20217_v42 }
0x1083   : > { %v6715_v30 = vadd.f32 %v6699_v9, %v6616_v52  ;;  %v6813_v41 = vadd.f32 %v6797_v27, %v6714_v59  ;;  %8316 = vrot.lane.b32.xlu1 %v8295_v32, %s12219_s17  ;;  %v6573_v6 = vadd.f32 %v6557_v54, %v6474_v57  ;;  %v20219_v59 = vld [vmem:[#allocation163_spill] sm:$0xff]  ;;  %v20220_v57 = vld [vmem:[#allocation24_spill] sm:$0xff] }
0x1084   : > { %8551 = vrot.lane.b32.xlu0 %v8531_v31, %s12217_s27  ;;  %v8297_v32 = vmul.f32 %v17613_v48, %v20219_v59  ;;  %v17635_v5 = vsel %vm446_vm0, %v20216_v55, %v20220_v57 }
0x1085   : > { %v6814_v39 = vadd.f32 %v6798_v11, %v6715_v30  ;;  %v17620_v52 = vpop.permute.xlu1 %7236  ;;  %v17625_v9 = vadd.f32 %v7161_v40, %v6813_v41  ;;  %v6612_v22 = vadd.f32 %v6604_v49, %v6573_v6  ;;  %v6776_v27 = vpop.permute.xlu0 %6775  ;;  %v8532_v40 = vmul.f32 %v17635_v5, %v20219_v59  ;;  %v20221_v41 = vld [vmem:[#allocation164_spill] sm:$0xff]  ;;  %v20222_v11 = vld [vmem:[#allocation17_spill] sm:$0xff] }
0x1086   : > { %v8199_v30 = vmul.f32 %v20200_v13, %v20219_v59  ;;  %v8103_v54 = vmul.f32 %v17487_v24, %v20221_v41 }
0x1087   : > { %8320 = vrot.lane.b32.xlu1 %v8297_v32, %s12219_s17  ;;  %v17630_v10 = vadd.f32 %v7162_v3, %v6814_v39  ;;  %v8432_v32 = vmul.f32 %v20206_v58, %v20212_v14 }
0x1088   : > { %8219 = vrot.lane.b32.xlu0 %v8197_v62, %s12217_s27 }
0x1089   : > { %v17638_v23 = vpop.permute.xlu1 %7679  ;;  %v7227_v31 = vpop.permute.xlu0 %7226 }
0x108b   : > { %8553 = vrot.lane.b32.xlu1 %v8532_v40, %s12217_s27  ;;  %v20223_v40 = vld [vmem:[#allocation29_spill] sm:$0xff] }
0x108c   : > { %8223 = vrot.lane.b32.xlu0 %v8199_v30, %s12217_s27  ;;  %v17661_v24 = vsel %vm811_vm6, %v20205_v45, %v20223_v40  ;;  %v7157_v30 = vmul.f32 %v17566_v35, %v20151_v16  ;;  %v20226_v45 = vld [vmem:[#allocation150_spill] sm:$0xff] }
0x108d   : > { %v6679_v17 = vpop.permute.xlu1 %6678  ;;  %v17652_v39 = vpop.permute.xlu0 %7669  ;;  %v7158_v14 = vmul.f32 %v7150_v7, %v20226_v45  ;;  %v8434_v16 = vmul.f32 %v17661_v24, %v20219_v59 }
0x108e   : > { %v6694_v49 = vsel %vm762_vm5, %v17425_v26, %v6679_v17  ;;  %v6695_v6 = vsel %vm762_vm5, %v6679_v17, %v20222_v11  ;;  %v20224_v17 = vld [vmem:[#allocation72_spill] sm:$0xff] }
0x108f   : > { %v6710_v3 = vadd.f32 %v6694_v49, %v17399_v38  ;;  %v6711_v62 = vadd.f32 %v6695_v6, %v6612_v22  ;;  %8130 = vrot.lane.b32.xlu1 %v8103_v54, %s12218_s30  ;;  %v6794_v11 = vsel %vm446_vm0, %v20224_v17, %v17264_v15  ;;  %v6793_v19 = vsel %vm446_vm0, %v6776_v27, %v20224_v17  ;;  %v20225_v49 = vld [vmem:[#allocation165_spill] sm:$0xff]  ;;  %v20227_v17 = vld [vmem:[#allocation43_spill] sm:$0xff] }
0x1090   : > { %8452 = vrot.lane.b32.xlu0 %v8432_v32, %s12218_s30  ;;  %v8105_v6 = vmul.f32 %v20204_v25, %v20225_v49  ;;  %v8201_v25 = vmul.f32 %v17480_v51, %v20221_v41  ;;  %v17703_v51 = vld [vmem:[%s19320_s6 + $0x61] ss:$8 sm:$0xf] }
0x1091   : > { %v6809_v38 = vadd.f32 %v6793_v19, %v6710_v3  ;;  %v6810_v22 = vadd.f32 %v6794_v11, %v6711_v62  ;;  %v7328_v54 = vpop.permute.xlu1 %7327  ;;  %v7231_v18 = vpop.permute.xlu0 %7230  ;;  %v8299_v19 = vmul.f32 %v20208_v28, %v20221_v41  ;;  %v8203_v28 = vmul.f32 %v17497_v56, %v20225_v49 }
0x1092   : > { %v7246_v11 = vsel %vm762_vm5, %v7227_v31, %v20227_v17  ;;  %v8438_v31 = vmul.f32 %v17522_v50, %v20225_v49 }
0x1093   : > { %8134 = vrot.lane.b32.xlu1 %v8105_v6, %s12218_s30  ;;  %v7165_v15 = vadd.f32 %v7157_v30, %v6809_v38  ;;  %v17677_v35 = vadd.f32 %v7158_v14, %v6810_v22  ;;  %v8301_v14 = vmul.f32 %v17557_v61, %v20225_v49  ;;  %v6693_v30 = vsel %vm762_vm5, %v17302_v36, %v17425_v26  ;;  %v20228_v38 = vld [vmem:[#allocation105_spill] sm:$0xff] }
0x1094   : > { %8456 = vrot.lane.b32.xlu0 %v8434_v16, %s12218_s30  ;;  %v6792_v61 = vsel %vm446_vm0, %v17378_v29, %v6776_v27  ;;  %v8536_v36 = vmul.f32 %v20216_v55, %v20225_v49  ;;  %v6709_v26 = vadd.f32 %v6693_v30, %v17397_v20  ;;  %v7345_v22 = vsel %vm446_vm0, %v20228_v38, %v7328_v54 }
0x1095   : > { %v17682_v32 = vpop.permute.xlu1 %7331  ;;  %v17686_v7 = vpop.permute.xlu0 %7234  ;;  %v7142_v6 = vrot.slane %v17393_v12, %v20108_v21  ;;  %v17725_v29 = vrot.slane %v17703_v51, %v20123_v63  ;;  %v7247_v30 = vsel %vm762_vm5, %v20227_v17, %v7231_v18 }
0x1096   : > { %v6808_v55 = vadd.f32 %v6792_v61, %v6709_v26  ;;  %v20230_v26 = vld [vmem:[#allocation167_spill] sm:$0xff] }
0x1097   : > { %8324 = vrot.lane.b32.xlu1 %v8299_v19, %s12219_s17  ;;  %v7262_v19 = vadd.f32 %v7246_v11, %v17432_v33 }
0x1098   : > { %8227 = vrot.lane.b32.xlu0 %v8201_v25, %s12217_s27  ;;  %v20229_v25 = vld [vmem:[#allocation166_spill] sm:$0xff] }
0x1099   : > { %v17690_v3 = vpop.permute.xlu1 %7564  ;;  %v7425_v62 = vpop.permute.xlu0 %7424  ;;  %v7361_v20 = vadd.f32 %v7345_v22, %v7262_v19  ;;  %v8202_v12 = vmul.f32 %v17583_v43, %v20229_v25  ;;  %v8104_v33 = vmul.f32 %v17549_v53, %v20229_v25  ;;  %v7491_v43 = vmul.f32 %v17725_v29, %v20226_v45 }
0x109a   : > { %v8204_v53 = vmul.f32 %v20200_v13, %v20230_v26  ;;  %v8300_v17 = vmul.f32 %v17588_v37, %v20229_v25  ;;  %v17756_v45 = vrot.slane %v17703_v51, %v20061_v8 }
0x109b   : > { %8328 = vrot.lane.b32.xlu1 %v8301_v14, %s12219_s17  ;;  %v17730_v14 = vmul.f32 0.0, %v7142_v6 }
0x109c   : > { %8231 = vrot.lane.b32.xlu0 %v8203_v28, %s12217_s27 }
0x109d   : > { %v17710_v56 = vpop.permute.xlu1 %7232  ;;  %v7429_v16 = vpop.permute.xlu0 %7428 }
0x109e   : > { %v7248_v11 = vsel %vm762_vm5, %v7231_v18, %v17710_v56 }
0x109f   : > { %8561 = vrot.lane.b32.xlu1 %v8536_v36, %s12217_s27  ;;  %v7164_v36 = vadd.f32 %v17730_v14, %v6808_v55  ;;  %v7264_v22 = vadd.f32 %v7248_v11, %v7165_v15 }
0x10a0   : > { %8464 = vrot.lane.b32.xlu0 %v8438_v31, %s12218_s30  ;;  %v17752_v31 = vrot.slane %v17703_v51, %v20108_v21 }
0x10a1   : > { %v7427_v27 = vpop.permute.xlu1 %7426  ;;  %v7662_v28 = vpop.permute.xlu0 %7661  ;;  %v7263_v18 = vadd.f32 %v7247_v30, %v7164_v36 }
0x10a2   : > { %v7444_v50 = vsel %vm811_vm6, %v7425_v62, %v7427_v27  ;;  %v7445_v15 = vsel %vm811_vm6, %v7427_v27, %v7429_v16  ;;  %v7493_v27 = vmul.f32 %v17756_v45, %v20171_v46 }
0x10a3   : > { %v7460_v61 = vadd.f32 %v7444_v50, %v7361_v20  ;;  %8229 = vrot.lane.b32.xlu1 %v8202_v12, %s12217_s27  ;;  %v8437_v50 = vmul.f32 %v20206_v58, %v20229_v25 }
0x10a4   : > { %8132 = vrot.lane.b32.xlu0 %v8104_v33, %s12218_s30 }
0x10a5   : > { %v17744_v62 = vpop.permute.xlu1 %7430  ;;  %v7499_v38 = vadd.f32 %v7491_v43, %v7460_v61  ;;  %v7330_v6 = vpop.permute.xlu0 %7329  ;;  %v20231_v61 = vld [vmem:[#allocation149_spill] sm:$0xff] }
0x10a6   : > { %v7346_v19 = vsel %vm446_vm0, %v7328_v54, %v7330_v6  ;;  %v7347_v13 = vsel %vm446_vm0, %v7330_v6, %v17682_v32  ;;  %v7446_v20 = vsel %vm811_vm6, %v7429_v16, %v17744_v62  ;;  %v8302_v54 = vmul.f32 %v17613_v48, %v20230_v26  ;;  %v17781_v16 = vld [vmem:[%s19320_s6 + $0x64] ss:$8 sm:$0xf] }
0x10a7   : > { %8233 = vrot.lane.b32.xlu1 %v8204_v53, %s12217_s27  ;;  %v7362_v37 = vadd.f32 %v7346_v19, %v7263_v18  ;;  %v7363_v55 = vadd.f32 %v7347_v13, %v7264_v22  ;;  %v7492_v43 = vmul.f32 %v17752_v31, %v20231_v61  ;;  %v8439_v53 = vmul.f32 %v17661_v24, %v20230_v26  ;;  %v20232_v19 = vld [vmem:[#allocation87_spill] sm:$0xff]  ;;  %v20233_v13 = vld [vmem:[#allocation168_spill] sm:$0xff] }
0x10a8   : > { %8326 = vrot.lane.b32.xlu0 %v8300_v17, %s12219_s17  ;;  %v17793_v46 = vrot.slane %v17781_v16, %v20123_v63  ;;  %v8537_v18 = vmul.f32 %v17635_v5, %v20230_v26  ;;  %v8426_v24 = vsel %vm811_vm6, %v20223_v40, %v20232_v19  ;;  %v20234_v5 = vld [vmem:[#allocation159_spill] sm:$0xff] }
0x10a9   : > { %v17766_v12 = vpop.permute.xlu1 %7663  ;;  %v7461_v33 = vadd.f32 %v7445_v15, %v7362_v37  ;;  %v7462_v30 = vadd.f32 %v7446_v20, %v7363_v55  ;;  %v17772_v11 = vpop.permute.xlu0 %7333  ;;  %v8303_v37 = vmul.f32 %v20233_v13, %v20217_v42 }
0x10aa   : > { %v7681_v55 = vsel %vm446_vm0, %v7662_v28, %v17766_v12  ;;  %v8045_v20 = vmul.f32 %v17793_v46, %v20234_v5 }
0x10ab   : > { %8462 = vrot.lane.b32.xlu1 %v8437_v50, %s12218_s30  ;;  %v17785_v58 = vadd.f32 %v7492_v43, %v7461_v33  ;;  %v17787_v48 = vadd.f32 %v7493_v27, %v7462_v30  ;;  %v8440_v50 = vmul.f32 %v20233_v13, %v8426_v24  ;;  %v20235_v33 = vld [vmem:[#allocation107_spill] sm:$0xff]  ;;  %v20237_v43 = vld [vmem:[#allocation170_spill] sm:$0xff] }
0x10ac   : > { %8330 = vrot.lane.b32.xlu0 %v8302_v54, %s12219_s17  ;;  %v8524_v40 = vsel %vm446_vm0, %v20220_v57, %v20235_v33  ;;  %v8298_v27 = vmul.f32 %v20217_v42, %v20237_v43  ;;  %v6697_v57 = vsel %vm762_vm5, %v17459_v47, %v17529_v44  ;;  %v6796_v42 = vsel %vm446_vm0, %v17537_v1, %v17594_v60  ;;  %v20240_v47 = vld [vmem:[#allocation171_spill] sm:$0xff]  ;;  %v20241_v33 = vld [vmem:[#allocation117_spill] sm:$0xff]  ;;  %v20242_v1 = vld [vmem:[#allocation114_spill] sm:$0xff] }
0x10ad   : > { %v7241_v36 = vpop.permute.xlu1 %7240  ;;  %v8538_v28 = vmul.f32 %v20233_v13, %v8524_v40  ;;  %v8533_v19 = vmul.f32 %v8524_v40, %v20237_v43  ;;  %v8435_v5 = vmul.f32 %v8426_v24, %v20237_v43  ;;  %v17852_v60 = vsel %vm446_vm0, %v20242_v1, %v20241_v33  ;;  %v20244_v40 = vld [vmem:[#allocation111_spill] sm:$0xff] }
0x10ae   : > { %v7563_v17 = vpop.permute.xlu0 %7562  ;;  %v20248_v13 = vld [vmem:[#allocation119_spill] sm:$0xff] }
0x10af   : > { %v7582_v22 = vsel %vm762_vm5, %v7563_v17, %v17690_v3  ;;  %8466 = vrot.lane.b32.xlu1 %v8439_v53, %s12218_s30  ;;  %v20238_v17 = vld [vmem:[#allocation110_spill] sm:$0xff] }
0x10b0   : > { %v7598_v6 = vadd.f32 %v7582_v22, %v7499_v38  ;;  %8563 = vrot.lane.b32.xlu0 %v8537_v18, %s12217_s27  ;;  %v20239_v18 = vld [vmem:[#allocation169_spill] sm:$0xff]  ;;  %v8986_v44 = vmul.f32 %v20238_v17, %v20240_v47 }
0x10b1   : > { %v17808_v15 = vpop.permute.xlu1 %7244  ;;  %v8991_v22 = vmul.f32 %v20239_v18, %v20238_v17  ;;  %v20246_v17 = vld [vmem:[#allocation96_spill] sm:$0xff] }
0x10b2   : > { %v7697_v38 = vadd.f32 %v7681_v55, %v7598_v6  ;;  %v17813_v54 = vpop.permute.xlu0 %7566  ;;  %v6713_v55 = vadd.f32 %v6697_v57, %v17513_v2  ;;  %v20243_v2 = vld [vmem:[#allocation112_spill] sm:$0xff]  ;;  %v7251_v57 = vsel %vm762_vm5, %v20246_v17, %v7241_v36 }
0x10b3   : > { %8332 = vrot.lane.b32.xlu1 %v8303_v37, %s12219_s17  ;;  %v8979_v24 = vsel %vm811_vm6, %v20244_v40, %v20243_v2 }
0x10b4   : > { %8468 = vrot.lane.b32.xlu0 %v8440_v50, %s12218_s30  ;;  %v17820_v30 = vadd.f32 %v8045_v20, %v7697_v38  ;;  %v6812_v50 = vadd.f32 %v6796_v42, %v6713_v55 }
0x10b5   : > { %v7435_v61 = vpop.permute.xlu1 %7434 }
0x10b6   : > { %20236 = vst [vmem:[#allocation12_spill] sm:$0xff] %v17820_v30  ;;  %v7338_v53 = vpop.permute.xlu0 %7337  ;;  %v7168_v55 = vadd.f32 %v17730_v14, %v6812_v50  ;;  %v20250_v50 = vld [vmem:[#allocation173_spill] sm:$0xff] }
0x10b7   : > { %8565 = vrot.lane.b32.xlu1 %v8538_v28, %s12217_s27  ;;  %v20245_v28 = vld [vmem:[#allocation172_spill] sm:$0xff] }
0x10b8   : > { %8322 = vrot.lane.b32.xlu0 %v8298_v27, %s12219_s17  ;;  %v9086_v27 = vmul.f32 %v17852_v60, %v20245_v28  ;;  %v8988_v42 = vmul.f32 %v8979_v24, %v20245_v28  ;;  %v7267_v26 = vadd.f32 %v7251_v57, %v7168_v55  ;;  %v20253_v55 = vld [vmem:[#allocation174_spill] sm:$0xff] }
0x10b9   : > { %v7439_v6 = vpop.permute.xlu1 %7438 }
0x10ba   : > { %v17833_v37 = vpop.permute.xlu0 %7341 }
0x10bb   : > { %9016 = vrot.lane.b32.xlu1 %v8991_v22, %s12218_s30  ;;  %v7250_v22 = vsel %vm762_vm5, %v17620_v52, %v20246_v17  ;;  %v20249_v52 = vld [vmem:[#allocation118_spill] sm:$0xff] }
0x10bc   : > { %8555 = vrot.lane.b32.xlu0 %v8533_v19, %s12217_s27  ;;  %v17875_v18 = vsel %vm446_vm0, %v20249_v52, %v20248_v13  ;;  %v7266_v17 = vadd.f32 %v7250_v22, %v17571_v4 }
0x10bd   : > { %v17842_v20 = vpop.permute.xlu1 %7671 }
0x10be   : > { %v17846_v38 = vpop.permute.xlu0 %7574 }
0x10bf   : > { %8458 = vrot.lane.b32.xlu1 %v8435_v5, %s12218_s30 }
0x10c0   : > { %9006 = vrot.lane.b32.xlu0 %v8986_v44, %s12218_s30  ;;  %v20247_v44 = vld [vmem:[#allocation65_spill] sm:$0xff] }
0x10c1   : > { %v7340_v19 = vpop.permute.xlu1 %7339  ;;  %v7349_v1 = vsel %vm446_vm0, %v20247_v44, %v7338_v53  ;;  %v9088_v44 = vmul.f32 %v17875_v18, %v20250_v50 }
0x10c2   : > { %v7243_v5 = vpop.permute.xlu0 %7242  ;;  %v7350_v40 = vsel %vm446_vm0, %v7338_v53, %v7340_v19  ;;  %v7365_v49 = vadd.f32 %v7349_v1, %v7266_v17 }
0x10c3   : > { %v7252_v43 = vsel %vm762_vm5, %v7241_v36, %v7243_v5  ;;  %9107 = vrot.lane.b32.xlu1 %v9086_v27, %s12217_s27  ;;  %v7366_v53 = vadd.f32 %v7350_v40, %v7267_v26  ;;  %v20251_v27 = vld [vmem:[#allocation115_spill] sm:$0xff]  ;;  %v20252_v26 = vld [vmem:[#allocation153_spill] sm:$0xff] }
0x10c4   : > { %9010 = vrot.lane.b32.xlu0 %v8988_v42, %s12218_s30  ;;  %v7268_v36 = vadd.f32 %v7252_v43, %v17625_v9  ;;  %v8990_v59 = vmul.f32 %v20251_v27, %v20250_v50  ;;  %v17887_v30 = vsel %vm811_vm6, %v20243_v2, %v20251_v27  ;;  %v7495_v9 = vmul.f32 %v17725_v29, %v20180_v34 }
0x10c5   : > { %v7344_v14 = vpop.permute.xlu1 %7343  ;;  %v7496_v43 = vmul.f32 %v17752_v31, %v20252_v26  ;;  %v9078_v2 = vsel %vm446_vm0, %v20241_v33, %v20249_v52  ;;  %v7253_v33 = vsel %vm762_vm5, %v7243_v5, %v17808_v15  ;;  %v20254_v52 = vld [vmem:[#allocation155_spill] sm:$0xff]  ;;  %v7486_v5 = vrot.slane %v17703_v51, %v20095_v0 }
0x10c6   : > { %v7437_v47 = vpop.permute.xlu0 %7436  ;;  %v9087_v17 = vmul.f32 %v9078_v2, %v20253_v55  ;;  %v7269_v26 = vadd.f32 %v7253_v33, %v17630_v10  ;;  %v7249_v51 = vsel %vm762_vm5, %v17710_v56, %v17686_v7  ;;  %v7348_v7 = vsel %vm446_vm0, %v17682_v32, %v17772_v11 }
0x10c7   : > { %v7448_v4 = vsel %vm811_vm6, %v7435_v61, %v7437_v47  ;;  %v7449_v22 = vsel %vm811_vm6, %v7437_v47, %v7439_v6  ;;  %9111 = vrot.lane.b32.xlu1 %v9088_v44, %s12217_s27  ;;  %v7351_v61 = vsel %vm446_vm0, %v7340_v19, %v17833_v37  ;;  %v7497_v44 = vmul.f32 %v17756_v45, %v20254_v52 }
0x10c8   : > { %v7464_v57 = vadd.f32 %v7448_v4, %v7365_v49  ;;  %v7465_v42 = vadd.f32 %v7449_v22, %v7366_v53  ;;  %9014 = vrot.lane.b32.xlu0 %v8990_v59, %s12218_s30  ;;  %v8989_v49 = vmul.f32 %v17887_v30, %v20253_v55  ;;  %v7367_v40 = vadd.f32 %v7351_v61, %v7268_v36  ;;  %v20255_v53 = vld [vmem:[#allocation176_spill] sm:$0xff] }
0x10c9   : > { %v7573_v47 = vpop.permute.xlu1 %7572  ;;  %v8993_v36 = vmul.f32 %v8979_v24, %v20255_v53  ;;  %v7352_v22 = vsel %vm446_vm0, %v17833_v37, %v7344_v14  ;;  %v20257_v37 = vld [vmem:[#allocation157_spill] sm:$0xff]  ;;  %v7265_v33 = vadd.f32 %v7249_v51, %v17677_v35 }
0x10ca   : > { %v7503_v1 = vadd.f32 %v7495_v9, %v7464_v57  ;;  %v7441_v59 = vpop.permute.xlu0 %7440  ;;  %v17905_v34 = vadd.f32 %v7496_v43, %v7465_v42  ;;  %v7586_v29 = vsel %vm762_vm5, %v7573_v47, %v17846_v38  ;;  %v20256_v42 = vld [vmem:[#allocation175_spill] sm:$0xff]  ;;  %v8049_v24 = vmul.f32 %v20257_v37, %v17793_v46  ;;  %v17935_v43 = vpop.f32.mrb[64].mxu1  ;;  %v20258_v47 = vld [vmem:[#allocation177_spill] sm:$0xff] }
0x10cb   : > { %v7450_v31 = vsel %vm811_vm6, %v7439_v6, %v7441_v59  ;;  %9012 = vrot.lane.b32.xlu1 %v8989_v49, %s12218_s30  ;;  %v9089_v9 = vmul.f32 %v20248_v13, %v20256_v42  ;;  %v7368_v61 = vadd.f32 %v7352_v22, %v7269_v26  ;;  %v8995_v49 = vmul.f32 %v20251_v27, %v20258_v47  ;;  %v20261_v22 = vld [vmem:[#allocation100_spill] sm:$0xff] }
0x10cc   : > { %v7466_v19 = vadd.f32 %v7450_v31, %v7367_v40  ;;  %9109 = vrot.lane.b32.xlu0 %v9087_v17, %s12217_s27  ;;  %v7602_v57 = vadd.f32 %v7586_v29, %v7503_v1  ;;  %v9091_v46 = vmul.f32 %v17852_v60, %v20255_v53  ;;  %v20259_v29 = vld [vmem:[#allocation156_spill] sm:$0xff]  ;;  %v17958_v60 = vpop.f32.mrb[65].mxu1  ;;  %v7364_v11 = vadd.f32 %v7348_v7, %v7265_v33 }
0x10cd   : > { %v17917_v4 = vpop.permute.xlu1 %7576  ;;  %v7498_v31 = vmul.f32 %v20259_v29, %v7486_v5  ;;  %v20265_v33 = vld [vmem:[#allocation180_spill] sm:$0xff] }
0x10ce   : > { %v17921_v6 = vpop.permute.xlu0 %7673  ;;  %v7505_v15 = vadd.f32 %v7497_v44, %v7466_v19 }
0x10cf   : > { %v7685_v45 = vsel %vm446_vm0, %v17842_v20, %v17921_v6  ;;  %9020 = vrot.lane.b32.xlu1 %v8993_v36, %s12218_s30  ;;  %v8036_v20 = vrot.slane %v17781_v16, %v20061_v8  ;;  %v20260_v36 = vld [vmem:[#allocation178_spill] sm:$0xff] }
0x10d0   : > { %v7701_v14 = vadd.f32 %v7685_v45, %v7602_v57  ;;  %9113 = vrot.lane.b32.xlu0 %v9089_v9, %s12217_s27  ;;  %v9092_v32 = vmul.f32 %v9078_v2, %v20260_v36  ;;  %v20262_v9 = vld [vmem:[#allocation90_spill] sm:$0xff]  ;;  %v9093_v45 = vmul.f32 %v17875_v18, %v20258_v47  ;;  %v8040_v2 = vrot.slane %v17781_v16, %v20095_v0 }
0x10d1   : > { %v7443_v10 = vpop.permute.xlu1 %7442  ;;  %v7688_v51 = vsel %vm446_vm0, %v20262_v9, %v17638_v23  ;;  %v12201_v23 = vld [vmem:[%s19320_s6 + $0x86] ss:$8 sm:$0xf] }
0x10d2   : > { %v7451_v1 = vsel %vm811_vm6, %v7441_v59, %v7443_v10  ;;  %v7579_v40 = vpop.permute.xlu0 %7578  ;;  %v17947_v17 = vadd.f32 %v8049_v24, %v7701_v14  ;;  %v8051_v59 = vmul.f32 %v8036_v20, %v20221_v41  ;;  %v20263_v24 = vld [vmem:[#allocation158_spill] sm:$0xff] }
0x10d3   : > { %v7467_v56 = vadd.f32 %v7451_v1, %v7368_v61  ;;  %v7588_v27 = vsel %vm762_vm5, %v17917_v4, %v7579_v40  ;;  %9024 = vrot.lane.b32.xlu1 %v8995_v49, %s12218_s30  ;;  %v7589_v57 = vsel %vm762_vm5, %v7579_v40, %v20261_v22  ;;  %v7494_v14 = vmul.f32 %v7486_v5, %v20263_v24  ;;  %v20264_v49 = vld [vmem:[#allocation179_spill] sm:$0xff] }
0x10d4   : > { %9117 = vrot.lane.b32.xlu0 %v9091_v46, %s12217_s27  ;;  %v7604_v52 = vadd.f32 %v7588_v27, %v7505_v15  ;;  %v8052_v46 = vmul.f32 %v8040_v2, %v20229_v25  ;;  %v8994_v5 = vmul.f32 %v17887_v30, %v20260_v36 }
0x10d5   : > { %v7506_v19 = vadd.f32 %v7498_v31, %v7467_v56  ;;  %v17961_v44 = vpop.permute.xlu1 %7675  ;;  %v9167_v31 = vrot.slane %v12201_v23, %v20095_v0 }
0x10d6   : > { %v7687_v35 = vsel %vm446_vm0, %v17961_v44, %v20262_v9  ;;  %v7433_v26 = vpop.permute.xlu0 %7432 }
0x10d7   : > { %v7605_v37 = vadd.f32 %v7589_v57, %v7506_v19  ;;  %v7703_v41 = vadd.f32 %v7687_v35, %v7604_v52  ;;  %v7447_v15 = vsel %vm811_vm6, %v17744_v62, %v7433_v26  ;;  %9119 = vrot.lane.b32.xlu1 %v9092_v32, %s12217_s27  ;;  %v9094_v62 = vmul.f32 %v20248_v13, %v20264_v49  ;;  %v20266_v19 = vld [vmem:[#allocation122_spill] sm:$0xff]  ;;  %v20268_v26 = vld [vmem:[#allocation85_spill] sm:$0xff] }
0x10d8   : > { %v7463_v61 = vadd.f32 %v7447_v15, %v7364_v11  ;;  %9121 = vrot.lane.b32.xlu0 %v9093_v45, %s12217_s27  ;;  %v9163_v13 = vrot.slane %v12201_v23, %v20061_v8  ;;  %v9184_v52 = vmul.f32 %v20266_v19, %v20245_v28  ;;  %v20267_v11 = vld [vmem:[#allocation91_spill] sm:$0xff]  ;;  %v7684_v45 = vsel %vm446_vm0, %v20268_v26, %v17652_v39 }
0x10d9   : > { %v7704_v18 = vadd.f32 %v7688_v51, %v7605_v37  ;;  %v17981_v10 = vpop.permute.xlu1 %8126  ;;  %v17986_v1 = vadd.f32 %v8051_v59, %v7703_v41  ;;  %v9185_v59 = vmul.f32 %v20265_v33, %v20253_v55  ;;  %v20269_v41 = vld [vmem:[#allocation160_spill] sm:$0xff] }
0x10da   : > { %v7502_v40 = vadd.f32 %v7494_v14, %v7463_v61  ;;  %v17988_v29 = vpop.permute.xlu0 %7665  ;;  %v8047_v15 = vmul.f32 %v8036_v20, %v20269_v41  ;;  %v10421_v20 = vld [vmem:[%s19322_s8 + $0x80] sm:$0xff] }
0x10db   : > { %9123 = vrot.lane.b32.xlu1 %v9094_v62, %s12217_s27  ;;  %v17997_v7 = vadd.f32 %v8052_v46, %v7704_v18  ;;  %v7683_v37 = vsel %vm446_vm0, %v17988_v29, %v20268_v26  ;;  %v18059_v33 = vld [vmem:[%s19320_s6 + $0x80] ss:$8 sm:$0xf] }
0x10dc   : > { %9022 = vrot.lane.b32.xlu0 %v8994_v5, %s12218_s30  ;;  %v10422_v5 = vld [vmem:[%s19322_s8 + $0x88] sm:$0xff]  ;;  %v10424_v26 = vld [vmem:[%s19322_s8 + $0x98] sm:$0xff] }
0x10dd   : > { %v18001_v56 = vpop.permute.xlu1 %8569  ;;  %v11959_v23 = vpack.c.bf16 %v10422_v5, %v10421_v20  ;;  %v10439_v20 = vld [vmem:[%s19322_s8 + $0x110] sm:$0xff]  ;;  %v7583_v5 = vsel %vm762_vm5, %v17690_v3, %v17813_v54 }
0x10de   : > { %v8117_v27 = vpop.permute.xlu0 %8116 }
0x10df   : > { %9174 = vrot.lane.b32.xlu1 %v9167_v31, %s12218_s30  ;;  %v10406_v31 = vld [vmem:[%s19322_s8 + $0x8] sm:$0xff]  ;;  %11960 = vmatprep.subr.bf16.mxu0 %v11959_v23  ;;  %v10440_v23 = vld [vmem:[%s19322_s8 + $0x118] sm:$0xff] }
0x10e0   : > { %9172 = vrot.lane.b32.xlu0 %v9163_v13, %s12218_s30  ;;  %v10453_v13 = vld [vmem:[%s19322_s8 + $0x180] sm:$0xff] }
0x10e1   : > { %v7569_v30 = vpop.permute.xlu1 %7568 }
0x10e2   : > { %v7584_v32 = vsel %vm762_vm5, %v17813_v54, %v7569_v30  ;;  %v7585_v22 = vsel %vm762_vm5, %v7569_v30, %v20267_v11  ;;  %v18013_v57 = vpop.permute.xlu0 %8559  ;;  %v10454_v30 = vld [vmem:[%s19322_s8 + $0x188] sm:$0xff]  ;;  %v10409_v54 = vld [vmem:[%s19322_s8 + $0x20] sm:$0xff] }
0x10e3   : > { %v7600_v9 = vadd.f32 %v7584_v32, %v17787_v48  ;;  %v7601_v35 = vadd.f32 %v7585_v22, %v7502_v40  ;;  %9206 = vrot.lane.b32.xlu1 %v9185_v59, %s12219_s17  ;;  %v20270_v48 = vld [vmem:[#allocation162_spill] sm:$0xff]  ;;  %v10438_v11 = vld [vmem:[%s19322_s8 + $0x108] sm:$0xff]  ;;  %v10423_v22 = vld [vmem:[%s19322_s8 + $0x90] sm:$0xff] }
0x10e4   : > { %9204 = vrot.lane.b32.xlu0 %v9184_v52, %s12219_s17  ;;  %v8048_v61 = vmul.f32 %v8040_v2, %v20270_v48  ;;  %v10405_v2 = vld [vmem:[%s19322_s8] sm:$0xff]  ;;  %v11991_v52 = vpack.c.bf16 %v10454_v30, %v10453_v13  ;;  %v10426_v13 = vld [vmem:[%s19322_s8 + $0xa8] sm:$0xff]  ;;  %v20272_v30 = vld [vmem:[#allocation69_spill] sm:$0xff] }
0x10e5   : > { %v7699_v24 = vadd.f32 %v7683_v37, %v7600_v9  ;;  %v7700_v14 = vadd.f32 %v7684_v45, %v7601_v35  ;;  %v18025_v51 = vpop.permute.xlu1 %8217  ;;  %v11961_v59 = vpack.c.bf16 %v10406_v31, %v10405_v2  ;;  %v10437_v32 = vld [vmem:[%s19322_s8 + $0x100] sm:$0xff]  ;;  %v10407_v45 = vld [vmem:[%s19322_s8 + $0x10] sm:$0xff]  ;;  %v10408_v37 = vld [vmem:[%s19322_s8 + $0x18] sm:$0xff] }
0x10e6   : > { %v18028_v18 = vpop.permute.xlu0 %8120  ;;  %v11993_v35 = vpack.c.bf16 %v10438_v11, %v10437_v32  ;;  %11992 = vmatprep.subr.bf16.mxu1 %v11991_v52  ;;  %v10425_v31 = vld [vmem:[%s19322_s8 + $0xa0] sm:$0xff]  ;;  %v11997_v52 = vpack.c.bf16 %v10440_v23, %v10439_v20  ;;  %v10410_v32 = vld [vmem:[%s19322_s8 + $0x28] sm:$0xff]  ;;  %v10428_v23 = vld [vmem:[%s19322_s8 + $0xb8] sm:$0xff] }
0x10e7   : > { %v18030_v62 = vadd.f32 %v8047_v15, %v7699_v24  ;;  %v18032_v46 = vadd.f32 %v8048_v61, %v7700_v14  ;;  %11962 = vmatpush3.bf16.msra.mxu0 %v11961_v59  ;;  %v11963_v15 = vpack.c.bf16 %v10424_v26, %v10423_v22  ;;  %v11965_v24 = vpack.c.bf16 %v10408_v37, %v10407_v45  ;;  %v10455_v14 = vld [vmem:[%s19322_s8 + $0x190] sm:$0xff]  ;;  %v10456_v61 = vld [vmem:[%s19322_s8 + $0x198] sm:$0xff]  ;;  %v10457_v11 = vld [vmem:[%s19322_s8 + $0x1a0] sm:$0xff] }
0x10e8   : > { %11994 = vmatpush3.bf16.msra.mxu1 %v11993_v35  ;;  %v11995_v2 = vpack.c.bf16 %v10456_v61, %v10455_v14  ;;  %v8136_v59 = vsel %vm762_vm5, %v8117_v27, %v20272_v30  ;;  %v11967_v3 = vpack.c.bf16 %v10426_v13, %v10425_v31  ;;  %v7682_v22 = vsel %vm446_vm0, %v17766_v12, %v17988_v29  ;;  %v10458_v45 = vld [vmem:[%s19322_s8 + $0x1a8] sm:$0xff]  ;;  %v10441_v37 = vld [vmem:[%s19322_s8 + $0x120] sm:$0xff]  ;;  %v20273_v29 = vld [vmem:[#allocation76_spill] sm:$0xff] }
0x10e9   : > { %v18034_v39 = vpop.permute.xlu1 %8221  ;;  %11964 = vmatprep.subr.bf16.mxu0 %v11963_v15  ;;  %v8032_v27 = vrot.slane %v17781_v16, %v20108_v21  ;;  %v18122_v26 = vrot.slane %v18059_v33, %v20123_v63  ;;  %v10442_v12 = vld [vmem:[%s19322_s8 + $0x128] sm:$0xff]  ;;  %v7599_v16 = vadd.f32 %v7583_v5, %v17785_v58  ;;  %v8235_v15 = vsel %vm446_vm0, %v20273_v29, %v18025_v51  ;;  %v10411_v58 = vld [vmem:[%s19322_s8 + $0x30] sm:$0xff] }
0x10ea   : > { %v18036_v40 = vpop.permute.xlu0 %8124  ;;  %11996 = vmatprep.subr.bf16.mxu1 %v11995_v2  ;;  %v11969_v61 = vpack.c.bf16 %v10410_v32, %v10409_v54  ;;  %v11999_v20 = vpack.c.bf16 %v10458_v45, %v10457_v11  ;;  %v10427_v2 = vld [vmem:[%s19322_s8 + $0xb0] sm:$0xff]  ;;  %v12001_v13 = vpack.c.bf16 %v10442_v12, %v10441_v37  ;;  %v10412_v54 = vld [vmem:[%s19322_s8 + $0x38] sm:$0xff] }
0x10eb   : > { %11966 = vmatpush3.bf16.msra.mxu0 %v11965_v24  ;;  %v20274_v5 = vld [vmem:[#allocation12_spill] sm:$0xff]  ;;  %v11971_v24 = vpack.c.bf16 %v10428_v23, %v10427_v2  ;;  %v10460_v11 = vld [vmem:[%s19322_s8 + $0x1b8] sm:$0xff]  ;;  %v7698_v45 = vadd.f32 %v7682_v22, %v7599_v16  ;;  %v18165_v12 = vmul.f32 0.0, %v8032_v27  ;;  %v8381_v22 = vmul.f32 %v18122_v26, %v20270_v48  ;;  %v10430_v16 = vld [vmem:[%s19322_s8 + $0xc8] sm:$0xff] }
0x10ec   : > { %v8152_v31 = vadd.f32 %v8136_v59, %v20274_v5  ;;  %11998 = vmatpush3.bf16.msra.mxu1 %v11997_v52  ;;  %11968 = vmatprep.subr.bf16.mxu0 %v11967_v3  ;;  %v10459_v32 = vld [vmem:[%s19322_s8 + $0x1b0] sm:$0xff]  ;;  %v10444_v52 = vld [vmem:[%s19322_s8 + $0x138] sm:$0xff]  ;;  %v10429_v3 = vld [vmem:[%s19322_s8 + $0xc0] sm:$0xff]  ;;  %v11973_v5 = vpack.c.bf16 %v10412_v54, %v10411_v58  ;;  %v18190_v58 = vrot.slane %v18059_v33, %v20108_v21 }
0x10ed   : > { %v18070_v9 = vpop.permute.xlu1 %8454  ;;  %12000 = vmatprep.subr.bf16.mxu1 %v11999_v20  ;;  %v12003_v29 = vpack.c.bf16 %v10460_v11, %v10459_v32  ;;  %v10443_v59 = vld [vmem:[%s19322_s8 + $0x130] sm:$0xff]  ;;  %v8137_v20 = vsel %vm762_vm5, %v20272_v30, %v18028_v18  ;;  %v11975_v32 = vpack.c.bf16 %v10430_v16, %v10429_v3  ;;  %v10413_v11 = vld [vmem:[%s19322_s8 + $0x40] sm:$0xff]  ;;  %v10414_v30 = vld [vmem:[%s19322_s8 + $0x48] sm:$0xff] }
0x10ee   : > { %20271 = vst [vmem:[#allocation22_spill] sm:$0xff] %v18070_v9  ;;  %v8315_v41 = vpop.permute.xlu0 %8314  ;;  %v8251_v37 = vadd.f32 %v8235_v15, %v8152_v31  ;;  %v12005_v48 = vpack.c.bf16 %v10444_v52, %v10443_v59  ;;  %v18195_v59 = vrot.slane %v18059_v33, %v20061_v8  ;;  %v11977_v52 = vpack.c.bf16 %v10414_v30, %v10413_v11 }
0x10ef   : > { %11970 = vmatpush3.bf16.msra.mxu0 %v11969_v61 }
0x10f0   : > { %12002 = vmatpush3.bf16.msra.mxu1 %v12001_v13  ;;  %11972 = vmatprep.subr.bf16.mxu0 %v11971_v24 }
0x10f1   : > { %v18118_v35 = vpop.permute.xlu1 %8122  ;;  %12004 = vmatprep.subr.bf16.mxu1 %v12003_v29 }
0x10f2   : > { %v8319_v14 = vpop.permute.xlu0 %8318  ;;  %v8138_v23 = vsel %vm762_vm5, %v18028_v18, %v18118_v35  ;;  %v8054_v18 = vadd.f32 %v18165_v12, %v7698_v45 }
0x10f3   : > { %v8154_v24 = vadd.f32 %v8138_v23, %v18030_v62  ;;  %11974 = vmatpush3.bf16.msra.mxu0 %v11973_v5  ;;  %v20276_v5 = vld [vmem:[#allocation161_spill] sm:$0xff] }
0x10f4   : > { %v8153_v13 = vadd.f32 %v8137_v20, %v8054_v18  ;;  %12006 = vmatpush3.bf16.msra.mxu1 %v12005_v48  ;;  %11976 = vmatprep.subr.bf16.mxu0 %v11975_v32 }
0x10f5   : > { %v8317_v2 = vpop.permute.xlu1 %8316 }
0x10f6   : > { %v8334_v15 = vsel %vm811_vm6, %v8315_v41, %v8317_v2  ;;  %v8552_v27 = vpop.permute.xlu0 %8551 }
0x10f7   : > { %v8350_v31 = vadd.f32 %v8334_v15, %v8251_v37  ;;  %11978 = vmatpush3.bf16.msra.mxu0 %v11977_v52 }
0x10f9   : > { %v18186_v41 = vpop.permute.xlu1 %8320  ;;  %v8389_v61 = vadd.f32 %v8381_v22, %v8350_v31  ;;  %v8335_v22 = vsel %vm811_vm6, %v8317_v2, %v8319_v14  ;;  %v20277_v31 = vld [vmem:[#allocation163_spill] sm:$0xff] }
0x10fa   : > { %v8220_v54 = vpop.permute.xlu0 %8219  ;;  %v8336_v62 = vsel %vm811_vm6, %v8319_v14, %v18186_v41  ;;  %v8383_v48 = vmul.f32 %v18195_v59, %v20277_v31  ;;  %v18215_v2 = vld [vmem:[%s19320_s6 + $0x83] ss:$8 sm:$0xf] }
0x10fb   : > { %v8236_v45 = vsel %vm446_vm0, %v18025_v51, %v8220_v54  ;;  %v8237_v29 = vsel %vm446_vm0, %v8220_v54, %v18034_v39  ;;  %v8382_v51 = vmul.f32 %v18190_v58, %v20276_v5  ;;  %v8918_v30 = vrot.slane %v18215_v2, %v20123_v63 }
0x10fc   : > { %v8252_v3 = vadd.f32 %v8236_v45, %v8153_v13  ;;  %v8253_v37 = vadd.f32 %v8237_v29, %v8154_v24  ;;  %v20279_v45 = vld [vmem:[#allocation171_spill] sm:$0xff] }
0x10fd   : > { %v18204_v16 = vpop.permute.xlu1 %8553  ;;  %v8935_v29 = vmul.f32 %v8918_v30, %v20279_v45 }
0x10fe   : > { %20275 = vst [vmem:[#allocation61_spill] sm:$0xff] %v18204_v16  ;;  %v8351_v20 = vadd.f32 %v8335_v22, %v8252_v3  ;;  %v8352_v23 = vadd.f32 %v8336_v62, %v8253_v37  ;;  %v18206_v15 = vpop.permute.xlu0 %8223  ;;  %v8571_v54 = vsel %vm446_vm0, %v8552_v27, %v18204_v16  ;;  %v7686_v27 = vsel %vm446_vm0, %v17921_v6, %v17961_v44 }
0x1100   : > { %v18217_v32 = vadd.f32 %v8382_v51, %v8351_v20  ;;  %v18219_v14 = vadd.f32 %v8383_v48, %v8352_v23  ;;  %v7587_v23 = vsel %vm762_vm5, %v17846_v38, %v17917_v4 }
0x1101   : > { %v8131_v11 = vpop.permute.xlu1 %8130 }
0x1102   : > { %20278 = vst [vmem:[#allocation14_spill] sm:$0xff] %v18217_v32  ;;  %v8453_v18 = vpop.permute.xlu0 %8452 }
0x1103   : > { %v8472_v13 = vsel %vm762_vm5, %v8453_v18, %v18070_v9 }
0x1104   : > { %v8488_v24 = vadd.f32 %v8472_v13, %v8389_v61  ;;  %v7603_v61 = vadd.f32 %v7587_v23, %v17905_v34  ;;  %v20280_v13 = vld [vmem:[#allocation9_spill] sm:$0xff] }
0x1105   : > { %v8135_v52 = vpop.permute.xlu1 %8134 }
0x1106   : > { %v8587_v3 = vadd.f32 %v8571_v54, %v8488_v24  ;;  %v18228_v37 = vpop.permute.xlu0 %8456  ;;  %v7702_v48 = vadd.f32 %v7686_v27, %v7603_v61  ;;  %v8140_v24 = vsel %vm762_vm5, %v17981_v10, %v20280_v13  ;;  %v8141_v54 = vsel %vm762_vm5, %v20280_v13, %v8131_v11 }
0x1107   : > { %v8156_v23 = vadd.f32 %v8140_v24, %v17947_v17 }
0x1108   : > { %v18230_v22 = vadd.f32 %v8935_v29, %v8587_v3  ;;  %v8058_v4 = vadd.f32 %v18165_v12, %v7702_v48  ;;  %v20281_v3 = vld [vmem:[#allocation58_spill] sm:$0xff] }
0x1109   : > { %v8325_v62 = vpop.permute.xlu1 %8324 }
0x110a   : > { %v8228_v20 = vpop.permute.xlu0 %8227  ;;  %v8157_v27 = vadd.f32 %v8141_v54, %v8058_v4 }
0x110b   : > { %v8239_v6 = vsel %vm446_vm0, %v20281_v3, %v8228_v20  ;;  %v20282_v3 = vld [vmem:[#allocation165_spill] sm:$0xff] }
0x110c   : > { %v8255_v45 = vadd.f32 %v8239_v6, %v8156_v23  ;;  %v8376_v23 = vrot.slane %v18059_v33, %v20095_v0  ;;  %v20285_v33 = vld [vmem:[#allocation168_spill] sm:$0xff] }
0x110d   : > { %v8329_v5 = vpop.permute.xlu1 %8328 }
0x110e   : > { %v8232_v51 = vpop.permute.xlu0 %8231 }
0x1111   : > { %v8562_v31 = vpop.permute.xlu1 %8561 }
0x1112   : > { %v18239_v18 = vpop.permute.xlu0 %8464 }
0x1115   : > { %v8230_v38 = vpop.permute.xlu1 %8229 }
0x1116   : > { %v8133_v29 = vpop.permute.xlu0 %8132  ;;  %v8240_v34 = vsel %vm446_vm0, %v8228_v20, %v8230_v38  ;;  %v8385_v20 = vmul.f32 %v18122_v26, %v20229_v25  ;;  %v8241_v17 = vsel %vm446_vm0, %v8230_v38, %v8232_v51  ;;  %v20283_v25 = vld [vmem:[#allocation167_spill] sm:$0xff] }
0x1117   : > { %v8142_v44 = vsel %vm762_vm5, %v8131_v11, %v8133_v29  ;;  %v8256_v10 = vadd.f32 %v8240_v34, %v8157_v27  ;;  %v8386_v11 = vmul.f32 %v18190_v58, %v20282_v3  ;;  %v8387_v26 = vmul.f32 %v18195_v59, %v20283_v25  ;;  %v20288_v25 = vld [vmem:[#allocation170_spill] sm:$0xff] }
0x1118   : > { %v8158_v32 = vadd.f32 %v8142_v44, %v17986_v1  ;;  %v8139_v59 = vsel %vm762_vm5, %v18118_v35, %v18036_v40  ;;  %v8926_v40 = vrot.slane %v18215_v2, %v20061_v8 }
0x1119   : > { %v8234_v61 = vpop.permute.xlu1 %8233  ;;  %v8155_v35 = vadd.f32 %v8139_v59, %v18032_v46 }
0x111a   : > { %v8327_v13 = vpop.permute.xlu0 %8326  ;;  %v8257_v4 = vadd.f32 %v8241_v17, %v8158_v32  ;;  %v8242_v38 = vsel %vm446_vm0, %v8232_v51, %v8234_v61 }
0x111b   : > { %v8338_v16 = vsel %vm811_vm6, %v8325_v62, %v8327_v13  ;;  %v8339_v12 = vsel %vm811_vm6, %v8327_v13, %v8329_v5 }
0x111c   : > { %v8354_v48 = vadd.f32 %v8338_v16, %v8255_v45  ;;  %v8355_v9 = vadd.f32 %v8339_v12, %v8256_v10  ;;  %v8143_v45 = vsel %vm762_vm5, %v8133_v29, %v8135_v52 }
0x111d   : > { %v8463_v24 = vpop.permute.xlu1 %8462  ;;  %v8159_v27 = vadd.f32 %v8143_v45, %v17997_v7  ;;  %v8238_v7 = vsel %vm446_vm0, %v18034_v39, %v18206_v15  ;;  %v20287_v39 = vld [vmem:[#allocation108_spill] sm:$0xff] }
0x111e   : > { %v8393_v54 = vadd.f32 %v8385_v20, %v8354_v48  ;;  %v8331_v6 = vpop.permute.xlu0 %8330  ;;  %v18260_v1 = vadd.f32 %v8386_v11, %v8355_v9  ;;  %v8476_v62 = vsel %vm762_vm5, %v8463_v24, %v18239_v18  ;;  %v8388_v20 = vmul.f32 %v20285_v33, %v8376_v23 }
0x111f   : > { %v8340_v16 = vsel %vm811_vm6, %v8329_v5, %v8331_v6  ;;  %v20284_v5 = vld [vmem:[#allocation169_spill] sm:$0xff]  ;;  %v8258_v51 = vadd.f32 %v8242_v38, %v8159_v27  ;;  %v8941_v24 = vmul.f32 %v8926_v40, %v20255_v53  ;;  %v8578_v38 = vsel %vm446_vm0, %v20287_v39, %v18001_v56 }
0x1120   : > { %v8356_v34 = vadd.f32 %v8340_v16, %v8257_v4  ;;  %v8492_v44 = vadd.f32 %v8476_v62, %v8393_v54  ;;  %v8939_v29 = vmul.f32 %v20284_v5, %v8918_v30  ;;  %v8254_v54 = vadd.f32 %v8238_v7, %v8155_v35  ;;  %v20286_v4 = vld [vmem:[#allocation88_spill] sm:$0xff] }
0x1121   : > { %v18268_v58 = vpop.permute.xlu1 %8466 }
0x1122   : > { %v18271_v32 = vpop.permute.xlu0 %8563  ;;  %v8395_v9 = vadd.f32 %v8387_v26, %v8356_v34  ;;  %v8930_v34 = vrot.slane %v18215_v2, %v20095_v0  ;;  %v8384_v26 = vmul.f32 %v8376_v23, %v20288_v25  ;;  %v10462_v25 = vld [vmem:[%s19322_s8 + $0x1c8] sm:$0xff] }
0x1123   : > { %v8575_v52 = vsel %vm446_vm0, %v8562_v31, %v18271_v32 }
0x1124   : > { %v8591_v10 = vadd.f32 %v8575_v52, %v8492_v44  ;;  %v8942_v52 = vmul.f32 %v8930_v34, %v20260_v36  ;;  %v10468_v36 = vld [vmem:[%s19322_s8 + $0x1f8] sm:$0xff] }
0x1125   : > { %v8333_v61 = vpop.permute.xlu1 %8332 }
0x1126   : > { %v8341_v13 = vsel %vm811_vm6, %v8331_v6, %v8333_v61  ;;  %v8469_v12 = vpop.permute.xlu0 %8468  ;;  %v18283_v48 = vadd.f32 %v8939_v29, %v8591_v10  ;;  %v20289_v61 = vld [vmem:[#allocation93_spill] sm:$0xff] }
0x1127   : > { %v8357_v31 = vadd.f32 %v8341_v13, %v8258_v51  ;;  %v8478_v30 = vsel %vm762_vm5, %v18268_v58, %v8469_v12  ;;  %v8479_v6 = vsel %vm762_vm5, %v8469_v12, %v20286_v4 }
0x1128   : > { %v8494_v11 = vadd.f32 %v8478_v30, %v8395_v9  ;;  %v8937_v30 = vmul.f32 %v8926_v40, %v20245_v28 }
0x1129   : > { %v8396_v3 = vadd.f32 %v8388_v20, %v8357_v31  ;;  %v18294_v17 = vpop.permute.xlu1 %8565  ;;  %v20290_v20 = vld [vmem:[#allocation109_spill] sm:$0xff] }
0x112a   : > { %v8577_v15 = vsel %vm446_vm0, %v18294_v17, %v20287_v39  ;;  %v8323_v62 = vpop.permute.xlu0 %8322  ;;  %v8574_v7 = vsel %vm446_vm0, %v20290_v20, %v18013_v57 }
0x112b   : > { %v8495_v16 = vadd.f32 %v8479_v6, %v8396_v3  ;;  %v8593_v45 = vadd.f32 %v8577_v15, %v8494_v11  ;;  %v8337_v46 = vsel %vm811_vm6, %v18186_v41, %v8323_v62 }
0x112c   : > { %v8353_v44 = vadd.f32 %v8337_v46, %v8254_v54 }
0x112d   : > { %v8594_v9 = vadd.f32 %v8578_v38, %v8495_v16  ;;  %v18310_v27 = vpop.permute.xlu1 %9016  ;;  %v18313_v29 = vadd.f32 %v8941_v24, %v8593_v45  ;;  %v8938_v24 = vmul.f32 %v8930_v34, %v20253_v55  ;;  %v10461_v34 = vld [vmem:[%s19322_s8 + $0x1c0] sm:$0xff] }
0x112e   : > { %v8392_v10 = vadd.f32 %v8384_v26, %v8353_v44  ;;  %v18315_v59 = vpop.permute.xlu0 %8555  ;;  %v10445_v26 = vld [vmem:[%s19322_s8 + $0x140] sm:$0xff]  ;;  %v12007_v38 = vpack.c.bf16 %v10462_v25, %v10461_v34  ;;  %v10446_v44 = vld [vmem:[%s19322_s8 + $0x148] sm:$0xff] }
0x112f   : > { %v18317_v41 = vadd.f32 %v8942_v52, %v8594_v9  ;;  %v8573_v31 = vsel %vm446_vm0, %v18315_v59, %v20290_v20  ;;  %v10431_v9 = vld [vmem:[%s19322_s8 + $0xd0] sm:$0xff]  ;;  %v10432_v52 = vld [vmem:[%s19322_s8 + $0xd8] sm:$0xff] }
0x1130   : > { %12008 = vmatprep.subr.bf16.mxu1 %v12007_v38  ;;  %v10463_v20 = vld [vmem:[%s19322_s8 + $0x1d0] sm:$0xff]  ;;  %v10418_v38 = vld [vmem:[%s19322_s8 + $0x68] sm:$0xff] }
0x1131   : > { %v8459_v51 = vpop.permute.xlu1 %8458 }
0x1132   : > { %v8474_v23 = vsel %vm762_vm5, %v18228_v37, %v8459_v51  ;;  %v8475_v56 = vsel %vm762_vm5, %v8459_v51, %v20289_v61  ;;  %v9007_v13 = vpop.permute.xlu0 %9006  ;;  %v11979_v51 = vpack.c.bf16 %v10432_v52, %v10431_v9  ;;  %v10416_v61 = vld [vmem:[%s19322_s8 + $0x58] sm:$0xff] }
0x1133   : > { %v8490_v12 = vadd.f32 %v8474_v23, %v18219_v14  ;;  %v8491_v33 = vadd.f32 %v8475_v56, %v8392_v10  ;;  %v12009_v10 = vpack.c.bf16 %v10446_v44, %v10445_v26  ;;  %v10415_v23 = vld [vmem:[%s19322_s8 + $0x50] sm:$0xff]  ;;  %v10417_v26 = vld [vmem:[%s19322_s8 + $0x60] sm:$0xff] }
0x1134   : > { %11980 = vmatprep.subr.bf16.mxu0 %v11979_v51  ;;  %v20293_v44 = vld [vmem:[#allocation116_spill] sm:$0xff]  ;;  %v11985_v51 = vpack.c.bf16 %v10418_v38, %v10417_v26 }
0x1135   : > { %v8589_v35 = vadd.f32 %v8573_v31, %v8490_v12  ;;  %v8590_v3 = vadd.f32 %v8574_v7, %v8491_v33  ;;  %v18331_v11 = vpop.permute.xlu1 %9107  ;;  %v11981_v12 = vpack.c.bf16 %v10416_v61, %v10415_v23  ;;  %12010 = vmatpush3.bf16.msra.mxu1 %v12009_v10  ;;  %v10464_v7 = vld [vmem:[%s19322_s8 + $0x1d8] sm:$0xff]  ;;  %v10447_v31 = vld [vmem:[%s19322_s8 + $0x150] sm:$0xff]  ;;  %v9026_v9 = vsel %vm762_vm5, %v9007_v13, %v20293_v44  ;;  %v10465_v61 = vld [vmem:[%s19322_s8 + $0x1e0] sm:$0xff] }
0x1136   : > { %v18334_v54 = vpop.permute.xlu0 %9010  ;;  %v18417_v52 = vld [vmem:[%s19320_s6 + $0x87] ss:$8 sm:$0xf]  ;;  %v9042_v26 = vadd.f32 %v9026_v9, %v18230_v22 }
0x1137   : > { %v18336_v14 = vadd.f32 %v8937_v30, %v8589_v35  ;;  %v18338_v4 = vadd.f32 %v8938_v24, %v8590_v3  ;;  %11982 = vmatpush3.bf16.msra.mxu0 %v11981_v12  ;;  %v12011_v30 = vpack.c.bf16 %v10464_v7, %v10463_v20  ;;  %v10448_v35 = vld [vmem:[%s19322_s8 + $0x158] sm:$0xff]  ;;  %v10433_v3 = vld [vmem:[%s19322_s8 + $0xe0] sm:$0xff]  ;;  %v10434_v24 = vld [vmem:[%s19322_s8 + $0xe8] sm:$0xff] }
0x1138   : > { %v12013_v34 = vpack.c.bf16 %v10448_v35, %v10447_v31  ;;  %v11983_v25 = vpack.c.bf16 %v10434_v24, %v10433_v3  ;;  %v10466_v13 = vld [vmem:[%s19322_s8 + $0x1e8] sm:$0xff]  ;;  %v10449_v12 = vld [vmem:[%s19322_s8 + $0x160] sm:$0xff]  ;;  %v20294_v20 = vld [vmem:[#allocation120_spill] sm:$0xff] }
0x1139   : > { %v18340_v6 = vpop.permute.xlu1 %9111  ;;  %12012 = vmatprep.subr.bf16.mxu1 %v12011_v30  ;;  %v9125_v7 = vsel %vm446_vm0, %v20294_v20, %v18331_v11  ;;  %v20295_v31 = vld [vmem:[#allocation123_spill] sm:$0xff]  ;;  %v12015_v3 = vpack.c.bf16 %v10466_v13, %v10465_v61  ;;  %v10420_v61 = vld [vmem:[%s19322_s8 + $0x78] sm:$0xff]  ;;  %v18457_v13 = vrot.slane %v18417_v52, %v20123_v63 }
0x113a   : > { %v18342_v57 = vpop.permute.xlu0 %9014  ;;  %12014 = vmatpush3.bf16.msra.mxu1 %v12013_v34  ;;  %11984 = vmatprep.subr.bf16.mxu0 %v11983_v25  ;;  %v10450_v24 = vld [vmem:[%s19322_s8 + $0x168] sm:$0xff]  ;;  %v10435_v34 = vld [vmem:[%s19322_s8 + $0xf0] sm:$0xff]  ;;  %v10436_v25 = vld [vmem:[%s19322_s8 + $0xf8] sm:$0xff]  ;;  %v9141_v5 = vadd.f32 %v9125_v7, %v9042_v26 }
0x113b   : > { %11986 = vmatpush3.bf16.msra.mxu0 %v11985_v51  ;;  %v10419_v51 = vld [vmem:[%s19322_s8 + $0x70] sm:$0xff]  ;;  %12016 = vmatprep.subr.bf16.mxu1 %v12015_v3  ;;  %v12017_v22 = vpack.c.bf16 %v10450_v24, %v10449_v12  ;;  %v11987_v9 = vpack.c.bf16 %v10436_v25, %v10435_v34  ;;  %v9189_v3 = vmul.f32 %v20266_v19, %v20255_v53  ;;  %v10452_v34 = vld [vmem:[%s19322_s8 + $0x178] sm:$0xff]  ;;  %v12203_v26 = vld [vmem:[%s12301_s26 + $0x28] sm:$0xff] }
0x113c   : > { %v10451_v24 = vld [vmem:[%s19322_s8 + $0x170] sm:$0xff] }
0x113d   : > { %v18344_v39 = vpop.permute.xlu1 %9012  ;;  %11988 = vmatprep.subr.bf16.mxu0 %v11987_v9  ;;  %v12021_v19 = vpack.c.bf16 %v10452_v34, %v10451_v24  ;;  %v12206_v9 = vld [vmem:[%s12301_s26 + $0x38] sm:$0xff]  ;;  %v20298_v24 = vld [vmem:[#allocation22_spill] sm:$0xff] }
0x113e   : > { %v18346_v15 = vpop.permute.xlu0 %9109  ;;  %12018 = vmatpush3.bf16.msra.mxu1 %v12017_v22  ;;  %v8473_v34 = vsel %vm762_vm5, %v20298_v24, %v18228_v37  ;;  %v9027_v37 = vsel %vm762_vm5, %v20293_v44, %v18334_v54 }
0x1141   : > { %v18348_v28 = vpop.permute.xlu1 %9020 }
0x1142   : > { %v18350_v40 = vpop.permute.xlu0 %9113 }
0x1145   : > { %v18352_v62 = vpop.permute.xlu1 %9024 }
0x1146   : > { %v18354_v16 = vpop.permute.xlu0 %9117 }
0x1149   : > { %v18356_v45 = vpop.permute.xlu1 %9119 }
0x114a   : > { %v18358_v46 = vpop.permute.xlu0 %9121 }
0x114b   : > { %20291 = vst [vmem:[#allocation66_spill] sm:$0xff] %v18358_v46  ;;  %v10467_v46 = vld [vmem:[%s19322_s8 + $0x1f0] sm:$0xff] }
0x114c   : > { %v12019_v7 = vpack.c.bf16 %v10468_v36, %v10467_v46  ;;  %v12202_v46 = vld [vmem:[%s12301_s26] sm:$0xff] }
0x114d   : > { %v18384_v56 = vpop.permute.xlu1 %9123 }
0x114e   : > { %20292 = vst [vmem:[#allocation136_spill] sm:$0xff] %v18384_v56  ;;  %v18386_v33 = vpop.permute.xlu0 %9022  ;;  %12020 = vmatprep.subr.bf16.mxu1 %v12019_v7  ;;  %v12207_v7 = vld [vmem:[%s12301_s26 + $0x30] sm:$0xff] }
0x114f   : > { %12022 = vmatpush3.bf16.msra.mxu1 %v12021_v19  ;;  %v20300_v19 = vld [vmem:[#allocation14_spill] sm:$0xff] }
0x1151   : > { %v18419_v10 = vpop.permute.xlu1 %9174 }
0x1152   : > { %v9173_v23 = vpop.permute.xlu0 %9172  ;;  %v9188_v25 = vmul.f32 %v18419_v10, %v17958_v60  ;;  %v9193_v22 = vmul.f32 %v17935_v43, %v18419_v10 }
0x1153   : > { %v9177_v30 = vsel %vm762_vm5, %v20295_v31, %v9173_v23  ;;  %v9178_v35 = vsel %vm762_vm5, %v9173_v23, %v18419_v10  ;;  %v11989_v31 = vpack.c.bf16 %v10420_v61, %v10419_v51  ;;  %v12204_v51 = vld [vmem:[%s12301_s26 + $0x10] sm:$0xff]  ;;  %v12205_v61 = vld [vmem:[%s12301_s26 + $0x20] sm:$0xff] }
0x1154   : > { %v9186_v38 = vmul.f32 %v9177_v30, %v20250_v50  ;;  %v9187_v23 = vmul.f32 %v9178_v35, %v20256_v42  ;;  %10616 = vmatmul.mubr.f32.vlgmr.msra.gmra.mrb[72].mxu1 %v12204_v51 }
0x1155   : > { %v18459_v20 = vpop.permute.xlu1 %9206  ;;  %11990 = vmatpush3.bf16.msra.mxu0 %v11989_v31  ;;  %10620 = vmatprep.mubr.f32.mxu1 %v12206_v9  ;;  %v20297_v31 = vmov 0.0  }
0x1156   : > { %9210 = vrot.lane.b32.xlu1 %v9187_v23, %s12219_s17  ;;  %9208 = vrot.lane.b32.xlu0 %v9186_v38, %s12219_s17  ;;  %v9205_v56 = vpop.permute.xlu0 %9204  ;;  %v20296_v38 = vld [vmem:[#allocation181_spill] sm:$0xff] }
0x1157   : > { %v9224_v12 = vsel %vm811_vm6, %v9205_v56, %v18459_v20  ;;  %v9271_v56 = vmul.f32 %v18457_v13, %v20253_v55  ;;  %v11229_v23 = vld [vmem:[%s19320_s6 + $0xa0] ss:$8 sm:$0xf] }
0x1158   : > { %v9240_v53 = vadd.f32 %v9224_v12, %v9141_v5  ;;  %10541 = vmatmul.mubr.f32.vlgmr.msra.gmra.mrb[70].mxu0 %v12202_v46  ;;  %v9191_v5 = vmul.f32 %v9177_v30, %v20258_v47  ;;  %v9192_v30 = vmul.f32 %v9178_v35, %v20264_v49  ;;  %v9293_v12 = vrot.slane %v11229_v23, %v20123_v63 }
0x1159   : > { %10545 = vmatprep.mubr.f32.mxu0 %v12203_v26  ;;  %10621 = vmatmul.mubr.f32.gmra.mrb[74].mxu1 %v12207_v7  ;;  %v9305_v10 = vrot.slane %v11229_v23, %v20095_v0  ;;  %v9301_v35 = vrot.slane %v11229_v23, %v20061_v8  ;;  %v8922_v46 = vrot.slane %v18215_v2, %v20108_v21 }
0x115a   : > { %9214 = vrot.lane.b32.xlu1 %v9189_v3, %s12219_s17  ;;  %9212 = vrot.lane.b32.xlu0 %v9188_v25, %s12219_s17  ;;  %v18485_v36 = vadd.f32 %v9271_v56, %v9240_v53  ;;  %v9297_v3 = vrot.slane %v11229_v23, %v20108_v21  ;;  %v20299_v25 = vld [vmem:[#allocation61_spill] sm:$0xff]  ;;  %v8489_v56 = vadd.f32 %v8473_v34, %v20300_v19 }
0x115b   : > { %10863 = vmatprep.mubr.f32.mxu1 %v20297_v31  ;;  %v8572_v53 = vsel %vm446_vm0, %v20299_v25, %v18315_v59  ;;  %v9028_v26 = vsel %vm762_vm5, %v18334_v54, %v18344_v39  ;;  %v8936_v23 = vmul.f32 0.0, %v8922_v46  ;;  %v8576_v59 = vsel %vm446_vm0, %v18271_v32, %v18294_v17 }
0x115c   : > { %10546 = vmatmul.mubr.f32.gmra.mrb[72].mxu0 %v12205_v61  ;;  %v9044_v2 = vadd.f32 %v9028_v26, %v18336_v14  ;;  %v9258_v61 = vrot.slane %v18417_v52, %v20108_v21  ;;  %v9029_v32 = vsel %vm762_vm5, %v18344_v39, %v18342_v57  ;;  %v9127_v17 = vsel %vm446_vm0, %v18346_v15, %v18340_v6  ;;  %v20301_v14 = vld [vmem:[#allocation113_spill] sm:$0xff] }
0x115d   : > { %10786 = vmatprep.mubr.f32.mxu0 %v20297_v31  ;;  %v9128_v7 = vsel %vm446_vm0, %v18340_v6, %v18350_v40  ;;  %v9031_v6 = vsel %vm762_vm5, %v20301_v14, %v18348_v28 }
0x115e   : > { %9218 = vrot.lane.b32.xlu1 %v9191_v5, %s12219_s17  ;;  %9216 = vrot.lane.b32.xlu0 %v20296_v38, %s12219_s17  ;;  %v8588_v5 = vadd.f32 %v8572_v53, %v8489_v56  ;;  %v8477_v38 = vsel %vm762_vm5, %v18239_v18, %v18268_v58  ;;  %v9126_v18 = vsel %vm446_vm0, %v18331_v11, %v18346_v15 }
0x115f   : > { %v9262_v58 = vrot.slane %v18417_v52, %v20061_v8  ;;  %v9143_v9 = vadd.f32 %v9127_v17, %v9044_v2 }
0x1160   : > { %v8944_v51 = vadd.f32 %v8936_v23, %v8588_v5  ;;  %v9033_v5 = vsel %vm762_vm5, %v18386_v33, %v18352_v62 }
0x1161   : > { %v9273_v15 = vmul.f32 %v9262_v58, %v20256_v42 }
0x1162   : > { %9222 = vrot.lane.b32.xlu1 %v9193_v22, %s12219_s17  ;;  %9220 = vrot.lane.b32.xlu0 %v9192_v30, %s12219_s17  ;;  %v8493_v22 = vadd.f32 %v8477_v38, %v18260_v1  ;;  %v9043_v54 = vadd.f32 %v9027_v37, %v8944_v51  ;;  %v9030_v1 = vsel %vm762_vm5, %v18310_v27, %v20301_v14 }
0x1163   : > { %v9266_v27 = vrot.slane %v18417_v52, %v20095_v0  ;;  %v9046_v34 = vadd.f32 %v9030_v1, %v18283_v48  ;;  %v9130_v48 = vsel %vm446_vm0, %v18354_v16, %v18356_v45  ;;  %v9032_v52 = vsel %vm762_vm5, %v18348_v28, %v18386_v33  ;;  %v20304_v1 = vld [vmem:[#allocation66_spill] sm:$0xff] }
0x1164   : > { %v8592_v44 = vadd.f32 %v8576_v59, %v8493_v22  ;;  %v9142_v30 = vadd.f32 %v9126_v18, %v9043_v54  ;;  %v9048_v2 = vadd.f32 %v9032_v52, %v18313_v29  ;;  %v9276_v14 = vmul.f32 %v9258_v61, %v20258_v47 }
0x1165   : > { %v9131_v29 = vsel %vm446_vm0, %v18356_v45, %v20304_v1 }
0x1166   : > { %9308 = vrot.lane.b32.xlu1 %v9297_v3, %s12219_s17  ;;  %9306 = vrot.lane.b32.xlu0 %v9293_v12, %s12219_s17  ;;  %v9272_v12 = vmul.f32 %v9258_v61, %v20250_v50  ;;  %v8948_v25 = vadd.f32 %v8936_v23, %v8592_v44  ;;  %v9274_v23 = vmul.f32 %v9266_v27, %v17958_v60 }
0x1168   : > { %v9047_v38 = vadd.f32 %v9031_v6, %v8948_v25 }
0x116a   : > { %9312 = vrot.lane.b32.xlu1 %v9305_v10, %s12219_s17  ;;  %9310 = vrot.lane.b32.xlu0 %v9301_v35, %s12219_s17  ;;  %v9045_v10 = vadd.f32 %v9029_v32, %v18338_v4  ;;  %v9146_v51 = vadd.f32 %v9130_v48, %v9047_v38  ;;  %v20303_v32 = vld [vmem:[#allocation178_spill] sm:$0xff] }
0x116b   : > { %v9275_v17 = vmul.f32 %v18457_v13, %v20303_v32  ;;  %v11230_v38 = vld [vmem:[%s19320_s6 + $0xa1] ss:$8 sm:$0xf] }
0x116c   : > { %v9144_v40 = vadd.f32 %v9128_v7, %v9045_v10  ;;  %v9277_v10 = vmul.f32 %v9262_v58, %v20264_v49 }
0x11c8   : > { %v9211_v11 = vpop.permute.xlu1 %9210  ;;  %v9209_v3 = vpop.permute.xlu0 %9208 }
0x11c9   : > { %v9225_v57 = vsel %vm811_vm6, %v18459_v20, %v9209_v3  ;;  %v9226_v39 = vsel %vm811_vm6, %v9209_v3, %v9211_v11  ;;  %v20302_v20 = vld [vmem:[#allocation121_spill] sm:$0xff] }
0x11ca   : > { %v9241_v35 = vadd.f32 %v9225_v57, %v9142_v30  ;;  %v9242_v24 = vadd.f32 %v9226_v39, %v9143_v9  ;;  %v9129_v53 = vsel %vm446_vm0, %v20302_v20, %v18354_v16  ;;  %v9049_v16 = vadd.f32 %v9033_v5, %v18317_v41  ;;  %v20305_v41 = vld [vmem:[#allocation136_spill] sm:$0xff] }
0x11cb   : > { %v9145_v59 = vadd.f32 %v9129_v53, %v9046_v34  ;;  %v9132_v30 = vsel %vm446_vm0, %v20304_v1, %v20305_v41  ;;  %v9278_v39 = vmul.f32 %v17935_v43, %v9266_v27  ;;  %v10637_v1 = vld [vmem:[%s19324_s10 + $0x8] sm:$0xff]  ;;  %v10639_v41 = vld [vmem:[%s19324_s10 + $0x18] sm:$0xff] }
0x11cc   : > { %v9215_v19 = vpop.permute.xlu1 %9214  ;;  %v9213_v56 = vpop.permute.xlu0 %9212  ;;  %v18572_v4 = vadd.f32 %v9272_v12, %v9241_v35  ;;  %v18574_v46 = vadd.f32 %v9273_v15, %v9242_v24  ;;  %v9148_v3 = vadd.f32 %v9132_v30, %v9049_v16 }
0x11cd   : > { %v9227_v26 = vsel %vm811_vm6, %v9211_v11, %v9213_v56  ;;  %v9147_v11 = vadd.f32 %v9131_v29, %v9048_v2  ;;  %v9400_v2 = vrot.slane %v11230_v38, %v20061_v8  ;;  %v18646_v16 = vpop.f32.mrb[66].mxu1  ;;  %v10641_v29 = vld [vmem:[%s19324_s10 + $0x28] sm:$0xff] }
0x11ce   : > { %v9243_v37 = vadd.f32 %v9227_v26, %v9144_v40 }
0x11d0   : > { %v9219_v22 = vpop.permute.xlu1 %9218  ;;  %v9217_v18 = vpop.permute.xlu0 %9216  ;;  %v18589_v54 = vadd.f32 %v9274_v23, %v9243_v37  ;;  %v9396_v37 = vrot.slane %v11230_v38, %v20108_v21 }
0x11d1   : > { %v9228_v28 = vsel %vm811_vm6, %v9215_v19, %v9217_v18  ;;  %v9229_v62 = vsel %vm811_vm6, %v9217_v18, %v9219_v22  ;;  %v18650_v18 = vpop.f32.mrb[67].mxu1 }
0x11d2   : > { %v9244_v33 = vadd.f32 %v9228_v28, %v9145_v59  ;;  %v9245_v44 = vadd.f32 %v9229_v62, %v9146_v51  ;;  %v9392_v59 = vrot.slane %v11230_v38, %v20123_v63  ;;  %v9404_v51 = vrot.slane %v11230_v38, %v20095_v0  ;;  %v18654_v62 = vpop.f32.mrb[68].mxu1  ;;  %v10659_v38 = vld [vmem:[%s19324_s10 + $0xb8] sm:$0xff] }
0x11d4   : > { %v9223_v9 = vpop.permute.xlu1 %9222  ;;  %v9221_v12 = vpop.permute.xlu0 %9220  ;;  %v18602_v7 = vadd.f32 %v9275_v17, %v9244_v33  ;;  %v18604_v57 = vadd.f32 %v9276_v14, %v9245_v44 }
0x11d5   : > { %v9230_v13 = vsel %vm811_vm6, %v9219_v22, %v9221_v12  ;;  %v9231_v61 = vsel %vm811_vm6, %v9221_v12, %v9223_v9  ;;  %v18648_v22 = vpop.f32.mrb[64].mxu0  ;;  %v18658_v44 = vpop.f32.mrb[69].mxu1  ;;  %v12023_v9 = vpack.c.bf16 %v10641_v29, %v10637_v1  ;;  %v10640_v12 = vld [vmem:[%s19324_s10 + $0x20] sm:$0xff]  ;;  %v10658_v29 = vld [vmem:[%s19324_s10 + $0xb0] sm:$0xff] }
0x11d6   : > { %v9246_v15 = vadd.f32 %v9230_v13, %v9147_v11  ;;  %v9247_v45 = vadd.f32 %v9231_v61, %v9148_v3  ;;  %v18652_v28 = vpop.f32.mrb[65].mxu0  ;;  %v18662_v17 = vpop.f32.mrb[70].mxu1  ;;  %v10643_v11 = vld [vmem:[%s19324_s10 + $0x38] sm:$0xff]  ;;  %v10636_v3 = vld [vmem:[%s19324_s10] sm:$0xff] }
0x11d7   : > { %v18656_v33 = vpop.f32.mrb[66].mxu0  ;;  %v18664_v14 = vpop.f32.mrb[71].mxu1  ;;  %v12055_v61 = vpack.c.bf16 %v10643_v11, %v10639_v41  ;;  %12024 = vmatprep.subr.bf16.mxu0 %v12023_v9  ;;  %v10661_v41 = vld [vmem:[%s19324_s10 + $0xc8] sm:$0xff] }
0x11d8   : > { %v9309_v35 = vpop.permute.xlu1 %9308  ;;  %v9307_v24 = vpop.permute.xlu0 %9306  ;;  %v18610_v34 = vadd.f32 %v9277_v10, %v9246_v15  ;;  %v18612_v25 = vadd.f32 %v9278_v39, %v9247_v45  ;;  %v12025_v39 = vpack.c.bf16 %v10640_v12, %v10636_v3  ;;  %v10638_v15 = vld [vmem:[%s19324_s10 + $0x10] sm:$0xff]  ;;  %v10645_v10 = vld [vmem:[%s19324_s10 + $0x48] sm:$0xff]  ;;  %v10663_v12 = vld [vmem:[%s19324_s10 + $0xd8] sm:$0xff] }
0x11d9   : > { %v9314_v6 = vsel %vm811_vm6, %v9307_v24, %v9309_v35  ;;  %v9322_v40 = vmul.f32 %v9307_v24, %v20253_v55  ;;  %v9327_v55 = vmul.f32 %v9307_v24, %v20303_v32  ;;  %v18660_v32 = vpop.f32.mrb[67].mxu0  ;;  %v10642_v45 = vld [vmem:[%s19324_s10 + $0x30] sm:$0xff]  ;;  %v10649_v24 = vld [vmem:[%s19324_s10 + $0x68] sm:$0xff]  ;;  %12056 = vmatprep.subr.bf16.mxu1 %v12055_v61  ;;  %v10667_v61 = vld [vmem:[%s19324_s10 + $0xf8] sm:$0xff] }
0x11da   : > { %v9323_v20 = vmul.f32 %v9314_v6, %v20250_v50  ;;  %v9328_v5 = vmul.f32 %v9314_v6, %v20258_v47  ;;  %v18675_v30 = vpop.f32.mrb[68].mxu0  ;;  %v10647_v6 = vld [vmem:[%s19324_s10 + $0x58] sm:$0xff]  ;;  %12026 = vmatpush1.bf16.msra.mxu0 %v12025_v39  ;;  %v10665_v9 = vld [vmem:[%s19324_s10 + $0xe8] sm:$0xff]  ;;  %v10660_v39 = vld [vmem:[%s19324_s10 + $0xc0] sm:$0xff] }
0x11db   : > { %9342 = vrot.lane.b32.xlu0 %v9322_v40, %s12218_s30  ;;  %v18686_v13 = vpop.f32.mrb[69].mxu0  ;;  %v10651_v40 = vld [vmem:[%s19324_s10 + $0x78] sm:$0xff]  ;;  %v12035_v3 = vpack.c.bf16 %v10665_v9, %v10661_v41  ;;  %v10676_v41 = vld [vmem:[%s19324_s10 + $0x140] sm:$0xff] }
0x11dc   : > { %v9313_v53 = vpop.permute.xlu1 %9312  ;;  %9344 = vrot.lane.b32.xlu1 %v9323_v20, %s12218_s30  ;;  %v9311_v27 = vpop.permute.xlu0 %9310  ;;  %v12027_v20 = vpack.c.bf16 %v10649_v24, %v10645_v10  ;;  %v10662_v10 = vld [vmem:[%s19324_s10 + $0xd0] sm:$0xff]  ;;  %v10669_v24 = vld [vmem:[%s19324_s10 + $0x108] sm:$0xff]  ;;  %v10680_v9 = vld [vmem:[%s19324_s10 + $0x160] sm:$0xff] }
0x11dd   : > { %v9315_v58 = vsel %vm811_vm6, %v9309_v35, %v9311_v27  ;;  %v9316_v19 = vsel %vm811_vm6, %v9311_v27, %v9313_v53  ;;  %v9326_v52 = vmul.f32 0.0, %v9313_v53  ;;  %v12057_v35 = vpack.c.bf16 %v10642_v45, %v10638_v15  ;;  %v10644_v27 = vld [vmem:[%s19324_s10 + $0x40] sm:$0xff] }
0x11de   : > { %v9324_v56 = vmul.f32 %v9315_v58, %v20256_v42  ;;  %v9325_v48 = vmul.f32 %v9316_v19, %v17958_v60  ;;  %v9329_v26 = vmul.f32 %v9315_v58, %v20264_v49  ;;  %v9330_v23 = vmul.f32 %v17935_v43, %v9316_v19  ;;  %v10648_v58 = vld [vmem:[%s19324_s10 + $0x60] sm:$0xff]  ;;  %v10646_v19 = vld [vmem:[%s19324_s10 + $0x50] sm:$0xff]  ;;  %12028 = vmatprep.subr.bf16.mxu0 %v12027_v20 }
0x11df   : > { %v12059_v53 = vpack.c.bf16 %v10651_v40, %v10647_v6  ;;  %12058 = vmatpush1.bf16.msra.mxu1 %v12057_v35  ;;  %v12067_v15 = vpack.c.bf16 %v10667_v61, %v10663_v12  ;;  %v10664_v45 = vld [vmem:[%s19324_s10 + $0xe0] sm:$0xff]  ;;  %v10666_v35 = vld [vmem:[%s19324_s10 + $0xf0] sm:$0xff]  ;;  %v10673_v6 = vld [vmem:[%s19324_s10 + $0x128] sm:$0xff] }
0x11e0   : > { %9348 = vrot.lane.b32.xlu1 %v9325_v48, %s12218_s30  ;;  %9346 = vrot.lane.b32.xlu0 %v9324_v56, %s12218_s30  ;;  %v12029_v56 = vpack.c.bf16 %v10648_v58, %v10644_v27  ;;  %v10650_v48 = vld [vmem:[%s19324_s10 + $0x70] sm:$0xff]  ;;  %v10671_v40 = vld [vmem:[%s19324_s10 + $0x118] sm:$0xff]  ;;  %v12037_v20 = vpack.c.bf16 %v10664_v45, %v10660_v39  ;;  %v12069_v27 = vpack.c.bf16 %v10666_v35, %v10662_v10 }
0x11e1   : > { %12060 = vmatprep.subr.bf16.mxu1 %v12059_v53  ;;  %v10675_v53 = vld [vmem:[%s19324_s10 + $0x138] sm:$0xff]  ;;  %v12039_v58 = vpack.c.bf16 %v10673_v6, %v10669_v24  ;;  %v10682_v61 = vld [vmem:[%s19324_s10 + $0x170] sm:$0xff]  ;;  %v10685_v39 = vld [vmem:[%s19324_s10 + $0x188] sm:$0xff] }
0x11e2   : > { %12030 = vmatpush1.bf16.msra.mxu0 %v12029_v56  ;;  %v10672_v56 = vld [vmem:[%s19324_s10 + $0x120] sm:$0xff]  ;;  %v10687_v45 = vld [vmem:[%s19324_s10 + $0x198] sm:$0xff] }
0x11e3   : > { %v10691_v10 = vld [vmem:[%s19324_s10 + $0x1b8] sm:$0xff] }
0x11e4   : > { %9352 = vrot.lane.b32.xlu1 %v9327_v55, %s12218_s30  ;;  %9350 = vrot.lane.b32.xlu0 %v9326_v52, %s12218_s30  ;;  %v10653_v55 = vld [vmem:[%s19324_s10 + $0x88] sm:$0xff] }
0x11e8   : > { %9356 = vrot.lane.b32.xlu1 %v9329_v26, %s12218_s30  ;;  %9354 = vrot.lane.b32.xlu0 %v9328_v5, %s12218_s30  ;;  %v10657_v5 = vld [vmem:[%s19324_s10 + $0xa8] sm:$0xff]  ;;  %v10655_v26 = vld [vmem:[%s19324_s10 + $0x98] sm:$0xff] }
0x11ec   : > { %9360 = vrot.lane.b32.xlu1 %v9326_v52, %s12218_s30  ;;  %9358 = vrot.lane.b32.xlu0 %v9330_v23, %s12218_s30  ;;  %v12061_v52 = vpack.c.bf16 %v10650_v48, %v10646_v19  ;;  %v12031_v23 = vpack.c.bf16 %v10657_v5, %v10653_v55  ;;  %v10668_v19 = vld [vmem:[%s19324_s10 + $0x100] sm:$0xff]  ;;  %v10670_v48 = vld [vmem:[%s19324_s10 + $0x110] sm:$0xff]  ;;  %v12071_v55 = vpack.c.bf16 %v10675_v53, %v10671_v40 }
0x11ed   : > { %v10677_v5 = vld [vmem:[%s19324_s10 + $0x148] sm:$0xff]  ;;  %v12045_v40 = vpack.c.bf16 %v10680_v9, %v10676_v41 }
0x11ee   : > { %12062 = vmatpush1.bf16.msra.mxu1 %v12061_v52  ;;  %12032 = vmatprep.subr.bf16.mxu0 %v12031_v23  ;;  %v10674_v52 = vld [vmem:[%s19324_s10 + $0x130] sm:$0xff]  ;;  %v10683_v23 = vld [vmem:[%s19324_s10 + $0x178] sm:$0xff] }
0x11f0   : > { %9407 = vrot.lane.b32.xlu1 %v9396_v37, %s12217_s27  ;;  %9405 = vrot.lane.b32.xlu0 %v9392_v59, %s12217_s27  ;;  %v12063_v37 = vpack.c.bf16 %v10659_v38, %v10655_v26  ;;  %v10652_v59 = vld [vmem:[%s19324_s10 + $0x80] sm:$0xff]  ;;  %v10681_v26 = vld [vmem:[%s19324_s10 + $0x168] sm:$0xff] }
0x11f1   : > { %v10679_v38 = vld [vmem:[%s19324_s10 + $0x158] sm:$0xff] }
0x11f2   : > { %12064 = vmatprep.subr.bf16.mxu1 %v12063_v37  ;;  %v12075_v12 = vpack.c.bf16 %v10683_v23, %v10679_v38  ;;  %v10693_v38 = vld [vmem:[%s19324_s10 + $0x1c8] sm:$0xff] }
0x11f3   : > { %v10697_v23 = vld [vmem:[%s19324_s10 + $0x1e8] sm:$0xff] }
0x11f4   : > { %9411 = vrot.lane.b32.xlu1 %v9404_v51, %s12217_s27  ;;  %9409 = vrot.lane.b32.xlu0 %v9400_v2, %s12217_s27  ;;  %v10656_v51 = vld [vmem:[%s19324_s10 + $0xa0] sm:$0xff]  ;;  %v10654_v2 = vld [vmem:[%s19324_s10 + $0x90] sm:$0xff] }
0x11f5   : > { %v12033_v1 = vpack.c.bf16 %v10656_v51, %v10652_v59  ;;  %v12065_v11 = vpack.c.bf16 %v10658_v29, %v10654_v2  ;;  %v11254_v59 = vld [vmem:[%s19323_s9] ss:$0 sm:$0xff]  ;;  %v12041_v51 = vpack.c.bf16 %v10672_v56, %v10668_v19  ;;  %v12043_v29 = vpack.c.bf16 %v10681_v26, %v10677_v5  ;;  %v10690_v26 = vld [vmem:[%s19324_s10 + $0x1b0] sm:$0xff] }
0x11f6   : > { %v10684_v19 = vld [vmem:[%s19324_s10 + $0x180] sm:$0xff]  ;;  %v12079_v5 = vpack.c.bf16 %v10691_v10, %v10687_v45  ;;  %v10694_v45 = vld [vmem:[%s19324_s10 + $0x1d0] sm:$0xff] }
0x11f7   : > { %12034 = vmatpush1.bf16.msra.mxu0 %v12033_v1  ;;  %12066 = vmatpush1.bf16.msra.mxu1 %v12065_v11  ;;  %v12073_v1 = vpack.c.bf16 %v10674_v52, %v10670_v48  ;;  %v10678_v11 = vld [vmem:[%s19324_s10 + $0x150] sm:$0xff]  ;;  %v10688_v56 = vld [vmem:[%s19324_s10 + $0x1a0] sm:$0xff] }
0x11f8   : > { %12036 = vmatprep.subr.bf16.mxu0 %v12035_v3  ;;  %12068 = vmatprep.subr.bf16.mxu1 %v12067_v15  ;;  %v10689_v15 = vld [vmem:[%s19324_s10 + $0x1a8] sm:$0xff]  ;;  %v10686_v48 = vld [vmem:[%s19324_s10 + $0x190] sm:$0xff]  ;;  %v12049_v41 = vpack.c.bf16 %v10688_v56, %v10684_v19 }
0x11f9   : > { %v10698_v10 = vld [vmem:[%s19324_s10 + $0x1f0] sm:$0xff] }
0x11fb   : > { %12038 = vmatpush1.bf16.msra.mxu0 %v12037_v20  ;;  %12070 = vmatpush1.bf16.msra.mxu1 %v12069_v27  ;;  %v12077_v27 = vpack.c.bf16 %v10682_v61, %v10678_v11  ;;  %v12081_v11 = vpack.c.bf16 %v10690_v26, %v10686_v48  ;;  %v10696_v61 = vld [vmem:[%s19324_s10 + $0x1e0] sm:$0xff] }
0x11fc   : > { %12040 = vmatprep.subr.bf16.mxu0 %v12039_v58  ;;  %12072 = vmatprep.subr.bf16.mxu1 %v12071_v55  ;;  %v12047_v58 = vpack.c.bf16 %v10689_v15, %v10685_v39 }
0x11ff   : > { %12042 = vmatpush1.bf16.msra.mxu0 %v12041_v51  ;;  %12074 = vmatpush1.bf16.msra.mxu1 %v12073_v1  ;;  %v10699_v51 = vld [vmem:[%s19324_s10 + $0x1f8] sm:$0xff] }
0x1200   : > { %12044 = vmatprep.subr.bf16.mxu0 %v12043_v29  ;;  %12076 = vmatprep.subr.bf16.mxu1 %v12075_v12  ;;  %v10692_v12 = vld [vmem:[%s19324_s10 + $0x1c0] sm:$0xff] }
0x1203   : > { %12046 = vmatpush1.bf16.msra.mxu0 %v12045_v40  ;;  %12078 = vmatpush1.bf16.msra.mxu1 %v12077_v27 }
0x1204   : > { %12048 = vmatprep.subr.bf16.mxu0 %v12047_v58  ;;  %12080 = vmatprep.subr.bf16.mxu1 %v12079_v5 }
0x1207   : > { %12050 = vmatpush1.bf16.msra.mxu0 %v12049_v41  ;;  %12082 = vmatpush1.bf16.msra.mxu1 %v12081_v11 }
0x1227   : > { %v11398_v24 = vpop.f32.mrb[72].mxu1 }
0x1228   : > { %v11399_v20 = vpop.f32.mrb[73].mxu1 }
0x1229   : > { %v11400_v55 = vadd.f32 %v11399_v20, %v11398_v24  ;;  %v12053_v24 = vpack.c.bf16 %v10696_v61, %v10692_v12 }
0x122b   : > { %v11360_v37 = vpop.f32.mrb[70].mxu0 }
0x122c   : > { %v11361_v2 = vpop.f32.mrb[71].mxu0  ;;  %v11401_v29 = vpop.f32.mrb[74].mxu1 }
0x122d   : > { %v11362_v3 = vadd.f32 %v11361_v2, %v11360_v37  ;;  %v10695_v37 = vld [vmem:[%s19324_s10 + $0x1d8] sm:$0xff]  ;;  %v11402_v9 = vpop.f32.mrb[75].mxu1 }
0x122e   : > { %v11403_v15 = vadd.f32 %v11402_v9, %v11401_v29 }
0x122f   : > { %v10543_v35 = vadd.f32 %v11362_v3, %v11254_v59  ;;  %v11363_v6 = vpop.f32.mrb[72].mxu0  ;;  %v12051_v3 = vpack.c.bf16 %v10697_v23, %v10693_v38 }
0x1230   : > { %v11364_v53 = vpop.f32.mrb[73].mxu0 }
0x1231   : > { %v11365_v52 = vadd.f32 %v11364_v53, %v11363_v6  ;;  %v10618_v2 = vadd.f32 %v11400_v55, %v10543_v35  ;;  %12052 = vmatprep.subr.bf16.mxu0 %v12051_v3  ;;  %v12085_v6 = vpack.c.bf16 %v10698_v10, %v10694_v45 }
0x1232   : > { %12054 = vmatpush1.bf16.msra.mxu0 %v12053_v24 }
0x1233   : > { %v10548_v1 = vadd.f32 %v11365_v52, %v11254_v59  ;;  %v10628_v39 = vmul.f32 0.70710677, %v10618_v2  ;;  %v12083_v59 = vpack.c.bf16 %v10699_v51, %v10695_v37  ;;  %v10626_v20 = vmul.f32 0.5, %v10618_v2 }
0x1235   : > { %12155 = verf.f32 %v10628_v39  ;;  %v10623_v35 = vadd.f32 %v11403_v15, %v10548_v1  ;;  %12084 = vmatprep.subr.bf16.mxu1 %v12083_v59 }
0x1236   : > { %12086 = vmatpush1.bf16.msra.mxu1 %v12085_v6 }
0x1237   : > { %v10629_v40 = vmul.f32 0.70710677, %v10623_v35  ;;  %v10627_v19 = vmul.f32 0.5, %v10623_v35 }
0x1239   : > { %12157 = verf.f32 %v10629_v40 }
0x123f   : > { %v12156_v53 = vpop.eup %12155 }
0x1240   : > { %v10632_v27 = vadd.f32 1.0, %v12156_v53 }
0x1242   : > { %v10634_v58 = vmul.f32 %v10632_v27, %v10626_v20 }
0x1243   : > { %v12158_v56 = vpop.eup %12157 }
0x1244   : > { %10787 = vmatmul.mubr.f32.vlgmr.msra.gmra.mrb[74].mxu0 %v10634_v58  ;;  %10864 = vmatmul.mubr.f32.vlgmr.msra.gmra.mrb[76].mxu1 %v10634_v58  ;;  %v10633_v48 = vadd.f32 1.0, %v12158_v56 }
0x1245   : > { %10792 = vmatprep.mubr.f32.mxu0 %v20297_v31  ;;  %10869 = vmatprep.mubr.f32.mxu1 %v20297_v31 }
0x1246   : > { %v10635_v55 = vmul.f32 %v10633_v48, %v10627_v19  ;;  %v20307_v48 = vld [vmem:[#allocation169_spill] sm:$0xff] }
0x1248   : > { %10793 = vmatmul.mubr.f32.gmra.mrb[76].mxu0 %v10635_v55  ;;  %10870 = vmatmul.mubr.f32.gmra.mrb[78].mxu1 %v10635_v55 }
0x124d   : > { %v9343_v52 = vpop.permute.xlu0 %9342 }
0x124e   : > { %v9345_v5 = vpop.permute.xlu1 %9344 }
0x124f   : > { %v9362_v26 = vsel %vm762_vm5, %v9343_v52, %v9345_v5 }
0x1250   : > { %v18869_v38 = vadd.f32 %v9362_v26, %v18485_v36 }
0x1252   : > { %v9349_v23 = vpop.permute.xlu1 %9348  ;;  %v9347_v37 = vpop.permute.xlu0 %9346 }
0x1253   : > { %v9363_v51 = vsel %vm762_vm5, %v9345_v5, %v9347_v37  ;;  %v9364_v2 = vsel %vm762_vm5, %v9347_v37, %v9349_v23  ;;  %v11249_v5 = vld [vmem:[%s19320_s6 + $0xa4] ss:$8 sm:$0xf] }
0x1254   : > { %v18874_v1 = vadd.f32 %v9363_v51, %v18572_v4  ;;  %v18877_v31 = vadd.f32 %v9364_v2, %v18574_v46  ;;  %v9950_v26 = vrot.slane %v11249_v5, %v20108_v21  ;;  %v9958_v37 = vrot.slane %v11249_v5, %v20095_v0  ;;  %v11250_v2 = vld [vmem:[%s19320_s6 + $0xa5] ss:$8 sm:$0xf] }
0x1255   : > { %v9954_v51 = vrot.slane %v11249_v5, %v20061_v8 }
0x1256   : > { %v9353_v29 = vpop.permute.xlu1 %9352  ;;  %v9351_v41 = vpop.permute.xlu0 %9350 }
0x1257   : > { %v9365_v9 = vsel %vm762_vm5, %v9349_v23, %v9351_v41  ;;  %v9946_v23 = vrot.slane %v11249_v5, %v20123_v63  ;;  %v10045_v41 = vrot.slane %v11250_v2, %v20123_v63 }
0x1258   : > { %v18881_v11 = vadd.f32 %v9365_v9, %v18589_v54  ;;  %v10057_v9 = vrot.slane %v11250_v2, %v20095_v0 }
0x125a   : > { %v9357_v36 = vpop.permute.xlu1 %9356  ;;  %v9355_v3 = vpop.permute.xlu0 %9354 }
0x125b   : > { %v9366_v12 = vsel %vm762_vm5, %v9353_v29, %v9355_v3  ;;  %v9367_v61 = vsel %vm762_vm5, %v9355_v3, %v9357_v36  ;;  %v10049_v29 = vrot.slane %v11250_v2, %v20108_v21  ;;  %v11252_v3 = vld [vmem:[%s19320_s6 + $0xa7] ss:$8 sm:$0xf] }
0x125c   : > { %v18886_v39 = vadd.f32 %v9366_v12, %v18602_v7  ;;  %v18889_v4 = vadd.f32 %v9367_v61, %v18604_v57  ;;  %v10187_v12 = vrot.slane %v11252_v3, %v20108_v21  ;;  %v10183_v61 = vrot.slane %v11252_v3, %v20123_v63 }
0x125e   : > { %v9361_v46 = vpop.permute.xlu1 %9360  ;;  %v9359_v15 = vpop.permute.xlu0 %9358 }
0x125f   : > { %v9368_v59 = vsel %vm762_vm5, %v9357_v36, %v9359_v15  ;;  %v9369_v45 = vsel %vm762_vm5, %v9359_v15, %v9361_v46  ;;  %v10053_v36 = vrot.slane %v11250_v2, %v20061_v8  ;;  %v10195_v46 = vrot.slane %v11252_v3, %v20095_v0 }
0x1260   : > { %v18894_v54 = vadd.f32 %v9368_v59, %v18610_v34  ;;  %v18897_v10 = vadd.f32 %v9369_v45, %v18612_v25  ;;  %v10191_v15 = vrot.slane %v11252_v3, %v20061_v8  ;;  %v11253_v59 = vld [vmem:[%s19320_s6 + $0xc0] ss:$8 sm:$0xf] }
0x1261   : > { %v10286_v45 = vrot.slane %v11253_v59, %v20108_v21 }
0x1262   : > { %v9408_v35 = vpop.permute.xlu1 %9407  ;;  %v9406_v24 = vpop.permute.xlu0 %9405 }
0x1263   : > { %v9413_v7 = vsel %vm446_vm0, %v9406_v24, %v9408_v35  ;;  %v9421_v6 = vmul.f32 %v9406_v24, %v20250_v50  ;;  %v9426_v50 = vmul.f32 %v9406_v24, %v20258_v47  ;;  %v10294_v24 = vrot.slane %v11253_v59, %v20095_v0 }
0x1264   : > { %v9422_v57 = vmul.f32 %v9413_v7, %v20256_v42  ;;  %v20306_v42 = vld [vmem:[#allocation171_spill] sm:$0xff]  ;;  %v9427_v19 = vmul.f32 %v9413_v7, %v20264_v49  ;;  %v10290_v7 = vrot.slane %v11253_v59, %v20061_v8 }
0x1265   : > { %9441 = vrot.lane.b32.xlu0 %v9421_v6, %s12217_s27  ;;  %v18978_v6 = vld [vmem:[%s19320_s6 + $0xa2] ss:$8 sm:$0xf] }
0x1266   : > { %v9412_v40 = vpop.permute.xlu1 %9411  ;;  %9443 = vrot.lane.b32.xlu1 %v9422_v57, %s12217_s27  ;;  %v9410_v20 = vpop.permute.xlu0 %9409  ;;  %v9808_v57 = vrot.slane %v18978_v6, %v20123_v63 }
0x1267   : > { %v9414_v34 = vsel %vm446_vm0, %v9408_v35, %v9410_v20  ;;  %v9415_v53 = vsel %vm446_vm0, %v9410_v20, %v9412_v40  ;;  %v9425_v58 = vmul.f32 %v9412_v40, %v20306_v42  ;;  %v9430_v47 = vmul.f32 %v20307_v48, %v9412_v40 }
0x1268   : > { %v9423_v25 = vmul.f32 %v9414_v34, %v17958_v60  ;;  %v9424_v27 = vmul.f32 0.0, %v9415_v53  ;;  %v9428_v56 = vmul.f32 %v17935_v43, %v9414_v34  ;;  %v11248_v60 = vld [vmem:[%s19320_s6 + $0xa3] ss:$8 sm:$0xf]  ;;  %v10282_v35 = vrot.slane %v11253_v59, %v20123_v63 }
0x1269   : > { %v9851_v55 = vrot.slane %v11248_v60, %v20108_v21  ;;  %v9847_v49 = vrot.slane %v11248_v60, %v20123_v63  ;;  %v9859_v43 = vrot.slane %v11248_v60, %v20095_v0  ;;  %v9855_v52 = vrot.slane %v11248_v60, %v20061_v8 }
0x126a   : > { %9447 = vrot.lane.b32.xlu1 %v9424_v27, %s12217_s27  ;;  %9445 = vrot.lane.b32.xlu0 %v9423_v25, %s12217_s27  ;;  %v9816_v53 = vrot.slane %v18978_v6, %v20061_v8  ;;  %v9825_v25 = vmul.f32 %v9808_v57, %v18652_v28  ;;  %v9829_v2 = vmul.f32 %v18648_v22, %v9808_v57 }
0x126c   : > { %v9827_v60 = vmul.f32 %v9816_v53, %v18646_v16 }
0x126e   : > { %9451 = vrot.lane.b32.xlu1 %v9426_v50, %s12217_s27  ;;  %9449 = vrot.lane.b32.xlu0 %v9425_v58, %s12217_s27 }
0x1272   : > { %9455 = vrot.lane.b32.xlu1 %v9428_v56, %s12217_s27  ;;  %9453 = vrot.lane.b32.xlu0 %v9427_v19, %s12217_s27 }
0x1276   : > { %9459 = vrot.lane.b32.xlu1 %v9430_v47, %s12217_s27  ;;  %9457 = vrot.lane.b32.xlu0 %v9424_v27, %s12217_s27 }
0x127a   : > { %9862 = vrot.lane.b32.xlu1 %v9851_v55, %s12219_s17  ;;  %9860 = vrot.lane.b32.xlu0 %v9847_v49, %s12219_s17  ;;  %v9820_v55 = vrot.slane %v18978_v6, %v20095_v0 }
0x127c   : > { %v9832_v59 = vmul.f32 %v9820_v55, %v18658_v44 }
0x127e   : > { %9866 = vrot.lane.b32.xlu1 %v9859_v43, %s12219_s17  ;;  %9864 = vrot.lane.b32.xlu0 %v9855_v52, %s12219_s17 }
0x1282   : > { %9961 = vrot.lane.b32.xlu1 %v9950_v26, %s12217_s27  ;;  %9959 = vrot.lane.b32.xlu0 %v9946_v23, %s12217_s27  ;;  %v9828_v26 = vmul.f32 %v9820_v55, %v18650_v18 }
0x1286   : > { %9965 = vrot.lane.b32.xlu1 %v9958_v37, %s12217_s27  ;;  %9963 = vrot.lane.b32.xlu0 %v9954_v51, %s12217_s27 }
0x128a   : > { %10060 = vrot.lane.b32.xlu1 %v10049_v29, %s12218_s30  ;;  %10058 = vrot.lane.b32.xlu0 %v10045_v41, %s12218_s30 }
0x128e   : > { %10064 = vrot.lane.b32.xlu1 %v10057_v9, %s12218_s30  ;;  %10062 = vrot.lane.b32.xlu0 %v10053_v36, %s12218_s30 }
0x1292   : > { %10198 = vrot.lane.b32.xlu1 %v10187_v12, %s12219_s17  ;;  %10196 = vrot.lane.b32.xlu0 %v10183_v61, %s12219_s17  ;;  %v9831_v61 = vmul.f32 %v9816_v53, %v18654_v62 }
0x1296   : > { %10202 = vrot.lane.b32.xlu1 %v10195_v46, %s12219_s17  ;;  %10200 = vrot.lane.b32.xlu0 %v10191_v15, %s12219_s17 }
0x129a   : > { %10297 = vrot.lane.b32.xlu1 %v10286_v45, %s12217_s27  ;;  %10295 = vrot.lane.b32.xlu0 %v10282_v35, %s12217_s27 }
0x129e   : > { %10301 = vrot.lane.b32.xlu1 %v10294_v24, %s12217_s27  ;;  %10299 = vrot.lane.b32.xlu0 %v10290_v7, %s12217_s27 }
0x12d7   : > { %v9442_v40 = vpop.permute.xlu0 %9441 }
0x12d8   : > { %v9444_v20 = vpop.permute.xlu1 %9443 }
0x12d9   : > { %v9461_v34 = vsel %vm446_vm0, %v9442_v40, %v9444_v20 }
0x12da   : > { %v9477_v27 = vadd.f32 %v9461_v34, %v18869_v38 }
0x12dc   : > { %v9448_v50 = vpop.permute.xlu1 %9447  ;;  %v9446_v42 = vpop.permute.xlu0 %9445  ;;  %v18987_v58 = vadd.f32 %v9825_v25, %v9477_v27 }
0x12dd   : > { %v9462_v19 = vsel %vm446_vm0, %v9444_v20, %v9446_v42  ;;  %v9463_v56 = vsel %vm446_vm0, %v9446_v42, %v9448_v50 }
0x12de   : > { %v18993_v48 = vadd.f32 %v9462_v19, %v18874_v1  ;;  %v9479_v47 = vadd.f32 %v9463_v56, %v18877_v31 }
0x12e0   : > { %v9452_v49 = vpop.permute.xlu1 %9451  ;;  %v9450_v38 = vpop.permute.xlu0 %9449  ;;  %v18998_v43 = vadd.f32 %v9827_v60, %v9479_v47 }
0x12e1   : > { %v9464_v52 = vsel %vm446_vm0, %v9448_v50, %v9450_v38 }
0x12e2   : > { %v9480_v5 = vadd.f32 %v9464_v52, %v18881_v11 }
0x12e4   : > { %v9456_v23 = vpop.permute.xlu1 %9455  ;;  %v9454_v37 = vpop.permute.xlu0 %9453  ;;  %v19003_v51 = vadd.f32 %v9828_v26, %v9480_v5 }
0x12e5   : > { %v9465_v1 = vsel %vm446_vm0, %v9452_v49, %v9454_v37  ;;  %v9466_v31 = vsel %vm446_vm0, %v9454_v37, %v9456_v23 }
0x12e6   : > { %v9481_v29 = vadd.f32 %v9465_v1, %v18886_v39  ;;  %v19010_v41 = vadd.f32 %v9466_v31, %v18889_v4 }
0x12e8   : > { %v9460_v9 = vpop.permute.xlu1 %9459  ;;  %v9458_v36 = vpop.permute.xlu0 %9457  ;;  %v19012_v11 = vadd.f32 %v9829_v2, %v9481_v29 }
0x12e9   : > { %v9467_v3 = vsel %vm446_vm0, %v9456_v23, %v9458_v36  ;;  %v9468_v12 = vsel %vm446_vm0, %v9458_v36, %v9460_v9 }
0x12ea   : > { %v9483_v46 = vadd.f32 %v9467_v3, %v18894_v54  ;;  %v9484_v15 = vadd.f32 %v9468_v12, %v18897_v10 }
0x12ec   : > { %v9863_v39 = vpop.permute.xlu1 %9862  ;;  %v9861_v45 = vpop.permute.xlu0 %9860  ;;  %v19020_v4 = vadd.f32 %v9831_v61, %v9483_v46  ;;  %v19022_v35 = vadd.f32 %v9832_v59, %v9484_v15 }
0x12ed   : > { %v9868_v24 = vsel %vm811_vm6, %v9861_v45, %v9863_v39  ;;  %v9876_v7 = vmul.f32 %v9861_v45, %v18652_v28  ;;  %v9881_v25 = vmul.f32 %v18648_v22, %v9861_v45 }
0x12ee   : > { %v9877_v57 = vmul.f32 0.0, %v9868_v24 }
0x12ef   : > { %9896 = vrot.lane.b32.xlu0 %v9876_v7, %s12218_s30 }
0x12f0   : > { %v9867_v40 = vpop.permute.xlu1 %9866  ;;  %9898 = vrot.lane.b32.xlu1 %v9877_v57, %s12218_s30  ;;  %v9865_v54 = vpop.permute.xlu0 %9864 }
0x12f1   : > { %v9869_v10 = vsel %vm811_vm6, %v9863_v39, %v9865_v54  ;;  %v9870_v20 = vsel %vm811_vm6, %v9865_v54, %v9867_v40  ;;  %v9880_v27 = vmul.f32 %v9867_v40, %v18656_v33  ;;  %v9885_v56 = vmul.f32 %v9867_v40, %v18675_v30 }
0x12f2   : > { %v9878_v34 = vmul.f32 %v9869_v10, %v18646_v16  ;;  %v9879_v53 = vmul.f32 %v9870_v20, %v18650_v18  ;;  %v9883_v50 = vmul.f32 %v9869_v10, %v18654_v62  ;;  %v9884_v60 = vmul.f32 %v9870_v20, %v18658_v44 }
0x12f4   : > { %9902 = vrot.lane.b32.xlu1 %v9879_v53, %s12218_s30  ;;  %9900 = vrot.lane.b32.xlu0 %v9878_v34, %s12218_s30  ;;  %v9962_v42 = vpop.permute.xlu1 %9961  ;;  %v9960_v19 = vpop.permute.xlu0 %9959 }
0x12f5   : > { %v9967_v47 = vsel %vm446_vm0, %v9960_v19, %v9962_v42  ;;  %v9975_v55 = vmul.f32 0.0, %v9960_v19 }
0x12f6   : > { %v9976_v52 = vmul.f32 %v9967_v47, %v18646_v16  ;;  %v9981_v31 = vmul.f32 %v9967_v47, %v18654_v62 }
0x12f8   : > { %9906 = vrot.lane.b32.xlu1 %v9881_v25, %s12218_s30  ;;  %9904 = vrot.lane.b32.xlu0 %v9880_v27, %s12218_s30  ;;  %v9966_v49 = vpop.permute.xlu1 %9965  ;;  %v9964_v38 = vpop.permute.xlu0 %9963 }
0x12f9   : > { %v9968_v5 = vsel %vm446_vm0, %v9962_v42, %v9964_v38  ;;  %v9969_v26 = vsel %vm446_vm0, %v9964_v38, %v9966_v49  ;;  %v9979_v1 = vmul.f32 %v9966_v49, %v18660_v32  ;;  %v9984_v36 = vmul.f32 %v9966_v49, %v18686_v13 }
0x12fa   : > { %v9977_v23 = vmul.f32 %v9968_v5, %v18650_v18  ;;  %v9978_v37 = vmul.f32 %v9969_v26, %v18656_v33  ;;  %v9982_v2 = vmul.f32 %v9968_v5, %v18658_v44  ;;  %v9983_v3 = vmul.f32 %v9969_v26, %v18675_v30 }
0x12fc   : > { %9910 = vrot.lane.b32.xlu1 %v9883_v50, %s12218_s30  ;;  %9908 = vrot.lane.b32.xlu0 %v9877_v57, %s12218_s30  ;;  %v10061_v29 = vpop.permute.xlu1 %10060  ;;  %v10059_v9 = vpop.permute.xlu0 %10058 }
0x12fd   : > { %v10066_v12 = vsel %vm762_vm5, %v10059_v9, %v10061_v29  ;;  %v10074_v15 = vmul.f32 %v10059_v9, %v18646_v16  ;;  %v10079_v10 = vmul.f32 %v10059_v9, %v18654_v62 }
0x12fe   : > { %v10075_v59 = vmul.f32 %v10066_v12, %v18650_v18  ;;  %v10080_v50 = vmul.f32 %v10066_v12, %v18658_v44 }
0x1300   : > { %9914 = vrot.lane.b32.xlu1 %v9885_v56, %s12218_s30  ;;  %9912 = vrot.lane.b32.xlu0 %v9884_v60, %s12218_s30  ;;  %v10065_v61 = vpop.permute.xlu1 %10064  ;;  %v10063_v46 = vpop.permute.xlu0 %10062 }
0x1301   : > { %v10067_v39 = vsel %vm762_vm5, %v10061_v29, %v10063_v46  ;;  %v10068_v45 = vsel %vm762_vm5, %v10063_v46, %v10065_v61  ;;  %v10078_v20 = vmul.f32 %v10065_v61, %v18664_v14  ;;  %v10083_v56 = vmul.f32 %v18662_v17, %v10065_v61 }
0x1302   : > { %v10076_v24 = vmul.f32 %v10067_v39, %v18656_v33  ;;  %v10077_v7 = vmul.f32 %v10068_v45, %v18660_v32  ;;  %v10081_v42 = vmul.f32 %v10067_v39, %v18675_v30  ;;  %v10082_v60 = vmul.f32 %v10068_v45, %v18686_v13 }
0x1304   : > { %9995 = vrot.lane.b32.xlu0 %v9975_v55, %s12217_s27  ;;  %9997 = vrot.lane.b32.xlu1 %v9976_v52, %s12217_s27  ;;  %v10199_v19 = vpop.permute.xlu1 %10198  ;;  %v10197_v62 = vpop.permute.xlu0 %10196 }
0x1305   : > { %v10204_v47 = vsel %vm811_vm6, %v10197_v62, %v10199_v19  ;;  %v10212_v38 = vmul.f32 %v10197_v62, %v18650_v18 }
0x1306   : > { %v10213_v52 = vmul.f32 %v10204_v47, %v18656_v33 }
0x1308   : > { %10001 = vrot.lane.b32.xlu1 %v9978_v37, %s12217_s27  ;;  %9999 = vrot.lane.b32.xlu0 %v9977_v23, %s12217_s27  ;;  %v10201_v49 = vpop.permute.xlu0 %10200 }
0x1309   : > { %v10205_v5 = vsel %vm811_vm6, %v10199_v19, %v10201_v49 }
0x130a   : > { %v10214_v23 = vmul.f32 %v10205_v5, %v18660_v32  ;;  %v10219_v29 = vmul.f32 %v10205_v5, %v18686_v13 }
0x130c   : > { %10005 = vrot.lane.b32.xlu1 %v9975_v55, %s12217_s27  ;;  %10003 = vrot.lane.b32.xlu0 %v9979_v1, %s12217_s27  ;;  %v10203_v55 = vpop.permute.xlu1 %10202  ;;  %v10217_v1 = vmul.f32 %v10197_v62, %v18658_v44 }
0x130d   : > { %v10206_v26 = vsel %vm811_vm6, %v10201_v49, %v10203_v55 }
0x130e   : > { %v10215_v37 = vmul.f32 %v10206_v26, %v18664_v14 }
0x1310   : > { %10009 = vrot.lane.b32.xlu1 %v9982_v2, %s12217_s27  ;;  %10007 = vrot.lane.b32.xlu0 %v9981_v31, %s12217_s27  ;;  %v10216_v31 = vmul.f32 0.0, %v10203_v55  ;;  %v10218_v2 = vmul.f32 %v10204_v47, %v18675_v30  ;;  %v10298_v9 = vpop.permute.xlu1 %10297 }
0x1314   : > { %10013 = vrot.lane.b32.xlu1 %v9984_v36, %s12217_s27  ;;  %10011 = vrot.lane.b32.xlu0 %v9983_v3, %s12217_s27  ;;  %v10296_v36 = vpop.permute.xlu0 %10295  ;;  %v10220_v3 = vmul.f32 %v18662_v17, %v10206_v26  ;;  %v10302_v61 = vpop.permute.xlu1 %10301 }
0x1315   : > { %v10303_v12 = vsel %vm446_vm0, %v10296_v36, %v10298_v9  ;;  %v10320_v19 = vmul.f32 %v18648_v22, %v10302_v61 }
0x1316   : > { %v10312_v39 = vmul.f32 %v10303_v12, %v18660_v32 }
0x1317   : > { %v19077_v57 = vpop.f32.mrb[74].mxu0  ;;  %v19079_v16 = vpop.f32.mrb[76].mxu1 }
0x1318   : > { %10094 = vrot.lane.b32.xlu0 %v10074_v15, %s12219_s17  ;;  %10096 = vrot.lane.b32.xlu1 %v10075_v59, %s12219_s17  ;;  %v19081_v40 = vpop.f32.mrb[75].mxu0  ;;  %v19083_v54 = vpop.f32.mrb[77].mxu1  ;;  %v10311_v59 = vmul.f32 %v10296_v36, %v18656_v33 }
0x1319   : > { %v10300_v46 = vpop.permute.xlu0 %10299 }
0x131a   : > { %v10305_v15 = vsel %vm446_vm0, %v10300_v46, %v10302_v61  ;;  %v10304_v45 = vsel %vm446_vm0, %v10298_v9, %v10300_v46 }
0x131b   : > { %v19089_v34 = vpop.f32.mrb[76].mxu0  ;;  %v19091_v53 = vpop.f32.mrb[78].mxu1 }
0x131c   : > { %10100 = vrot.lane.b32.xlu1 %v10077_v7, %s12219_s17  ;;  %10098 = vrot.lane.b32.xlu0 %v10076_v24, %s12219_s17  ;;  %v19093_v25 = vpop.f32.mrb[77].mxu0  ;;  %v19095_v27 = vpop.f32.mrb[79].mxu1  ;;  %v10314_v24 = vmul.f32 0.0, %v10305_v15  ;;  %v10313_v7 = vmul.f32 %v10304_v45, %v18664_v14 }
0x1320   : > { %10104 = vrot.lane.b32.xlu1 %v10079_v10, %s12219_s17  ;;  %10102 = vrot.lane.b32.xlu0 %v10078_v20, %s12219_s17  ;;  %v10316_v10 = vmul.f32 %v10296_v36, %v18675_v30  ;;  %v10315_v20 = vmul.f32 %v10302_v61, %v18652_v28  ;;  %v9812_v28 = vrot.slane %v18978_v6, %v20108_v21 }
0x1324   : > { %10108 = vrot.lane.b32.xlu1 %v10081_v42, %s12219_s17  ;;  %10106 = vrot.lane.b32.xlu0 %v10080_v50, %s12219_s17  ;;  %v10317_v50 = vmul.f32 %v10303_v12, %v18686_v13  ;;  %v10318_v42 = vmul.f32 %v18662_v17, %v10304_v45 }
0x1328   : > { %10112 = vrot.lane.b32.xlu1 %v10083_v56, %s12219_s17  ;;  %10110 = vrot.lane.b32.xlu0 %v10082_v60, %s12219_s17  ;;  %v9826_v60 = vmul.f32 0.0, %v9812_v28 }
0x132c   : > { %10232 = vrot.lane.b32.xlu0 %v10212_v38, %s12218_s30  ;;  %10234 = vrot.lane.b32.xlu1 %v10213_v52, %s12218_s30  ;;  %v9834_v38 = vadd.f32 %v9826_v60, %v18993_v48 }
0x1330   : > { %10238 = vrot.lane.b32.xlu1 %v10215_v37, %s12218_s30  ;;  %10236 = vrot.lane.b32.xlu0 %v10214_v23, %s12218_s30 }
0x1334   : > { %10242 = vrot.lane.b32.xlu1 %v10217_v1, %s12218_s30  ;;  %10240 = vrot.lane.b32.xlu0 %v10216_v31, %s12218_s30 }
0x1338   : > { %10246 = vrot.lane.b32.xlu1 %v10219_v29, %s12218_s30  ;;  %10244 = vrot.lane.b32.xlu0 %v10218_v2, %s12218_s30 }
0x133c   : > { %10250 = vrot.lane.b32.xlu1 %v10216_v31, %s12218_s30  ;;  %10248 = vrot.lane.b32.xlu0 %v10220_v3, %s12218_s30 }
0x1340   : > { %10331 = vrot.lane.b32.xlu0 %v10311_v59, %s12217_s27  ;;  %10333 = vrot.lane.b32.xlu1 %v10312_v39, %s12217_s27 }
0x1344   : > { %10337 = vrot.lane.b32.xlu1 %v10314_v24, %s12217_s27  ;;  %10335 = vrot.lane.b32.xlu0 %v10313_v7, %s12217_s27 }
0x1348   : > { %10341 = vrot.lane.b32.xlu1 %v10316_v10, %s12217_s27  ;;  %10339 = vrot.lane.b32.xlu0 %v10315_v20, %s12217_s27  ;;  %v11251_v20 = vld [vmem:[%s19320_s6 + $0xa6] ss:$8 sm:$0xf] }
0x134c   : > { %10345 = vrot.lane.b32.xlu1 %v10318_v42, %s12217_s27  ;;  %10343 = vrot.lane.b32.xlu0 %v10317_v50, %s12217_s27 }
0x1350   : > { %10349 = vrot.lane.b32.xlu1 %v10320_v19, %s12217_s27  ;;  %10347 = vrot.lane.b32.xlu0 %v10314_v24, %s12217_s27  ;;  %v10144_v19 = vrot.slane %v11251_v20, %v20123_v63 }
0x1361   : > { %v9897_v62 = vpop.permute.xlu0 %9896 }
0x1362   : > { %v9899_v56 = vpop.permute.xlu1 %9898 }
0x1363   : > { %v9916_v47 = vsel %vm762_vm5, %v9897_v62, %v9899_v56 }
0x1364   : > { %v9932_v55 = vadd.f32 %v9916_v47, %v18987_v58  ;;  %v9838_v58 = vadd.f32 %v9826_v60, %v19010_v41 }
0x1366   : > { %v9903_v49 = vpop.permute.xlu1 %9902  ;;  %v9901_v52 = vpop.permute.xlu0 %9900 }
0x1367   : > { %v9917_v22 = vsel %vm762_vm5, %v9899_v56, %v9901_v52  ;;  %v9918_v5 = vsel %vm762_vm5, %v9901_v52, %v9903_v49 }
0x1368   : > { %v9933_v26 = vadd.f32 %v9917_v22, %v9834_v38  ;;  %v9934_v23 = vadd.f32 %v9918_v5, %v18998_v43  ;;  %v10148_v38 = vrot.slane %v11251_v20, %v20108_v21  ;;  %v10161_v5 = vmul.f32 %v10144_v19, %v18650_v18 }
0x136a   : > { %v9907_v37 = vpop.permute.xlu1 %9906  ;;  %v9905_v6 = vpop.permute.xlu0 %9904 }
0x136b   : > { %v9919_v1 = vsel %vm762_vm5, %v9903_v49, %v9905_v6  ;;  %v10156_v6 = vrot.slane %v11251_v20, %v20095_v0 }
0x136c   : > { %v9935_v31 = vadd.f32 %v9919_v1, %v19003_v51 }
0x136e   : > { %v9911_v2 = vpop.permute.xlu1 %9910  ;;  %v9909_v29 = vpop.permute.xlu0 %9908 }
0x136f   : > { %v9920_v48 = vsel %vm762_vm5, %v9907_v37, %v9909_v29  ;;  %v9921_v9 = vsel %vm762_vm5, %v9909_v29, %v9911_v2  ;;  %v10152_v37 = vrot.slane %v11251_v20, %v20061_v8 }
0x1370   : > { %v19161_v36 = vadd.f32 %v9920_v48, %v19012_v11  ;;  %v19163_v3 = vadd.f32 %v9921_v9, %v9838_v58 }
0x1372   : > { %v9915_v43 = vpop.permute.xlu1 %9914  ;;  %v9913_v12 = vpop.permute.xlu0 %9912 }
0x1373   : > { %v9922_v61 = vsel %vm762_vm5, %v9911_v2, %v9913_v12  ;;  %v9923_v46 = vsel %vm762_vm5, %v9913_v12, %v9915_v43 }
0x1374   : > { %v19168_v51 = vadd.f32 %v9922_v61, %v19020_v4  ;;  %v19171_v41 = vadd.f32 %v9923_v46, %v19022_v35  ;;  %v10700_v35 = vld [vmem:[%s19325_s11] sm:$0xf]  ;;  %v10162_v61 = vmul.f32 %v10148_v38, %v18656_v33 }
0x1375   : > { %v10705_v22 = vrot.slane %v10700_v35, %v20123_v63  ;;  %v10709_v48 = vrot.slane %v10700_v35, %v20108_v21 }
0x1376   : > { %v9998_v15 = vpop.permute.xlu1 %9997  ;;  %v9996_v59 = vpop.permute.xlu0 %9995 }
0x1377   : > { %v10015_v4 = vsel %vm446_vm0, %v9996_v59, %v9998_v15  ;;  %v10789_v59 = vadd.f32 %v19077_v57, %v10705_v22 }
0x1378   : > { %v10031_v28 = vadd.f32 %v10015_v4, %v9932_v55  ;;  %v19190_v55 = vrot.slane %v10700_v35, %v20061_v8 }
0x137a   : > { %v10002_v39 = vpop.permute.xlu1 %10001  ;;  %v10000_v45 = vpop.permute.xlu0 %9999 }
0x137b   : > { %v10016_v60 = vsel %vm446_vm0, %v9998_v15, %v10000_v45  ;;  %v10017_v47 = vsel %vm446_vm0, %v10000_v45, %v10002_v39  ;;  %v10717_v45 = vrot.slane %v10700_v35, %v20095_v0 }
0x137c   : > { %v10032_v1 = vadd.f32 %v10016_v60, %v9933_v26  ;;  %v10033_v2 = vadd.f32 %v10017_v47, %v9934_v23  ;;  %v10163_v26 = vmul.f32 %v10152_v37, %v18660_v32  ;;  %v10866_v23 = vadd.f32 %v19079_v16, %v19190_v55 }
0x137d   : > { %v10876_v60 = vsub.f32 0.0, %v10789_v59  ;;  %v10165_v47 = vmul.f32 %v10144_v19, %v18658_v44  ;;  %v10795_v59 = vadd.f32 %v19089_v34, %v10705_v22 }
0x137e   : > { %v10006_v11 = vpop.permute.xlu1 %10005  ;;  %v10004_v24 = vpop.permute.xlu0 %10003  ;;  %v10878_v35 = vsub.f32 0.0, %v10866_v23 }
0x137f   : > { %v10018_v43 = vsel %vm446_vm0, %v10002_v39, %v10004_v24  ;;  %v10791_v24 = vadd.f32 %v19081_v40, %v10709_v48  ;;  %v10880_v34 = vsub.f32 0.0, %v10795_v59 }
0x1380   : > { %v10034_v20 = vadd.f32 %v10018_v43, %v9935_v31  ;;  %v10868_v31 = vadd.f32 %v19083_v54, %v10717_v45  ;;  %v10884_v54 = vmul.f32 1.442695, %v10876_v60  ;;  %v10888_v19 = vmul.f32 1.442695, %v10878_v35 }
0x1382   : > { %v10010_v7 = vpop.permute.xlu1 %10009  ;;  %v10008_v10 = vpop.permute.xlu0 %10007  ;;  %v10879_v43 = vsub.f32 0.0, %v10868_v31  ;;  %12159 = vpow2.f32 %v10884_v54 }
0x1383   : > { %v10019_v33 = vsel %vm446_vm0, %v10006_v11, %v10008_v10  ;;  %v10020_v57 = vsel %vm446_vm0, %v10008_v10, %v10010_v7  ;;  %v10877_v11 = vsub.f32 0.0, %v10791_v24  ;;  %12161 = vpow2.f32 %v10888_v19 }
0x1384   : > { %v10035_v40 = vadd.f32 %v10019_v33, %v19161_v36  ;;  %v10166_v36 = vmul.f32 %v10148_v38, %v18675_v30  ;;  %v10890_v22 = vmul.f32 1.442695, %v10879_v43 }
0x1386   : > { %v10014_v50 = vpop.permute.xlu1 %10013  ;;  %v10012_v42 = vpop.permute.xlu0 %10011 }
0x1387   : > { %v10021_v10 = vsel %vm446_vm0, %v10010_v7, %v10012_v42 }
0x138a   : > { %v10097_v62 = vpop.permute.xlu1 %10096  ;;  %v10095_v56 = vpop.permute.xlu0 %10094 }
0x138b   : > { %v10114_v49 = vsel %vm811_vm6, %v10095_v56, %v10097_v62  ;;  %v10164_v56 = vmul.f32 %v10156_v6, %v18664_v14  ;;  %v10022_v14 = vsel %vm446_vm0, %v10012_v42, %v10014_v50 }
0x138c   : > { %v10130_v52 = vadd.f32 %v10114_v49, %v10031_v28  ;;  %v10036_v49 = vadd.f32 %v10020_v57, %v19163_v3  ;;  %v10168_v3 = vmul.f32 %v18662_v17, %v10156_v6  ;;  %v10038_v7 = vadd.f32 %v10022_v14, %v19171_v41 }
0x138d   : > { %v10872_v41 = vadd.f32 %v19091_v53, %v19190_v55  ;;  %v12160_v55 = vpop.eup %12159 }
0x138e   : > { %v10101_v58 = vpop.permute.xlu1 %10100  ;;  %v10099_v29 = vpop.permute.xlu0 %10098  ;;  %v19193_v9 = vadd.f32 %v10161_v5, %v10130_v52  ;;  %v10900_v35 = vadd.f32 1.0, %v12160_v55 }
0x138f   : > { %v10115_v12 = vsel %vm811_vm6, %v10097_v62, %v10099_v29  ;;  %v10116_v18 = vsel %vm811_vm6, %v10099_v29, %v10101_v58  ;;  %v12162_v60 = vpop.eup %12161 }
0x1390   : > { %v10131_v46 = vadd.f32 %v10115_v12, %v10032_v1  ;;  %v10132_v15 = vadd.f32 %v10116_v18, %v10033_v2  ;;  %v10167_v12 = vmul.f32 %v10152_v37, %v18686_v13  ;;  %v10037_v18 = vadd.f32 %v10021_v10, %v19168_v51  ;;  %v10375_v10 = vld [vmem:[%s19321_s7] sm:$0xf] }
0x1391   : > { %v10797_v51 = vadd.f32 %v19093_v25, %v10709_v48  ;;  %v10892_v25 = vmul.f32 1.442695, %v10880_v34 }
0x1392   : > { %v10105_v4 = vpop.permute.xlu1 %10104  ;;  %v10103_v39 = vpop.permute.xlu0 %10102  ;;  %v19205_v28 = vadd.f32 %v10162_v61, %v10131_v46  ;;  %v19207_v62 = vadd.f32 %v10163_v26, %v10132_v15  ;;  %v10886_v15 = vmul.f32 1.442695, %v10877_v11 }
0x1393   : > { %v10117_v32 = vsel %vm811_vm6, %v10101_v58, %v10103_v39  ;;  %v10882_v39 = vsub.f32 0.0, %v10872_v41 }
0x1394   : > { %v10133_v16 = vadd.f32 %v10117_v32, %v10034_v20  ;;  %12163 = vpow2.f32 %v10886_v15  ;;  %v10881_v20 = vsub.f32 0.0, %v10797_v51 }
0x1395   : > { %12165 = vpow2.f32 %v10890_v22  ;;  %v10896_v57 = vmul.f32 1.442695, %v10882_v39 }
0x1396   : > { %v10109_v52 = vpop.permute.xlu1 %10108  ;;  %v10107_v5 = vpop.permute.xlu0 %10106  ;;  %v19217_v1 = vadd.f32 %v10164_v56, %v10133_v16  ;;  %v10894_v48 = vmul.f32 1.442695, %v10881_v20  ;;  %12167 = vpow2.f32 %v10892_v25 }
0x1397   : > { %v10118_v2 = vsel %vm811_vm6, %v10105_v4, %v10107_v5  ;;  %v10119_v58 = vsel %vm811_vm6, %v10107_v5, %v10109_v52  ;;  %v10874_v4 = vadd.f32 %v19095_v27, %v10717_v45 }
0x1398   : > { %v10134_v29 = vadd.f32 %v10118_v2, %v10035_v40  ;;  %v10135_v44 = vadd.f32 %v10119_v58, %v10036_v49  ;;  %12169 = vpow2.f32 %v10894_v48 }
0x1399   : > { %v10883_v53 = vsub.f32 0.0, %v10874_v4  ;;  %12171 = vpow2.f32 %v10896_v57 }
0x139a   : > { %v10113_v50 = vpop.permute.xlu1 %10112  ;;  %v10111_v42 = vpop.permute.xlu0 %10110  ;;  %v19228_v61 = vadd.f32 %v10165_v47, %v10134_v29  ;;  %v19230_v46 = vadd.f32 %v10166_v36, %v10135_v44  ;;  %v10902_v47 = vadd.f32 1.0, %v12162_v60  ;;  %v19257_v44 = vrot.slane %v10375_v10, %v20123_v63 }
0x139b   : > { %v10120_v30 = vsel %vm811_vm6, %v10109_v52, %v10111_v42  ;;  %v10121_v17 = vsel %vm811_vm6, %v10111_v42, %v10113_v50  ;;  %v10898_v16 = vmul.f32 1.442695, %v10883_v53  ;;  %v10384_v42 = vrot.slane %v10375_v10, %v20108_v21 }
0x139c   : > { %v10136_v38 = vadd.f32 %v10120_v30, %v10037_v18  ;;  %v10137_v13 = vadd.f32 %v10121_v17, %v10038_v7  ;;  %v19267_v17 = vrot.slane %v10375_v10, %v20061_v8 }
0x139d   : > { %12173 = vpow2.f32 %v10898_v16 }
0x139e   : > { %v10235_v37 = vpop.permute.xlu1 %10234  ;;  %v10233_v6 = vpop.permute.xlu0 %10232  ;;  %v19238_v26 = vadd.f32 %v10167_v12, %v10136_v38  ;;  %v19240_v23 = vadd.f32 %v10168_v3, %v10137_v13  ;;  %12175 = vrcp.f32 %v10900_v35 }
0x139f   : > { %v12164_v31 = vpop.eup %12163  ;;  %v10252_v11 = vsel %vm762_vm5, %v10233_v6, %v10235_v37  ;;  %12177 = vrcp.f32 %v10902_v47 }
0x13a0   : > { %v10901_v40 = vadd.f32 1.0, %v12164_v31  ;;  %v12166_v49 = vpop.eup %12165  ;;  %v10268_v54 = vadd.f32 %v10252_v11, %v19193_v9 }
0x13a1   : > { %v12168_v14 = vpop.eup %12167  ;;  %v10903_v2 = vadd.f32 1.0, %v12166_v49 }
0x13a2   : > { %v10239_v24 = vpop.permute.xlu1 %10238  ;;  %v10237_v33 = vpop.permute.xlu0 %10236  ;;  %12179 = vrcp.f32 %v10901_v40  ;;  %v10904_v18 = vadd.f32 1.0, %v12168_v14 }
0x13a3   : > { %v12170_v58 = vpop.eup %12169  ;;  %v10253_v3 = vsel %vm762_vm5, %v10235_v37, %v10237_v33  ;;  %v10254_v19 = vsel %vm762_vm5, %v10237_v33, %v10239_v24  ;;  %12181 = vrcp.f32 %v10903_v2 }
0x13a4   : > { %v12172_v12 = vpop.eup %12171  ;;  %v10905_v50 = vadd.f32 1.0, %v12170_v58  ;;  %v10269_v15 = vadd.f32 %v10253_v3, %v19205_v28  ;;  %v10270_v63 = vadd.f32 %v10254_v19, %v19207_v62  ;;  %12183 = vrcp.f32 %v10904_v18 }
0x13a5   : > { %v10906_v21 = vadd.f32 1.0, %v12172_v12 }
0x13a6   : > { %v19243_v32 = vpop.permute.xlu1 %10242  ;;  %v10241_v56 = vpop.permute.xlu0 %10240  ;;  %12185 = vrcp.f32 %v10905_v50 }
0x13a7   : > { %v12174_v9 = vpop.eup %12173  ;;  %v10255_v28 = vsel %vm762_vm5, %v10239_v24, %v10241_v56  ;;  %v10392_v24 = vrot.slane %v10375_v10, %v20095_v0  ;;  %12187 = vrcp.f32 %v10906_v21 }
0x13a8   : > { %v12176_v13 = vpop.eup %12175  ;;  %v10907_v6 = vadd.f32 1.0, %v12174_v9  ;;  %v10271_v22 = vadd.f32 %v10255_v28, %v19217_v1 }
0x13a9   : > { %v12178_v34 = vpop.eup %12177 }
0x13aa   : > { %v19245_v27 = vpop.permute.xlu1 %10246  ;;  %v10245_v45 = vpop.permute.xlu0 %10244  ;;  %12189 = vrcp.f32 %v10907_v6 }
0x13ab   : > { %v10256_v48 = vsel %vm762_vm5, %v19243_v32, %v10245_v45  ;;  %v10257_v53 = vsel %vm762_vm5, %v10245_v45, %v19245_v27 }
0x13ac   : > { %v12180_v25 = vpop.eup %12179  ;;  %v10272_v16 = vadd.f32 %v10256_v48, %v19228_v61  ;;  %v10273_v60 = vadd.f32 %v10257_v53, %v19230_v46 }
0x13ad   : > { %v12182_v31 = vpop.eup %12181 }
0x13ae   : > { %v19247_v52 = vpop.permute.xlu1 %10250  ;;  %v19249_v5 = vpop.permute.xlu0 %10248 }
0x13af   : > { %v10258_v45 = vsel %vm762_vm5, %v19245_v27, %v19249_v5  ;;  %v10259_v47 = vsel %vm762_vm5, %v19249_v5, %v19247_v52  ;;  %v12184_v10 = vpop.eup %12183 }
0x13b0   : > { %v10274_v14 = vadd.f32 %v10258_v45, %v19238_v26  ;;  %v10275_v2 = vadd.f32 %v10259_v47, %v19240_v23  ;;  %v12186_v5 = vpop.eup %12185 }
0x13b1   : > { %v12188_v12 = vpop.eup %12187 }
0x13b2   : > { %v10334_v29 = vpop.permute.xlu1 %10333  ;;  %v10332_v36 = vpop.permute.xlu0 %10331 }
0x13b3   : > { %v10351_v43 = vsel %vm446_vm0, %v10332_v36, %v10334_v29 }
0x13b4   : > { %v10367_v7 = vadd.f32 %v10351_v43, %v10268_v54  ;;  %v12190_v18 = vpop.eup %12189 }
0x13b6   : > { %v10397_v59 = vadd.f32 %v19257_v44, %v10367_v7  ;;  %v10338_v30 = vpop.permute.xlu1 %10337  ;;  %v10336_v38 = vpop.permute.xlu0 %10335 }
0x13b7   : > { %v10352_v62 = vsel %vm446_vm0, %v10334_v29, %v10336_v38  ;;  %v10353_v51 = vsel %vm446_vm0, %v10336_v38, %v10338_v30 }
0x13b8   : > { %v10924_v41 = vmul.f32 %v12176_v13, %v10397_v59  ;;  %v10368_v8 = vadd.f32 %v10352_v62, %v10269_v15  ;;  %v10369_v37 = vadd.f32 %v10353_v51, %v10270_v63 }
0x13ba   : > { %10932 = vst [vmem:[%s19274_s19] sm:$0xff] %v10924_v41  ;;  %v10398_v20 = vadd.f32 %v10384_v42, %v10368_v8  ;;  %v10399_v4 = vadd.f32 %v19267_v17, %v10369_v37  ;;  %v10342_v39 = vpop.permute.xlu1 %10341  ;;  %v10340_v33 = vpop.permute.xlu0 %10339 }
0x13bb   : > { %v10354_v55 = vsel %vm446_vm0, %v10338_v30, %v10340_v33 }
0x13bc   : > { %v10925_v1 = vmul.f32 %v12180_v25, %v10398_v20  ;;  %v10926_v57 = vmul.f32 %v12178_v34, %v10399_v4  ;;  %v10370_v56 = vadd.f32 %v10354_v55, %v10271_v22 }
0x13be   : > { %10933 = vst [vmem:[%s19274_s19 + $0x8] sm:$0xff] %v10925_v1  ;;  %10934 = vst [vmem:[%s19274_s19 + $0x10] sm:$0xff] %v10926_v57  ;;  %v10400_v0 = vadd.f32 %v10392_v24, %v10370_v56  ;;  %v10346_v35 = vpop.permute.xlu1 %10345  ;;  %v10344_v32 = vpop.permute.xlu0 %10343 }
0x13bf   : > { %v10355_v40 = vsel %vm446_vm0, %v10342_v39, %v10344_v32  ;;  %v10356_v61 = vsel %vm446_vm0, %v10344_v32, %v10346_v35 }
0x13c0   : > { %v10927_v46 = vmul.f32 %v12182_v31, %v10400_v0  ;;  %v10371_v49 = vadd.f32 %v10355_v40, %v10272_v16  ;;  %v10372_v11 = vadd.f32 %v10356_v61, %v10273_v60 }
0x13c2   : > { %10935 = vst [vmem:[%s19274_s19 + $0x18] sm:$0xff] %v10927_v46  ;;  %v10401_v27 = vadd.f32 %v19257_v44, %v10371_v49  ;;  %v10402_v58 = vadd.f32 %v10384_v42, %v10372_v11  ;;  %v10350_v54 = vpop.permute.xlu1 %10349  ;;  %v10348_v52 = vpop.permute.xlu0 %10347 }
0x13c3   : > { %v10357_v29 = vsel %vm446_vm0, %v10346_v35, %v10348_v52  ;;  %v10358_v36 = vsel %vm446_vm0, %v10348_v52, %v10350_v54 }
0x13c4   : > { %v10928_v3 = vmul.f32 %v12184_v10, %v10401_v27  ;;  %v10929_v19 = vmul.f32 %v12186_v5, %v10402_v58  ;;  %v10373_v43 = vadd.f32 %v10357_v29, %v10274_v14  ;;  %v10374_v26 = vadd.f32 %v10358_v36, %v10275_v2 }
0x13c6   : > { %10936 = vst [vmem:[%s19274_s19 + $0x20] sm:$0xff] %v10928_v3  ;;  %10937 = vst [vmem:[%s19274_s19 + $0x28] sm:$0xff] %v10929_v19  ;;  %v10403_v23 = vadd.f32 %v19267_v17, %v10373_v43  ;;  %v10404_v44 = vadd.f32 %v10392_v24, %v10374_v26 }
0x13c8   : > { %v10930_v7 = vmul.f32 %v12188_v12, %v10403_v23  ;;  %v10931_v50 = vmul.f32 %v12190_v18, %v10404_v44 }
0x13ca   : > { %10938 = vst [vmem:[%s19274_s19 + $0x30] sm:$0xff] %v10930_v7  ;;  %10939 = vst [vmem:[%s19274_s19 + $0x38] sm:$0xff] %v10931_v50 }
0x13cb PF: > { %s22_s21 = sadd.s32 1, %s12214_s21  }
0x13cc   : > { %p19_p4 = scmp.ge.s32.totalorder %s22_s21, 4  }
0x13ce   :  { %21 = sbr.rel (!%p19_p4) target bundleno = 1 (0x1), region = 180 }

</bundles_post_ra>
